<compile_context>
chip_gen: v7x
topology: tpu7x:2x2x1
jax: 0.10.0
libtpu: 0.0.40
codegen_flags: <defaults>
</compile_context>

<pallas_src>
import functools

import jax
import jax.numpy as jnp
from jax.experimental import pallas as pl
from jax.experimental.pallas import tpu as pltpu

LRELU_SLOPE = 0.1  # modules.LRELU_SLOPE in VITS


# ----------------------------------------------------------------------------
# Pallas kernel: in-kernel Q-tap conv accumulation + bias + leaky_relu, bf16 out
# ----------------------------------------------------------------------------
def _conv_ktap_kernel(x_ref, w_ref, b_ref, o_ref, *, q_taps, hout, slope):
    # x_ref: (1, Hg, Cg) bf16   activation slab for one (batch*period) item
    # w_ref: (Q, Cg, tn) bf16   grouped weight tile
    # b_ref: (1, tn)     f32    bias tile
    # o_ref: (1, Hout, tn) bf16 output tile
    x = x_ref[0]                                        # (Hg, Cg)
    tn = o_ref.shape[-1]
    acc = jnp.zeros((hout, tn), jnp.float32)
    for q in range(q_taps):                             # static, unrolled tap loop
        acc = acc + jnp.dot(x[q:q + hout, :], w_ref[q],
                            preferred_element_type=jnp.float32)
    out = acc + b_ref[...]                              # (1, tn) f32 bias broadcast
    if slope is not None:                               # leaky_relu on the VPU
        out = jnp.where(out >= 0.0, out, out * slope)
    o_ref[0] = out.astype(o_ref.dtype)


def conv_ktap_pallas(xg, wg, bias, slope, hout):
    """xg: (N, Hg, Cg) bf16 grouped activations; wg: (Q, Cg, Cout) bf16; bias: (1, Cout) f32."""
    N, Hg, Cg = xg.shape
    Q, _, Cout = wg.shape
    tn = 512 if Cout % 512 == 0 else Cout               # Cout in {128, 512, 1024}
    grid = (Cout // tn, N)                               # j outer (weight reuse), n inner

    kernel = functools.partial(_conv_ktap_kernel, q_taps=Q, hout=hout, slope=slope)
    flops = 2 * N * hout * Q * Cg * Cout
    bytes_accessed = (xg.size * xg.dtype.itemsize * (Cout // tn)
                      + wg.size * wg.dtype.itemsize
                      + bias.size * 4
                      + N * hout * Cout * 2)

    return pl.pallas_call(
        kernel,
        out_shape=jax.ShapeDtypeStruct((N, hout, Cout), jnp.bfloat16),
        grid_spec=pltpu.PrefetchScalarGridSpec(
            num_scalar_prefetch=0,
            grid=grid,
            in_specs=[
                pl.BlockSpec((1, Hg, Cg), lambda j, n: (n, 0, 0)),
                pl.BlockSpec((Q, Cg, tn), lambda j, n: (0, 0, j)),
                pl.BlockSpec((1, tn), lambda j, n: (0, j)),
            ],
            out_specs=pl.BlockSpec((1, hout, tn), lambda j, n: (n, 0, j)),
        ),
        compiler_params=pltpu.CompilerParams(
            dimension_semantics=("parallel", "parallel")),
        cost_estimate=pl.CostEstimate(flops=flops, transcendentals=0,
                                      bytes_accessed=bytes_accessed),
    )(xg, wg, bias)


def conv_ktap_xla(xg, wg, bias, slope, hout):
    """Plain-XLA path (lane-sparse Cout < 128: conv0 / conv_post) with identical math."""
    Q = wg.shape[0]
    acc = None
    for q in range(Q):
        part = jnp.einsum("nhc,co->nho", xg[:, q:q + hout, :], wg[q],
                          preferred_element_type=jnp.float32)
        acc = part if acc is None else acc + part
    out = acc + bias                                     # (1, Cout) broadcasts
    if slope is not None:
        out = jnp.where(out >= 0.0, out, out * slope)
    return out.astype(jnp.bfloat16)


# ----------------------------------------------------------------------------
# Plain-JAX glue: pad + row-group so a stride-s conv becomes a Q-tap stride-1 conv
# ----------------------------------------------------------------------------
def _group_rows(x, K, s, p):
    """x: (N, H, Cin) -> (N, Hout + Q - 1, s*Cin) zero-padded grouped rows."""
    N, H, Cin = x.shape
    Hout = (H + 2 * p - K) // s + 1
    assert Hout >= 1, "input too short for this conv"
    Q = -(-K // s)                                       # ceil(K / s)
    Hp = (Hout + Q - 1) * s
    pad_right = Hp - H - p
    assert pad_right >= 0
    xp = jnp.pad(x, ((0, 0), (p, pad_right), (0, 0)))
    xg = xp.reshape(N, Hp // s, s * Cin)
    return xg, Hout, Q


# ----------------------------------------------------------------------------
# Parameter construction (deterministic, synthetic; weight_norm/spectral_norm only
# reparametrize the effective weight, so plain (weight, bias) tensors are used).
# ----------------------------------------------------------------------------
def init_params(key, kernel_size=5):
    shapes = [
        (32, 1, kernel_size, 1),
        (128, 32, kernel_size, 1),
        (512, 128, kernel_size, 1),
        (1024, 512, kernel_size, 1),
        (1024, 1024, kernel_size, 1),
        (1, 1024, 3, 1),             # conv_post
    ]
    params = []
    for i, s in enumerate(shapes):
        kw, kb = jax.random.split(jax.random.fold_in(key, i))
        fan_in = s[1] * s[2]
        w = jax.random.normal(kw, s, jnp.float32) / jnp.sqrt(fan_in)
        b = 0.01 * jax.random.normal(kb, (s[0],), jnp.float32)
        params.append((w, b))
    return params


def prepare_params(params, kernel_size=5, stride=3):
    """Hoisted once: fold (Cout,Cin,K,1) conv weights into grouped-tap
    (Q, s*Cin, Cout) bf16 matrices (zero-filled phantom taps) + f32 (1, Cout) bias."""
    specs = [(kernel_size, stride)] * 4 + [(kernel_size, 1), (3, 1)]
    prepared = []
    for (w, b), (K, s) in zip(params, specs):
        Cout, Cin, Kw, _ = w.shape
        assert Kw == K
        Q = -(-K // s)
        wt = jnp.transpose(w[..., 0], (2, 1, 0))         # (K, Cin, Cout)
        wt = jnp.pad(wt, ((0, Q * s - K), (0, 0), (0, 0)))
        wg = wt.reshape(Q, s * Cin, Cout).astype(jnp.bfloat16)
        prepared.append((wg, b.reshape(1, Cout).astype(jnp.float32)))
    return prepared


# ----------------------------------------------------------------------------
# Forward pass (matches DiscriminatorP.forward)
# ----------------------------------------------------------------------------
def discriminator_p_forward(x, prepared, *, period, kernel_size=5, stride=3,
                            use_pallas=True):
    b, c, t = x.shape                                    # PyTorch input: (B, C=1, T)
    if t % period != 0:
        n_pad = period - t % period
        if n_pad >= t:
            raise ValueError("reflect pad requires n_pad < T (input too short)")
        x = jnp.pad(x, ((0, 0), (0, 0), (0, n_pad)), mode="reflect")
        t = t + n_pad
    H = t // period
    x4 = x.reshape(b, c, H, period)                      # NCHW, like torch .view
    # -> kernel layout (B*period, H, C): period folded into batch, channels last, bf16 once
    cur = jnp.transpose(x4, (0, 3, 2, 1)).reshape(b * period, H, c).astype(jnp.bfloat16)

    pad_k = (kernel_size - 1) // 2
    layer_specs = [(kernel_size, stride, pad_k)] * 4 + [
        (kernel_size, 1, pad_k),                         # 5th conv has stride 1
        (3, 1, 1),                                       # conv_post
    ]

    fmap = []
    for li, ((wg, bias), (K, s, p)) in enumerate(zip(prepared, layer_specs)):
        Cout = wg.shape[-1]
        xg, Hout, Q = _group_rows(cur, K, s, p)          # (N, Hout+Q-1, s*Cin) bf16
        slope = LRELU_SLOPE if li < 5 else None          # no activation after conv_post
        lane_dense = (Cout % 128 == 0)
        if use_pallas and lane_dense:
            out = conv_ktap_pallas(xg, wg, bias, slope, Hout)
        else:
            out = conv_ktap_xla(xg, wg, bias, slope, Hout)
        cur = out                                        # (N, Hout, Cout) bf16
        # fmap kept in torch NCHW layout but bf16 (deliberate: feature-matching loss
        # consumers can upcast; relayout traffic is halved vs f32).
        fmap.append(jnp.transpose(out.reshape(b, period, Hout, Cout), (0, 3, 2, 1)))

    flat = fmap[-1].reshape(b, -1).astype(jnp.float32)   # torch.flatten(x, 1, -1)
    return flat, fmap


if __name__ == "__main__":
    key = jax.random.PRNGKey(0)
    k_in, k_par = jax.random.split(key)

    period = 3
    B, C, T = 2, 1, 47                 # T not divisible by period -> exercises reflect pad
    x = jax.random.normal(k_in, (B, C, T), jnp.float32)
    params = init_params(k_par)
    prepared = prepare_params(params)  # hoisted weight folding/grouping + bf16 cast

    fwd = jax.jit(discriminator_p_forward,
                  static_argnames=("period", "kernel_size", "stride", "use_pallas"))

    flat, fmap = fwd(x, prepared, period=period, use_pallas=True)
    flat = jax.block_until_ready(flat)
    fmap = [jax.block_until_ready(f) for f in fmap]

    # sanity check vs a plain-XLA reference doing the same bf16-in / f32-acc math
    flat_ref, fmap_ref = fwd(x, prepared, period=period, use_pallas=False)
    flat_ref = jax.block_until_ready(flat_ref)
    assert flat.shape == flat_ref.shape
    assert jnp.allclose(flat, flat_ref, rtol=3e-2, atol=1e-3), \
        float(jnp.max(jnp.abs(flat - flat_ref)))
    for a, r in zip(fmap, fmap_ref):
        assert a.shape == r.shape
        af, rf = a.astype(jnp.float32), r.astype(jnp.float32)
        assert jnp.allclose(af, rf, rtol=3e-2, atol=1e-3), \
            float(jnp.max(jnp.abs(af - rf)))

    print("KERNEL_OK")
</pallas_src>

<mosaic_0001>
module attributes {stable_mosaic.version = 11 : i64} {
  func.func @_conv_ktap_kernel(%arg0: i32, %arg1: i32, %arg2: memref<1x3x96xbf16, #tpu.memory_space<vmem>>, %arg3: memref<2x96x128xbf16, #tpu.memory_space<vmem>>, %arg4: memref<1x128xf32, #tpu.memory_space<vmem>>, %arg5: memref<1x2x128xbf16, #tpu.memory_space<vmem>>) attributes {dimension_semantics = [#tpu.dimension_semantics<parallel>, #tpu.dimension_semantics<parallel>], iteration_bounds = array<i64: 1, 6>, scalar_prefetch = 0 : i64, scratch_operands = 0 : i64, tpu.core_type = #tpu.core_type<tc>, window_params = [{transform_indices = @transform_0, window_bounds = array<i64: 1, 3, 96>}, {transform_indices = @transform_1, window_bounds = array<i64: 2, 96, 128>}, {transform_indices = @transform_2, window_bounds = array<i64: 1, 128>}, {transform_indices = @transform_3, window_bounds = array<i64: 1, 2, 128>}]} {
    %c0 = arith.constant 0 : index
    %c0_0 = arith.constant 0 : index
    %c0_1 = arith.constant 0 : index
    %0 = vector.load %arg2[%c0, %c0_0, %c0_1] : memref<1x3x96xbf16, #tpu.memory_space<vmem>>, vector<1x3x96xbf16>
    %1 = vector.shape_cast %0 : vector<1x3x96xbf16> to vector<3x96xbf16>
    %cst = arith.constant 0.000000e+00 : f32
    %2 = vector.broadcast %cst : f32 to vector<2x128xf32>
    %3 = vector.extract_strided_slice %1 {offsets = [0, 0], sizes = [2, 96], strides = [1, 1]} : vector<3x96xbf16> to vector<2x96xbf16>
    %c0_2 = arith.constant 0 : index
    %c0_3 = arith.constant 0 : index
    %c0_4 = arith.constant 0 : index
    %4 = vector.load %arg3[%c0_2, %c0_3, %c0_4] : memref<2x96x128xbf16, #tpu.memory_space<vmem>>, vector<1x96x128xbf16>
    %5 = vector.shape_cast %4 : vector<1x96x128xbf16> to vector<96x128xbf16>
    %cst_5 = arith.constant dense<0.000000e+00> : vector<2x128xf32>
    %6 = tpu.matmul %3, %5, %cst_5 {dimension_numbers = #tpu.dot_dimension_numbers<[1], [0], [0], [1], [0, 0, 1, 1], [], []>} : vector<2x96xbf16>, vector<96x128xbf16>, vector<2x128xf32> -> vector<2x128xf32>
    %7 = arith.addf %2, %6 : vector<2x128xf32>
    %8 = vector.extract_strided_slice %1 {offsets = [1, 0], sizes = [2, 96], strides = [1, 1]} : vector<3x96xbf16> to vector<2x96xbf16>
    %c1 = arith.constant 1 : index
    %c0_6 = arith.constant 0 : index
    %c0_7 = arith.constant 0 : index
    %9 = vector.load %arg3[%c1, %c0_6, %c0_7] : memref<2x96x128xbf16, #tpu.memory_space<vmem>>, vector<1x96x128xbf16>
    %10 = vector.shape_cast %9 : vector<1x96x128xbf16> to vector<96x128xbf16>
    %cst_8 = arith.constant dense<0.000000e+00> : vector<2x128xf32>
    %11 = tpu.matmul %8, %10, %cst_8 {dimension_numbers = #tpu.dot_dimension_numbers<[1], [0], [0], [1], [0, 0, 1, 1], [], []>} : vector<2x96xbf16>, vector<96x128xbf16>, vector<2x128xf32> -> vector<2x128xf32>
    %12 = arith.addf %7, %11 : vector<2x128xf32>
    %c0_9 = arith.constant 0 : index
    %c0_10 = arith.constant 0 : index
    %13 = vector.load %arg4[%c0_9, %c0_10] : memref<1x128xf32, #tpu.memory_space<vmem>>, vector<1x128xf32>
    %14 = vector.broadcast %13 : vector<1x128xf32> to vector<2x128xf32>
    %15 = arith.addf %12, %14 : vector<2x128xf32>
    %cst_11 = arith.constant 0.000000e+00 : f32
    %16 = vector.broadcast %cst_11 : f32 to vector<2x128xf32>
    %17 = arith.cmpf oge, %15, %16 : vector<2x128xf32>
    %cst_12 = arith.constant 1.000000e-01 : f32
    %18 = vector.broadcast %cst_12 : f32 to vector<2x128xf32>
    %19 = arith.mulf %15, %18 : vector<2x128xf32>
    %20 = arith.select %17, %15, %19 : vector<2x128xi1>, vector<2x128xf32>
    %21 = arith.truncf %20 : vector<2x128xf32> to vector<2x128xbf16>
    %c0_13 = arith.constant 0 : index
    %c0_14 = arith.constant 0 : index
    %c0_15 = arith.constant 0 : index
    %22 = vector.load %arg5[%c0_13, %c0_14, %c0_15] : memref<1x2x128xbf16, #tpu.memory_space<vmem>>, vector<1x2x128xbf16>
    %23 = vector.shape_cast %22 : vector<1x2x128xbf16> to vector<2x128xbf16>
    %24 = vector.shape_cast %21 : vector<2x128xbf16> to vector<1x2x128xbf16>
    tpu.vector_store %arg5[%c0_13, %c0_14, %c0_15], %24 {strides = array<i32>} : memref<1x2x128xbf16, #tpu.memory_space<vmem>>, vector<1x2x128xbf16>,
    return
  }
  func.func @transform_0(%arg0: i32, %arg1: i32) -> (i32, i32, i32) {
    %c0_i32 = arith.constant 0 : i32
    %c0_i32_0 = arith.constant 0 : i32
    %c0_i32_1 = arith.constant 0 : i32
    return %arg1, %c0_i32, %c0_i32_0 : i32, i32, i32
  }
  func.func @transform_1(%arg0: i32, %arg1: i32) -> (i32, i32, i32) {
    %c0_i32 = arith.constant 0 : i32
    %c0_i32_0 = arith.constant 0 : i32
    %c0_i32_1 = arith.constant 0 : i32
    return %c0_i32, %c0_i32_0, %arg0 : i32, i32, i32
  }
  func.func @transform_2(%arg0: i32, %arg1: i32) -> (i32, i32) {
    %c0_i32 = arith.constant 0 : i32
    %c0_i32_0 = arith.constant 0 : i32
    return %c0_i32, %arg0 : i32, i32
  }
  func.func @transform_3(%arg0: i32, %arg1: i32) -> (i32, i32, i32) {
    %c0_i32 = arith.constant 0 : i32
    %c0_i32_0 = arith.constant 0 : i32
    return %arg1, %c0_i32, %arg0 : i32, i32, i32
  }
}

module attributes {stable_mosaic.version = 11 : i64} {
  func.func @_conv_ktap_kernel(%arg0: i32, %arg1: i32, %arg2: memref<1x2x384xbf16, #tpu.memory_space<vmem>>, %arg3: memref<2x384x512xbf16, #tpu.memory_space<vmem>>, %arg4: memref<1x512xf32, #tpu.memory_space<vmem>>, %arg5: memref<1x1x512xbf16, #tpu.memory_space<vmem>>) attributes {dimension_semantics = [#tpu.dimension_semantics<parallel>, #tpu.dimension_semantics<parallel>], iteration_bounds = array<i64: 1, 6>, scalar_prefetch = 0 : i64, scratch_operands = 0 : i64, tpu.core_type = #tpu.core_type<tc>, window_params = [{transform_indices = @transform_0, window_bounds = array<i64: 1, 2, 384>}, {transform_indices = @transform_1, window_bounds = array<i64: 2, 384, 512>}, {transform_indices = @transform_2, window_bounds = array<i64: 1, 512>}, {transform_indices = @transform_3, window_bounds = array<i64: 1, 1, 512>}]} {
    %c0 = arith.constant 0 : index
    %c0_0 = arith.constant 0 : index
    %c0_1 = arith.constant 0 : index
    %0 = vector.load %arg2[%c0, %c0_0, %c0_1] : memref<1x2x384xbf16, #tpu.memory_space<vmem>>, vector<1x2x384xbf16>
    %1 = vector.shape_cast %0 : vector<1x2x384xbf16> to vector<2x384xbf16>
    %cst = arith.constant 0.000000e+00 : f32
    %2 = vector.broadcast %cst : f32 to vector<1x512xf32>
    %3 = vector.extract_strided_slice %1 {offsets = [0, 0], sizes = [1, 384], strides = [1, 1]} : vector<2x384xbf16> to vector<1x384xbf16>
    %c0_2 = arith.constant 0 : index
    %c0_3 = arith.constant 0 : index
    %c0_4 = arith.constant 0 : index
    %4 = vector.load %arg3[%c0_2, %c0_3, %c0_4] : memref<2x384x512xbf16, #tpu.memory_space<vmem>>, vector<1x384x512xbf16>
    %5 = vector.shape_cast %4 : vector<1x384x512xbf16> to vector<384x512xbf16>
    %cst_5 = arith.constant dense<0.000000e+00> : vector<1x512xf32>
    %6 = tpu.matmul %3, %5, %cst_5 {dimension_numbers = #tpu.dot_dimension_numbers<[1], [0], [0], [1], [0, 0, 1, 1], [], []>} : vector<1x384xbf16>, vector<384x512xbf16>, vector<1x512xf32> -> vector<1x512xf32>
    %7 = arith.addf %2, %6 : vector<1x512xf32>
    %8 = vector.extract_strided_slice %1 {offsets = [1, 0], sizes = [1, 384], strides = [1, 1]} : vector<2x384xbf16> to vector<1x384xbf16>
    %c1 = arith.constant 1 : index
    %c0_6 = arith.constant 0 : index
    %c0_7 = arith.constant 0 : index
    %9 = vector.load %arg3[%c1, %c0_6, %c0_7] : memref<2x384x512xbf16, #tpu.memory_space<vmem>>, vector<1x384x512xbf16>
    %10 = vector.shape_cast %9 : vector<1x384x512xbf16> to vector<384x512xbf16>
    %cst_8 = arith.constant dense<0.000000e+00> : vector<1x512xf32>
    %11 = tpu.matmul %8, %10, %cst_8 {dimension_numbers = #tpu.dot_dimension_numbers<[1], [0], [0], [1], [0, 0, 1, 1], [], []>} : vector<1x384xbf16>, vector<384x512xbf16>, vector<1x512xf32> -> vector<1x512xf32>
    %12 = arith.addf %7, %11 : vector<1x512xf32>
    %c0_9 = arith.constant 0 : index
    %c0_10 = arith.constant 0 : index
    %13 = vector.load %arg4[%c0_9, %c0_10] : memref<1x512xf32, #tpu.memory_space<vmem>>, vector<1x512xf32>
    %14 = arith.addf %12, %13 : vector<1x512xf32>
    %cst_11 = arith.constant 0.000000e+00 : f32
    %15 = vector.broadcast %cst_11 : f32 to vector<1x512xf32>
    %16 = arith.cmpf oge, %14, %15 : vector<1x512xf32>
    %cst_12 = arith.constant 1.000000e-01 : f32
    %17 = vector.broadcast %cst_12 : f32 to vector<1x512xf32>
    %18 = arith.mulf %14, %17 : vector<1x512xf32>
    %19 = arith.select %16, %14, %18 : vector<1x512xi1>, vector<1x512xf32>
    %20 = arith.truncf %19 : vector<1x512xf32> to vector<1x512xbf16>
    %c0_13 = arith.constant 0 : index
    %c0_14 = arith.constant 0 : index
    %c0_15 = arith.constant 0 : index
    %21 = vector.load %arg5[%c0_13, %c0_14, %c0_15] : memref<1x1x512xbf16, #tpu.memory_space<vmem>>, vector<1x1x512xbf16>
    %22 = vector.shape_cast %21 : vector<1x1x512xbf16> to vector<1x512xbf16>
    %23 = vector.shape_cast %20 : vector<1x512xbf16> to vector<1x1x512xbf16>
    tpu.vector_store %arg5[%c0_13, %c0_14, %c0_15], %23 {strides = array<i32>} : memref<1x1x512xbf16, #tpu.memory_space<vmem>>, vector<1x1x512xbf16>,
    return
  }
  func.func @transform_0(%arg0: i32, %arg1: i32) -> (i32, i32, i32) {
    %c0_i32 = arith.constant 0 : i32
    %c0_i32_0 = arith.constant 0 : i32
    %c0_i32_1 = arith.constant 0 : i32
    return %arg1, %c0_i32, %c0_i32_0 : i32, i32, i32
  }
  func.func @transform_1(%arg0: i32, %arg1: i32) -> (i32, i32, i32) {
    %c0_i32 = arith.constant 0 : i32
    %c0_i32_0 = arith.constant 0 : i32
    %c0_i32_1 = arith.constant 0 : i32
    return %c0_i32, %c0_i32_0, %arg0 : i32, i32, i32
  }
  func.func @transform_2(%arg0: i32, %arg1: i32) -> (i32, i32) {
    %c0_i32 = arith.constant 0 : i32
    %c0_i32_0 = arith.constant 0 : i32
    return %c0_i32, %arg0 : i32, i32
  }
  func.func @transform_3(%arg0: i32, %arg1: i32) -> (i32, i32, i32) {
    %c0_i32 = arith.constant 0 : i32
    %c0_i32_0 = arith.constant 0 : i32
    return %arg1, %c0_i32, %arg0 : i32, i32, i32
  }
}

module attributes {stable_mosaic.version = 11 : i64} {
  func.func @_conv_ktap_kernel(%arg0: i32, %arg1: i32, %arg2: memref<1x2x1536xbf16, #tpu.memory_space<vmem>>, %arg3: memref<2x1536x512xbf16, #tpu.memory_space<vmem>>, %arg4: memref<1x512xf32, #tpu.memory_space<vmem>>, %arg5: memref<1x1x512xbf16, #tpu.memory_space<vmem>>) attributes {dimension_semantics = [#tpu.dimension_semantics<parallel>, #tpu.dimension_semantics<parallel>], iteration_bounds = array<i64: 2, 6>, scalar_prefetch = 0 : i64, scratch_operands = 0 : i64, tpu.core_type = #tpu.core_type<tc>, window_params = [{transform_indices = @transform_0, window_bounds = array<i64: 1, 2, 1536>}, {transform_indices = @transform_1, window_bounds = array<i64: 2, 1536, 512>}, {transform_indices = @transform_2, window_bounds = array<i64: 1, 512>}, {transform_indices = @transform_3, window_bounds = array<i64: 1, 1, 512>}]} {
    %c0 = arith.constant 0 : index
    %c0_0 = arith.constant 0 : index
    %c0_1 = arith.constant 0 : index
    %0 = vector.load %arg2[%c0, %c0_0, %c0_1] : memref<1x2x1536xbf16, #tpu.memory_space<vmem>>, vector<1x2x1536xbf16>
    %1 = vector.shape_cast %0 : vector<1x2x1536xbf16> to vector<2x1536xbf16>
    %cst = arith.constant 0.000000e+00 : f32
    %2 = vector.broadcast %cst : f32 to vector<1x512xf32>
    %3 = vector.extract_strided_slice %1 {offsets = [0, 0], sizes = [1, 1536], strides = [1, 1]} : vector<2x1536xbf16> to vector<1x1536xbf16>
    %c0_2 = arith.constant 0 : index
    %c0_3 = arith.constant 0 : index
    %c0_4 = arith.constant 0 : index
    %4 = vector.load %arg3[%c0_2, %c0_3, %c0_4] : memref<2x1536x512xbf16, #tpu.memory_space<vmem>>, vector<1x1536x512xbf16>
    %5 = vector.shape_cast %4 : vector<1x1536x512xbf16> to vector<1536x512xbf16>
    %cst_5 = arith.constant dense<0.000000e+00> : vector<1x512xf32>
    %6 = tpu.matmul %3, %5, %cst_5 {dimension_numbers = #tpu.dot_dimension_numbers<[1], [0], [0], [1], [0, 0, 1, 1], [], []>} : vector<1x1536xbf16>, vector<1536x512xbf16>, vector<1x512xf32> -> vector<1x512xf32>
    %7 = arith.addf %2, %6 : vector<1x512xf32>
    %8 = vector.extract_strided_slice %1 {offsets = [1, 0], sizes = [1, 1536], strides = [1, 1]} : vector<2x1536xbf16> to vector<1x1536xbf16>
    %c1 = arith.constant 1 : index
    %c0_6 = arith.constant 0 : index
    %c0_7 = arith.constant 0 : index
    %9 = vector.load %arg3[%c1, %c0_6, %c0_7] : memref<2x1536x512xbf16, #tpu.memory_space<vmem>>, vector<1x1536x512xbf16>
    %10 = vector.shape_cast %9 : vector<1x1536x512xbf16> to vector<1536x512xbf16>
    %cst_8 = arith.constant dense<0.000000e+00> : vector<1x512xf32>
    %11 = tpu.matmul %8, %10, %cst_8 {dimension_numbers = #tpu.dot_dimension_numbers<[1], [0], [0], [1], [0, 0, 1, 1], [], []>} : vector<1x1536xbf16>, vector<1536x512xbf16>, vector<1x512xf32> -> vector<1x512xf32>
    %12 = arith.addf %7, %11 : vector<1x512xf32>
    %c0_9 = arith.constant 0 : index
    %c0_10 = arith.constant 0 : index
    %13 = vector.load %arg4[%c0_9, %c0_10] : memref<1x512xf32, #tpu.memory_space<vmem>>, vector<1x512xf32>
    %14 = arith.addf %12, %13 : vector<1x512xf32>
    %cst_11 = arith.constant 0.000000e+00 : f32
    %15 = vector.broadcast %cst_11 : f32 to vector<1x512xf32>
    %16 = arith.cmpf oge, %14, %15 : vector<1x512xf32>
    %cst_12 = arith.constant 1.000000e-01 : f32
    %17 = vector.broadcast %cst_12 : f32 to vector<1x512xf32>
    %18 = arith.mulf %14, %17 : vector<1x512xf32>
    %19 = arith.select %16, %14, %18 : vector<1x512xi1>, vector<1x512xf32>
    %20 = arith.truncf %19 : vector<1x512xf32> to vector<1x512xbf16>
    %c0_13 = arith.constant 0 : index
    %c0_14 = arith.constant 0 : index
    %c0_15 = arith.constant 0 : index
    %21 = vector.load %arg5[%c0_13, %c0_14, %c0_15] : memref<1x1x512xbf16, #tpu.memory_space<vmem>>, vector<1x1x512xbf16>
    %22 = vector.shape_cast %21 : vector<1x1x512xbf16> to vector<1x512xbf16>
    %23 = vector.shape_cast %20 : vector<1x512xbf16> to vector<1x1x512xbf16>
    tpu.vector_store %arg5[%c0_13, %c0_14, %c0_15], %23 {strides = array<i32>} : memref<1x1x512xbf16, #tpu.memory_space<vmem>>, vector<1x1x512xbf16>,
    return
  }
  func.func @transform_0(%arg0: i32, %arg1: i32) -> (i32, i32, i32) {
    %c0_i32 = arith.constant 0 : i32
    %c0_i32_0 = arith.constant 0 : i32
    %c0_i32_1 = arith.constant 0 : i32
    return %arg1, %c0_i32, %c0_i32_0 : i32, i32, i32
  }
  func.func @transform_1(%arg0: i32, %arg1: i32) -> (i32, i32, i32) {
    %c0_i32 = arith.constant 0 : i32
    %c0_i32_0 = arith.constant 0 : i32
    %c0_i32_1 = arith.constant 0 : i32
    return %c0_i32, %c0_i32_0, %arg0 : i32, i32, i32
  }
  func.func @transform_2(%arg0: i32, %arg1: i32) -> (i32, i32) {
    %c0_i32 = arith.constant 0 : i32
    %c0_i32_0 = arith.constant 0 : i32
    return %c0_i32, %arg0 : i32, i32
  }
  func.func @transform_3(%arg0: i32, %arg1: i32) -> (i32, i32, i32) {
    %c0_i32 = arith.constant 0 : i32
    %c0_i32_0 = arith.constant 0 : i32
    return %arg1, %c0_i32, %arg0 : i32, i32, i32
  }
}

module attributes {stable_mosaic.version = 11 : i64} {
  func.func @_conv_ktap_kernel(%arg0: i32, %arg1: i32, %arg2: memref<1x5x1024xbf16, #tpu.memory_space<vmem>>, %arg3: memref<5x1024x512xbf16, #tpu.memory_space<vmem>>, %arg4: memref<1x512xf32, #tpu.memory_space<vmem>>, %arg5: memref<1x1x512xbf16, #tpu.memory_space<vmem>>) attributes {dimension_semantics = [#tpu.dimension_semantics<parallel>, #tpu.dimension_semantics<parallel>], iteration_bounds = array<i64: 2, 6>, scalar_prefetch = 0 : i64, scratch_operands = 0 : i64, tpu.core_type = #tpu.core_type<tc>, window_params = [{transform_indices = @transform_0, window_bounds = array<i64: 1, 5, 1024>}, {transform_indices = @transform_1, window_bounds = array<i64: 5, 1024, 512>}, {transform_indices = @transform_2, window_bounds = array<i64: 1, 512>}, {transform_indices = @transform_3, window_bounds = array<i64: 1, 1, 512>}]} {
    %c0 = arith.constant 0 : index
    %c0_0 = arith.constant 0 : index
    %c0_1 = arith.constant 0 : index
    %0 = vector.load %arg2[%c0, %c0_0, %c0_1] : memref<1x5x1024xbf16, #tpu.memory_space<vmem>>, vector<1x5x1024xbf16>
    %1 = vector.shape_cast %0 : vector<1x5x1024xbf16> to vector<5x1024xbf16>
    %cst = arith.constant 0.000000e+00 : f32
    %2 = vector.broadcast %cst : f32 to vector<1x512xf32>
    %3 = vector.extract_strided_slice %1 {offsets = [0, 0], sizes = [1, 1024], strides = [1, 1]} : vector<5x1024xbf16> to vector<1x1024xbf16>
    %c0_2 = arith.constant 0 : index
    %c0_3 = arith.constant 0 : index
    %c0_4 = arith.constant 0 : index
    %4 = vector.load %arg3[%c0_2, %c0_3, %c0_4] : memref<5x1024x512xbf16, #tpu.memory_space<vmem>>, vector<1x1024x512xbf16>
    %5 = vector.shape_cast %4 : vector<1x1024x512xbf16> to vector<1024x512xbf16>
    %cst_5 = arith.constant dense<0.000000e+00> : vector<1x512xf32>
    %6 = tpu.matmul %3, %5, %cst_5 {dimension_numbers = #tpu.dot_dimension_numbers<[1], [0], [0], [1], [0, 0, 1, 1], [], []>} : vector<1x1024xbf16>, vector<1024x512xbf16>, vector<1x512xf32> -> vector<1x512xf32>
    %7 = arith.addf %2, %6 : vector<1x512xf32>
    %8 = vector.extract_strided_slice %1 {offsets = [1, 0], sizes = [1, 1024], strides = [1, 1]} : vector<5x1024xbf16> to vector<1x1024xbf16>
    %c1 = arith.constant 1 : index
    %c0_6 = arith.constant 0 : index
    %c0_7 = arith.constant 0 : index
    %9 = vector.load %arg3[%c1, %c0_6, %c0_7] : memref<5x1024x512xbf16, #tpu.memory_space<vmem>>, vector<1x1024x512xbf16>
    %10 = vector.shape_cast %9 : vector<1x1024x512xbf16> to vector<1024x512xbf16>
    %cst_8 = arith.constant dense<0.000000e+00> : vector<1x512xf32>
    %11 = tpu.matmul %8, %10, %cst_8 {dimension_numbers = #tpu.dot_dimension_numbers<[1], [0], [0], [1], [0, 0, 1, 1], [], []>} : vector<1x1024xbf16>, vector<1024x512xbf16>, vector<1x512xf32> -> vector<1x512xf32>
    %12 = arith.addf %7, %11 : vector<1x512xf32>
    %13 = vector.extract_strided_slice %1 {offsets = [2, 0], sizes = [1, 1024], strides = [1, 1]} : vector<5x1024xbf16> to vector<1x1024xbf16>
    %c2 = arith.constant 2 : index
    %c0_9 = arith.constant 0 : index
    %c0_10 = arith.constant 0 : index
    %14 = vector.load %arg3[%c2, %c0_9, %c0_10] : memref<5x1024x512xbf16, #tpu.memory_space<vmem>>, vector<1x1024x512xbf16>
    %15 = vector.shape_cast %14 : vector<1x1024x512xbf16> to vector<1024x512xbf16>
    %cst_11 = arith.constant dense<0.000000e+00> : vector<1x512xf32>
    %16 = tpu.matmul %13, %15, %cst_11 {dimension_numbers = #tpu.dot_dimension_numbers<[1], [0], [0], [1], [0, 0, 1, 1], [], []>} : vector<1x1024xbf16>, vector<1024x512xbf16>, vector<1x512xf32> -> vector<1x512xf32>
    %17 = arith.addf %12, %16 : vector<1x512xf32>
    %18 = vector.extract_strided_slice %1 {offsets = [3, 0], sizes = [1, 1024], strides = [1, 1]} : vector<5x1024xbf16> to vector<1x1024xbf16>
    %c3 = arith.constant 3 : index
    %c0_12 = arith.constant 0 : index
    %c0_13 = arith.constant 0 : index
    %19 = vector.load %arg3[%c3, %c0_12, %c0_13] : memref<5x1024x512xbf16, #tpu.memory_space<vmem>>, vector<1x1024x512xbf16>
    %20 = vector.shape_cast %19 : vector<1x1024x512xbf16> to vector<1024x512xbf16>
    %cst_14 = arith.constant dense<0.000000e+00> : vector<1x512xf32>
    %21 = tpu.matmul %18, %20, %cst_14 {dimension_numbers = #tpu.dot_dimension_numbers<[1], [0], [0], [1], [0, 0, 1, 1], [], []>} : vector<1x1024xbf16>, vector<1024x512xbf16>, vector<1x512xf32> -> vector<1x512xf32>
    %22 = arith.addf %17, %21 : vector<1x512xf32>
    %23 = vector.extract_strided_slice %1 {offsets = [4, 0], sizes = [1, 1024], strides = [1, 1]} : vector<5x1024xbf16> to vector<1x1024xbf16>
    %c4 = arith.constant 4 : index
    %c0_15 = arith.constant 0 : index
    %c0_16 = arith.constant 0 : index
    %24 = vector.load %arg3[%c4, %c0_15, %c0_16] : memref<5x1024x512xbf16, #tpu.memory_space<vmem>>, vector<1x1024x512xbf16>
    %25 = vector.shape_cast %24 : vector<1x1024x512xbf16> to vector<1024x512xbf16>
    %cst_17 = arith.constant dense<0.000000e+00> : vector<1x512xf32>
    %26 = tpu.matmul %23, %25, %cst_17 {dimension_numbers = #tpu.dot_dimension_numbers<[1], [0], [0], [1], [0, 0, 1, 1], [], []>} : vector<1x1024xbf16>, vector<1024x512xbf16>, vector<1x512xf32> -> vector<1x512xf32>
    %27 = arith.addf %22, %26 : vector<1x512xf32>
    %c0_18 = arith.constant 0 : index
    %c0_19 = arith.constant 0 : index
    %28 = vector.load %arg4[%c0_18, %c0_19] : memref<1x512xf32, #tpu.memory_space<vmem>>, vector<1x512xf32>
    %29 = arith.addf %27, %28 : vector<1x512xf32>
    %cst_20 = arith.constant 0.000000e+00 : f32
    %30 = vector.broadcast %cst_20 : f32 to vector<1x512xf32>
    %31 = arith.cmpf oge, %29, %30 : vector<1x512xf32>
    %cst_21 = arith.constant 1.000000e-01 : f32
    %32 = vector.broadcast %cst_21 : f32 to vector<1x512xf32>
    %33 = arith.mulf %29, %32 : vector<1x512xf32>
    %34 = arith.select %31, %29, %33 : vector<1x512xi1>, vector<1x512xf32>
    %35 = arith.truncf %34 : vector<1x512xf32> to vector<1x512xbf16>
    %c0_22 = arith.constant 0 : index
    %c0_23 = arith.constant 0 : index
    %c0_24 = arith.constant 0 : index
    %36 = vector.load %arg5[%c0_22, %c0_23, %c0_24] : memref<1x1x512xbf16, #tpu.memory_space<vmem>>, vector<1x1x512xbf16>
    %37 = vector.shape_cast %36 : vector<1x1x512xbf16> to vector<1x512xbf16>
    %38 = vector.shape_cast %35 : vector<1x512xbf16> to vector<1x1x512xbf16>
    tpu.vector_store %arg5[%c0_22, %c0_23, %c0_24], %38 {strides = array<i32>} : memref<1x1x512xbf16, #tpu.memory_space<vmem>>, vector<1x1x512xbf16>,
    return
  }
  func.func @transform_0(%arg0: i32, %arg1: i32) -> (i32, i32, i32) {
    %c0_i32 = arith.constant 0 : i32
    %c0_i32_0 = arith.constant 0 : i32
    %c0_i32_1 = arith.constant 0 : i32
    return %arg1, %c0_i32, %c0_i32_0 : i32, i32, i32
  }
  func.func @transform_1(%arg0: i32, %arg1: i32) -> (i32, i32, i32) {
    %c0_i32 = arith.constant 0 : i32
    %c0_i32_0 = arith.constant 0 : i32
    %c0_i32_1 = arith.constant 0 : i32
    return %c0_i32, %c0_i32_0, %arg0 : i32, i32, i32
  }
  func.func @transform_2(%arg0: i32, %arg1: i32) -> (i32, i32) {
    %c0_i32 = arith.constant 0 : i32
    %c0_i32_0 = arith.constant 0 : i32
    return %c0_i32, %arg0 : i32, i32
  }
  func.func @transform_3(%arg0: i32, %arg1: i32) -> (i32, i32, i32) {
    %c0_i32 = arith.constant 0 : i32
    %c0_i32_0 = arith.constant 0 : i32
    return %arg1, %c0_i32, %arg0 : i32, i32, i32
  }
}

</mosaic_0001>

<bundles_post_ra>
// kernel: discriminator_p_forward.4
= control target key start
LH: loop header
LB: loop body
LE: loop exit
PB: predicated region body
PF: predicated region fallthrough
CT: control target
= control target key end

     0   :  { %8 = vsyncpa [#allocation3], 0  ;;  %s900_s0 = inlined_call_operand.vmem [shape: bf16[6,3,96], index: 0, kind: input, shape index: {}]   ;;  %s901_s1 = inlined_call_operand.hbm [shape: bf16[2,96,128], index: 1, kind: input, shape index: {}]   ;;  %s902_s2 = inlined_call_operand.hbm [shape: f32[1,128], index: 2, kind: input, shape index: {}]   ;;  %s903_s3 = inlined_call_operand.vmem [shape: bf16[6,2,128], index: 3, kind: output, shape index: {}]  }
   0x1   :  { %9 = vsyncpa [#allocation5], 0  ;;  %s782_s12 = smov 0   ;;  %s784_s13 = smov 0  }
   0x2   :  { %s786_s14 = smov 0  }
   0x3 LB: > { %s532_s15 = sadd.s32 4294967295, %s753_s14   ;;  %s24_s16 = sadd.s32 1, %s749_s13  ;;  %s753_s14 = sphi %s786_s14, %s15_s14   ;;  %s749_s13 = sphi %s784_s13, %s913_s13   ;;  %s745_s12 = sphi %s782_s12, %s912_s12  }
   0x4   : > { %p25_p0 = scmp.ge.s32.totalorder %s24_s16, 6  ;;  %p534_p1 = scmp.ge.s32.totalorder %s753_s14, 1 }
   0x5   : > { %p138_p2 = scmp.lt.s32.totalorder %s753_s14, 7  ;;  %p807_p4 = scmp.eq.s32.totalorder %s532_s15, 0 }
   0x6   : > { %s915_s16 = smov (%p25_p0, %s24_s16), 0  ;;  %s755_s19 = smov [#allocation2]  }
   0x7   : > { %p803_p3 = pnand %p534_p1, %p138_p2  ;;  %s152_s20 = sshll.u32 %s755_s19, 4  ;;  %s153_s20 = int_to_ptr.vmem [resolvable:$true] %s152_s20 }
   0x8   : > { %s908_s18 = scalar_select %p807_p4, 1, 0 }
   0x9   : > { %s907_s17 = scalar_select %p803_p3, 1, 0 }
   0xa   : > { %p613_p5 = pneg %p803_p3  ;;  %s756_s22 = smov [#allocation4]  }
   0xb   : > { %s168_s23 = sshll.u32 %s756_s22, 4  ;;  %s667_s26 = scalar_lea.hbm %s901_s1, 1536  ;;  %s819_s23 = int_to_ptr.vmem [resolvable:$true] %s168_s23 }
   0xc   : > { %p815_p6 = pnand %p807_p4, %p613_p5  ;;  %p668_p7 = scmp.ne.s32.totalorder %s901_s1, %s667_s26 }
   0xd   : > { %p674_p11 = scmp.lt.u32.totalorder %s667_s26, %s901_s1 }
   0xe   : > { %p669_p8 = pneg %p815_p6 }
  0x10   : > { %p670_p9 = pnand %p669_p8, %p668_p7 }
  0x12   : > { %p671_p10 = pneg %p670_p9 }
  0x14   : > { %p676_p12 = pnand %p674_p11, %p671_p10 }
  0x16   : > { %679 = shalt.err (!%p676_p12)
}
  0x17   : > { %s680_s4 = scalar_lea.vmem %s153_s20, 1536  ;;  %p688_p2 = scmp.lt.s32.totalorder %s153_s20, %s153_s20 }
  0x18   : > { %p681_p13 = scmp.ne.s32.totalorder %s153_s20, %s680_s4  ;;  %p689_p5 = scmp.lt.s32.totalorder %s680_s4, %s680_s4 }
  0x1a   : > { %p683_p0 = pnand %p681_p13, %p669_p8  ;;  %p690_p4 = por %p689_p5, %p688_p2 }
  0x1c   : > { %p684_p1 = pneg %p683_p0 }
  0x1e   : > { %p691_p3 = pnand %p690_p4, %p684_p1 }
  0x20   : > { %694 = shalt.err (!%p691_p3)
}
  0x21   : > { %s757_s5 = smov 64   ;;  %s758_s6 = smov 4  }
  0x22   : > { %616 = dma.hbm_to_vmem [thread:$0]  (!%p815_p6), %s901_s1, 1536, %s153_s20, [#allocation3], %s757_s5, %s757_s5, %s758_s6  }
  0x23   : > { %s695_s11 = scalar_lea.hbm %s902_s2, 16 }
  0x24   : > { %p696_p7 = scmp.ne.s32.totalorder %s902_s2, %s695_s11  ;;  %p702_p9 = scmp.lt.u32.totalorder %s695_s11, %s902_s2 }
  0x26   : > { %p698_p3 = pnand %p696_p7, %p669_p8 }
  0x28   : > { %p699_p4 = pneg %p698_p3 }
  0x2a   : > { %p704_p10 = pnand %p702_p9, %p699_p4 }
  0x2c   : > { %707 = shalt.err (!%p704_p10)
}
  0x2d   : > { %s708_s20 = scalar_lea.vmem %s819_s23, 16  ;;  %s715_s25 = scalar_lea.vmem %s819_s23, 32 }
  0x2e   : > { %p709_p11 = scmp.ne.s32.totalorder %s819_s23, %s708_s20  ;;  %p716_p0 = scmp.lt.s32.totalorder %s819_s23, %s819_s23 }
  0x2f   : > { %p717_p1 = scmp.lt.s32.totalorder %s715_s25, %s708_s20 }
  0x30   : > { %p711_p12 = pnand %p709_p11, %p669_p8 }
  0x31   : > { %p718_p2 = por %p717_p1, %p716_p0 }
  0x32   : > { %p712_p13 = pneg %p711_p12 }
  0x34   : > { %p719_p5 = pnand %p718_p2, %p712_p13 }
  0x36   : > { %722 = shalt.err (!%p719_p5)
}
  0x37   : > { %619 = dma.hbm_to_vmem [thread:$0]  (!%p815_p6), %s902_s2, 16, %s819_s23, [#allocation5]  }
  0x38   : > { %p910_p7 = scmp.ne.s32.totalorder %s907_s17, 0 }
  0x39   : > { %p911_p8 = scmp.ne.s32.totalorder (!%p910_p7), %s908_s18, 0 }
  0x3a   : > { %188 = sbr.rel (%p910_p7) target bundleno = 316 (0x13c), region = 32 }
  0x41   : > { %736 = dma.done.wait (%p911_p8), [#allocation3], 1536  }
  0x42   : > { %738 = vsyncadd (%p911_p8), [#allocation3], 4294965760 }
  0x43   : > { %740 = dma.done.wait (%p911_p8), [#allocation5], 16  }
  0x44   : > { %742 = vsyncadd (%p911_p8), [#allocation5], 4294967280  ;;  %v759_v0 = vmov 0.0   ;;  %vm760_vm0 = vmmov 0   ;;  %p216_p6 = scmp.lt.s32.totalorder %s745_s12, 5  ;;  %v655_v1 = vld [vmem:[#allocation2 + $0x30] sm:$0xff]   ;;  %v257_v5 = vlaneseq }
  0x45   : > { %573 = vmatprep.subr.bf16.mxu0 %v759_v0  ;;  %589 = vmatprep.subr.bf16.mxu1 %v759_v0  ;;  %v656_v2 = vld [vmem:[#allocation2] sm:$0xff]   ;;  %v761_v3 = vmov 1983009808   ;;  %v657_v6 = vld [vmem:[#allocation2 + $0x38] sm:$0xff]   ;;  %v658_v7 = vld [vmem:[#allocation2 + $0x8] sm:$0xff]   ;;  %vm304_vm1 = vcmask 785408  }
  0x46   : > { %585 = vmatprep.mubr.msk.bf16.mxu0 %vm760_vm0, %v759_v0  ;;  %601 = vmatprep.mubr.msk.bf16.mxu1 %vm760_vm0, %v759_v0  ;;  %v255_v4 = vunpack.c.l.s4 %v761_v3  ;;  %s917_s12 = smov (!%p216_p6, %s745_s12), 5  ;;  %v258_v9 = vshrl.u32 %v257_v5, 7  ;;  %v659_v10 = vld [vmem:[#allocation2 + $0x40] sm:$0xff]   ;;  %v660_v11 = vld [vmem:[#allocation2 + $0x10] sm:$0xff]   ;;  %v661_v13 = vld [vmem:[#allocation2 + $0x48] sm:$0xff]  }
  0x47   : > { %574 = vmatpush3.bf16.msra.mxu0 %v655_v1  ;;  %590 = vmatpush3.bf16.msra.mxu1 %v656_v2  ;;  %s541_s17 = sshll.u32 %s917_s12, 1  ;;  %v662_v14 = vld [vmem:[#allocation2 + $0x18] sm:$0xff]   ;;  %v663_v17 = vld [vmem:[#allocation2 + $0x50] sm:$0xff]   ;;  %v664_v18 = vld [vmem:[#allocation2 + $0x20] sm:$0xff]   ;;  %s225_s30 = scalar_lea.vmem %s903_s3, %s917_s12 }
  0x48   : > { %575 = vmatprep.subr.bf16.mxu0 %v759_v0  ;;  %591 = vmatprep.subr.bf16.mxu1 %v759_v0  ;;  %v256_v8 = vunpack.c.0.s8 %v255_v4  ;;  %s219_s23 = scalar_lea.vmem %s900_s0, %s541_s17  ;;  %v665_v22 = vld [vmem:[#allocation2 + $0x58] sm:$0xff]   ;;  %v666_v23 = vld [vmem:[#allocation2 + $0x28] sm:$0xff]   ;;  %v556_v27 = vld [vmem:[#allocation4] ss:$0 sm:$0xff] }
  0x49   : > { %v227_v15 = vld [vmem:[%s219_s23] sm:$0x3] }
  0x4a   : > { %v259_v12 = vsub.s32 %v256_v8, %v258_v9 }
  0x4b   : > { %576 = vmatpush3.bf16.msra.mxu0 %v657_v6  ;;  %592 = vmatpush3.bf16.msra.mxu1 %v658_v7 }
  0x4c   : > { %577 = vmatprep.subr.bf16.mxu0 %v759_v0  ;;  %593 = vmatprep.subr.bf16.mxu1 %v759_v0  ;;  %v260_v16 = vrot.slane %v227_v15, %v259_v12 }
  0x4e   : > { %v264_v19 = vshll.u32 %v260_v16, 16  ;;  %v262_v20 = vshrl.u32 %v260_v16, 16 }
  0x4f   : > { %578 = vmatpush3.bf16.msra.mxu0 %v659_v10  ;;  %594 = vmatpush3.bf16.msra.mxu1 %v660_v11 }
  0x50   : > { %579 = vmatprep.subr.bf16.mxu0 %v759_v0  ;;  %595 = vmatprep.subr.bf16.mxu1 %v759_v0  ;;  %v266_v21 = vrot.slane %v264_v19, 1 }
  0x52   : > { %v267_v24 = vor.u32 %v266_v21, %v262_v20 }
  0x53   : > { %580 = vmatpush3.bf16.msra.mxu0 %v661_v13  ;;  %596 = vmatpush3.bf16.msra.mxu1 %v662_v14 }
  0x54   : > { %581 = vmatprep.subr.bf16.mxu0 %v759_v0  ;;  %597 = vmatprep.subr.bf16.mxu1 %v759_v0 }
  0x57   : > { %582 = vmatpush3.bf16.msra.mxu0 %v663_v17  ;;  %598 = vmatpush3.bf16.msra.mxu1 %v664_v18 }
  0x58   : > { %583 = vmatprep.subr.bf16.mxu0 %v759_v0  ;;  %599 = vmatprep.subr.bf16.mxu1 %v759_v0 }
  0x5b   : > { %584 = vmatpush3.bf16.msra.mxu0 %v665_v22  ;;  %600 = vmatpush3.bf16.msra.mxu1 %v666_v23 }
  0x5e   : > { %586 = vmatmul.mubr.msk.bf16.vlgmr.msra.gmra.mrb[0].mxu0 %vm304_vm1, %v267_v24  ;;  %602 = vmatmul.mubr.msk.bf16.vlgmr.msra.gmra.mrb[0].mxu1 %vm304_vm1, %v227_v15 }
 0x131   : > { %v342_v25 = vpop.f32.mrb[0].mxu0  ;;  %v421_v26 = vpop.f32.mrb[0].mxu1 }
 0x132   : > { %v587_v28 = vpop.f32.mrb[1].mxu0  ;;  %v422_v29 = vadd.f32 %v421_v26, %v342_v25  ;;  %v603_v30 = vpop.f32.mrb[1].mxu1 }
 0x133   : > { %v345_v31 = vpop.f32.mrb[2].mxu0  ;;  %v424_v32 = vpop.f32.mrb[2].mxu1 }
 0x134   : > { %v588_v33 = vpop.f32.mrb[3].mxu0  ;;  %v434_v34 = vadd.f32 %v556_v27, %v422_v29  ;;  %v604_v35 = vpop.f32.mrb[3].mxu1 }
 0x136   : > { %vm435_vm2 = vcmp.ge.f32.partialorder %v434_v34, 0.0  ;;  %v436_v36 = vmul.f32 0.1, %v434_v34 }
 0x138   : > { %v437_v37 = vsel %vm435_vm2, %v434_v34, %v436_v36 }
 0x139   : > { %v438_v38 = vpack.c.bf16 %v437_v37, %v437_v37 }
 0x13b   : > { %439 = vst [vmem:[%s225_s30] sm:$0x1] %v438_v38 }
 0x13c PF: > { %s15_s14 = sadd.s32 1, %s753_s14   ;;  %s912_s12 = smov %s749_s13 }
 0x13d   : > { %p12_p3 = scmp.ge.s32.totalorder %s15_s14, 8   ;;  %s913_s13 = smov %s915_s16 }
 0x13f   :  { %14 = sbr.rel (!%p12_p3) target bundleno = 3 (0x3), region = 74 }
 0x146   :  { %463 = vsyncpa [#allocation3], 1 }
 0x147   :  { %465 = vsyncpa [#allocation3 + $0x1], 1 }
 0x148   :  { %466 = vsyncpa [#allocation5], 1 }

// kernel: discriminator_p_forward.5
= control target key start
LH: loop header
LB: loop body
LE: loop exit
PB: predicated region body
PF: predicated region fallthrough
CT: control target
= control target key end

     0   :  { %8 = vsyncpa [#allocation3], 0  ;;  %s2778_s0 = inlined_call_operand.vmem [shape: bf16[6,2,384], index: 0, kind: input, shape index: {}]   ;;  %s2779_s1 = inlined_call_operand.hbm [shape: bf16[2,384,512], index: 1, kind: input, shape index: {}]   ;;  %s2780_s2 = inlined_call_operand.hbm [shape: f32[1,512], index: 2, kind: input, shape index: {}]   ;;  %s2781_s3 = inlined_call_operand.vmem [shape: bf16[6,1,512], index: 3, kind: output, shape index: {}]  }
   0x1   :  { %9 = vsyncpa [#allocation5], 0  ;;  %s2606_s12 = smov 0   ;;  %s2608_s13 = smov 0  }
   0x2   :  { %s2610_s14 = smov 0  }
   0x3 LB: > { %s1947_s15 = sadd.s32 4294967295, %s2578_s14   ;;  %s24_s16 = sadd.s32 1, %s2574_s13  ;;  %s2578_s14 = sphi %s2610_s14, %s15_s14   ;;  %s2574_s13 = sphi %s2608_s13, %s2795_s13   ;;  %s2570_s12 = sphi %s2606_s12, %s2794_s12  }
   0x4   : > { %p25_p0 = scmp.ge.s32.totalorder %s24_s16, 6  ;;  %p1949_p1 = scmp.ge.s32.totalorder %s2578_s14, 1 }
   0x5   : > { %p138_p2 = scmp.lt.s32.totalorder %s2578_s14, 7  ;;  %p2631_p4 = scmp.eq.s32.totalorder %s1947_s15, 0 }
   0x6   : > { %s2797_s16 = smov (%p25_p0, %s24_s16), 0  ;;  %s2580_s19 = smov [#allocation2]  }
   0x7   : > { %p2627_p3 = pnand %p1949_p1, %p138_p2  ;;  %s153_s20 = sshll.u32 %s2580_s19, 4  ;;  %s154_s20 = int_to_ptr.vmem [resolvable:$true] %s153_s20 }
   0x8   : > { %s2786_s18 = scalar_select %p2631_p4, 1, 0 }
   0x9   : > { %s2785_s17 = scalar_select %p2627_p3, 1, 0 }
   0xa   : > { %p2163_p5 = pneg %p2627_p3  ;;  %s2581_s22 = smov [#allocation4]  }
   0xb   : > { %s170_s23 = sshll.u32 %s2581_s22, 4  ;;  %s2492_s26 = scalar_lea.hbm %s2779_s1, 24576  ;;  %s2643_s23 = int_to_ptr.vmem [resolvable:$true] %s170_s23 }
   0xc   : > { %p2639_p6 = pnand %p2631_p4, %p2163_p5  ;;  %p2493_p7 = scmp.ne.s32.totalorder %s2779_s1, %s2492_s26 }
   0xd   : > { %p2499_p11 = scmp.lt.u32.totalorder %s2492_s26, %s2779_s1 }
   0xe   : > { %p2494_p8 = pneg %p2639_p6 }
  0x10   : > { %p2495_p9 = pnand %p2494_p8, %p2493_p7 }
  0x12   : > { %p2496_p10 = pneg %p2495_p9 }
  0x14   : > { %p2501_p12 = pnand %p2499_p11, %p2496_p10 }
  0x16   : > { %2504 = shalt.err (!%p2501_p12)
}
  0x17   : > { %s2505_s4 = scalar_lea.vmem %s154_s20, 24576  ;;  %p2513_p2 = scmp.lt.s32.totalorder %s154_s20, %s154_s20 }
  0x18   : > { %p2506_p13 = scmp.ne.s32.totalorder %s154_s20, %s2505_s4  ;;  %p2514_p5 = scmp.lt.s32.totalorder %s2505_s4, %s2505_s4 }
  0x1a   : > { %p2508_p0 = pnand %p2506_p13, %p2494_p8  ;;  %p2515_p4 = por %p2514_p5, %p2513_p2 }
  0x1c   : > { %p2509_p1 = pneg %p2508_p0 }
  0x1e   : > { %p2516_p3 = pnand %p2515_p4, %p2509_p1 }
  0x20   : > { %2519 = shalt.err (!%p2516_p3)
}
  0x21   : > { %s2582_s5 = smov 256   ;;  %s2583_s6 = smov 16  }
  0x22   : > { %2166 = dma.hbm_to_vmem [thread:$0]  (!%p2639_p6), %s2779_s1, 24576, %s154_s20, [#allocation3], %s2582_s5, %s2582_s5, %s2583_s6  }
  0x23   : > { %s2520_s11 = scalar_lea.hbm %s2780_s2, 64 }
  0x24   : > { %p2521_p7 = scmp.ne.s32.totalorder %s2780_s2, %s2520_s11  ;;  %p2527_p9 = scmp.lt.u32.totalorder %s2520_s11, %s2780_s2 }
  0x26   : > { %p2523_p3 = pnand %p2521_p7, %p2494_p8 }
  0x28   : > { %p2524_p4 = pneg %p2523_p3 }
  0x2a   : > { %p2529_p10 = pnand %p2527_p9, %p2524_p4 }
  0x2c   : > { %2532 = shalt.err (!%p2529_p10)
}
  0x2d   : > { %s2533_s20 = scalar_lea.vmem %s2643_s23, 64  ;;  %p2541_p0 = scmp.lt.s32.totalorder %s2643_s23, %s2643_s23 }
  0x2e   : > { %p2534_p11 = scmp.ne.s32.totalorder %s2643_s23, %s2533_s20  ;;  %p2542_p1 = scmp.lt.s32.totalorder %s2533_s20, %s2533_s20 }
  0x30   : > { %p2536_p12 = pnand %p2534_p11, %p2494_p8  ;;  %p2543_p2 = por %p2542_p1, %p2541_p0 }
  0x32   : > { %p2537_p13 = pneg %p2536_p12 }
  0x34   : > { %p2544_p5 = pnand %p2543_p2, %p2537_p13 }
  0x36   : > { %2547 = shalt.err (!%p2544_p5)
}
  0x37   : > { %2169 = dma.hbm_to_vmem [thread:$0]  (!%p2639_p6), %s2780_s2, 64, %s2643_s23, [#allocation5]  }
  0x38   : > { %p2788_p7 = scmp.ne.s32.totalorder %s2785_s17, 0 }
  0x39   : > { %p2789_p3 = scmp.ne.s32.totalorder (!%p2788_p7), %s2786_s18, 0 }
  0x3a   : > { %190 = sbr.rel (%p2788_p7) target bundleno = 494 (0x1ee), region = 32 }
  0x41   : > { %2561 = dma.done.wait (%p2789_p3), [#allocation3], 24576  }
  0x42   : > { %2563 = vsyncadd (%p2789_p3), [#allocation3], 4294942720 }
  0x43   : > { %2565 = dma.done.wait (%p2789_p3), [#allocation5], 64  }
  0x44   : > { %2567 = vsyncadd (%p2789_p3), [#allocation5], 4294967232  ;;  %v2584_v0 = vmov 0   ;;  %v2204_v1 = vld [vmem:[#allocation2 + $0x304] ss:$16 sps:$4 sm:$0xff]   ;;  %p220_p6 = scmp.lt.s32.totalorder %s2570_s12, 5  ;;  %v442_v18 = vlaneseq }
  0x45   : > { %1019 = vmatprep.mubr.bf16.mxu1 %v2584_v0  ;;  %v2206_v2 = vld [vmem:[#allocation2 + $0x504] ss:$16 sps:$4 sm:$0xff]   ;;  %946 = vmatprep.subr.bf16.mxu0 %v2204_v1  ;;  %v2208_v3 = vld [vmem:[#allocation2 + $0x300] ss:$16 sps:$4 sm:$0xff]   ;;  %v2585_v16 = vmov 1966171168  }
  0x46   : > { %v2209_v4 = vld [vmem:[#allocation2 + $0x500] ss:$16 sps:$4 sm:$0xff]   ;;  %987 = vmatprep.subr.bf16.mxu1 %v2206_v2  ;;  %v2210_v5 = vld [vmem:[#allocation2 + $0x324] ss:$16 sps:$4 sm:$0xff]   ;;  %947 = vmatpush1.bf16.msra.mxu0 %v2208_v3  ;;  %s2799_s12 = smov (!%p220_p6, %s2570_s12), 5  ;;  %v440_v17 = vunpack.c.l.s4 %v2585_v16  ;;  %v2708_v25 = vshrl.u32 %v442_v18, 7 }
  0x47   : > { %988 = vmatpush1.bf16.msra.mxu1 %v2209_v4  ;;  %v2212_v6 = vld [vmem:[#allocation2 + $0x524] ss:$16 sps:$4 sm:$0xff]   ;;  %v2214_v7 = vld [vmem:[#allocation2 + $0x320] ss:$16 sps:$4 sm:$0xff]   ;;  %948 = vmatprep.subr.bf16.mxu0 %v2210_v5  ;;  %s2154_s17 = smul.u32 3, %s2799_s12  ;;  %vm1828_vm2 = vcmask 1040384  }
  0x48   : > { %v2215_v8 = vld [vmem:[#allocation2 + $0x520] ss:$16 sps:$4 sm:$0xff]   ;;  %989 = vmatprep.subr.bf16.mxu1 %v2212_v6  ;;  %v2216_v9 = vld [vmem:[#allocation2 + $0x344] ss:$16 sps:$4 sm:$0xff]   ;;  %v441_v24 = vunpack.c.0.s8 %v440_v17  ;;  %v2256_v46 = vld [vmem:[#allocation2 + $0x30c] ss:$16 sps:$4 sm:$0xff]  }
  0x49   : > { %v2218_v10 = vld [vmem:[#allocation2 + $0x544] ss:$16 sps:$4 sm:$0xff]   ;;  %v2220_v11 = vld [vmem:[#allocation2 + $0x340] ss:$16 sps:$4 sm:$0xff]   ;;  %s223_s23 = scalar_lea.vmem %s2778_s0, %s2154_s17  ;;  %v2254_v48 = vld [vmem:[#allocation2 + $0x308] ss:$16 sps:$4 sm:$0xff]  }
  0x4a   : > { %v2221_v12 = vld [vmem:[#allocation2 + $0x540] ss:$16 sps:$4 sm:$0xff]   ;;  %949 = vmatpush1.bf16.msra.mxu0 %v2214_v7  ;;  %v2222_v13 = vld [vmem:[#allocation2 + $0x364] ss:$16 sps:$4 sm:$0xff]   ;;  %v2714_v29 = vsub.s32 %v441_v24, %v2708_v25  ;;  %v2262_v51 = vld [vmem:[#allocation2 + $0x32c] ss:$16 sps:$4 sm:$0xff]  }
  0x4b   : > { %990 = vmatpush1.bf16.msra.mxu1 %v2215_v8  ;;  %950 = vmatprep.subr.bf16.mxu0 %v2216_v9  ;;  %v2224_v14 = vld [vmem:[#allocation2 + $0x564] ss:$16 sps:$4 sm:$0xff]   ;;  %v2226_v15 = vld [vmem:[#allocation2 + $0x360] ss:$16 sps:$4 sm:$0xff]   ;;  %v2260_v52 = vld [vmem:[#allocation2 + $0x328] ss:$16 sps:$4 sm:$0xff]  }
  0x4c   : > { %991 = vmatprep.subr.bf16.mxu1 %v2218_v10  ;;  %v2227_v19 = vld [vmem:[#allocation2 + $0x560] ss:$16 sps:$4 sm:$0xff]   ;;  %v2228_v20 = vld [vmem:[#allocation2 + $0x384] ss:$16 sps:$4 sm:$0xff]   ;;  %v2268_v55 = vld [vmem:[#allocation2 + $0x34c] ss:$16 sps:$4 sm:$0xff]  }
  0x4d   : > { %v2230_v21 = vld [vmem:[#allocation2 + $0x584] ss:$16 sps:$4 sm:$0xff]   ;;  %v2232_v22 = vld [vmem:[#allocation2 + $0x380] ss:$16 sps:$4 sm:$0xff]   ;;  %v2266_v56 = vld [vmem:[#allocation2 + $0x348] ss:$16 sps:$4 sm:$0xff]  }
  0x4e   : > { %951 = vmatpush1.bf16.msra.mxu0 %v2220_v11  ;;  %v2233_v23 = vld [vmem:[#allocation2 + $0x580] ss:$16 sps:$4 sm:$0xff]   ;;  %v2234_v26 = vld [vmem:[#allocation2 + $0x3a4] ss:$16 sps:$4 sm:$0xff]   ;;  %v2274_v59 = vld [vmem:[#allocation2 + $0x36c] ss:$16 sps:$4 sm:$0xff]  }
  0x4f   : > { %992 = vmatpush1.bf16.msra.mxu1 %v2221_v12  ;;  %952 = vmatprep.subr.bf16.mxu0 %v2222_v13  ;;  %v2236_v27 = vld [vmem:[#allocation2 + $0x5a4] ss:$16 sps:$4 sm:$0xff]   ;;  %v2238_v28 = vld [vmem:[#allocation2 + $0x3a0] ss:$16 sps:$4 sm:$0xff]   ;;  %v2272_v60 = vld [vmem:[#allocation2 + $0x368] ss:$16 sps:$4 sm:$0xff]  }
  0x50   : > { %993 = vmatprep.subr.bf16.mxu1 %v2224_v14  ;;  %v2239_v30 = vld [vmem:[#allocation2 + $0x5a0] ss:$16 sps:$4 sm:$0xff]   ;;  %v2240_v31 = vld [vmem:[#allocation2 + $0x3c4] ss:$16 sps:$4 sm:$0xff]   ;;  %v2280_v63 = vld [vmem:[#allocation2 + $0x38c] ss:$16 sps:$4 sm:$0xff]  }
  0x51   : > { %v2242_v32 = vld [vmem:[#allocation2 + $0x5c4] ss:$16 sps:$4 sm:$0xff]   ;;  %v1957_v33 = vld.sshfl [vmem:[%s223_s23] sm:$0x13 pattern:$0x75316420] }
  0x52   : > { %953 = vmatpush1.bf16.msra.mxu0 %v2226_v15  ;;  %v2244_v34 = vld [vmem:[#allocation2 + $0x3c0] ss:$16 sps:$4 sm:$0xff]   ;;  %v2717_v35 = vrot.slane %v1957_v33, %v2714_v29  ;;  %v438_v36 = vcombine.high %v1957_v33, %v1957_v33  ;;  %v2246_v38 = vld [vmem:[#allocation2 + $0x3e4] ss:$16 sps:$4 sm:$0xff]   ;;  %v2278_v1 = vld [vmem:[#allocation2 + $0x388] ss:$16 sps:$4 sm:$0xff]  }
  0x53   : > { %994 = vmatpush1.bf16.msra.mxu1 %v2227_v19  ;;  %954 = vmatprep.subr.bf16.mxu0 %v2228_v20  ;;  %v2245_v37 = vld [vmem:[#allocation2 + $0x5c0] ss:$16 sps:$4 sm:$0xff]   ;;  %v2248_v39 = vld [vmem:[#allocation2 + $0x5e4] ss:$16 sps:$4 sm:$0xff]   ;;  %v2286_v4 = vld [vmem:[#allocation2 + $0x3ac] ss:$16 sps:$4 sm:$0xff]  }
  0x54   : > { %995 = vmatprep.subr.bf16.mxu1 %v2230_v21  ;;  %v2720_v40 = vrot.slane %v438_v36, %v2714_v29  ;;  %v2250_v41 = vld [vmem:[#allocation2 + $0x3e0] ss:$16 sps:$4 sm:$0xff]   ;;  %v2724_v42 = vcombine.high %v2717_v35, %v2717_v35  ;;  %v2252_v45 = vld [vmem:[#allocation2 + $0x404] ss:$16 sps:$4 sm:$0xff]   ;;  %v2284_v5 = vld [vmem:[#allocation2 + $0x3a8] ss:$16 sps:$4 sm:$0xff]  }
  0x55   : > { %v2251_v44 = vld [vmem:[#allocation2 + $0x5e0] ss:$16 sps:$4 sm:$0xff]   ;;  %v2258_v50 = vld [vmem:[#allocation2 + $0x424] ss:$16 sps:$4 sm:$0xff]   ;;  %v2292_v8 = vld [vmem:[#allocation2 + $0x3cc] ss:$16 sps:$4 sm:$0xff]  }
  0x56   : > { %955 = vmatpush1.bf16.msra.mxu0 %v2232_v22  ;;  %v458_v43 = vshrl.u32 %v2720_v40, 16  ;;  %v461_v47 = vshrl.u32 %v2724_v42, 16  ;;  %v2257_v49 = vld [vmem:[#allocation2 + $0x400] ss:$16 sps:$4 sm:$0xff]   ;;  %v2264_v54 = vld [vmem:[#allocation2 + $0x444] ss:$16 sps:$4 sm:$0xff]  }
  0x57   : > { %996 = vmatpush1.bf16.msra.mxu1 %v2233_v23  ;;  %956 = vmatprep.subr.bf16.mxu0 %v2234_v26  ;;  %v2263_v53 = vld [vmem:[#allocation2 + $0x420] ss:$16 sps:$4 sm:$0xff]   ;;  %v2270_v58 = vld [vmem:[#allocation2 + $0x464] ss:$16 sps:$4 sm:$0xff]   ;;  %v2290_v9 = vld [vmem:[#allocation2 + $0x3c8] ss:$16 sps:$4 sm:$0xff]  }
  0x58   : > { %997 = vmatprep.subr.bf16.mxu1 %v2236_v27  ;;  %978 = vmatprep.mubr.bf16.mxu0 %v458_v43  ;;  %v2269_v57 = vld [vmem:[#allocation2 + $0x440] ss:$16 sps:$4 sm:$0xff]   ;;  %v2276_v62 = vld [vmem:[#allocation2 + $0x484] ss:$16 sps:$4 sm:$0xff]   ;;  %v2298_v12 = vld [vmem:[#allocation2 + $0x3ec] ss:$16 sps:$4 sm:$0xff]  }
  0x59   : > { %v2275_v61 = vld [vmem:[#allocation2 + $0x460] ss:$16 sps:$4 sm:$0xff]   ;;  %v2282_v3 = vld [vmem:[#allocation2 + $0x4a4] ss:$16 sps:$4 sm:$0xff]   ;;  %v2296_v13 = vld [vmem:[#allocation2 + $0x3e8] ss:$16 sps:$4 sm:$0xff]  }
  0x5a   : > { %957 = vmatpush1.bf16.msra.mxu0 %v2238_v28  ;;  %v2281_v2 = vld [vmem:[#allocation2 + $0x480] ss:$16 sps:$4 sm:$0xff]   ;;  %v2288_v7 = vld [vmem:[#allocation2 + $0x4c4] ss:$16 sps:$4 sm:$0xff]   ;;  %v2302_v15 = vld [vmem:[#allocation2 + $0x40c] ss:$16 sps:$4 sm:$0xff]  }
  0x5b   : > { %998 = vmatpush1.bf16.msra.mxu1 %v2239_v30  ;;  %958 = vmatprep.subr.bf16.mxu0 %v2240_v31  ;;  %v2287_v6 = vld [vmem:[#allocation2 + $0x4a0] ss:$16 sps:$4 sm:$0xff]   ;;  %v2294_v11 = vld [vmem:[#allocation2 + $0x4e4] ss:$16 sps:$4 sm:$0xff]   ;;  %v2305_v16 = vld [vmem:[#allocation2 + $0x50c] ss:$16 sps:$4 sm:$0xff]  }
  0x5c   : > { %999 = vmatprep.subr.bf16.mxu1 %v2242_v32  ;;  %v2293_v10 = vld [vmem:[#allocation2 + $0x4c0] ss:$16 sps:$4 sm:$0xff]   ;;  %v455_v17 = vshrl.u32 %v2717_v35, 16  ;;  %v2300_v18 = vld [vmem:[#allocation2 + $0x408] ss:$16 sps:$4 sm:$0xff]   ;;  %vm1831_vm4 = vcmask 1041409  }
  0x5d   : > { %v2299_v14 = vld [vmem:[#allocation2 + $0x4e0] ss:$16 sps:$4 sm:$0xff]   ;;  %v2303_v19 = vld [vmem:[#allocation2 + $0x508] ss:$16 sps:$4 sm:$0xff]   ;;  %v2308_v20 = vld [vmem:[#allocation2 + $0x42c] ss:$16 sps:$4 sm:$0xff]  }
  0x5e   : > { %959 = vmatpush1.bf16.msra.mxu0 %v2244_v34  ;;  %v2311_v21 = vld [vmem:[#allocation2 + $0x52c] ss:$16 sps:$4 sm:$0xff]   ;;  %v2306_v22 = vld [vmem:[#allocation2 + $0x428] ss:$16 sps:$4 sm:$0xff]   ;;  %vm1829_vm3 = vsmask.f32 256 }
  0x5f   : > { %1000 = vmatpush1.bf16.msra.mxu1 %v2245_v37  ;;  %960 = vmatprep.subr.bf16.mxu0 %v2246_v38  ;;  %v2309_v23 = vld [vmem:[#allocation2 + $0x528] ss:$16 sps:$4 sm:$0xff]   ;;  %v2314_v24 = vld [vmem:[#allocation2 + $0x44c] ss:$16 sps:$4 sm:$0xff]   ;;  %vm1832_vm5 = vsmask.f32 1280  ;;  %vm2750_vm6 = vmand %vm1828_vm2, %vm1829_vm3 }
  0x60   : > { %1001 = vmatprep.subr.bf16.mxu1 %v2248_v39  ;;  %v2317_v26 = vld [vmem:[#allocation2 + $0x54c] ss:$16 sps:$4 sm:$0xff]   ;;  %v2312_v27 = vld [vmem:[#allocation2 + $0x448] ss:$16 sps:$4 sm:$0xff]   ;;  %vm2754_vm7 = vmand %vm1831_vm4, %vm1832_vm5  ;;  %vm1835_vm8 = vcmask 1042434   ;;  %s1956_s27 = sshll.u32 %s2799_s12, 2 }
  0x61   : > { %v2315_v28 = vld [vmem:[#allocation2 + $0x548] ss:$16 sps:$4 sm:$0xff]   ;;  %v2320_v30 = vld [vmem:[#allocation2 + $0x46c] ss:$16 sps:$4 sm:$0xff]   ;;  %vm1836_vm9 = vsmask.f32 2304  ;;  %vm1834_vm12 = vmor %vm2754_vm7, %vm2750_vm6  ;;  %s233_s30 = scalar_lea.vmem %s2781_s3, %s1956_s27 }
  0x62   : > { %961 = vmatpush1.bf16.msra.mxu0 %v2250_v41  ;;  %v2323_v31 = vld [vmem:[#allocation2 + $0x56c] ss:$16 sps:$4 sm:$0xff]   ;;  %v2318_v32 = vld [vmem:[#allocation2 + $0x468] ss:$16 sps:$4 sm:$0xff]   ;;  %vm1837_vm13 = vmand %vm1835_vm8, %vm1836_vm9  ;;  %vm1839_vm14 = vcmask 1043459  }
  0x63   : > { %1002 = vmatpush1.bf16.msra.mxu1 %v2251_v44  ;;  %962 = vmatprep.subr.bf16.mxu0 %v2252_v45  ;;  %v2321_v33 = vld [vmem:[#allocation2 + $0x568] ss:$16 sps:$4 sm:$0xff]   ;;  %v2326_v34 = vld [vmem:[#allocation2 + $0x48c] ss:$16 sps:$4 sm:$0xff]   ;;  %vm1840_vm15 = vsmask.f32 3328 }
  0x64   : > { %1028 = vmatprep.subr.bf16.mxu1 %v2256_v46  ;;  %v2329_v36 = vld [vmem:[#allocation2 + $0x58c] ss:$16 sps:$4 sm:$0xff]   ;;  %v2324_v37 = vld [vmem:[#allocation2 + $0x488] ss:$16 sps:$4 sm:$0xff]  }
  0x65   : > { %v2327_v38 = vld [vmem:[#allocation2 + $0x588] ss:$16 sps:$4 sm:$0xff]   ;;  %v2332_v39 = vld [vmem:[#allocation2 + $0x4ac] ss:$16 sps:$4 sm:$0xff]  }
  0x66   : > { %1020 = vmatmul.mubr.bf16.vlgmr.msra.gmra.mrb[0].mxu1 %v461_v47  ;;  %963 = vmatpush1.bf16.msra.mxu0 %v2257_v49  ;;  %v2335_v41 = vld [vmem:[#allocation2 + $0x5ac] ss:$16 sps:$4 sm:$0xff]   ;;  %v2333_v44 = vld [vmem:[#allocation2 + $0x5a8] ss:$16 sps:$4 sm:$0xff]  }
  0x67   : > { %1029 = vmatpush1.bf16.msra.mxu1 %v2254_v48  ;;  %964 = vmatprep.subr.bf16.mxu0 %v2258_v50  ;;  %v2338_v45 = vld [vmem:[#allocation2 + $0x4cc] ss:$16 sps:$4 sm:$0xff]   ;;  %v2336_v48 = vld [vmem:[#allocation2 + $0x4c8] ss:$16 sps:$4 sm:$0xff]  }
  0x68   : > { %1030 = vmatprep.subr.bf16.mxu1 %v2262_v51  ;;  %1060 = vmatprep.mubr.bf16.mxu1 %v458_v43  ;;  %v2330_v43 = vld [vmem:[#allocation2 + $0x4a8] ss:$16 sps:$4 sm:$0xff]   ;;  %v2341_v46 = vld [vmem:[#allocation2 + $0x5cc] ss:$16 sps:$4 sm:$0xff]  }
  0x69   : > { %v2339_v49 = vld [vmem:[#allocation2 + $0x5c8] ss:$16 sps:$4 sm:$0xff]   ;;  %v2344_v50 = vld [vmem:[#allocation2 + $0x4ec] ss:$16 sps:$4 sm:$0xff]  }
  0x6a   : > { %965 = vmatpush1.bf16.msra.mxu0 %v2263_v53  ;;  %v2347_v51 = vld [vmem:[#allocation2 + $0x5ec] ss:$16 sps:$4 sm:$0xff]   ;;  %v2345_v53 = vld [vmem:[#allocation2 + $0x5e8] ss:$16 sps:$4 sm:$0xff]  }
  0x6b   : > { %1031 = vmatpush1.bf16.msra.mxu1 %v2260_v52  ;;  %966 = vmatprep.subr.bf16.mxu0 %v2264_v54  ;;  %v2342_v52 = vld [vmem:[#allocation2 + $0x4e8] ss:$16 sps:$4 sm:$0xff]   ;;  %v2350_v54 = vld [vmem:[#allocation2 + $0x4] ss:$16 sps:$4 sm:$0xff]  }
  0x6c   : > { %1032 = vmatprep.subr.bf16.mxu1 %v2268_v55  ;;  %v2353_v55 = vld [vmem:[#allocation2 + $0x204] ss:$16 sps:$4 sm:$0xff]  }
  0x6e   : > { %967 = vmatpush1.bf16.msra.mxu0 %v2269_v57  ;;  %v2351_v57 = vld [vmem:[#allocation2 + $0x200] ss:$16 sps:$4 sm:$0xff]  }
  0x6f   : > { %1033 = vmatpush1.bf16.msra.mxu1 %v2266_v56  ;;  %968 = vmatprep.subr.bf16.mxu0 %v2270_v58  ;;  %v2348_v56 = vld [vmem:[#allocation2] ss:$16 sps:$4 sm:$0xff]   ;;  %v2356_v58 = vld [vmem:[#allocation2 + $0x24] ss:$16 sps:$4 sm:$0xff]  }
  0x70   : > { %1034 = vmatprep.subr.bf16.mxu1 %v2274_v59  ;;  %v2359_v59 = vld [vmem:[#allocation2 + $0x224] ss:$16 sps:$4 sm:$0xff]  }
  0x72   : > { %969 = vmatpush1.bf16.msra.mxu0 %v2275_v61  ;;  %v2357_v61 = vld [vmem:[#allocation2 + $0x220] ss:$16 sps:$4 sm:$0xff]  }
  0x73   : > { %1035 = vmatpush1.bf16.msra.mxu1 %v2272_v60  ;;  %970 = vmatprep.subr.bf16.mxu0 %v2276_v62  ;;  %v2354_v60 = vld [vmem:[#allocation2 + $0x20] ss:$16 sps:$4 sm:$0xff]   ;;  %v2362_v62 = vld [vmem:[#allocation2 + $0x44] ss:$16 sps:$4 sm:$0xff]  }
  0x74   : > { %1036 = vmatprep.subr.bf16.mxu1 %v2280_v63  ;;  %v2365_v63 = vld [vmem:[#allocation2 + $0x244] ss:$16 sps:$4 sm:$0xff]  }
  0x76   : > { %971 = vmatpush1.bf16.msra.mxu0 %v2281_v2  ;;  %v2363_v2 = vld [vmem:[#allocation2 + $0x240] ss:$16 sps:$4 sm:$0xff]  }
  0x77   : > { %1037 = vmatpush1.bf16.msra.mxu1 %v2278_v1  ;;  %972 = vmatprep.subr.bf16.mxu0 %v2282_v3  ;;  %v2360_v1 = vld [vmem:[#allocation2 + $0x40] ss:$16 sps:$4 sm:$0xff]   ;;  %v2368_v3 = vld [vmem:[#allocation2 + $0x64] ss:$16 sps:$4 sm:$0xff]  }
  0x78   : > { %1038 = vmatprep.subr.bf16.mxu1 %v2286_v4  ;;  %v2366_v4 = vld [vmem:[#allocation2 + $0x60] ss:$16 sps:$4 sm:$0xff]  }
  0x7a   : > { %973 = vmatpush1.bf16.msra.mxu0 %v2287_v6  ;;  %v2374_v6 = vld [vmem:[#allocation2 + $0x84] ss:$16 sps:$4 sm:$0xff]  }
  0x7b   : > { %1039 = vmatpush1.bf16.msra.mxu1 %v2284_v5  ;;  %974 = vmatprep.subr.bf16.mxu0 %v2288_v7  ;;  %v2369_v5 = vld [vmem:[#allocation2 + $0x260] ss:$16 sps:$4 sm:$0xff]   ;;  %v2377_v7 = vld [vmem:[#allocation2 + $0x284] ss:$16 sps:$4 sm:$0xff]  }
  0x7c   : > { %1040 = vmatprep.subr.bf16.mxu1 %v2292_v8  ;;  %v2372_v8 = vld [vmem:[#allocation2 + $0x80] ss:$16 sps:$4 sm:$0xff]  }
  0x7e   : > { %975 = vmatpush1.bf16.msra.mxu0 %v2293_v10  ;;  %v2380_v10 = vld [vmem:[#allocation2 + $0xa4] ss:$16 sps:$4 sm:$0xff]  }
  0x7f   : > { %1041 = vmatpush1.bf16.msra.mxu1 %v2290_v9  ;;  %976 = vmatprep.subr.bf16.mxu0 %v2294_v11  ;;  %v2375_v9 = vld [vmem:[#allocation2 + $0x280] ss:$16 sps:$4 sm:$0xff]   ;;  %v2383_v11 = vld [vmem:[#allocation2 + $0x2a4] ss:$16 sps:$4 sm:$0xff]  }
  0x80   : > { %1042 = vmatprep.subr.bf16.mxu1 %v2298_v12  ;;  %v2378_v12 = vld [vmem:[#allocation2 + $0xa0] ss:$16 sps:$4 sm:$0xff]  }
  0x82   : > { %977 = vmatpush1.bf16.msra.mxu0 %v2299_v14  ;;  %v2386_v14 = vld [vmem:[#allocation2 + $0xc4] ss:$16 sps:$4 sm:$0xff]  }
  0x83   : > { %1043 = vmatpush1.bf16.msra.mxu1 %v2296_v13  ;;  %1069 = vmatprep.subr.bf16.mxu0 %v2305_v16  ;;  %v2381_v13 = vld [vmem:[#allocation2 + $0x2a0] ss:$16 sps:$4 sm:$0xff]  }
  0x84   : > { %1044 = vmatprep.subr.bf16.mxu1 %v2302_v15  ;;  %v2389_v15 = vld [vmem:[#allocation2 + $0x2c4] ss:$16 sps:$4 sm:$0xff]   ;;  %v2384_v16 = vld [vmem:[#allocation2 + $0xc0] ss:$16 sps:$4 sm:$0xff]  }
  0x85   : > { %979 = vmatmul.mubr.bf16.vlgmr.msra.gmra.mrb[0].mxu0 %v455_v17 }
  0x86   : > { %1070 = vmatpush1.bf16.msra.mxu0 %v2303_v19  ;;  %1101 = vmatprep.mubr.bf16.mxu0 %v2584_v0  ;;  %v2395_v19 = vld [vmem:[#allocation2 + $0x2e4] ss:$16 sps:$4 sm:$0xff]  }
  0x87   : > { %1045 = vmatpush1.bf16.msra.mxu1 %v2300_v18  ;;  %1071 = vmatprep.subr.bf16.mxu0 %v2311_v21  ;;  %v2392_v18 = vld [vmem:[#allocation2 + $0xe4] ss:$16 sps:$4 sm:$0xff]   ;;  %v2393_v21 = vld [vmem:[#allocation2 + $0x2e0] ss:$16 sps:$4 sm:$0xff]  }
  0x88   : > { %1046 = vmatprep.subr.bf16.mxu1 %v2308_v20  ;;  %v2390_v20 = vld [vmem:[#allocation2 + $0xe0] ss:$16 sps:$4 sm:$0xff]  }
  0x8a   : > { %1072 = vmatpush1.bf16.msra.mxu0 %v2309_v23  ;;  %v2401_v23 = vld [vmem:[#allocation2 + $0xc] ss:$16 sps:$4 sm:$0xff]  }
  0x8b   : > { %1047 = vmatpush1.bf16.msra.mxu1 %v2306_v22  ;;  %1073 = vmatprep.subr.bf16.mxu0 %v2317_v26  ;;  %v2398_v22 = vld [vmem:[#allocation2 + $0x104] ss:$16 sps:$4 sm:$0xff]   ;;  %v2399_v26 = vld [vmem:[#allocation2 + $0x8] ss:$16 sps:$4 sm:$0xff]  }
  0x8c   : > { %1048 = vmatprep.subr.bf16.mxu1 %v2314_v24  ;;  %v2396_v24 = vld [vmem:[#allocation2 + $0x100] ss:$16 sps:$4 sm:$0xff]  }
  0x8e   : > { %1074 = vmatpush1.bf16.msra.mxu0 %v2315_v28  ;;  %v2407_v28 = vld [vmem:[#allocation2 + $0x2c] ss:$16 sps:$4 sm:$0xff]  }
  0x8f   : > { %1049 = vmatpush1.bf16.msra.mxu1 %v2312_v27  ;;  %1075 = vmatprep.subr.bf16.mxu0 %v2323_v31  ;;  %v2404_v27 = vld [vmem:[#allocation2 + $0x124] ss:$16 sps:$4 sm:$0xff]   ;;  %v2405_v31 = vld [vmem:[#allocation2 + $0x28] ss:$16 sps:$4 sm:$0xff]  }
  0x90   : > { %1050 = vmatprep.subr.bf16.mxu1 %v2320_v30  ;;  %v2402_v30 = vld [vmem:[#allocation2 + $0x120] ss:$16 sps:$4 sm:$0xff]  }
  0x92   : > { %1076 = vmatpush1.bf16.msra.mxu0 %v2321_v33  ;;  %v2413_v33 = vld [vmem:[#allocation2 + $0x4c] ss:$16 sps:$4 sm:$0xff]  }
  0x93   : > { %1051 = vmatpush1.bf16.msra.mxu1 %v2318_v32  ;;  %1077 = vmatprep.subr.bf16.mxu0 %v2329_v36  ;;  %v2410_v32 = vld [vmem:[#allocation2 + $0x144] ss:$16 sps:$4 sm:$0xff]   ;;  %v2411_v36 = vld [vmem:[#allocation2 + $0x48] ss:$16 sps:$4 sm:$0xff]  }
  0x94   : > { %1052 = vmatprep.subr.bf16.mxu1 %v2326_v34  ;;  %v2408_v34 = vld [vmem:[#allocation2 + $0x140] ss:$16 sps:$4 sm:$0xff]  }
  0x96   : > { %1078 = vmatpush1.bf16.msra.mxu0 %v2327_v38  ;;  %v2419_v38 = vld [vmem:[#allocation2 + $0x6c] ss:$16 sps:$4 sm:$0xff]  }
  0x97   : > { %1053 = vmatpush1.bf16.msra.mxu1 %v2324_v37  ;;  %1079 = vmatprep.subr.bf16.mxu0 %v2335_v41  ;;  %v2416_v37 = vld [vmem:[#allocation2 + $0x164] ss:$16 sps:$4 sm:$0xff]   ;;  %v2417_v41 = vld [vmem:[#allocation2 + $0x68] ss:$16 sps:$4 sm:$0xff]  }
  0x98   : > { %1054 = vmatprep.subr.bf16.mxu1 %v2332_v39  ;;  %v2414_v39 = vld [vmem:[#allocation2 + $0x160] ss:$16 sps:$4 sm:$0xff]  }
  0x9a   : > { %1080 = vmatpush1.bf16.msra.mxu0 %v2333_v44  ;;  %v2425_v44 = vld [vmem:[#allocation2 + $0x8c] ss:$16 sps:$4 sm:$0xff]  }
  0x9b   : > { %1055 = vmatpush1.bf16.msra.mxu1 %v2330_v43  ;;  %1081 = vmatprep.subr.bf16.mxu0 %v2341_v46  ;;  %v2422_v43 = vld [vmem:[#allocation2 + $0x184] ss:$16 sps:$4 sm:$0xff]  }
  0x9c   : > { %1056 = vmatprep.subr.bf16.mxu1 %v2338_v45  ;;  %v2420_v45 = vld [vmem:[#allocation2 + $0x180] ss:$16 sps:$4 sm:$0xff]   ;;  %v2428_v46 = vld [vmem:[#allocation2 + $0x1a4] ss:$16 sps:$4 sm:$0xff]  }
  0x9e   : > { %1082 = vmatpush1.bf16.msra.mxu0 %v2339_v49  ;;  %v2426_v49 = vld [vmem:[#allocation2 + $0x1a0] ss:$16 sps:$4 sm:$0xff]  }
  0x9f   : > { %1057 = vmatpush1.bf16.msra.mxu1 %v2336_v48  ;;  %1083 = vmatprep.subr.bf16.mxu0 %v2347_v51  ;;  %v2431_v48 = vld [vmem:[#allocation2 + $0xac] ss:$16 sps:$4 sm:$0xff]   ;;  %v2434_v51 = vld [vmem:[#allocation2 + $0x1c4] ss:$16 sps:$4 sm:$0xff]  }
  0xa0   : > { %1058 = vmatprep.subr.bf16.mxu1 %v2344_v50  ;;  %v2429_v50 = vld [vmem:[#allocation2 + $0xa8] ss:$16 sps:$4 sm:$0xff]  }
  0xa2   : > { %1084 = vmatpush1.bf16.msra.mxu0 %v2345_v53  ;;  %v2432_v53 = vld [vmem:[#allocation2 + $0x1c0] ss:$16 sps:$4 sm:$0xff]  }
  0xa3   : > { %1059 = vmatpush1.bf16.msra.mxu1 %v2342_v52  ;;  %1593 = vmatprep.subr.bf16.mxu0 %v2350_v54  ;;  %v2437_v52 = vld [vmem:[#allocation2 + $0xcc] ss:$16 sps:$4 sm:$0xff]   ;;  %v2435_v54 = vld [vmem:[#allocation2 + $0xc8] ss:$16 sps:$4 sm:$0xff]  }
  0xa4   : > { %1634 = vmatprep.subr.bf16.mxu1 %v2353_v55  ;;  %v2440_v55 = vld [vmem:[#allocation2 + $0x1e4] ss:$16 sps:$4 sm:$0xff]  }
  0xa5   : > { %1102 = vmatmul.mubr.bf16.vlgmr.msra.gmra.mrb[4].mxu0 %v461_v47  ;;  %v2371_v47 = vld [vmem:[#allocation2 + $0x264] ss:$16 sps:$4 sm:$0xff]  }
  0xa6   : > { %1061 = vmatmul.mubr.bf16.vlgmr.msra.gmra.mrb[4].mxu1 %v455_v17  ;;  %1594 = vmatpush1.bf16.msra.mxu0 %v2348_v56  ;;  %v2387_v17 = vld [vmem:[#allocation2 + $0x2c0] ss:$16 sps:$4 sm:$0xff]   ;;  %v2443_v56 = vld [vmem:[#allocation2 + $0xec] ss:$16 sps:$4 sm:$0xff]  }
  0xa7   : > { %1635 = vmatpush1.bf16.msra.mxu1 %v2351_v57  ;;  %1595 = vmatprep.subr.bf16.mxu0 %v2356_v58  ;;  %v2438_v57 = vld [vmem:[#allocation2 + $0x1e0] ss:$16 sps:$4 sm:$0xff]   ;;  %v2441_v58 = vld [vmem:[#allocation2 + $0xe8] ss:$16 sps:$4 sm:$0xff]  }
  0xa8   : > { %1636 = vmatprep.subr.bf16.mxu1 %v2359_v59  ;;  %1666 = vmatprep.mubr.bf16.mxu1 %v2584_v0  ;;  %v2446_v59 = vld [vmem:[#allocation2 + $0x10c] ss:$16 sps:$4 sm:$0xff]  }
  0xa9   : > { %1625 = vmatprep.mubr.bf16.mxu0 %v2720_v40 }
  0xaa   : > { %1596 = vmatpush1.bf16.msra.mxu0 %v2354_v60  ;;  %v2449_v60 = vld [vmem:[#allocation2 + $0x20c] ss:$16 sps:$4 sm:$0xff]  }
  0xab   : > { %1637 = vmatpush1.bf16.msra.mxu1 %v2357_v61  ;;  %1597 = vmatprep.subr.bf16.mxu0 %v2362_v62  ;;  %v2444_v61 = vld [vmem:[#allocation2 + $0x108] ss:$16 sps:$4 sm:$0xff]  }
  0xac   : > { %1638 = vmatprep.subr.bf16.mxu1 %v2365_v63  ;;  %v2447_v62 = vld [vmem:[#allocation2 + $0x208] ss:$16 sps:$4 sm:$0xff]   ;;  %v2452_v63 = vld [vmem:[#allocation2 + $0x12c] ss:$16 sps:$4 sm:$0xff]  }
  0xae   : > { %1598 = vmatpush1.bf16.msra.mxu0 %v2360_v1  ;;  %v2455_v1 = vld [vmem:[#allocation2 + $0x22c] ss:$16 sps:$4 sm:$0xff]  }
  0xaf   : > { %1639 = vmatpush1.bf16.msra.mxu1 %v2363_v2  ;;  %1599 = vmatprep.subr.bf16.mxu0 %v2368_v3  ;;  %v2450_v2 = vld [vmem:[#allocation2 + $0x128] ss:$16 sps:$4 sm:$0xff]  }
  0xb0   : > { %1640 = vmatprep.subr.bf16.mxu1 %v2371_v47  ;;  %v2453_v3 = vld [vmem:[#allocation2 + $0x228] ss:$16 sps:$4 sm:$0xff]   ;;  %v2458_v47 = vld [vmem:[#allocation2 + $0x14c] ss:$16 sps:$4 sm:$0xff]  }
  0xb2   : > { %1600 = vmatpush1.bf16.msra.mxu0 %v2366_v4  ;;  %v2461_v4 = vld [vmem:[#allocation2 + $0x24c] ss:$16 sps:$4 sm:$0xff]  }
  0xb3   : > { %1641 = vmatpush1.bf16.msra.mxu1 %v2369_v5  ;;  %1601 = vmatprep.subr.bf16.mxu0 %v2374_v6  ;;  %v2456_v5 = vld [vmem:[#allocation2 + $0x148] ss:$16 sps:$4 sm:$0xff]  }
  0xb4   : > { %1642 = vmatprep.subr.bf16.mxu1 %v2377_v7  ;;  %v2459_v6 = vld [vmem:[#allocation2 + $0x248] ss:$16 sps:$4 sm:$0xff]   ;;  %v2464_v7 = vld [vmem:[#allocation2 + $0x16c] ss:$16 sps:$4 sm:$0xff]  }
  0xb6   : > { %1602 = vmatpush1.bf16.msra.mxu0 %v2372_v8  ;;  %v2467_v8 = vld [vmem:[#allocation2 + $0x26c] ss:$16 sps:$4 sm:$0xff]  }
  0xb7   : > { %1643 = vmatpush1.bf16.msra.mxu1 %v2375_v9  ;;  %1603 = vmatprep.subr.bf16.mxu0 %v2380_v10  ;;  %v2462_v9 = vld [vmem:[#allocation2 + $0x168] ss:$16 sps:$4 sm:$0xff]  }
  0xb8   : > { %1644 = vmatprep.subr.bf16.mxu1 %v2383_v11  ;;  %v2465_v10 = vld [vmem:[#allocation2 + $0x268] ss:$16 sps:$4 sm:$0xff]   ;;  %v2470_v11 = vld [vmem:[#allocation2 + $0x18c] ss:$16 sps:$4 sm:$0xff]  }
  0xba   : > { %1604 = vmatpush1.bf16.msra.mxu0 %v2378_v12  ;;  %v2473_v12 = vld [vmem:[#allocation2 + $0x28c] ss:$16 sps:$4 sm:$0xff]  }
  0xbb   : > { %1645 = vmatpush1.bf16.msra.mxu1 %v2381_v13  ;;  %1605 = vmatprep.subr.bf16.mxu0 %v2386_v14  ;;  %v2468_v13 = vld [vmem:[#allocation2 + $0x188] ss:$16 sps:$4 sm:$0xff]   ;;  %v2476_v14 = vld [vmem:[#allocation2 + $0x1ac] ss:$16 sps:$4 sm:$0xff]  }
  0xbc   : > { %1646 = vmatprep.subr.bf16.mxu1 %v2389_v15  ;;  %v2479_v15 = vld [vmem:[#allocation2 + $0x2ac] ss:$16 sps:$4 sm:$0xff]  }
  0xbe   : > { %1606 = vmatpush1.bf16.msra.mxu0 %v2384_v16  ;;  %v2474_v16 = vld [vmem:[#allocation2 + $0x1a8] ss:$16 sps:$4 sm:$0xff]  }
  0xbf   : > { %1647 = vmatpush1.bf16.msra.mxu1 %v2387_v17  ;;  %1607 = vmatprep.subr.bf16.mxu0 %v2392_v18  ;;  %v2477_v17 = vld [vmem:[#allocation2 + $0x2a8] ss:$16 sps:$4 sm:$0xff]   ;;  %v2482_v18 = vld [vmem:[#allocation2 + $0x1cc] ss:$16 sps:$4 sm:$0xff]  }
  0xc0   : > { %1648 = vmatprep.subr.bf16.mxu1 %v2395_v19  ;;  %v2485_v19 = vld [vmem:[#allocation2 + $0x2cc] ss:$16 sps:$4 sm:$0xff]  }
  0xc2   : > { %1608 = vmatpush1.bf16.msra.mxu0 %v2390_v20  ;;  %v2480_v20 = vld [vmem:[#allocation2 + $0x1c8] ss:$16 sps:$4 sm:$0xff]  }
  0xc3   : > { %1649 = vmatpush1.bf16.msra.mxu1 %v2393_v21  ;;  %1609 = vmatprep.subr.bf16.mxu0 %v2398_v22  ;;  %v2483_v21 = vld [vmem:[#allocation2 + $0x2c8] ss:$16 sps:$4 sm:$0xff]   ;;  %v2488_v22 = vld [vmem:[#allocation2 + $0x1ec] ss:$16 sps:$4 sm:$0xff]  }
  0xc4   : > { %1675 = vmatprep.subr.bf16.mxu1 %v2401_v23  ;;  %v2491_v23 = vld [vmem:[#allocation2 + $0x2ec] ss:$16 sps:$4 sm:$0xff]  }
  0xc6   : > { %1667 = vmatmul.mubr.bf16.vlgmr.msra.gmra.mrb[8].mxu1 %v2724_v42  ;;  %1610 = vmatpush1.bf16.msra.mxu0 %v2396_v24  ;;  %v2486_v24 = vld [vmem:[#allocation2 + $0x1e8] ss:$16 sps:$4 sm:$0xff]  }
  0xc7   : > { %1676 = vmatpush1.bf16.msra.mxu1 %v2399_v26  ;;  %1611 = vmatprep.subr.bf16.mxu0 %v2404_v27  ;;  %v2489_v26 = vld [vmem:[#allocation2 + $0x2e8] ss:$16 sps:$4 sm:$0xff]  }
  0xc8   : > { %1677 = vmatprep.subr.bf16.mxu1 %v2407_v28  ;;  %1707 = vmatprep.mubr.bf16.mxu1 %v2720_v40  ;;  %v2423_v40 = vld [vmem:[#allocation2 + $0x88] ss:$16 sps:$4 sm:$0xff]  }
  0xca   : > { %1612 = vmatpush1.bf16.msra.mxu0 %v2402_v30 }
  0xcb   : > { %1678 = vmatpush1.bf16.msra.mxu1 %v2405_v31  ;;  %1613 = vmatprep.subr.bf16.mxu0 %v2410_v32 }
  0xcc   : > { %1679 = vmatprep.subr.bf16.mxu1 %v2413_v33 }
  0xce   : > { %1614 = vmatpush1.bf16.msra.mxu0 %v2408_v34 }
  0xcf   : > { %1680 = vmatpush1.bf16.msra.mxu1 %v2411_v36  ;;  %1615 = vmatprep.subr.bf16.mxu0 %v2416_v37 }
  0xd0   : > { %1681 = vmatprep.subr.bf16.mxu1 %v2419_v38 }
  0xd2   : > { %1616 = vmatpush1.bf16.msra.mxu0 %v2414_v39 }
  0xd3   : > { %1682 = vmatpush1.bf16.msra.mxu1 %v2417_v41  ;;  %1617 = vmatprep.subr.bf16.mxu0 %v2422_v43 }
  0xd4   : > { %1683 = vmatprep.subr.bf16.mxu1 %v2425_v44 }
  0xd6   : > { %1618 = vmatpush1.bf16.msra.mxu0 %v2420_v45 }
  0xd7   : > { %1684 = vmatpush1.bf16.msra.mxu1 %v2423_v40  ;;  %1619 = vmatprep.subr.bf16.mxu0 %v2428_v46 }
  0xd8   : > { %1685 = vmatprep.subr.bf16.mxu1 %v2431_v48 }
  0xda   : > { %1620 = vmatpush1.bf16.msra.mxu0 %v2426_v49 }
  0xdb   : > { %1686 = vmatpush1.bf16.msra.mxu1 %v2429_v50  ;;  %1621 = vmatprep.subr.bf16.mxu0 %v2434_v51 }
  0xdc   : > { %1687 = vmatprep.subr.bf16.mxu1 %v2437_v52 }
  0xde   : > { %1622 = vmatpush1.bf16.msra.mxu0 %v2432_v53  ;;  %v1761_v53 = vsub.s32 0, %v2708_v25 }
  0xdf   : > { %1688 = vmatpush1.bf16.msra.mxu1 %v2435_v54  ;;  %1623 = vmatprep.subr.bf16.mxu0 %v2440_v55  ;;  %v1757_v54 = vld [vmem:[#allocation4] sm:$0xf]  ;;  %v1765_v55 = vsub.s32 1, %v2708_v25 }
  0xe0   : > { %1689 = vmatprep.subr.bf16.mxu1 %v2443_v56 }
  0xe2   : > { %1624 = vmatpush1.bf16.msra.mxu0 %v2438_v57 }
  0xe3   : > { %1690 = vmatpush1.bf16.msra.mxu1 %v2441_v58  ;;  %1716 = vmatprep.subr.bf16.mxu0 %v2449_v60  ;;  %v1762_v58 = vrot.slane %v1757_v54, %v1761_v53 }
  0xe4   : > { %1691 = vmatprep.subr.bf16.mxu1 %v2446_v59 }
  0xe5   : > { %1626 = vmatmul.mubr.bf16.vlgmr.msra.gmra.mrb[8].mxu0 %v2717_v35 }
  0xe6   : > { %1717 = vmatpush1.bf16.msra.mxu0 %v2447_v62  ;;  %1748 = vmatprep.mubr.bf16.mxu0 %v2584_v0  ;;  %v2471_v0 = vld [vmem:[#allocation2 + $0x288] ss:$16 sps:$4 sm:$0xff]  }
  0xe7   : > { %1692 = vmatpush1.bf16.msra.mxu1 %v2444_v61  ;;  %1718 = vmatprep.subr.bf16.mxu0 %v2455_v1  ;;  %v1766_v61 = vrot.slane %v1757_v54, %v1765_v55 }
  0xe8   : > { %1693 = vmatprep.subr.bf16.mxu1 %v2452_v63 }
  0xea   : > { %1719 = vmatpush1.bf16.msra.mxu0 %v2453_v3 }
  0xeb   : > { %1694 = vmatpush1.bf16.msra.mxu1 %v2450_v2  ;;  %1720 = vmatprep.subr.bf16.mxu0 %v2461_v4 }
  0xec   : > { %1695 = vmatprep.subr.bf16.mxu1 %v2458_v47 }
  0xee   : > { %1721 = vmatpush1.bf16.msra.mxu0 %v2459_v6 }
  0xef   : > { %1696 = vmatpush1.bf16.msra.mxu1 %v2456_v5  ;;  %1722 = vmatprep.subr.bf16.mxu0 %v2467_v8 }
  0xf0   : > { %1697 = vmatprep.subr.bf16.mxu1 %v2464_v7 }
  0xf2   : > { %1723 = vmatpush1.bf16.msra.mxu0 %v2465_v10  ;;  %v1773_v10 = vsub.s32 3, %v2708_v25 }
  0xf3   : > { %1698 = vmatpush1.bf16.msra.mxu1 %v2462_v9  ;;  %1724 = vmatprep.subr.bf16.mxu0 %v2473_v12  ;;  %v1769_v9 = vsub.s32 2, %v2708_v25 }
  0xf4   : > { %1699 = vmatprep.subr.bf16.mxu1 %v2470_v11 }
  0xf6   : > { %1725 = vmatpush1.bf16.msra.mxu0 %v2471_v0  ;;  %v1770_v0 = vrot.slane %v1757_v54, %v1769_v9 }
  0xf7   : > { %1700 = vmatpush1.bf16.msra.mxu1 %v2468_v13  ;;  %1726 = vmatprep.subr.bf16.mxu0 %v2479_v15 }
  0xf8   : > { %1701 = vmatprep.subr.bf16.mxu1 %v2476_v14 }
  0xfa   : > { %1727 = vmatpush1.bf16.msra.mxu0 %v2477_v17  ;;  %v1774_v17 = vrot.slane %v1757_v54, %v1773_v10 }
  0xfb   : > { %1702 = vmatpush1.bf16.msra.mxu1 %v2474_v16  ;;  %1728 = vmatprep.subr.bf16.mxu0 %v2485_v19 }
  0xfc   : > { %1703 = vmatprep.subr.bf16.mxu1 %v2482_v18 }
  0xfe   : > { %1729 = vmatpush1.bf16.msra.mxu0 %v2483_v21 }
  0xff   : > { %1704 = vmatpush1.bf16.msra.mxu1 %v2480_v20  ;;  %1730 = vmatprep.subr.bf16.mxu0 %v2491_v23 }
 0x100   : > { %1705 = vmatprep.subr.bf16.mxu1 %v2488_v22 }
 0x102   : > { %1731 = vmatpush1.bf16.msra.mxu0 %v2489_v26 }
 0x103   : > { %1706 = vmatpush1.bf16.msra.mxu1 %v2486_v24 }
 0x105   : > { %1749 = vmatmul.mubr.bf16.vlgmr.msra.gmra.mrb[12].mxu0 %v2724_v42 }
 0x106   : > { %1708 = vmatmul.mubr.bf16.vlgmr.msra.gmra.mrb[12].mxu1 %v2717_v35 }
 0x139   : > { %v1021_v27 = vpop.f32.mrb[0].mxu1 }
 0x13a   : > { %v1023_v28 = vpop.f32.mrb[1].mxu1 }
 0x13b   : > { %v1025_v30 = vpop.f32.mrb[2].mxu1 }
 0x13c   : > { %v1026_v31 = vpop.f32.mrb[3].mxu1 }
 0x158   : > { %v980_v32 = vpop.f32.mrb[0].mxu0 }
 0x159   : > { %v1022_v33 = vadd.f32 %v1021_v27, %v980_v32  ;;  %v982_v34 = vpop.f32.mrb[1].mxu0 }
 0x15a   : > { %v1024_v36 = vadd.f32 %v1023_v28, %v982_v34  ;;  %v984_v37 = vpop.f32.mrb[2].mxu0 }
 0x15b   : > { %v985_v38 = vpop.f32.mrb[3].mxu0 }
 0x15c   : > { %v1843_v38 = vld [vmem:[%s233_s30] sm:$0xf] }
 0x178   : > { %v1103_v41 = vpop.f32.mrb[4].mxu0 }
 0x179   : > { %v1062_v39 = vpop.f32.mrb[4].mxu1  ;;  %v1105_v45 = vpop.f32.mrb[5].mxu0 }
 0x17a   : > { %v1104_v43 = vadd.f32 %v1103_v41, %v1062_v39  ;;  %v1064_v44 = vpop.f32.mrb[5].mxu1  ;;  %v1107_v35 = vpop.f32.mrb[6].mxu0 }
 0x17b   : > { %v1106_v40 = vadd.f32 %v1105_v45, %v1064_v44  ;;  %v1066_v46 = vpop.f32.mrb[6].mxu1  ;;  %v1108_v42 = vpop.f32.mrb[7].mxu0 }
 0x17c   : > { %v1067_v48 = vpop.f32.mrb[7].mxu1 }
 0x199   : > { %v1668_v49 = vpop.f32.mrb[8].mxu1 }
 0x19a   : > { %v1670_v50 = vpop.f32.mrb[9].mxu1 }
 0x19b   : > { %v1672_v51 = vpop.f32.mrb[10].mxu1 }
 0x19c   : > { %v1673_v52 = vpop.f32.mrb[11].mxu1 }
 0x1b8   : > { %v1627_v56 = vpop.f32.mrb[8].mxu0 }
 0x1b9   : > { %v1628_v57 = vadd.f32 %v1627_v56, %v1022_v33  ;;  %v1629_v59 = vpop.f32.mrb[9].mxu0 }
 0x1ba   : > { %v1630_v60 = vadd.f32 %v1629_v59, %v1024_v36  ;;  %v1631_v62 = vpop.f32.mrb[10].mxu0 }
 0x1bb   : > { %v1669_v63 = vadd.f32 %v1668_v49, %v1628_v57  ;;  %v1632_v1 = vpop.f32.mrb[11].mxu0 }
 0x1bc   : > { %v1671_v2 = vadd.f32 %v1670_v50, %v1630_v60 }
 0x1bd   : > { %v1779_v3 = vadd.f32 %v1762_v58, %v1669_v63 }
 0x1be   : > { %v1780_v47 = vadd.f32 %v1766_v61, %v1671_v2 }
 0x1bf   : > { %vm1783_vm0 = vcmp.ge.f32.partialorder %v1779_v3, 0.0  ;;  %v1787_v4 = vmul.f32 0.1, %v1779_v3 }
 0x1c0   : > { %vm1784_vm1 = vcmp.ge.f32.partialorder %v1780_v47, 0.0  ;;  %v1788_v5 = vmul.f32 0.1, %v1780_v47 }
 0x1c1   : > { %v1791_v6 = vsel %vm1783_vm0, %v1779_v3, %v1787_v4  ;;  %vm1838_vm0 = vmor %vm1837_vm13, %vm1834_vm12 }
 0x1c2   : > { %v1792_v7 = vsel %vm1784_vm1, %v1780_v47, %v1788_v5  ;;  %vm1841_vm1 = vmand %vm1839_vm14, %vm1840_vm15 }
 0x1c3   : > { %v2150_v8 = vpack.c.bf16 %v1792_v7, %v1791_v6  ;;  %vm1842_vm2 = vmor %vm1841_vm1, %vm1838_vm0 }
 0x1c5   : > { %v1811_v34 = vrot.slane %v2150_v8, %v2714_v29 }
 0x1d8   : > { %v1750_v12 = vpop.f32.mrb[12].mxu0 }
 0x1d9   : > { %v1709_v11 = vpop.f32.mrb[12].mxu1  ;;  %v1752_v15 = vpop.f32.mrb[13].mxu0 }
 0x1da   : > { %v1710_v13 = vadd.f32 %v1709_v11, %v1104_v43  ;;  %v1711_v14 = vpop.f32.mrb[13].mxu1  ;;  %v1754_v19 = vpop.f32.mrb[14].mxu0 }
 0x1db   : > { %v1712_v16 = vadd.f32 %v1711_v14, %v1106_v40  ;;  %v1713_v18 = vpop.f32.mrb[14].mxu1  ;;  %v1755_v22 = vpop.f32.mrb[15].mxu0 }
 0x1dc   : > { %v1751_v20 = vadd.f32 %v1750_v12, %v1710_v13  ;;  %v1714_v21 = vpop.f32.mrb[15].mxu1 }
 0x1dd   : > { %v1753_v23 = vadd.f32 %v1752_v15, %v1712_v16 }
 0x1de   : > { %v1781_v24 = vadd.f32 %v1770_v0, %v1751_v20 }
 0x1df   : > { %v1782_v27 = vadd.f32 %v1774_v17, %v1753_v23 }
 0x1e0   : > { %vm1785_vm10 = vcmp.ge.f32.partialorder %v1781_v24, 0.0  ;;  %v1789_v28 = vmul.f32 0.1, %v1781_v24 }
 0x1e1   : > { %vm1786_vm11 = vcmp.ge.f32.partialorder %v1782_v27, 0.0  ;;  %v1790_v30 = vmul.f32 0.1, %v1782_v27 }
 0x1e2   : > { %v1793_v31 = vsel %vm1785_vm10, %v1781_v24, %v1789_v28 }
 0x1e3   : > { %v1794_v32 = vsel %vm1786_vm11, %v1782_v27, %v1790_v30 }
 0x1e4   : > { %v2151_v33 = vpack.c.bf16 %v1794_v32, %v1793_v31 }
 0x1e6   : > { %v1818_v36 = vrot.slane %v2151_v33, %v2714_v29 }
 0x1e8   : > { %v1819_v37 = vcombine.low %v1811_v34, %v1818_v36 }
 0x1ea   : > { %v1826_v39 = vrot.slane %v1819_v37, %v2714_v29 }
 0x1ec   : > { %v1844_v41 = vsel %vm1842_vm2, %v1826_v39, %v1843_v38 }
 0x1ed   : > { %1845 = vst [vmem:[%s233_s30] sm:$0xf] %v1844_v41 }
 0x1ee PF: > { %s15_s14 = sadd.s32 1, %s2578_s14   ;;  %s2794_s12 = smov %s2574_s13 }
 0x1ef   : > { %p12_p8 = scmp.ge.s32.totalorder %s15_s14, 8   ;;  %s2795_s13 = smov %s2797_s16 }
 0x1f1   :  { %14 = sbr.rel (!%p12_p8) target bundleno = 3 (0x3), region = 74 }
 0x1f8   :  { %1874 = vsyncpa [#allocation3], 1 }
 0x1f9   :  { %1876 = vsyncpa [#allocation3 + $0x1], 1 }
 0x1fa   :  { %1877 = vsyncpa [#allocation5], 1 }

// kernel: discriminator_p_forward.6
= control target key start
LH: loop header
LB: loop body
LE: loop exit
PB: predicated region body
PF: predicated region fallthrough
CT: control target
= control target key end

     0   :  { %8 = vsyncpa [#allocation3], 0  ;;  %s9974_s0 = inlined_call_operand.vmem [shape: bf16[6,2,1536], index: 0, kind: input, shape index: {}]   ;;  %s9975_s1 = inlined_call_operand.hbm [shape: bf16[2,1536,1024], index: 1, kind: input, shape index: {}]   ;;  %s9976_s2 = inlined_call_operand.hbm [shape: f32[1,1024], index: 2, kind: input, shape index: {}]   ;;  %s9977_s3 = inlined_call_operand.vmem [shape: bf16[6,1,1024], index: 3, kind: output, shape index: {}]  }
   0x1   :  { %10 = vsyncpa [#allocation3 + $0x1], 0 }
   0x2   :  { %11 = vsyncpa [#allocation5], 0 }
   0x3   :  { %13 = vsyncpa [#allocation5 + $0x1], 0  ;;  %s8778_s12 = smov 0   ;;  %s8780_s13 = smov 0  }
   0x4   :  { %s8782_s14 = smov 0   ;;  %s8784_s15 = smov 0  }
   0x5   :  { %s8786_s16 = smov 0   ;;  %s8788_s17 = smov 0  }
   0x6   :  { %s8790_s18 = smov 0   ;;  %s8792_s19 = smov 0  }
   0x7 LB: > { %s6212_s20 = sadd.s32 4294967295, %s8750_s19   ;;  %s28_s21 = sadd.s32 1, %s8742_s17  ;;  %s8750_s19 = sphi %s8792_s19, %s19_s19   ;;  %s8746_s18 = sphi %s8790_s18, %s9997_s18   ;;  %s8742_s17 = sphi %s8788_s17, %s9996_s17   ;;  %s8738_s16 = sphi %s8786_s16, %s9995_s16   ;;  %s8734_s15 = sphi %s8784_s15, %s9994_s15   ;;  %s8730_s14 = sphi %s8782_s14, %s9993_s14   ;;  %s8726_s13 = sphi %s8780_s13, %s9992_s13   ;;  %s8722_s12 = sphi %s8778_s12, %s9991_s12  }
   0x8   : > { %p29_p0 = scmp.ge.s32.totalorder %s28_s21, 6  ;;  %s31_s22 = sadd.s32 1, %s8746_s18 }
   0x9   : > { %s64_s23 = sadd.s32 1, %s8730_s14  ;;  %p71_p1 = scmp.ne.s32.totalorder %s8730_s14, %s8726_s13 }
   0xa   : > { %s9999_s21 = smov (%p29_p0, %s28_s21), 0  ;;  %s10001_s22 = smov (!%p29_p0, %s31_s22), %s8746_s18 }
   0xb   : > { %p72_p2 = scmp.eq.s32.totalorder %s8750_s19, 0  ;;  %p77_p3 = scmp.ne.s32.totalorder %s8726_s13, %s8722_s12 }
   0xc   : > { %p33_p4 = scmp.ge.s32.totalorder %s10001_s22, 2  ;;  %p78_p5 = scmp.eq.s32.totalorder %s6212_s20, 0 }
   0xd   : > { %p8827_p6 = por %p72_p2, %p71_p1  ;;  %p7398_p8 = scmp.lt.s32.totalorder %s8750_s19, 12 }
   0xe   : > { %s10003_s22 = smov (%p33_p4, %s10001_s22), 0  ;;  %p8833_p7 = por %p78_p5, %p77_p3 }
   0xf   : > { %s61_s26 = ssub.s32 %s8746_s18, %s10003_s22  ;;  %s8841_s27 = sand.u32 1, %s8730_s14  }
  0x10   : > { %s9980_s25 = scalar_select %p8833_p7, 1, 0 }
  0x11   : > { %p62_p9 = scmp.eq.s32.totalorder %s61_s26, 0  ;;  %s7384_s28 = smul.u32 6144, %s8841_s27 }
  0x12   : > { %s7382_s29 = sshll.u32 %s8746_s18, 8  ;;  %p8855_p10 = pnand %p7398_p8, %p8827_p6 }
  0x13   : > { %s8846_s30 = scalar_select %p62_p9, %s8730_s14, %s64_s23  }
  0x14   : > { %s8851_s6 = scalar_lea.hbm %s9975_s1, %s7382_s29  ;;  %s166_s7 = scalar_lea.vmem [#allocation2], %s7384_s28 }
  0x15   : > { %s173_s8 = sshll.u32 %s166_s7, 4  ;;  %s163_s10 = scalar_lea.sflag [#allocation3], %s8841_s27  ;;  %s8859_s8 = int_to_ptr.vmem [resolvable:$true] %s173_s8 }
  0x16   : > { %s8620_s11 = scalar_lea.hbm %s8851_s6, 98304  ;;  %p8622_p13 = pneg %p8855_p10 }
  0x17   : > { %p8621_p12 = scmp.ne.s32.totalorder %s8851_s6, %s8620_s11  ;;  %s8625_s23 = scalar_lea.hbm %s9975_s1, 196608 }
  0x18   : > { %p8626_p2 = scmp.lt.u32.totalorder %s8851_s6, %s9975_s1  ;;  %p8627_p3 = scmp.lt.u32.totalorder %s8625_s23, %s8620_s11 }
  0x19   : > { %p8623_p0 = pnand %p8622_p13, %p8621_p12  ;;  %p8629_p5 = scmp.lt.u32.totalorder %s8620_s11, %s8851_s6 }
  0x1a   : > { %p8628_p4 = por %p8627_p3, %p8626_p2 }
  0x1b   : > { %p8624_p1 = pneg %p8623_p0 }
  0x1c   : > { %p8630_p6 = por %p8629_p5, %p8628_p4 }
  0x1e   : > { %p8631_p8 = pnand %p8630_p6, %p8624_p1 }
  0x20   : > { %8634 = shalt.err (!%p8631_p8)
}
  0x21   : > { %s8635_s28 = scalar_lea.vmem %s8859_s8, 98304  ;;  %s8752_s29 = smov [#allocation2]  }
  0x22   : > { %p8636_p9 = scmp.ne.s32.totalorder %s8859_s8, %s8635_s28  ;;  %s8640_s4 = sshll.u32 %s8752_s29, 4  ;;  %s8641_s4 = int_to_ptr.vmem [resolvable:$false] %s8640_s4 }
  0x23   : > { %s8642_s5 = scalar_lea.vmem %s8641_s4, 196608  ;;  %p8643_p11 = scmp.lt.s32.totalorder %s8859_s8, %s8641_s4 }
  0x24   : > { %p8638_p12 = pnand %p8636_p9, %p8622_p13  ;;  %p8644_p2 = scmp.lt.s32.totalorder %s8642_s5, %s8635_s28 }
  0x26   : > { %p8639_p0 = pneg %p8638_p12  ;;  %p8645_p3 = por %p8644_p2, %p8643_p11 }
  0x28   : > { %p8646_p4 = pnand %p8645_p3, %p8639_p0 }
  0x2a   : > { %8649 = shalt.err (!%p8646_p4)
}
  0x2b   : > { %s8753_s7 = smov 512   ;;  %s8754_s11 = smov 256  }
  0x2c   : > { %s8755_s12 = smov 16   ;;  %p200_p1 = scmp.lt.s32.totalorder %s8750_s19, 13 }
  0x2d   : > { %7394 = dma.hbm_to_vmem [thread:$0]  (!%p8855_p10), %s8851_s6, 98304, %s8859_s8, %s163_s10, %s8753_s7, %s8754_s11, %s8755_s12  }
  0x2e   : > { %s6218_s20 = sshll.u32 %s8841_s27, 2  ;;  %s7383_s23 = sshll.u32 %s8746_s18, 6 }
  0x2f   : > { %p9982_p11 = scmp.ge.s32.totalorder %s8750_s19, 1  ;;  %s8902_s29 = scalar_lea.hbm %s9976_s2, %s7383_s23 }
  0x30   : > { %s187_s4 = scalar_lea.vmem [#allocation4], %s6218_s20  ;;  %s184_s6 = scalar_lea.sflag [#allocation5], %s8841_s27 }
  0x31   : > { %p8895_p5 = pnand %p9982_p11, %p200_p1  ;;  %s195_s5 = sshll.u32 %s187_s4, 4  ;;  %s196_s5 = int_to_ptr.vmem [resolvable:$true] %s195_s5 }
  0x32   : > { %s8650_s8 = scalar_lea.hbm %s8902_s29, 64  ;;  %s8655_s11 = scalar_lea.hbm %s9976_s2, 128 }
  0x33   : > { %s9983_s24 = scalar_select %p8895_p5, 1, 0 }
  0x34   : > { %p8651_p6 = scmp.ne.s32.totalorder %s8902_s29, %s8650_s8  ;;  %p8656_p12 = scmp.lt.u32.totalorder %s8902_s29, %s9976_s2 }
  0x35   : > { %p8657_p0 = scmp.lt.u32.totalorder %s8655_s11, %s8650_s8  ;;  %p8659_p3 = scmp.lt.u32.totalorder %s8650_s8, %s8902_s29 }
  0x36   : > { %p8653_p8 = pnand %p8651_p6, %p8622_p13 }
  0x37   : > { %p8658_p2 = por %p8657_p0, %p8656_p12 }
  0x38   : > { %p8654_p9 = pneg %p8653_p8 }
  0x39   : > { %p8660_p4 = por %p8659_p3, %p8658_p2 }
  0x3b   : > { %p8661_p1 = pnand %p8660_p4, %p8654_p9 }
  0x3d   : > { %8664 = shalt.err (!%p8661_p1)
}
  0x3e   : > { %s8665_s27 = scalar_lea.vmem %s196_s5, 64  ;;  %s8756_s20 = smov [#allocation4]  }
  0x3f   : > { %p8666_p11 = scmp.ne.s32.totalorder %s196_s5, %s8665_s27  ;;  %s8670_s26 = sshll.u32 %s8756_s20, 4  ;;  %s8671_s26 = int_to_ptr.vmem [resolvable:$false] %s8670_s26 }
  0x40   : > { %s8672_s28 = scalar_lea.vmem %s8671_s26, 128  ;;  %p8673_p7 = scmp.lt.s32.totalorder %s196_s5, %s8671_s26 }
  0x41   : > { %p8668_p6 = pnand %p8666_p11, %p8622_p13  ;;  %p8674_p5 = scmp.lt.s32.totalorder %s8672_s28, %s8665_s27 }
  0x43   : > { %p8669_p8 = pneg %p8668_p6  ;;  %p8675_p0 = por %p8674_p5, %p8673_p7 }
  0x45   : > { %p8676_p12 = pnand %p8675_p0, %p8669_p8 }
  0x47   : > { %8679 = shalt.err (!%p8676_p12)
}
  0x48   : > { %7397 = dma.hbm_to_vmem [thread:$0]  (!%p8855_p10), %s8902_s29, 64, %s196_s5, %s184_s6  }
  0x49   : > { %p9984_p9 = scmp.ne.s32.totalorder %s9983_s24, 0 }
  0x4a   : > { %s206_s4 = sand.u32 (!%p9984_p9), 1, %s8726_s13   ;;  %p9985_p13 = scmp.ne.s32.totalorder (!%p9984_p9), %s9980_s25, 0 }
  0x4b   : > { %204 = sbr.rel (%p9984_p9) target bundleno = 1087 (0x43f), region = 32  ;;  %s207_s10 = scalar_lea.sflag (!%p9984_p9), [#allocation3], %s206_s4 }
  0x4c   : > { %s7385_s8 = smul.u32 (!%p9984_p9), 6144, %s206_s4 }
  0x4e   : > { %s8927_s7 = scalar_lea.vmem (!%p9984_p9), [#allocation2], %s7385_s8 }
  0x52   : > { %8713 = dma.done.wait (%p9985_p13), %s207_s10, 98304  }
  0x53   : > { %8715 = vsyncadd (%p9985_p13), %s207_s10, 4294868992  ;;  %s6222_s11 = sshll.u32 %s206_s4, 2  ;;  %s216_s9 = scalar_lea.sflag [#allocation5], %s206_s4 }
  0x54   : > { %s8933_s12 = scalar_lea.vmem [#allocation4], %s6222_s11 }
  0x55   : > { %8717 = dma.done.wait (%p9985_p13), %s216_s9, 64  }
  0x56   : > { %8719 = vsyncadd (%p9985_p13), %s216_s9, 4294967232  ;;  %v7467_v0 = vld [vmem:[%s8927_s7 + $0xc04] ss:$16 sps:$4 sm:$0xff]   ;;  %v7471_v2 = vld [vmem:[%s8927_s7 + $0xc00] ss:$16 sps:$4 sm:$0xff]   ;;  %p254_p7 = scmp.lt.s32.totalorder %s8734_s15, 5  ;;  %v1046_v38 = vlaneseq }
  0x57   : > { %v7469_v1 = vld [vmem:[%s8927_s7 + $0xe04] ss:$16 sps:$4 sm:$0xff]   ;;  %3083 = vmatprep.subr.bf16.mxu0 %v7467_v0  ;;  %v7472_v3 = vld [vmem:[%s8927_s7 + $0xe00] ss:$16 sps:$4 sm:$0xff]   ;;  %v8757_v36 = vmov 1966171168  }
  0x58   : > { %3124 = vmatprep.subr.bf16.mxu1 %v7469_v1  ;;  %v7473_v4 = vld [vmem:[%s8927_s7 + $0xc24] ss:$16 sps:$4 sm:$0xff]   ;;  %3084 = vmatpush1.bf16.msra.mxu0 %v7471_v2  ;;  %v7477_v6 = vld [vmem:[%s8927_s7 + $0xc20] ss:$16 sps:$4 sm:$0xff]   ;;  %s10005_s15 = smov (!%p254_p7, %s8734_s15), 5  ;;  %v1044_v37 = vunpack.c.l.s4 %v8757_v36  ;;  %v8983_v43 = vshrl.u32 %v1046_v38, 7 }
  0x59   : > { %3125 = vmatpush1.bf16.msra.mxu1 %v7472_v3  ;;  %v7475_v5 = vld [vmem:[%s8927_s7 + $0xe24] ss:$16 sps:$4 sm:$0xff]   ;;  %3085 = vmatprep.subr.bf16.mxu0 %v7473_v4  ;;  %v7478_v7 = vld [vmem:[%s8927_s7 + $0xe20] ss:$16 sps:$4 sm:$0xff]   ;;  %s7386_s25 = smul.u32 12, %s10005_s15  ;;  %s6223_s6 = sshll.u32 %s8738_s16, 2 }
  0x5a   : > { %3126 = vmatprep.subr.bf16.mxu1 %v7475_v5  ;;  %v7479_v8 = vld [vmem:[%s8927_s7 + $0xc44] ss:$16 sps:$4 sm:$0xff]   ;;  %v7483_v10 = vld [vmem:[%s8927_s7 + $0xc40] ss:$16 sps:$4 sm:$0xff]   ;;  %v1045_v42 = vunpack.c.0.s8 %v1044_v37  ;;  %vm6070_vm2 = vcmask 1040384   ;;  %p9922_p10 = scmp.lt.s32.totalorder %s6223_s6, 7 }
  0x5b   : > { %v7481_v9 = vld [vmem:[%s8927_s7 + $0xe44] ss:$16 sps:$4 sm:$0xff]   ;;  %v7484_v11 = vld [vmem:[%s8927_s7 + $0xe40] ss:$16 sps:$4 sm:$0xff]   ;;  %s8993_s5 = scalar_lea.vmem %s9974_s0, %s7386_s25  ;;  %vm6071_vm3 = vsmask.f32 256 }
  0x5c   : > { %3086 = vmatpush1.bf16.msra.mxu0 %v7477_v6  ;;  %v7485_v12 = vld [vmem:[%s8927_s7 + $0xc64] ss:$16 sps:$4 sm:$0xff]   ;;  %v7489_v14 = vld [vmem:[%s8927_s7 + $0xc60] ss:$16 sps:$4 sm:$0xff]   ;;  %v8996_v49 = vsub.s32 %v1045_v42, %v8983_v43  ;;  %vm6073_vm4 = vcmask 1041409   ;;  %vm9926_vm6 = vmand %vm6070_vm2, %vm6071_vm3  ;;  %s10007_s6 = smov (!%p9922_p10, %s6223_s6), 7 }
  0x5d   : > { %3127 = vmatpush1.bf16.msra.mxu1 %v7478_v7  ;;  %3087 = vmatprep.subr.bf16.mxu0 %v7479_v8  ;;  %v7487_v13 = vld [vmem:[%s8927_s7 + $0xe64] ss:$16 sps:$4 sm:$0xff]   ;;  %v7490_v15 = vld [vmem:[%s8927_s7 + $0xe60] ss:$16 sps:$4 sm:$0xff]   ;;  %vm6074_vm5 = vsmask.f32 1280 }
  0x5e   : > { %3128 = vmatprep.subr.bf16.mxu1 %v7481_v9  ;;  %v7491_v16 = vld [vmem:[%s8927_s7 + $0xc84] ss:$16 sps:$4 sm:$0xff]   ;;  %v7495_v18 = vld [vmem:[%s8927_s7 + $0xc80] ss:$16 sps:$4 sm:$0xff]   ;;  %vm9930_vm7 = vmand %vm6073_vm4, %vm6074_vm5  ;;  %vm6077_vm8 = vcmask 1042434   ;;  %s6224_s16 = sshll.u32 %s10005_s15, 3 }
  0x5f   : > { %v7493_v17 = vld [vmem:[%s8927_s7 + $0xe84] ss:$16 sps:$4 sm:$0xff]   ;;  %v7496_v19 = vld [vmem:[%s8927_s7 + $0xe80] ss:$16 sps:$4 sm:$0xff]   ;;  %vm6078_vm9 = vsmask.f32 2304  ;;  %vm6076_vm12 = vmor %vm9930_vm7, %vm9926_vm6  ;;  %s266_s27 = sadd.s32 %s6224_s16, %s10007_s6 }
  0x60   : > { %3088 = vmatpush1.bf16.msra.mxu0 %v7483_v10  ;;  %v7497_v20 = vld [vmem:[%s8927_s7 + $0xca4] ss:$16 sps:$4 sm:$0xff]   ;;  %v7501_v22 = vld [vmem:[%s8927_s7 + $0xca0] ss:$16 sps:$4 sm:$0xff]   ;;  %vm6079_vm13 = vmand %vm6077_vm8, %vm6078_vm9  ;;  %vm6081_vm14 = vcmask 1043459   ;;  %s267_s15 = scalar_lea.vmem %s9977_s3, %s266_s27 }
  0x61   : > { %3129 = vmatpush1.bf16.msra.mxu1 %v7484_v11  ;;  %3089 = vmatprep.subr.bf16.mxu0 %v7485_v12  ;;  %v7499_v21 = vld [vmem:[%s8927_s7 + $0xea4] ss:$16 sps:$4 sm:$0xff]   ;;  %v7502_v23 = vld [vmem:[%s8927_s7 + $0xea0] ss:$16 sps:$4 sm:$0xff]   ;;  %vm6082_vm15 = vsmask.f32 3328 }
  0x62   : > { %3130 = vmatprep.subr.bf16.mxu1 %v7487_v13  ;;  %v7503_v24 = vld [vmem:[%s8927_s7 + $0xcc4] ss:$16 sps:$4 sm:$0xff]   ;;  %v7507_v26 = vld [vmem:[%s8927_s7 + $0xcc0] ss:$16 sps:$4 sm:$0xff]  }
  0x63   : > { %v7505_v25 = vld [vmem:[%s8927_s7 + $0xec4] ss:$16 sps:$4 sm:$0xff]   ;;  %v7508_v27 = vld [vmem:[%s8927_s7 + $0xec0] ss:$16 sps:$4 sm:$0xff]  }
  0x64   : > { %3090 = vmatpush1.bf16.msra.mxu0 %v7489_v14  ;;  %v7509_v28 = vld [vmem:[%s8927_s7 + $0xce4] ss:$16 sps:$4 sm:$0xff]   ;;  %v7513_v30 = vld [vmem:[%s8927_s7 + $0xce0] ss:$16 sps:$4 sm:$0xff]  }
  0x65   : > { %3131 = vmatpush1.bf16.msra.mxu1 %v7490_v15  ;;  %3091 = vmatprep.subr.bf16.mxu0 %v7491_v16  ;;  %v7511_v29 = vld [vmem:[%s8927_s7 + $0xee4] ss:$16 sps:$4 sm:$0xff]   ;;  %v7514_v31 = vld [vmem:[%s8927_s7 + $0xee0] ss:$16 sps:$4 sm:$0xff]  }
  0x66   : > { %3132 = vmatprep.subr.bf16.mxu1 %v7493_v17  ;;  %v7515_v32 = vld [vmem:[%s8927_s7 + $0xd04] ss:$16 sps:$4 sm:$0xff]   ;;  %v7519_v34 = vld [vmem:[%s8927_s7 + $0xd00] ss:$16 sps:$4 sm:$0xff]  }
  0x67   : > { %v7517_v33 = vld [vmem:[%s8927_s7 + $0xf04] ss:$16 sps:$4 sm:$0xff]   ;;  %v7520_v35 = vld [vmem:[%s8927_s7 + $0xf00] ss:$16 sps:$4 sm:$0xff]  }
  0x68   : > { %3092 = vmatpush1.bf16.msra.mxu0 %v7495_v18  ;;  %v7521_v39 = vld [vmem:[%s8927_s7 + $0xd24] ss:$16 sps:$4 sm:$0xff]   ;;  %v7525_v41 = vld [vmem:[%s8927_s7 + $0xd20] ss:$16 sps:$4 sm:$0xff]  }
  0x69   : > { %3133 = vmatpush1.bf16.msra.mxu1 %v7496_v19  ;;  %3093 = vmatprep.subr.bf16.mxu0 %v7497_v20  ;;  %v7523_v40 = vld [vmem:[%s8927_s7 + $0xf24] ss:$16 sps:$4 sm:$0xff]   ;;  %v7526_v44 = vld [vmem:[%s8927_s7 + $0xf20] ss:$16 sps:$4 sm:$0xff]  }
  0x6a   : > { %3134 = vmatprep.subr.bf16.mxu1 %v7499_v21  ;;  %v7527_v45 = vld [vmem:[%s8927_s7 + $0xd44] ss:$16 sps:$4 sm:$0xff]   ;;  %v7531_v47 = vld [vmem:[%s8927_s7 + $0xd40] ss:$16 sps:$4 sm:$0xff]  }
  0x6b   : > { %v7529_v46 = vld [vmem:[%s8927_s7 + $0xf44] ss:$16 sps:$4 sm:$0xff]   ;;  %v7532_v48 = vld [vmem:[%s8927_s7 + $0xf40] ss:$16 sps:$4 sm:$0xff]  }
  0x6c   : > { %3094 = vmatpush1.bf16.msra.mxu0 %v7501_v22  ;;  %v7533_v50 = vld [vmem:[%s8927_s7 + $0xd64] ss:$16 sps:$4 sm:$0xff]   ;;  %v7537_v53 = vld [vmem:[%s8927_s7 + $0xd60] ss:$16 sps:$4 sm:$0xff]  }
  0x6d   : > { %3135 = vmatpush1.bf16.msra.mxu1 %v7502_v23  ;;  %3095 = vmatprep.subr.bf16.mxu0 %v7503_v24  ;;  %v7535_v51 = vld [vmem:[%s8927_s7 + $0xf64] ss:$16 sps:$4 sm:$0xff]   ;;  %v7538_v55 = vld [vmem:[%s8927_s7 + $0xf60] ss:$16 sps:$4 sm:$0xff]  }
  0x6e   : > { %3136 = vmatprep.subr.bf16.mxu1 %v7505_v25  ;;  %v269_v52 = vld [vmem:[%s8993_s5] sm:$0xff] }
  0x6f   : > { %v1049_v54 = vrot.slane %v269_v52, %v8996_v49  ;;  %v7539_v56 = vld [vmem:[%s8927_s7 + $0xd84] ss:$16 sps:$4 sm:$0xff]   ;;  %v1042_v59 = vcombine.high %v269_v52, %v269_v52  ;;  %v7543_v60 = vld [vmem:[%s8927_s7 + $0xd80] ss:$16 sps:$4 sm:$0xff]  }
  0x70   : > { %3096 = vmatpush1.bf16.msra.mxu0 %v7507_v26  ;;  %v7541_v57 = vld [vmem:[%s8927_s7 + $0xf84] ss:$16 sps:$4 sm:$0xff]   ;;  %v7544_v62 = vld [vmem:[%s8927_s7 + $0xf80] ss:$16 sps:$4 sm:$0xff]  }
  0x71   : > { %3137 = vmatpush1.bf16.msra.mxu1 %v7508_v27  ;;  %3097 = vmatprep.subr.bf16.mxu0 %v7509_v28  ;;  %v1057_v58 = vcombine.high %v1049_v54, %v1049_v54  ;;  %v7545_v63 = vld [vmem:[%s8927_s7 + $0xda4] ss:$16 sps:$4 sm:$0xff]   ;;  %v9019_v3 = vrot.slane %v1042_v59, %v8996_v49  ;;  %v7549_v5 = vld [vmem:[%s8927_s7 + $0xda0] ss:$16 sps:$4 sm:$0xff]   ;;  %v9033_v10 = vrot.slane %v1049_v54, %v8996_v49 }
  0x72   : > { %3138 = vmatprep.subr.bf16.mxu1 %v7511_v29  ;;  %v7547_v0 = vld [vmem:[%s8927_s7 + $0xfa4] ss:$16 sps:$4 sm:$0xff]   ;;  %v7550_v6 = vld [vmem:[%s8927_s7 + $0xfa0] ss:$16 sps:$4 sm:$0xff]  }
  0x73   : > { %v9008_v61 = vrot.slane %v1057_v58, %v8996_v49  ;;  %v7551_v7 = vld [vmem:[%s8927_s7 + $0xdc4] ss:$16 sps:$4 sm:$0xff]   ;;  %v1058_v9 = vcombine.high %v9019_v3, %v9019_v3  ;;  %v7555_v11 = vld [vmem:[%s8927_s7 + $0xdc0] ss:$16 sps:$4 sm:$0xff]   ;;  %v9044_v16 = vcombine.high %v9033_v10, %v9033_v10  ;;  %v1116_v22 = vshrl.u32 %v9033_v10, 16 }
  0x74   : > { %3098 = vmatpush1.bf16.msra.mxu0 %v7513_v30  ;;  %v7553_v8 = vld [vmem:[%s8927_s7 + $0xfc4] ss:$16 sps:$4 sm:$0xff]   ;;  %v7556_v12 = vld [vmem:[%s8927_s7 + $0xfc0] ss:$16 sps:$4 sm:$0xff]  }
  0x75   : > { %3139 = vmatpush1.bf16.msra.mxu1 %v7514_v31  ;;  %3099 = vmatprep.subr.bf16.mxu0 %v7515_v32  ;;  %v1119_v1 = vshrl.u32 %v9008_v61, 16  ;;  %v9016_v2 = vcombine.high %v9008_v61, %v9008_v61  ;;  %v7557_v13 = vld [vmem:[%s8927_s7 + $0xde4] ss:$16 sps:$4 sm:$0xff]   ;;  %v9040_v15 = vrot.slane %v1058_v9, %v8996_v49  ;;  %v7561_v17 = vld [vmem:[%s8927_s7 + $0xde0] ss:$16 sps:$4 sm:$0xff]   ;;  %v1122_v23 = vshrl.u32 %v9044_v16, 16 }
  0x76   : > { %3140 = vmatprep.subr.bf16.mxu1 %v7517_v33  ;;  %v7559_v14 = vld [vmem:[%s8927_s7 + $0xfe4] ss:$16 sps:$4 sm:$0xff]   ;;  %v7562_v18 = vld [vmem:[%s8927_s7 + $0xfe0] ss:$16 sps:$4 sm:$0xff]  }
  0x77   : > { %3115 = vmatprep.mubr.bf16.mxu0 %v1119_v1  ;;  %v1125_v4 = vshrl.u32 %v9016_v2, 16  ;;  %v7566_v19 = vld [vmem:[%s8927_s7 + $0x1004] ss:$16 sps:$4 sm:$0xff]   ;;  %v9052_v21 = vcombine.high %v9040_v15, %v9040_v15  ;;  %v7564_v24 = vld [vmem:[%s8927_s7 + $0x1000] ss:$16 sps:$4 sm:$0xff]   ;;  %v1131_v28 = vshrl.u32 %v9040_v15, 16 }
  0x78   : > { %3100 = vmatpush1.bf16.msra.mxu0 %v7519_v34  ;;  %v7569_v20 = vld [vmem:[%s8927_s7 + $0x1204] ss:$16 sps:$4 sm:$0xff]   ;;  %v7567_v25 = vld [vmem:[%s8927_s7 + $0x1200] ss:$16 sps:$4 sm:$0xff]  }
  0x79   : > { %3141 = vmatpush1.bf16.msra.mxu1 %v7520_v35  ;;  %3101 = vmatprep.subr.bf16.mxu0 %v7521_v39  ;;  %v7572_v26 = vld [vmem:[%s8927_s7 + $0x1024] ss:$16 sps:$4 sm:$0xff]   ;;  %v1137_v29 = vshrl.u32 %v9052_v21, 16  ;;  %v7570_v30 = vld [vmem:[%s8927_s7 + $0x1020] ss:$16 sps:$4 sm:$0xff]  }
  0x7a   : > { %3142 = vmatprep.subr.bf16.mxu1 %v7523_v40  ;;  %3156 = vmatprep.mubr.bf16.mxu1 %v1125_v4  ;;  %v7575_v27 = vld [vmem:[%s8927_s7 + $0x1224] ss:$16 sps:$4 sm:$0xff]   ;;  %v7573_v31 = vld [vmem:[%s8927_s7 + $0x1220] ss:$16 sps:$4 sm:$0xff]  }
  0x7b   : > { %v7578_v32 = vld [vmem:[%s8927_s7 + $0x1044] ss:$16 sps:$4 sm:$0xff]   ;;  %v7576_v34 = vld [vmem:[%s8927_s7 + $0x1040] ss:$16 sps:$4 sm:$0xff]  }
  0x7c   : > { %3102 = vmatpush1.bf16.msra.mxu0 %v7525_v41  ;;  %v7581_v33 = vld [vmem:[%s8927_s7 + $0x1244] ss:$16 sps:$4 sm:$0xff]   ;;  %v7579_v35 = vld [vmem:[%s8927_s7 + $0x1240] ss:$16 sps:$4 sm:$0xff]  }
  0x7d   : > { %3143 = vmatpush1.bf16.msra.mxu1 %v7526_v44  ;;  %3103 = vmatprep.subr.bf16.mxu0 %v7527_v45  ;;  %v7584_v36 = vld [vmem:[%s8927_s7 + $0x1064] ss:$16 sps:$4 sm:$0xff]   ;;  %v7582_v38 = vld [vmem:[%s8927_s7 + $0x1060] ss:$16 sps:$4 sm:$0xff]  }
  0x7e   : > { %3144 = vmatprep.subr.bf16.mxu1 %v7529_v46  ;;  %v7587_v37 = vld [vmem:[%s8927_s7 + $0x1264] ss:$16 sps:$4 sm:$0xff]   ;;  %v7585_v39 = vld [vmem:[%s8927_s7 + $0x1260] ss:$16 sps:$4 sm:$0xff]  }
  0x7f   : > { %v7590_v40 = vld [vmem:[%s8927_s7 + $0x1084] ss:$16 sps:$4 sm:$0xff]   ;;  %v7588_v42 = vld [vmem:[%s8927_s7 + $0x1080] ss:$16 sps:$4 sm:$0xff]  }
  0x80   : > { %3104 = vmatpush1.bf16.msra.mxu0 %v7531_v47  ;;  %v7593_v41 = vld [vmem:[%s8927_s7 + $0x1284] ss:$16 sps:$4 sm:$0xff]   ;;  %v7591_v44 = vld [vmem:[%s8927_s7 + $0x1280] ss:$16 sps:$4 sm:$0xff]  }
  0x81   : > { %3145 = vmatpush1.bf16.msra.mxu1 %v7532_v48  ;;  %3105 = vmatprep.subr.bf16.mxu0 %v7533_v50  ;;  %v7596_v45 = vld [vmem:[%s8927_s7 + $0x10a4] ss:$16 sps:$4 sm:$0xff]   ;;  %v7594_v47 = vld [vmem:[%s8927_s7 + $0x10a0] ss:$16 sps:$4 sm:$0xff]  }
  0x82   : > { %3146 = vmatprep.subr.bf16.mxu1 %v7535_v51  ;;  %v7599_v46 = vld [vmem:[%s8927_s7 + $0x12a4] ss:$16 sps:$4 sm:$0xff]   ;;  %v7597_v48 = vld [vmem:[%s8927_s7 + $0x12a0] ss:$16 sps:$4 sm:$0xff]  }
  0x83   : > { %v7602_v50 = vld [vmem:[%s8927_s7 + $0x10c4] ss:$16 sps:$4 sm:$0xff]   ;;  %v7600_v52 = vld [vmem:[%s8927_s7 + $0x10c0] ss:$16 sps:$4 sm:$0xff]  }
  0x84   : > { %3106 = vmatpush1.bf16.msra.mxu0 %v7537_v53  ;;  %v7605_v51 = vld [vmem:[%s8927_s7 + $0x12c4] ss:$16 sps:$4 sm:$0xff]   ;;  %v7603_v53 = vld [vmem:[%s8927_s7 + $0x12c0] ss:$16 sps:$4 sm:$0xff]  }
  0x85   : > { %3147 = vmatpush1.bf16.msra.mxu1 %v7538_v55  ;;  %3107 = vmatprep.subr.bf16.mxu0 %v7539_v56  ;;  %v7608_v54 = vld [vmem:[%s8927_s7 + $0x10e4] ss:$16 sps:$4 sm:$0xff]   ;;  %v7606_v56 = vld [vmem:[%s8927_s7 + $0x10e0] ss:$16 sps:$4 sm:$0xff]  }
  0x86   : > { %3148 = vmatprep.subr.bf16.mxu1 %v7541_v57  ;;  %v7611_v55 = vld [vmem:[%s8927_s7 + $0x12e4] ss:$16 sps:$4 sm:$0xff]   ;;  %v7609_v57 = vld [vmem:[%s8927_s7 + $0x12e0] ss:$16 sps:$4 sm:$0xff]  }
  0x87   : > { %v7614_v58 = vld [vmem:[%s8927_s7 + $0x1104] ss:$16 sps:$4 sm:$0xff]   ;;  %v7624_v9 = vld [vmem:[%s8927_s7 + $0x1140] ss:$16 sps:$4 sm:$0xff]  }
  0x88   : > { %3108 = vmatpush1.bf16.msra.mxu0 %v7543_v60  ;;  %v7617_v59 = vld [vmem:[%s8927_s7 + $0x1304] ss:$16 sps:$4 sm:$0xff]   ;;  %v7612_v60 = vld [vmem:[%s8927_s7 + $0x1100] ss:$16 sps:$4 sm:$0xff]  }
  0x89   : > { %3149 = vmatpush1.bf16.msra.mxu1 %v7544_v62  ;;  %3109 = vmatprep.subr.bf16.mxu0 %v7545_v63  ;;  %v7615_v62 = vld [vmem:[%s8927_s7 + $0x1300] ss:$16 sps:$4 sm:$0xff]   ;;  %v7620_v63 = vld [vmem:[%s8927_s7 + $0x1124] ss:$16 sps:$4 sm:$0xff]  }
  0x8a   : > { %3150 = vmatprep.subr.bf16.mxu1 %v7547_v0  ;;  %v7623_v0 = vld [vmem:[%s8927_s7 + $0x1324] ss:$16 sps:$4 sm:$0xff]  }
  0x8c   : > { %3110 = vmatpush1.bf16.msra.mxu0 %v7549_v5  ;;  %v7618_v5 = vld [vmem:[%s8927_s7 + $0x1120] ss:$16 sps:$4 sm:$0xff]  }
  0x8d   : > { %3151 = vmatpush1.bf16.msra.mxu1 %v7550_v6  ;;  %3111 = vmatprep.subr.bf16.mxu0 %v7551_v7  ;;  %v7621_v6 = vld [vmem:[%s8927_s7 + $0x1320] ss:$16 sps:$4 sm:$0xff]   ;;  %v7626_v7 = vld [vmem:[%s8927_s7 + $0x1144] ss:$16 sps:$4 sm:$0xff]  }
  0x8e   : > { %3152 = vmatprep.subr.bf16.mxu1 %v7553_v8  ;;  %v7629_v8 = vld [vmem:[%s8927_s7 + $0x1344] ss:$16 sps:$4 sm:$0xff]  }
  0x90   : > { %3112 = vmatpush1.bf16.msra.mxu0 %v7555_v11  ;;  %v7627_v11 = vld [vmem:[%s8927_s7 + $0x1340] ss:$16 sps:$4 sm:$0xff]  }
  0x91   : > { %3153 = vmatpush1.bf16.msra.mxu1 %v7556_v12  ;;  %3113 = vmatprep.subr.bf16.mxu0 %v7557_v13  ;;  %v7632_v12 = vld [vmem:[%s8927_s7 + $0x1164] ss:$16 sps:$4 sm:$0xff]  }
  0x92   : > { %3154 = vmatprep.subr.bf16.mxu1 %v7559_v14  ;;  %v7635_v13 = vld [vmem:[%s8927_s7 + $0x1364] ss:$16 sps:$4 sm:$0xff]   ;;  %v7630_v14 = vld [vmem:[%s8927_s7 + $0x1160] ss:$16 sps:$4 sm:$0xff]  }
  0x94   : > { %3114 = vmatpush1.bf16.msra.mxu0 %v7561_v17  ;;  %v7633_v17 = vld [vmem:[%s8927_s7 + $0x1360] ss:$16 sps:$4 sm:$0xff]  }
  0x95   : > { %3155 = vmatpush1.bf16.msra.mxu1 %v7562_v18  ;;  %3165 = vmatprep.subr.bf16.mxu0 %v7566_v19  ;;  %v7638_v18 = vld [vmem:[%s8927_s7 + $0x1184] ss:$16 sps:$4 sm:$0xff]  }
  0x96   : > { %3206 = vmatprep.subr.bf16.mxu1 %v7569_v20  ;;  %v7641_v19 = vld [vmem:[%s8927_s7 + $0x1384] ss:$16 sps:$4 sm:$0xff]   ;;  %v7636_v20 = vld [vmem:[%s8927_s7 + $0x1180] ss:$16 sps:$4 sm:$0xff]  }
  0x97   : > { %3116 = vmatmul.mubr.bf16.vlgmr.msra.gmra.mrb[0].mxu0 %v1116_v22 }
  0x98   : > { %3157 = vmatmul.mubr.bf16.vlgmr.msra.gmra.mrb[0].mxu1 %v1122_v23  ;;  %3166 = vmatpush1.bf16.msra.mxu0 %v7564_v24  ;;  %v7639_v24 = vld [vmem:[%s8927_s7 + $0x1380] ss:$16 sps:$4 sm:$0xff]  }
  0x99   : > { %3207 = vmatpush1.bf16.msra.mxu1 %v7567_v25  ;;  %3167 = vmatprep.subr.bf16.mxu0 %v7572_v26  ;;  %v7644_v25 = vld [vmem:[%s8927_s7 + $0x11a4] ss:$16 sps:$4 sm:$0xff]  }
  0x9a   : > { %3208 = vmatprep.subr.bf16.mxu1 %v7575_v27  ;;  %3197 = vmatprep.mubr.bf16.mxu0 %v1131_v28  ;;  %v7647_v26 = vld [vmem:[%s8927_s7 + $0x13a4] ss:$16 sps:$4 sm:$0xff]   ;;  %v7642_v27 = vld [vmem:[%s8927_s7 + $0x11a0] ss:$16 sps:$4 sm:$0xff]  }
  0x9b   : > { %3238 = vmatprep.mubr.bf16.mxu1 %v1137_v29 }
  0x9c   : > { %3168 = vmatpush1.bf16.msra.mxu0 %v7570_v30  ;;  %v7645_v30 = vld [vmem:[%s8927_s7 + $0x13a0] ss:$16 sps:$4 sm:$0xff]  }
  0x9d   : > { %3209 = vmatpush1.bf16.msra.mxu1 %v7573_v31  ;;  %3169 = vmatprep.subr.bf16.mxu0 %v7578_v32  ;;  %v7650_v31 = vld [vmem:[%s8927_s7 + $0x11c4] ss:$16 sps:$4 sm:$0xff]  }
  0x9e   : > { %3210 = vmatprep.subr.bf16.mxu1 %v7581_v33  ;;  %v7653_v32 = vld [vmem:[%s8927_s7 + $0x13c4] ss:$16 sps:$4 sm:$0xff]   ;;  %v9124_v33 = vrot.slane %v9019_v3, %v8996_v49  ;;  %v7654_v3 = vld [vmem:[%s8927_s7 + $0x11e0] ss:$16 sps:$4 sm:$0xff]  }
  0xa0   : > { %3170 = vmatpush1.bf16.msra.mxu0 %v7576_v34  ;;  %v7648_v34 = vld [vmem:[%s8927_s7 + $0x11c0] ss:$16 sps:$4 sm:$0xff]  }
  0xa1   : > { %3211 = vmatpush1.bf16.msra.mxu1 %v7579_v35  ;;  %3171 = vmatprep.subr.bf16.mxu0 %v7584_v36  ;;  %v7651_v35 = vld [vmem:[%s8927_s7 + $0x13c0] ss:$16 sps:$4 sm:$0xff]   ;;  %v7656_v36 = vld [vmem:[%s8927_s7 + $0x11e4] ss:$16 sps:$4 sm:$0xff]  }
  0xa2   : > { %3212 = vmatprep.subr.bf16.mxu1 %v7587_v37  ;;  %v7659_v37 = vld [vmem:[%s8927_s7 + $0x13e4] ss:$16 sps:$4 sm:$0xff]  }
  0xa4   : > { %3172 = vmatpush1.bf16.msra.mxu0 %v7582_v38  ;;  %v9132_v38 = vcombine.high %v9124_v33, %v9124_v33 }
  0xa5   : > { %3213 = vmatpush1.bf16.msra.mxu1 %v7585_v39  ;;  %3173 = vmatprep.subr.bf16.mxu0 %v7590_v40  ;;  %v7657_v39 = vld [vmem:[%s8927_s7 + $0x13e0] ss:$16 sps:$4 sm:$0xff]   ;;  %v7662_v40 = vld [vmem:[%s8927_s7 + $0x1404] ss:$16 sps:$4 sm:$0xff]  }
  0xa6   : > { %3214 = vmatprep.subr.bf16.mxu1 %v7593_v41  ;;  %v7665_v41 = vld [vmem:[%s8927_s7 + $0x1604] ss:$16 sps:$4 sm:$0xff]  }
  0xa8   : > { %3174 = vmatpush1.bf16.msra.mxu0 %v7588_v42  ;;  %v7660_v42 = vld [vmem:[%s8927_s7 + $0x1400] ss:$16 sps:$4 sm:$0xff]  }
  0xa9   : > { %3215 = vmatpush1.bf16.msra.mxu1 %v7591_v44  ;;  %3175 = vmatprep.subr.bf16.mxu0 %v7596_v45  ;;  %v1128_v44 = vshrl.u32 %v9124_v33, 16  ;;  %v1134_v45 = vshrl.u32 %v9132_v38, 16 }
  0xaa   : > { %3216 = vmatprep.subr.bf16.mxu1 %v7599_v46  ;;  %v7663_v46 = vld [vmem:[%s8927_s7 + $0x1600] ss:$16 sps:$4 sm:$0xff]  }
  0xac   : > { %3176 = vmatpush1.bf16.msra.mxu0 %v7594_v47  ;;  %v7668_v47 = vld [vmem:[%s8927_s7 + $0x1424] ss:$16 sps:$4 sm:$0xff]  }
  0xad   : > { %3217 = vmatpush1.bf16.msra.mxu1 %v7597_v48  ;;  %3177 = vmatprep.subr.bf16.mxu0 %v7602_v50  ;;  %v7671_v48 = vld [vmem:[%s8927_s7 + $0x1624] ss:$16 sps:$4 sm:$0xff]   ;;  %v9145_v50 = vld.sshfl [vmem:[%s8993_s5 + $0x8] sm:$0x33 pattern:$0x75316420] }
  0xae   : > { %3218 = vmatprep.subr.bf16.mxu1 %v7605_v51  ;;  %v1098_v51 = vcombine.high %v9145_v50, %v9145_v50 }
  0xb0   : > { %3178 = vmatpush1.bf16.msra.mxu0 %v7600_v52  ;;  %v7666_v52 = vld [vmem:[%s8927_s7 + $0x1420] ss:$16 sps:$4 sm:$0xff]  }
  0xb1   : > { %3219 = vmatpush1.bf16.msra.mxu1 %v7603_v53  ;;  %3179 = vmatprep.subr.bf16.mxu0 %v7608_v54  ;;  %v7669_v53 = vld [vmem:[%s8927_s7 + $0x1620] ss:$16 sps:$4 sm:$0xff]   ;;  %v7674_v54 = vld [vmem:[%s8927_s7 + $0x1444] ss:$16 sps:$4 sm:$0xff]  }
  0xb2   : > { %3220 = vmatprep.subr.bf16.mxu1 %v7611_v55  ;;  %v9157_v55 = vrot.slane %v1098_v51, %v8996_v49  ;;  %v7726_v51 = vld [vmem:[%s8927_s7 + $0x1560] ss:$16 sps:$4 sm:$0xff]  }
  0xb4   : > { %3180 = vmatpush1.bf16.msra.mxu0 %v7606_v56  ;;  %v7677_v56 = vld [vmem:[%s8927_s7 + $0x1644] ss:$16 sps:$4 sm:$0xff]  }
  0xb5   : > { %3221 = vmatpush1.bf16.msra.mxu1 %v7609_v57  ;;  %3181 = vmatprep.subr.bf16.mxu0 %v7614_v58  ;;  %v1143_v57 = vshrl.u32 %v9157_v55, 16  ;;  %v9163_v58 = vcombine.high %v9157_v55, %v9157_v55 }
  0xb6   : > { %3222 = vmatprep.subr.bf16.mxu1 %v7617_v59  ;;  %v7672_v59 = vld [vmem:[%s8927_s7 + $0x1440] ss:$16 sps:$4 sm:$0xff]  }
  0xb8   : > { %3182 = vmatpush1.bf16.msra.mxu0 %v7612_v60  ;;  %v7675_v60 = vld [vmem:[%s8927_s7 + $0x1640] ss:$16 sps:$4 sm:$0xff]  }
  0xb9   : > { %3223 = vmatpush1.bf16.msra.mxu1 %v7615_v62  ;;  %3183 = vmatprep.subr.bf16.mxu0 %v7620_v63  ;;  %v7680_v62 = vld [vmem:[%s8927_s7 + $0x1464] ss:$16 sps:$4 sm:$0xff]   ;;  %v1149_v63 = vshrl.u32 %v9163_v58, 16 }
  0xba   : > { %3224 = vmatprep.subr.bf16.mxu1 %v7623_v0  ;;  %v7683_v0 = vld [vmem:[%s8927_s7 + $0x1664] ss:$16 sps:$4 sm:$0xff]  }
  0xbc   : > { %3184 = vmatpush1.bf16.msra.mxu0 %v7618_v5  ;;  %v7678_v5 = vld [vmem:[%s8927_s7 + $0x1460] ss:$16 sps:$4 sm:$0xff]  }
  0xbd   : > { %3225 = vmatpush1.bf16.msra.mxu1 %v7621_v6  ;;  %3185 = vmatprep.subr.bf16.mxu0 %v7626_v7  ;;  %v7681_v6 = vld [vmem:[%s8927_s7 + $0x1660] ss:$16 sps:$4 sm:$0xff]   ;;  %v7686_v7 = vld [vmem:[%s8927_s7 + $0x1484] ss:$16 sps:$4 sm:$0xff]  }
  0xbe   : > { %3226 = vmatprep.subr.bf16.mxu1 %v7629_v8  ;;  %v7689_v8 = vld [vmem:[%s8927_s7 + $0x1684] ss:$16 sps:$4 sm:$0xff]  }
  0xc0   : > { %3186 = vmatpush1.bf16.msra.mxu0 %v7624_v9  ;;  %v7684_v9 = vld [vmem:[%s8927_s7 + $0x1480] ss:$16 sps:$4 sm:$0xff]  }
  0xc1   : > { %3227 = vmatpush1.bf16.msra.mxu1 %v7627_v11  ;;  %3187 = vmatprep.subr.bf16.mxu0 %v7632_v12  ;;  %v7687_v11 = vld [vmem:[%s8927_s7 + $0x1680] ss:$16 sps:$4 sm:$0xff]   ;;  %v7692_v12 = vld [vmem:[%s8927_s7 + $0x14a4] ss:$16 sps:$4 sm:$0xff]  }
  0xc2   : > { %3228 = vmatprep.subr.bf16.mxu1 %v7635_v13  ;;  %v7695_v13 = vld [vmem:[%s8927_s7 + $0x16a4] ss:$16 sps:$4 sm:$0xff]  }
  0xc4   : > { %3188 = vmatpush1.bf16.msra.mxu0 %v7630_v14  ;;  %v7690_v14 = vld [vmem:[%s8927_s7 + $0x14a0] ss:$16 sps:$4 sm:$0xff]  }
  0xc5   : > { %3229 = vmatpush1.bf16.msra.mxu1 %v7633_v17  ;;  %3189 = vmatprep.subr.bf16.mxu0 %v7638_v18  ;;  %v7693_v17 = vld [vmem:[%s8927_s7 + $0x16a0] ss:$16 sps:$4 sm:$0xff]   ;;  %v7698_v18 = vld [vmem:[%s8927_s7 + $0x14c4] ss:$16 sps:$4 sm:$0xff]  }
  0xc6   : > { %3230 = vmatprep.subr.bf16.mxu1 %v7641_v19  ;;  %v7701_v19 = vld [vmem:[%s8927_s7 + $0x16c4] ss:$16 sps:$4 sm:$0xff]  }
  0xc8   : > { %3190 = vmatpush1.bf16.msra.mxu0 %v7636_v20  ;;  %v7696_v20 = vld [vmem:[%s8927_s7 + $0x14c0] ss:$16 sps:$4 sm:$0xff]  }
  0xc9   : > { %3231 = vmatpush1.bf16.msra.mxu1 %v7639_v24  ;;  %3191 = vmatprep.subr.bf16.mxu0 %v7644_v25  ;;  %v7699_v24 = vld [vmem:[%s8927_s7 + $0x16c0] ss:$16 sps:$4 sm:$0xff]   ;;  %v7704_v25 = vld [vmem:[%s8927_s7 + $0x14e4] ss:$16 sps:$4 sm:$0xff]  }
  0xca   : > { %3232 = vmatprep.subr.bf16.mxu1 %v7647_v26  ;;  %v7707_v26 = vld [vmem:[%s8927_s7 + $0x16e4] ss:$16 sps:$4 sm:$0xff]  }
  0xcc   : > { %3192 = vmatpush1.bf16.msra.mxu0 %v7642_v27  ;;  %v7702_v27 = vld [vmem:[%s8927_s7 + $0x14e0] ss:$16 sps:$4 sm:$0xff]  }
  0xcd   : > { %3233 = vmatpush1.bf16.msra.mxu1 %v7645_v30  ;;  %3193 = vmatprep.subr.bf16.mxu0 %v7650_v31  ;;  %v7705_v30 = vld [vmem:[%s8927_s7 + $0x16e0] ss:$16 sps:$4 sm:$0xff]   ;;  %v7710_v31 = vld [vmem:[%s8927_s7 + $0x1504] ss:$16 sps:$4 sm:$0xff]  }
  0xce   : > { %3234 = vmatprep.subr.bf16.mxu1 %v7653_v32  ;;  %v7713_v32 = vld [vmem:[%s8927_s7 + $0x1704] ss:$16 sps:$4 sm:$0xff]  }
  0xd0   : > { %3194 = vmatpush1.bf16.msra.mxu0 %v7648_v34  ;;  %v7708_v34 = vld [vmem:[%s8927_s7 + $0x1500] ss:$16 sps:$4 sm:$0xff]  }
  0xd1   : > { %3235 = vmatpush1.bf16.msra.mxu1 %v7651_v35  ;;  %3195 = vmatprep.subr.bf16.mxu0 %v7656_v36  ;;  %v7711_v35 = vld [vmem:[%s8927_s7 + $0x1700] ss:$16 sps:$4 sm:$0xff]   ;;  %v7716_v36 = vld [vmem:[%s8927_s7 + $0x1524] ss:$16 sps:$4 sm:$0xff]  }
  0xd2   : > { %3236 = vmatprep.subr.bf16.mxu1 %v7659_v37  ;;  %v7719_v37 = vld [vmem:[%s8927_s7 + $0x1724] ss:$16 sps:$4 sm:$0xff]  }
  0xd4   : > { %3196 = vmatpush1.bf16.msra.mxu0 %v7654_v3  ;;  %v7714_v3 = vld [vmem:[%s8927_s7 + $0x1520] ss:$16 sps:$4 sm:$0xff]  }
  0xd5   : > { %3237 = vmatpush1.bf16.msra.mxu1 %v7657_v39  ;;  %3247 = vmatprep.subr.bf16.mxu0 %v7662_v40  ;;  %v7717_v39 = vld [vmem:[%s8927_s7 + $0x1720] ss:$16 sps:$4 sm:$0xff]   ;;  %v7722_v40 = vld [vmem:[%s8927_s7 + $0x1544] ss:$16 sps:$4 sm:$0xff]  }
  0xd6   : > { %3288 = vmatprep.subr.bf16.mxu1 %v7665_v41  ;;  %v7725_v41 = vld [vmem:[%s8927_s7 + $0x1744] ss:$16 sps:$4 sm:$0xff]  }
  0xd7   : > { %3198 = vmatmul.mubr.bf16.vlgmr.msra.gmra.mrb[4].mxu0 %v1128_v44 }
  0xd8   : > { %3239 = vmatmul.mubr.bf16.vlgmr.msra.gmra.mrb[4].mxu1 %v1134_v45  ;;  %3248 = vmatpush1.bf16.msra.mxu0 %v7660_v42  ;;  %v7720_v42 = vld [vmem:[%s8927_s7 + $0x1540] ss:$16 sps:$4 sm:$0xff]  }
  0xd9   : > { %3289 = vmatpush1.bf16.msra.mxu1 %v7663_v46  ;;  %3249 = vmatprep.subr.bf16.mxu0 %v7668_v47  ;;  %v7723_v46 = vld [vmem:[%s8927_s7 + $0x1740] ss:$16 sps:$4 sm:$0xff]   ;;  %v7728_v47 = vld [vmem:[%s8927_s7 + $0x1564] ss:$16 sps:$4 sm:$0xff]  }
  0xda   : > { %3290 = vmatprep.subr.bf16.mxu1 %v7671_v48  ;;  %3279 = vmatprep.mubr.bf16.mxu0 %v1143_v57  ;;  %v7731_v48 = vld [vmem:[%s8927_s7 + $0x1764] ss:$16 sps:$4 sm:$0xff]  }
  0xdb   : > { %3320 = vmatprep.mubr.bf16.mxu1 %v1149_v63 }
  0xdc   : > { %3250 = vmatpush1.bf16.msra.mxu0 %v7666_v52  ;;  %v7729_v52 = vld [vmem:[%s8927_s7 + $0x1760] ss:$16 sps:$4 sm:$0xff]  }
  0xdd   : > { %3291 = vmatpush1.bf16.msra.mxu1 %v7669_v53  ;;  %3251 = vmatprep.subr.bf16.mxu0 %v7674_v54  ;;  %v7734_v53 = vld [vmem:[%s8927_s7 + $0x1584] ss:$16 sps:$4 sm:$0xff]  }
  0xde   : > { %3292 = vmatprep.subr.bf16.mxu1 %v7677_v56  ;;  %v7737_v54 = vld [vmem:[%s8927_s7 + $0x1784] ss:$16 sps:$4 sm:$0xff]   ;;  %v7732_v56 = vld [vmem:[%s8927_s7 + $0x1580] ss:$16 sps:$4 sm:$0xff]  }
  0xe0   : > { %3252 = vmatpush1.bf16.msra.mxu0 %v7672_v59  ;;  %v7735_v59 = vld [vmem:[%s8927_s7 + $0x1780] ss:$16 sps:$4 sm:$0xff]  }
  0xe1   : > { %3293 = vmatpush1.bf16.msra.mxu1 %v7675_v60  ;;  %3253 = vmatprep.subr.bf16.mxu0 %v7680_v62  ;;  %v7740_v60 = vld [vmem:[%s8927_s7 + $0x15a4] ss:$16 sps:$4 sm:$0xff]  }
  0xe2   : > { %3294 = vmatprep.subr.bf16.mxu1 %v7683_v0  ;;  %v7743_v62 = vld [vmem:[%s8927_s7 + $0x17a4] ss:$16 sps:$4 sm:$0xff]   ;;  %v7738_v0 = vld [vmem:[%s8927_s7 + $0x15a0] ss:$16 sps:$4 sm:$0xff]  }
  0xe4   : > { %3254 = vmatpush1.bf16.msra.mxu0 %v7678_v5  ;;  %v7741_v5 = vld [vmem:[%s8927_s7 + $0x17a0] ss:$16 sps:$4 sm:$0xff]  }
  0xe5   : > { %3295 = vmatpush1.bf16.msra.mxu1 %v7681_v6  ;;  %3255 = vmatprep.subr.bf16.mxu0 %v7686_v7  ;;  %v7746_v6 = vld [vmem:[%s8927_s7 + $0x15c4] ss:$16 sps:$4 sm:$0xff]  }
  0xe6   : > { %3296 = vmatprep.subr.bf16.mxu1 %v7689_v8  ;;  %v7749_v7 = vld [vmem:[%s8927_s7 + $0x17c4] ss:$16 sps:$4 sm:$0xff]   ;;  %v7744_v8 = vld [vmem:[%s8927_s7 + $0x15c0] ss:$16 sps:$4 sm:$0xff]  }
  0xe8   : > { %3256 = vmatpush1.bf16.msra.mxu0 %v7684_v9  ;;  %v9221_v9 = vrot.slane %v9145_v50, %v8996_v49  ;;  %v7753_v50 = vld [vmem:[%s8927_s7 + $0x17e0] ss:$16 sps:$4 sm:$0xff]  }
  0xe9   : > { %3297 = vmatpush1.bf16.msra.mxu1 %v7687_v11  ;;  %3257 = vmatprep.subr.bf16.mxu0 %v7692_v12  ;;  %v7747_v11 = vld [vmem:[%s8927_s7 + $0x17c0] ss:$16 sps:$4 sm:$0xff]   ;;  %v7752_v12 = vld [vmem:[%s8927_s7 + $0x15e4] ss:$16 sps:$4 sm:$0xff]  }
  0xea   : > { %3298 = vmatprep.subr.bf16.mxu1 %v7695_v13  ;;  %v7755_v13 = vld [vmem:[%s8927_s7 + $0x17e4] ss:$16 sps:$4 sm:$0xff]  }
  0xec   : > { %3258 = vmatpush1.bf16.msra.mxu0 %v7690_v14  ;;  %v7750_v14 = vld [vmem:[%s8927_s7 + $0x15e0] ss:$16 sps:$4 sm:$0xff]  }
  0xed   : > { %3299 = vmatpush1.bf16.msra.mxu1 %v7693_v17  ;;  %3259 = vmatprep.subr.bf16.mxu0 %v7698_v18  ;;  %v9229_v17 = vcombine.high %v9221_v9, %v9221_v9  ;;  %v7758_v18 = vld [vmem:[%s8927_s7 + $0xc0c] ss:$16 sps:$4 sm:$0xff]  }
  0xee   : > { %3300 = vmatprep.subr.bf16.mxu1 %v7701_v19  ;;  %v7761_v19 = vld [vmem:[%s8927_s7 + $0xe0c] ss:$16 sps:$4 sm:$0xff]  }
  0xf0   : > { %3260 = vmatpush1.bf16.msra.mxu0 %v7696_v20  ;;  %v1140_v20 = vshrl.u32 %v9221_v9, 16 }
  0xf1   : > { %3301 = vmatpush1.bf16.msra.mxu1 %v7699_v24  ;;  %3261 = vmatprep.subr.bf16.mxu0 %v7704_v25  ;;  %v1146_v24 = vshrl.u32 %v9229_v17, 16  ;;  %v7756_v25 = vld [vmem:[%s8927_s7 + $0xc08] ss:$16 sps:$4 sm:$0xff]  }
  0xf2   : > { %3302 = vmatprep.subr.bf16.mxu1 %v7707_v26  ;;  %v7759_v26 = vld [vmem:[%s8927_s7 + $0xe08] ss:$16 sps:$4 sm:$0xff]  }
  0xf4   : > { %3262 = vmatpush1.bf16.msra.mxu0 %v7702_v27  ;;  %v7764_v27 = vld [vmem:[%s8927_s7 + $0xc2c] ss:$16 sps:$4 sm:$0xff]  }
  0xf5   : > { %3303 = vmatpush1.bf16.msra.mxu1 %v7705_v30  ;;  %3263 = vmatprep.subr.bf16.mxu0 %v7710_v31  ;;  %v7767_v30 = vld [vmem:[%s8927_s7 + $0xe2c] ss:$16 sps:$4 sm:$0xff]   ;;  %v7762_v31 = vld [vmem:[%s8927_s7 + $0xc28] ss:$16 sps:$4 sm:$0xff]  }
  0xf6   : > { %3304 = vmatprep.subr.bf16.mxu1 %v7713_v32  ;;  %v7765_v32 = vld [vmem:[%s8927_s7 + $0xe28] ss:$16 sps:$4 sm:$0xff]  }
  0xf8   : > { %3264 = vmatpush1.bf16.msra.mxu0 %v7708_v34  ;;  %v7770_v34 = vld [vmem:[%s8927_s7 + $0xc4c] ss:$16 sps:$4 sm:$0xff]  }
  0xf9   : > { %3305 = vmatpush1.bf16.msra.mxu1 %v7711_v35  ;;  %3265 = vmatprep.subr.bf16.mxu0 %v7716_v36  ;;  %v7773_v35 = vld [vmem:[%s8927_s7 + $0xe4c] ss:$16 sps:$4 sm:$0xff]   ;;  %v7768_v36 = vld [vmem:[%s8927_s7 + $0xc48] ss:$16 sps:$4 sm:$0xff]  }
  0xfa   : > { %3306 = vmatprep.subr.bf16.mxu1 %v7719_v37  ;;  %v7771_v37 = vld [vmem:[%s8927_s7 + $0xe48] ss:$16 sps:$4 sm:$0xff]  }
  0xfc   : > { %3266 = vmatpush1.bf16.msra.mxu0 %v7714_v3  ;;  %v7776_v3 = vld [vmem:[%s8927_s7 + $0xc6c] ss:$16 sps:$4 sm:$0xff]  }
  0xfd   : > { %3307 = vmatpush1.bf16.msra.mxu1 %v7717_v39  ;;  %3267 = vmatprep.subr.bf16.mxu0 %v7722_v40  ;;  %v7779_v39 = vld [vmem:[%s8927_s7 + $0xe6c] ss:$16 sps:$4 sm:$0xff]   ;;  %v7774_v40 = vld [vmem:[%s8927_s7 + $0xc68] ss:$16 sps:$4 sm:$0xff]  }
  0xfe   : > { %3308 = vmatprep.subr.bf16.mxu1 %v7725_v41  ;;  %v7785_v41 = vld [vmem:[%s8927_s7 + $0xe8c] ss:$16 sps:$4 sm:$0xff]  }
 0x100   : > { %3268 = vmatpush1.bf16.msra.mxu0 %v7720_v42  ;;  %v7780_v42 = vld [vmem:[%s8927_s7 + $0xc88] ss:$16 sps:$4 sm:$0xff]  }
 0x101   : > { %3309 = vmatpush1.bf16.msra.mxu1 %v7723_v46  ;;  %3269 = vmatprep.subr.bf16.mxu0 %v7728_v47  ;;  %v7783_v46 = vld [vmem:[%s8927_s7 + $0xe88] ss:$16 sps:$4 sm:$0xff]   ;;  %v7788_v47 = vld [vmem:[%s8927_s7 + $0xcac] ss:$16 sps:$4 sm:$0xff]  }
 0x102   : > { %3310 = vmatprep.subr.bf16.mxu1 %v7731_v48  ;;  %v7791_v48 = vld [vmem:[%s8927_s7 + $0xeac] ss:$16 sps:$4 sm:$0xff]  }
 0x104   : > { %3270 = vmatpush1.bf16.msra.mxu0 %v7726_v51  ;;  %v7786_v51 = vld [vmem:[%s8927_s7 + $0xca8] ss:$16 sps:$4 sm:$0xff]  }
 0x105   : > { %3311 = vmatpush1.bf16.msra.mxu1 %v7729_v52  ;;  %3271 = vmatprep.subr.bf16.mxu0 %v7734_v53  ;;  %v7789_v52 = vld [vmem:[%s8927_s7 + $0xea8] ss:$16 sps:$4 sm:$0xff]   ;;  %v7794_v53 = vld [vmem:[%s8927_s7 + $0xccc] ss:$16 sps:$4 sm:$0xff]  }
 0x106   : > { %3312 = vmatprep.subr.bf16.mxu1 %v7737_v54  ;;  %v7797_v54 = vld [vmem:[%s8927_s7 + $0xecc] ss:$16 sps:$4 sm:$0xff]  }
 0x108   : > { %3272 = vmatpush1.bf16.msra.mxu0 %v7732_v56  ;;  %v7792_v56 = vld [vmem:[%s8927_s7 + $0xcc8] ss:$16 sps:$4 sm:$0xff]  }
 0x109   : > { %3313 = vmatpush1.bf16.msra.mxu1 %v7735_v59  ;;  %3273 = vmatprep.subr.bf16.mxu0 %v7740_v60  ;;  %v7795_v59 = vld [vmem:[%s8927_s7 + $0xec8] ss:$16 sps:$4 sm:$0xff]   ;;  %v7800_v60 = vld [vmem:[%s8927_s7 + $0xcec] ss:$16 sps:$4 sm:$0xff]  }
 0x10a   : > { %3314 = vmatprep.subr.bf16.mxu1 %v7743_v62  ;;  %v7803_v62 = vld [vmem:[%s8927_s7 + $0xeec] ss:$16 sps:$4 sm:$0xff]  }
 0x10c   : > { %3274 = vmatpush1.bf16.msra.mxu0 %v7738_v0  ;;  %v7798_v0 = vld [vmem:[%s8927_s7 + $0xce8] ss:$16 sps:$4 sm:$0xff]  }
 0x10d   : > { %3315 = vmatpush1.bf16.msra.mxu1 %v7741_v5  ;;  %3275 = vmatprep.subr.bf16.mxu0 %v7746_v6  ;;  %v7801_v5 = vld [vmem:[%s8927_s7 + $0xee8] ss:$16 sps:$4 sm:$0xff]   ;;  %v7806_v6 = vld [vmem:[%s8927_s7 + $0xd0c] ss:$16 sps:$4 sm:$0xff]  }
 0x10e   : > { %3316 = vmatprep.subr.bf16.mxu1 %v7749_v7  ;;  %v7809_v7 = vld [vmem:[%s8927_s7 + $0xf0c] ss:$16 sps:$4 sm:$0xff]  }
 0x110   : > { %3276 = vmatpush1.bf16.msra.mxu0 %v7744_v8  ;;  %v7804_v8 = vld [vmem:[%s8927_s7 + $0xd08] ss:$16 sps:$4 sm:$0xff]  }
 0x111   : > { %3317 = vmatpush1.bf16.msra.mxu1 %v7747_v11  ;;  %3277 = vmatprep.subr.bf16.mxu0 %v7752_v12  ;;  %v7807_v11 = vld [vmem:[%s8927_s7 + $0xf08] ss:$16 sps:$4 sm:$0xff]   ;;  %v7812_v12 = vld [vmem:[%s8927_s7 + $0xd2c] ss:$16 sps:$4 sm:$0xff]  }
 0x112   : > { %3318 = vmatprep.subr.bf16.mxu1 %v7755_v13  ;;  %v7815_v13 = vld [vmem:[%s8927_s7 + $0xf2c] ss:$16 sps:$4 sm:$0xff]  }
 0x114   : > { %3278 = vmatpush1.bf16.msra.mxu0 %v7750_v14  ;;  %v7810_v14 = vld [vmem:[%s8927_s7 + $0xd28] ss:$16 sps:$4 sm:$0xff]  }
 0x115   : > { %3319 = vmatpush1.bf16.msra.mxu1 %v7753_v50  ;;  %3329 = vmatprep.subr.bf16.mxu0 %v7758_v18  ;;  %v7813_v50 = vld [vmem:[%s8927_s7 + $0xf28] ss:$16 sps:$4 sm:$0xff]   ;;  %v7818_v18 = vld [vmem:[%s8927_s7 + $0xd4c] ss:$16 sps:$4 sm:$0xff]  }
 0x116   : > { %3370 = vmatprep.subr.bf16.mxu1 %v7761_v19  ;;  %v7821_v19 = vld [vmem:[%s8927_s7 + $0xf4c] ss:$16 sps:$4 sm:$0xff]  }
 0x117   : > { %3280 = vmatmul.mubr.bf16.vlgmr.msra.gmra.mrb[8].mxu0 %v1140_v20 }
 0x118   : > { %3321 = vmatmul.mubr.bf16.vlgmr.msra.gmra.mrb[8].mxu1 %v1146_v24  ;;  %3330 = vmatpush1.bf16.msra.mxu0 %v7756_v25  ;;  %v7816_v25 = vld [vmem:[%s8927_s7 + $0xd48] ss:$16 sps:$4 sm:$0xff]  }
 0x119   : > { %3371 = vmatpush1.bf16.msra.mxu1 %v7759_v26  ;;  %3331 = vmatprep.subr.bf16.mxu0 %v7764_v27  ;;  %v7819_v26 = vld [vmem:[%s8927_s7 + $0xf48] ss:$16 sps:$4 sm:$0xff]   ;;  %v7824_v27 = vld [vmem:[%s8927_s7 + $0xd6c] ss:$16 sps:$4 sm:$0xff]  }
 0x11a   : > { %3372 = vmatprep.subr.bf16.mxu1 %v7767_v30  ;;  %3361 = vmatprep.mubr.bf16.mxu0 %v1119_v1  ;;  %v7777_v1 = vld [vmem:[%s8927_s7 + $0xe68] ss:$16 sps:$4 sm:$0xff]   ;;  %v7827_v30 = vld [vmem:[%s8927_s7 + $0xf6c] ss:$16 sps:$4 sm:$0xff]  }
 0x11b   : > { %3402 = vmatprep.mubr.bf16.mxu1 %v1125_v4  ;;  %v7782_v4 = vld [vmem:[%s8927_s7 + $0xc8c] ss:$16 sps:$4 sm:$0xff]  }
 0x11c   : > { %3332 = vmatpush1.bf16.msra.mxu0 %v7762_v31  ;;  %v7822_v31 = vld [vmem:[%s8927_s7 + $0xd68] ss:$16 sps:$4 sm:$0xff]  }
 0x11d   : > { %3373 = vmatpush1.bf16.msra.mxu1 %v7765_v32  ;;  %3333 = vmatprep.subr.bf16.mxu0 %v7770_v34  ;;  %v7825_v32 = vld [vmem:[%s8927_s7 + $0xf68] ss:$16 sps:$4 sm:$0xff]   ;;  %v7830_v34 = vld [vmem:[%s8927_s7 + $0xd8c] ss:$16 sps:$4 sm:$0xff]  }
 0x11e   : > { %3374 = vmatprep.subr.bf16.mxu1 %v7773_v35  ;;  %v7833_v35 = vld [vmem:[%s8927_s7 + $0xf8c] ss:$16 sps:$4 sm:$0xff]  }
 0x120   : > { %3334 = vmatpush1.bf16.msra.mxu0 %v7768_v36  ;;  %v7828_v36 = vld [vmem:[%s8927_s7 + $0xd88] ss:$16 sps:$4 sm:$0xff]  }
 0x121   : > { %3375 = vmatpush1.bf16.msra.mxu1 %v7771_v37  ;;  %3335 = vmatprep.subr.bf16.mxu0 %v7776_v3  ;;  %v7831_v37 = vld [vmem:[%s8927_s7 + $0xf88] ss:$16 sps:$4 sm:$0xff]   ;;  %v7836_v3 = vld [vmem:[%s8927_s7 + $0xdac] ss:$16 sps:$4 sm:$0xff]  }
 0x122   : > { %3376 = vmatprep.subr.bf16.mxu1 %v7779_v39  ;;  %v7839_v39 = vld [vmem:[%s8927_s7 + $0xfac] ss:$16 sps:$4 sm:$0xff]  }
 0x124   : > { %3336 = vmatpush1.bf16.msra.mxu0 %v7774_v40  ;;  %v7834_v40 = vld [vmem:[%s8927_s7 + $0xda8] ss:$16 sps:$4 sm:$0xff]  }
 0x125   : > { %3377 = vmatpush1.bf16.msra.mxu1 %v7777_v1  ;;  %3337 = vmatprep.subr.bf16.mxu0 %v7782_v4  ;;  %v7837_v1 = vld [vmem:[%s8927_s7 + $0xfa8] ss:$16 sps:$4 sm:$0xff]   ;;  %v7842_v4 = vld [vmem:[%s8927_s7 + $0xdcc] ss:$16 sps:$4 sm:$0xff]  }
 0x126   : > { %3378 = vmatprep.subr.bf16.mxu1 %v7785_v41  ;;  %v7845_v41 = vld [vmem:[%s8927_s7 + $0xfcc] ss:$16 sps:$4 sm:$0xff]  }
 0x128   : > { %3338 = vmatpush1.bf16.msra.mxu0 %v7780_v42  ;;  %v7840_v42 = vld [vmem:[%s8927_s7 + $0xdc8] ss:$16 sps:$4 sm:$0xff]  }
 0x129   : > { %3379 = vmatpush1.bf16.msra.mxu1 %v7783_v46  ;;  %3339 = vmatprep.subr.bf16.mxu0 %v7788_v47  ;;  %v7843_v46 = vld [vmem:[%s8927_s7 + $0xfc8] ss:$16 sps:$4 sm:$0xff]   ;;  %v7848_v47 = vld [vmem:[%s8927_s7 + $0xdec] ss:$16 sps:$4 sm:$0xff]  }
 0x12a   : > { %3380 = vmatprep.subr.bf16.mxu1 %v7791_v48  ;;  %v7851_v48 = vld [vmem:[%s8927_s7 + $0xfec] ss:$16 sps:$4 sm:$0xff]  }
 0x12c   : > { %3340 = vmatpush1.bf16.msra.mxu0 %v7786_v51  ;;  %v7846_v51 = vld [vmem:[%s8927_s7 + $0xde8] ss:$16 sps:$4 sm:$0xff]  }
 0x12d   : > { %3381 = vmatpush1.bf16.msra.mxu1 %v7789_v52  ;;  %3341 = vmatprep.subr.bf16.mxu0 %v7794_v53  ;;  %v7849_v52 = vld [vmem:[%s8927_s7 + $0xfe8] ss:$16 sps:$4 sm:$0xff]   ;;  %v7854_v53 = vld [vmem:[%s8927_s7 + $0x100c] ss:$16 sps:$4 sm:$0xff]  }
 0x12e   : > { %3382 = vmatprep.subr.bf16.mxu1 %v7797_v54  ;;  %v7857_v54 = vld [vmem:[%s8927_s7 + $0x120c] ss:$16 sps:$4 sm:$0xff]  }
 0x130   : > { %3342 = vmatpush1.bf16.msra.mxu0 %v7792_v56  ;;  %v7852_v56 = vld [vmem:[%s8927_s7 + $0x1008] ss:$16 sps:$4 sm:$0xff]  }
 0x131   : > { %3383 = vmatpush1.bf16.msra.mxu1 %v7795_v59  ;;  %3343 = vmatprep.subr.bf16.mxu0 %v7800_v60  ;;  %v7855_v59 = vld [vmem:[%s8927_s7 + $0x1208] ss:$16 sps:$4 sm:$0xff]   ;;  %v7860_v60 = vld [vmem:[%s8927_s7 + $0x102c] ss:$16 sps:$4 sm:$0xff]  }
 0x132   : > { %3384 = vmatprep.subr.bf16.mxu1 %v7803_v62  ;;  %v7863_v62 = vld [vmem:[%s8927_s7 + $0x122c] ss:$16 sps:$4 sm:$0xff]  }
 0x134   : > { %3344 = vmatpush1.bf16.msra.mxu0 %v7798_v0  ;;  %v7858_v0 = vld [vmem:[%s8927_s7 + $0x1028] ss:$16 sps:$4 sm:$0xff]  }
 0x135   : > { %3385 = vmatpush1.bf16.msra.mxu1 %v7801_v5  ;;  %3345 = vmatprep.subr.bf16.mxu0 %v7806_v6  ;;  %v7861_v5 = vld [vmem:[%s8927_s7 + $0x1228] ss:$16 sps:$4 sm:$0xff]   ;;  %v7866_v6 = vld [vmem:[%s8927_s7 + $0x104c] ss:$16 sps:$4 sm:$0xff]  }
 0x136   : > { %3386 = vmatprep.subr.bf16.mxu1 %v7809_v7  ;;  %v7869_v7 = vld [vmem:[%s8927_s7 + $0x124c] ss:$16 sps:$4 sm:$0xff]  }
 0x138   : > { %3346 = vmatpush1.bf16.msra.mxu0 %v7804_v8  ;;  %v7872_v8 = vld [vmem:[%s8927_s7 + $0x106c] ss:$16 sps:$4 sm:$0xff]  }
 0x139   : > { %3387 = vmatpush1.bf16.msra.mxu1 %v7807_v11  ;;  %3347 = vmatprep.subr.bf16.mxu0 %v7812_v12  ;;  %v7875_v11 = vld [vmem:[%s8927_s7 + $0x126c] ss:$16 sps:$4 sm:$0xff]   ;;  %v7873_v12 = vld [vmem:[%s8927_s7 + $0x1268] ss:$16 sps:$4 sm:$0xff]  }
 0x13a   : > { %3388 = vmatprep.subr.bf16.mxu1 %v7815_v13  ;;  %v7881_v13 = vld [vmem:[%s8927_s7 + $0x128c] ss:$16 sps:$4 sm:$0xff]  }
 0x13c   : > { %3348 = vmatpush1.bf16.msra.mxu0 %v7810_v14  ;;  %v7876_v14 = vld [vmem:[%s8927_s7 + $0x1088] ss:$16 sps:$4 sm:$0xff]  }
 0x13d   : > { %3389 = vmatpush1.bf16.msra.mxu1 %v7813_v50  ;;  %3349 = vmatprep.subr.bf16.mxu0 %v7818_v18  ;;  %v7879_v50 = vld [vmem:[%s8927_s7 + $0x1288] ss:$16 sps:$4 sm:$0xff]   ;;  %v7884_v18 = vld [vmem:[%s8927_s7 + $0x10ac] ss:$16 sps:$4 sm:$0xff]  }
 0x13e   : > { %3390 = vmatprep.subr.bf16.mxu1 %v7821_v19  ;;  %v7887_v19 = vld [vmem:[%s8927_s7 + $0x12ac] ss:$16 sps:$4 sm:$0xff]  }
 0x140   : > { %3350 = vmatpush1.bf16.msra.mxu0 %v7816_v25  ;;  %v7882_v25 = vld [vmem:[%s8927_s7 + $0x10a8] ss:$16 sps:$4 sm:$0xff]  }
 0x141   : > { %3391 = vmatpush1.bf16.msra.mxu1 %v7819_v26  ;;  %3351 = vmatprep.subr.bf16.mxu0 %v7824_v27  ;;  %v7885_v26 = vld [vmem:[%s8927_s7 + $0x12a8] ss:$16 sps:$4 sm:$0xff]   ;;  %v7890_v27 = vld [vmem:[%s8927_s7 + $0x10cc] ss:$16 sps:$4 sm:$0xff]  }
 0x142   : > { %3392 = vmatprep.subr.bf16.mxu1 %v7827_v30  ;;  %v7893_v30 = vld [vmem:[%s8927_s7 + $0x12cc] ss:$16 sps:$4 sm:$0xff]  }
 0x144   : > { %3352 = vmatpush1.bf16.msra.mxu0 %v7822_v31 }
 0x145   : > { %3393 = vmatpush1.bf16.msra.mxu1 %v7825_v32  ;;  %3353 = vmatprep.subr.bf16.mxu0 %v7830_v34  ;;  %v7888_v34 = vld [vmem:[%s8927_s7 + $0x10c8] ss:$16 sps:$4 sm:$0xff]  }
 0x146   : > { %3394 = vmatprep.subr.bf16.mxu1 %v7833_v35  ;;  %v7891_v35 = vld [vmem:[%s8927_s7 + $0x12c8] ss:$16 sps:$4 sm:$0xff]  }
 0x148   : > { %3354 = vmatpush1.bf16.msra.mxu0 %v7828_v36 }
 0x149   : > { %3395 = vmatpush1.bf16.msra.mxu1 %v7831_v37  ;;  %3355 = vmatprep.subr.bf16.mxu0 %v7836_v3 }
 0x14a   : > { %3396 = vmatprep.subr.bf16.mxu1 %v7839_v39 }
 0x14c   : > { %3356 = vmatpush1.bf16.msra.mxu0 %v7834_v40 }
 0x14d   : > { %3397 = vmatpush1.bf16.msra.mxu1 %v7837_v1  ;;  %3357 = vmatprep.subr.bf16.mxu0 %v7842_v4 }
 0x14e   : > { %3398 = vmatprep.subr.bf16.mxu1 %v7845_v41 }
 0x150   : > { %3358 = vmatpush1.bf16.msra.mxu0 %v7840_v42  ;;  %v7896_v42 = vld [vmem:[%s8927_s7 + $0x10ec] ss:$16 sps:$4 sm:$0xff]  }
 0x151   : > { %3399 = vmatpush1.bf16.msra.mxu1 %v7843_v46  ;;  %3359 = vmatprep.subr.bf16.mxu0 %v7848_v47  ;;  %v7899_v46 = vld [vmem:[%s8927_s7 + $0x12ec] ss:$16 sps:$4 sm:$0xff]   ;;  %v7894_v47 = vld [vmem:[%s8927_s7 + $0x10e8] ss:$16 sps:$4 sm:$0xff]  }
 0x152   : > { %3400 = vmatprep.subr.bf16.mxu1 %v7851_v48  ;;  %v7897_v48 = vld [vmem:[%s8927_s7 + $0x12e8] ss:$16 sps:$4 sm:$0xff]  }
 0x154   : > { %3360 = vmatpush1.bf16.msra.mxu0 %v7846_v51  ;;  %v7902_v51 = vld [vmem:[%s8927_s7 + $0x110c] ss:$16 sps:$4 sm:$0xff]  }
 0x155   : > { %3401 = vmatpush1.bf16.msra.mxu1 %v7849_v52  ;;  %3411 = vmatprep.subr.bf16.mxu0 %v7854_v53  ;;  %v7905_v52 = vld [vmem:[%s8927_s7 + $0x130c] ss:$16 sps:$4 sm:$0xff]   ;;  %v7900_v53 = vld [vmem:[%s8927_s7 + $0x1108] ss:$16 sps:$4 sm:$0xff]  }
 0x156   : > { %3452 = vmatprep.subr.bf16.mxu1 %v7857_v54  ;;  %v7903_v54 = vld [vmem:[%s8927_s7 + $0x1308] ss:$16 sps:$4 sm:$0xff]  }
 0x157   : > { %3362 = vmatmul.mubr.bf16.vlgmr.msra.gmra.mrb[12].mxu0 %v1116_v22  ;;  %v7864_v22 = vld [vmem:[%s8927_s7 + $0x1048] ss:$16 sps:$4 sm:$0xff]  }
 0x158   : > { %3403 = vmatmul.mubr.bf16.vlgmr.msra.gmra.mrb[12].mxu1 %v1122_v23  ;;  %3412 = vmatpush1.bf16.msra.mxu0 %v7852_v56  ;;  %v7867_v23 = vld [vmem:[%s8927_s7 + $0x1248] ss:$16 sps:$4 sm:$0xff]   ;;  %v7908_v56 = vld [vmem:[%s8927_s7 + $0x112c] ss:$16 sps:$4 sm:$0xff]  }
 0x159   : > { %3453 = vmatpush1.bf16.msra.mxu1 %v7855_v59  ;;  %3413 = vmatprep.subr.bf16.mxu0 %v7860_v60  ;;  %v7911_v59 = vld [vmem:[%s8927_s7 + $0x132c] ss:$16 sps:$4 sm:$0xff]   ;;  %v7906_v60 = vld [vmem:[%s8927_s7 + $0x1128] ss:$16 sps:$4 sm:$0xff]  }
 0x15a   : > { %3454 = vmatprep.subr.bf16.mxu1 %v7863_v62  ;;  %3443 = vmatprep.mubr.bf16.mxu0 %v1131_v28  ;;  %v7870_v28 = vld [vmem:[%s8927_s7 + $0x1068] ss:$16 sps:$4 sm:$0xff]  }
 0x15b   : > { %3484 = vmatprep.mubr.bf16.mxu1 %v1137_v29  ;;  %v7878_v29 = vld [vmem:[%s8927_s7 + $0x108c] ss:$16 sps:$4 sm:$0xff]   ;;  %v7909_v62 = vld [vmem:[%s8927_s7 + $0x1328] ss:$16 sps:$4 sm:$0xff]  }
 0x15c   : > { %3414 = vmatpush1.bf16.msra.mxu0 %v7858_v0  ;;  %v7914_v0 = vld [vmem:[%s8927_s7 + $0x114c] ss:$16 sps:$4 sm:$0xff]  }
 0x15d   : > { %3455 = vmatpush1.bf16.msra.mxu1 %v7861_v5  ;;  %3415 = vmatprep.subr.bf16.mxu0 %v7866_v6  ;;  %v7917_v5 = vld [vmem:[%s8927_s7 + $0x134c] ss:$16 sps:$4 sm:$0xff]   ;;  %v7912_v6 = vld [vmem:[%s8927_s7 + $0x1148] ss:$16 sps:$4 sm:$0xff]  }
 0x15e   : > { %3456 = vmatprep.subr.bf16.mxu1 %v7869_v7  ;;  %v7915_v7 = vld [vmem:[%s8927_s7 + $0x1348] ss:$16 sps:$4 sm:$0xff]  }
 0x160   : > { %3416 = vmatpush1.bf16.msra.mxu0 %v7864_v22  ;;  %v7920_v22 = vld [vmem:[%s8927_s7 + $0x116c] ss:$16 sps:$4 sm:$0xff]  }
 0x161   : > { %3457 = vmatpush1.bf16.msra.mxu1 %v7867_v23  ;;  %3417 = vmatprep.subr.bf16.mxu0 %v7872_v8  ;;  %v7923_v23 = vld [vmem:[%s8927_s7 + $0x136c] ss:$16 sps:$4 sm:$0xff]   ;;  %v7918_v8 = vld [vmem:[%s8927_s7 + $0x1168] ss:$16 sps:$4 sm:$0xff]  }
 0x162   : > { %3458 = vmatprep.subr.bf16.mxu1 %v7875_v11  ;;  %v7921_v11 = vld [vmem:[%s8927_s7 + $0x1368] ss:$16 sps:$4 sm:$0xff]  }
 0x164   : > { %3418 = vmatpush1.bf16.msra.mxu0 %v7870_v28  ;;  %v7926_v28 = vld [vmem:[%s8927_s7 + $0x118c] ss:$16 sps:$4 sm:$0xff]  }
 0x165   : > { %3459 = vmatpush1.bf16.msra.mxu1 %v7873_v12  ;;  %3419 = vmatprep.subr.bf16.mxu0 %v7878_v29  ;;  %v7929_v12 = vld [vmem:[%s8927_s7 + $0x138c] ss:$16 sps:$4 sm:$0xff]   ;;  %v7924_v29 = vld [vmem:[%s8927_s7 + $0x1188] ss:$16 sps:$4 sm:$0xff]  }
 0x166   : > { %3460 = vmatprep.subr.bf16.mxu1 %v7881_v13  ;;  %v7927_v13 = vld [vmem:[%s8927_s7 + $0x1388] ss:$16 sps:$4 sm:$0xff]  }
 0x168   : > { %3420 = vmatpush1.bf16.msra.mxu0 %v7876_v14  ;;  %v7932_v14 = vld [vmem:[%s8927_s7 + $0x11ac] ss:$16 sps:$4 sm:$0xff]  }
 0x169   : > { %3461 = vmatpush1.bf16.msra.mxu1 %v7879_v50  ;;  %3421 = vmatprep.subr.bf16.mxu0 %v7884_v18  ;;  %v7935_v50 = vld [vmem:[%s8927_s7 + $0x13ac] ss:$16 sps:$4 sm:$0xff]   ;;  %v7930_v18 = vld [vmem:[%s8927_s7 + $0x11a8] ss:$16 sps:$4 sm:$0xff]  }
 0x16a   : > { %3462 = vmatprep.subr.bf16.mxu1 %v7887_v19  ;;  %v3117_v31 = vpop.f32.mrb[0].mxu0  ;;  %v7933_v19 = vld [vmem:[%s8927_s7 + $0x13a8] ss:$16 sps:$4 sm:$0xff]  }
 0x16b   : > { %v3158_v32 = vpop.f32.mrb[0].mxu1  ;;  %v3119_v37 = vpop.f32.mrb[1].mxu0 }
 0x16c   : > { %v9342_v36 = vadd.f32 %v3158_v32, %v3117_v31  ;;  %v3160_v3 = vpop.f32.mrb[1].mxu1  ;;  %v3121_v40 = vpop.f32.mrb[2].mxu0  ;;  %3422 = vmatpush1.bf16.msra.mxu0 %v7882_v25  ;;  %v7938_v25 = vld [vmem:[%s8927_s7 + $0x11cc] ss:$16 sps:$4 sm:$0xff]  }
 0x16d   : > { %v9344_v39 = vadd.f32 %v3160_v3, %v3119_v37  ;;  %v3162_v1 = vpop.f32.mrb[2].mxu1  ;;  %3463 = vmatpush1.bf16.msra.mxu1 %v7885_v26  ;;  %v3122_v4 = vpop.f32.mrb[3].mxu0  ;;  %3423 = vmatprep.subr.bf16.mxu0 %v7890_v27  ;;  %v7941_v26 = vld [vmem:[%s8927_s7 + $0x13cc] ss:$16 sps:$4 sm:$0xff]   ;;  %v7936_v27 = vld [vmem:[%s8927_s7 + $0x11c8] ss:$16 sps:$4 sm:$0xff]  }
 0x16e   : > { %v3163_v41 = vpop.f32.mrb[3].mxu1  ;;  %3464 = vmatprep.subr.bf16.mxu1 %v7893_v30  ;;  %v7939_v30 = vld [vmem:[%s8927_s7 + $0x13c8] ss:$16 sps:$4 sm:$0xff]   ;;  %v7944_v31 = vld [vmem:[%s8927_s7 + $0x11ec] ss:$16 sps:$4 sm:$0xff]  }
 0x16f   : > { %v7947_v32 = vld [vmem:[%s8927_s7 + $0x13ec] ss:$16 sps:$4 sm:$0xff]   ;;  %v7948_v40 = vld [vmem:[%s8927_s7 + $0x1408] ss:$16 sps:$4 sm:$0xff]  }
 0x170   : > { %3424 = vmatpush1.bf16.msra.mxu0 %v7888_v34  ;;  %v7942_v34 = vld [vmem:[%s8927_s7 + $0x11e8] ss:$16 sps:$4 sm:$0xff]   ;;  %v7950_v37 = vld [vmem:[%s8927_s7 + $0x140c] ss:$16 sps:$4 sm:$0xff]  }
 0x171   : > { %3465 = vmatpush1.bf16.msra.mxu1 %v7891_v35  ;;  %3425 = vmatprep.subr.bf16.mxu0 %v7896_v42  ;;  %v7945_v35 = vld [vmem:[%s8927_s7 + $0x13e8] ss:$16 sps:$4 sm:$0xff]   ;;  %v7953_v3 = vld [vmem:[%s8927_s7 + $0x160c] ss:$16 sps:$4 sm:$0xff]  }
 0x172   : > { %3466 = vmatprep.subr.bf16.mxu1 %v7899_v46  ;;  %v7951_v1 = vld [vmem:[%s8927_s7 + $0x1608] ss:$16 sps:$4 sm:$0xff]   ;;  %v7956_v4 = vld [vmem:[%s8927_s7 + $0x142c] ss:$16 sps:$4 sm:$0xff]  }
 0x173   : > { %v7959_v41 = vld [vmem:[%s8927_s7 + $0x162c] ss:$16 sps:$4 sm:$0xff]   ;;  %v7954_v42 = vld [vmem:[%s8927_s7 + $0x1428] ss:$16 sps:$4 sm:$0xff]  }
 0x174   : > { %3426 = vmatpush1.bf16.msra.mxu0 %v7894_v47  ;;  %v7957_v46 = vld [vmem:[%s8927_s7 + $0x1628] ss:$16 sps:$4 sm:$0xff]   ;;  %v7962_v47 = vld [vmem:[%s8927_s7 + $0x144c] ss:$16 sps:$4 sm:$0xff]  }
 0x175   : > { %3467 = vmatpush1.bf16.msra.mxu1 %v7897_v48  ;;  %3427 = vmatprep.subr.bf16.mxu0 %v7902_v51  ;;  %v7965_v48 = vld [vmem:[%s8927_s7 + $0x164c] ss:$16 sps:$4 sm:$0xff]  }
 0x176   : > { %3468 = vmatprep.subr.bf16.mxu1 %v7905_v52  ;;  %v7968_v51 = vld [vmem:[%s8927_s7 + $0x146c] ss:$16 sps:$4 sm:$0xff]  }
 0x177   : > { %v7971_v52 = vld [vmem:[%s8927_s7 + $0x166c] ss:$16 sps:$4 sm:$0xff]  }
 0x178   : > { %3428 = vmatpush1.bf16.msra.mxu0 %v7900_v53  ;;  %v7969_v53 = vld [vmem:[%s8927_s7 + $0x1668] ss:$16 sps:$4 sm:$0xff]  }
 0x179   : > { %3469 = vmatpush1.bf16.msra.mxu1 %v7903_v54  ;;  %3429 = vmatprep.subr.bf16.mxu0 %v7908_v56  ;;  %v7977_v54 = vld [vmem:[%s8927_s7 + $0x168c] ss:$16 sps:$4 sm:$0xff]   ;;  %v7972_v56 = vld [vmem:[%s8927_s7 + $0x1488] ss:$16 sps:$4 sm:$0xff]  }
 0x17a   : > { %3470 = vmatprep.subr.bf16.mxu1 %v7911_v59  ;;  %v7975_v59 = vld [vmem:[%s8927_s7 + $0x1688] ss:$16 sps:$4 sm:$0xff]  }
 0x17c   : > { %3430 = vmatpush1.bf16.msra.mxu0 %v7906_v60  ;;  %v7980_v60 = vld [vmem:[%s8927_s7 + $0x14ac] ss:$16 sps:$4 sm:$0xff]  }
 0x17d   : > { %3471 = vmatpush1.bf16.msra.mxu1 %v7909_v62  ;;  %3431 = vmatprep.subr.bf16.mxu0 %v7914_v0  ;;  %v7983_v62 = vld [vmem:[%s8927_s7 + $0x16ac] ss:$16 sps:$4 sm:$0xff]   ;;  %v7978_v0 = vld [vmem:[%s8927_s7 + $0x14a8] ss:$16 sps:$4 sm:$0xff]  }
 0x17e   : > { %3472 = vmatprep.subr.bf16.mxu1 %v7917_v5  ;;  %v7981_v5 = vld [vmem:[%s8927_s7 + $0x16a8] ss:$16 sps:$4 sm:$0xff]  }
 0x180   : > { %3432 = vmatpush1.bf16.msra.mxu0 %v7912_v6  ;;  %v7986_v6 = vld [vmem:[%s8927_s7 + $0x14cc] ss:$16 sps:$4 sm:$0xff]  }
 0x181   : > { %3473 = vmatpush1.bf16.msra.mxu1 %v7915_v7  ;;  %3433 = vmatprep.subr.bf16.mxu0 %v7920_v22  ;;  %v7989_v7 = vld [vmem:[%s8927_s7 + $0x16cc] ss:$16 sps:$4 sm:$0xff]  }
 0x182   : > { %3474 = vmatprep.subr.bf16.mxu1 %v7923_v23 }
 0x184   : > { %3434 = vmatpush1.bf16.msra.mxu0 %v7918_v8  ;;  %v7984_v8 = vld [vmem:[%s8927_s7 + $0x14c8] ss:$16 sps:$4 sm:$0xff]  }
 0x185   : > { %3475 = vmatpush1.bf16.msra.mxu1 %v7921_v11  ;;  %3435 = vmatprep.subr.bf16.mxu0 %v7926_v28  ;;  %v7987_v11 = vld [vmem:[%s8927_s7 + $0x16c8] ss:$16 sps:$4 sm:$0xff]  }
 0x186   : > { %3476 = vmatprep.subr.bf16.mxu1 %v7929_v12 }
 0x188   : > { %3436 = vmatpush1.bf16.msra.mxu0 %v7924_v29 }
 0x189   : > { %3477 = vmatpush1.bf16.msra.mxu1 %v7927_v13  ;;  %3437 = vmatprep.subr.bf16.mxu0 %v7932_v14 }
 0x18a   : > { %3478 = vmatprep.subr.bf16.mxu1 %v7935_v50 }
 0x18c   : > { %3438 = vmatpush1.bf16.msra.mxu0 %v7930_v18 }
 0x18d   : > { %3479 = vmatpush1.bf16.msra.mxu1 %v7933_v19  ;;  %3439 = vmatprep.subr.bf16.mxu0 %v7938_v25 }
 0x18e   : > { %3480 = vmatprep.subr.bf16.mxu1 %v7941_v26  ;;  %v7995_v26 = vld [vmem:[%s8927_s7 + $0x16ec] ss:$16 sps:$4 sm:$0xff]  }
 0x190   : > { %3440 = vmatpush1.bf16.msra.mxu0 %v7936_v27 }
 0x191   : > { %3481 = vmatpush1.bf16.msra.mxu1 %v7939_v30  ;;  %3441 = vmatprep.subr.bf16.mxu0 %v7944_v31  ;;  %v7993_v30 = vld [vmem:[%s8927_s7 + $0x16e8] ss:$16 sps:$4 sm:$0xff]   ;;  %v7998_v31 = vld [vmem:[%s8927_s7 + $0x150c] ss:$16 sps:$4 sm:$0xff]  }
 0x192   : > { %3482 = vmatprep.subr.bf16.mxu1 %v7947_v32  ;;  %v8001_v32 = vld [vmem:[%s8927_s7 + $0x170c] ss:$16 sps:$4 sm:$0xff]  }
 0x194   : > { %3442 = vmatpush1.bf16.msra.mxu0 %v7942_v34  ;;  %v7996_v34 = vld [vmem:[%s8927_s7 + $0x1508] ss:$16 sps:$4 sm:$0xff]  }
 0x195   : > { %3483 = vmatpush1.bf16.msra.mxu1 %v7945_v35  ;;  %3493 = vmatprep.subr.bf16.mxu0 %v7950_v37  ;;  %v7999_v35 = vld [vmem:[%s8927_s7 + $0x1708] ss:$16 sps:$4 sm:$0xff]   ;;  %v8004_v37 = vld [vmem:[%s8927_s7 + $0x152c] ss:$16 sps:$4 sm:$0xff]  }
 0x196   : > { %3534 = vmatprep.subr.bf16.mxu1 %v7953_v3  ;;  %v8007_v3 = vld [vmem:[%s8927_s7 + $0x172c] ss:$16 sps:$4 sm:$0xff]  }
 0x197   : > { %3444 = vmatmul.mubr.bf16.vlgmr.msra.gmra.mrb[16].mxu0 %v1128_v44  ;;  %v7960_v44 = vld [vmem:[%s8927_s7 + $0x1448] ss:$16 sps:$4 sm:$0xff]  }
 0x198   : > { %3485 = vmatmul.mubr.bf16.vlgmr.msra.gmra.mrb[16].mxu1 %v1134_v45  ;;  %3494 = vmatpush1.bf16.msra.mxu0 %v7948_v40  ;;  %v7963_v45 = vld [vmem:[%s8927_s7 + $0x1648] ss:$16 sps:$4 sm:$0xff]  }
 0x199   : > { %3535 = vmatpush1.bf16.msra.mxu1 %v7951_v1  ;;  %3495 = vmatprep.subr.bf16.mxu0 %v7956_v4  ;;  %v8002_v40 = vld [vmem:[%s8927_s7 + $0x1528] ss:$16 sps:$4 sm:$0xff]   ;;  %v8010_v4 = vld [vmem:[%s8927_s7 + $0x154c] ss:$16 sps:$4 sm:$0xff]  }
 0x19a   : > { %3536 = vmatprep.subr.bf16.mxu1 %v7959_v41  ;;  %3525 = vmatprep.mubr.bf16.mxu0 %v1143_v57  ;;  %v7966_v57 = vld [vmem:[%s8927_s7 + $0x1468] ss:$16 sps:$4 sm:$0xff]   ;;  %v8013_v41 = vld [vmem:[%s8927_s7 + $0x174c] ss:$16 sps:$4 sm:$0xff]  }
 0x19b   : > { %3566 = vmatprep.mubr.bf16.mxu1 %v1149_v63  ;;  %v7974_v63 = vld [vmem:[%s8927_s7 + $0x148c] ss:$16 sps:$4 sm:$0xff]   ;;  %v8005_v1 = vld [vmem:[%s8927_s7 + $0x1728] ss:$16 sps:$4 sm:$0xff]  }
 0x19c   : > { %3496 = vmatpush1.bf16.msra.mxu0 %v7954_v42  ;;  %v8008_v42 = vld [vmem:[%s8927_s7 + $0x1548] ss:$16 sps:$4 sm:$0xff]  }
 0x19d   : > { %3537 = vmatpush1.bf16.msra.mxu1 %v7957_v46  ;;  %3497 = vmatprep.subr.bf16.mxu0 %v7962_v47  ;;  %v8011_v46 = vld [vmem:[%s8927_s7 + $0x1748] ss:$16 sps:$4 sm:$0xff]   ;;  %v8016_v47 = vld [vmem:[%s8927_s7 + $0x156c] ss:$16 sps:$4 sm:$0xff]  }
 0x19e   : > { %3538 = vmatprep.subr.bf16.mxu1 %v7965_v48  ;;  %v8019_v48 = vld [vmem:[%s8927_s7 + $0x176c] ss:$16 sps:$4 sm:$0xff]  }
 0x1a0   : > { %3498 = vmatpush1.bf16.msra.mxu0 %v7960_v44  ;;  %v8014_v44 = vld [vmem:[%s8927_s7 + $0x1568] ss:$16 sps:$4 sm:$0xff]  }
 0x1a1   : > { %3539 = vmatpush1.bf16.msra.mxu1 %v7963_v45  ;;  %3499 = vmatprep.subr.bf16.mxu0 %v7968_v51  ;;  %v8017_v45 = vld [vmem:[%s8927_s7 + $0x1768] ss:$16 sps:$4 sm:$0xff]   ;;  %v8022_v51 = vld [vmem:[%s8927_s7 + $0x158c] ss:$16 sps:$4 sm:$0xff]  }
 0x1a2   : > { %3540 = vmatprep.subr.bf16.mxu1 %v7971_v52  ;;  %v8025_v52 = vld [vmem:[%s8927_s7 + $0x178c] ss:$16 sps:$4 sm:$0xff]  }
 0x1a4   : > { %3500 = vmatpush1.bf16.msra.mxu0 %v7966_v57  ;;  %v8020_v57 = vld [vmem:[%s8927_s7 + $0x1588] ss:$16 sps:$4 sm:$0xff]  }
 0x1a5   : > { %3541 = vmatpush1.bf16.msra.mxu1 %v7969_v53  ;;  %3501 = vmatprep.subr.bf16.mxu0 %v7974_v63  ;;  %v8023_v53 = vld [vmem:[%s8927_s7 + $0x1788] ss:$16 sps:$4 sm:$0xff]   ;;  %v8028_v63 = vld [vmem:[%s8927_s7 + $0x15ac] ss:$16 sps:$4 sm:$0xff]  }
 0x1a6   : > { %3542 = vmatprep.subr.bf16.mxu1 %v7977_v54  ;;  %v8031_v54 = vld [vmem:[%s8927_s7 + $0x17ac] ss:$16 sps:$4 sm:$0xff]  }
 0x1a8   : > { %3502 = vmatpush1.bf16.msra.mxu0 %v7972_v56  ;;  %v8026_v56 = vld [vmem:[%s8927_s7 + $0x15a8] ss:$16 sps:$4 sm:$0xff]  }
 0x1a9   : > { %3543 = vmatpush1.bf16.msra.mxu1 %v7975_v59  ;;  %3503 = vmatprep.subr.bf16.mxu0 %v7980_v60  ;;  %v8029_v59 = vld [vmem:[%s8927_s7 + $0x17a8] ss:$16 sps:$4 sm:$0xff]   ;;  %v8034_v60 = vld [vmem:[%s8927_s7 + $0x15cc] ss:$16 sps:$4 sm:$0xff]  }
 0x1aa   : > { %3544 = vmatprep.subr.bf16.mxu1 %v7983_v62  ;;  %v3199_v22 = vpop.f32.mrb[4].mxu0  ;;  %v8037_v62 = vld [vmem:[%s8927_s7 + $0x17cc] ss:$16 sps:$4 sm:$0xff]  }
 0x1ab   : > { %v3240_v23 = vpop.f32.mrb[4].mxu1  ;;  %v3200_v28 = vadd.f32 %v3199_v22, %v9342_v36  ;;  %v3201_v12 = vpop.f32.mrb[5].mxu0  ;;  %v7992_v36 = vld [vmem:[%s8927_s7 + $0x14ec] ss:$16 sps:$4 sm:$0xff]   ;;  %v8038_v22 = vld [vmem:[%s8927_s7 + $0x15e8] ss:$16 sps:$4 sm:$0xff]  }
 0x1ac   : > { %v3242_v29 = vpop.f32.mrb[5].mxu1  ;;  %v3202_v13 = vadd.f32 %v3201_v12, %v9344_v39  ;;  %v3203_v14 = vpop.f32.mrb[6].mxu0  ;;  %3504 = vmatpush1.bf16.msra.mxu0 %v7978_v0  ;;  %v7990_v39 = vld [vmem:[%s8927_s7 + $0x14e8] ss:$16 sps:$4 sm:$0xff]   ;;  %v8047_v12 = vld [vmem:[%s8927_s7 + $0x200] ss:$16 sps:$4 sm:$0xff]  }
 0x1ad   : > { %v3244_v50 = vpop.f32.mrb[6].mxu1  ;;  %3545 = vmatpush1.bf16.msra.mxu1 %v7981_v5  ;;  %v9420_v18 = vadd.f32 %v3240_v23, %v3200_v28  ;;  %v3204_v19 = vpop.f32.mrb[7].mxu0  ;;  %3505 = vmatprep.subr.bf16.mxu0 %v7986_v6  ;;  %v8032_v0 = vld [vmem:[%s8927_s7 + $0x15c8] ss:$16 sps:$4 sm:$0xff]   ;;  %v8040_v6 = vld [vmem:[%s8927_s7 + $0x15ec] ss:$16 sps:$4 sm:$0xff]  }
 0x1ae   : > { %v3245_v25 = vpop.f32.mrb[7].mxu1  ;;  %3546 = vmatprep.subr.bf16.mxu1 %v7989_v7  ;;  %v9424_v27 = vadd.f32 %v3242_v29, %v3202_v13  ;;  %v8035_v5 = vld [vmem:[%s8927_s7 + $0x17c8] ss:$16 sps:$4 sm:$0xff]   ;;  %v8043_v7 = vld [vmem:[%s8927_s7 + $0x17ec] ss:$16 sps:$4 sm:$0xff]  }
 0x1af   : > { %v8041_v23 = vld [vmem:[%s8927_s7 + $0x17e8] ss:$16 sps:$4 sm:$0xff]   ;;  %v8044_v28 = vld [vmem:[%s8927_s7] ss:$16 sps:$4 sm:$0xff]   ;;  %v8052_v29 = vld [vmem:[%s8927_s7 + $0x24] ss:$16 sps:$4 sm:$0xff]  }
 0x1b0   : > { %3506 = vmatpush1.bf16.msra.mxu0 %v7984_v8  ;;  %v8046_v8 = vld [vmem:[%s8927_s7 + $0x4] ss:$16 sps:$4 sm:$0xff]   ;;  %v8050_v14 = vld [vmem:[%s8927_s7 + $0x20] ss:$16 sps:$4 sm:$0xff]  }
 0x1b1   : > { %3547 = vmatpush1.bf16.msra.mxu1 %v7987_v11  ;;  %3507 = vmatprep.subr.bf16.mxu0 %v7992_v36  ;;  %v8049_v11 = vld [vmem:[%s8927_s7 + $0x204] ss:$16 sps:$4 sm:$0xff]   ;;  %v8053_v50 = vld [vmem:[%s8927_s7 + $0x220] ss:$16 sps:$4 sm:$0xff]  }
 0x1b2   : > { %3548 = vmatprep.subr.bf16.mxu1 %v7995_v26  ;;  %v8055_v13 = vld [vmem:[%s8927_s7 + $0x224] ss:$16 sps:$4 sm:$0xff]  }
 0x1b3   : > { %v8058_v19 = vld [vmem:[%s8927_s7 + $0x44] ss:$16 sps:$4 sm:$0xff]  }
 0x1b4   : > { %3508 = vmatpush1.bf16.msra.mxu0 %v7990_v39  ;;  %v8061_v25 = vld [vmem:[%s8927_s7 + $0x244] ss:$16 sps:$4 sm:$0xff]   ;;  %v8062_v39 = vld [vmem:[%s8927_s7 + $0x60] ss:$16 sps:$4 sm:$0xff]  }
 0x1b5   : > { %3549 = vmatpush1.bf16.msra.mxu1 %v7993_v30  ;;  %3509 = vmatprep.subr.bf16.mxu0 %v7998_v31  ;;  %v8064_v36 = vld [vmem:[%s8927_s7 + $0x64] ss:$16 sps:$4 sm:$0xff]   ;;  %v8065_v30 = vld [vmem:[%s8927_s7 + $0x260] ss:$16 sps:$4 sm:$0xff]  }
 0x1b6   : > { %3550 = vmatprep.subr.bf16.mxu1 %v8001_v32  ;;  %v8067_v26 = vld [vmem:[%s8927_s7 + $0x264] ss:$16 sps:$4 sm:$0xff]  }
 0x1b7   : > { %v8070_v31 = vld [vmem:[%s8927_s7 + $0x84] ss:$16 sps:$4 sm:$0xff]  }
 0x1b8   : > { %3510 = vmatpush1.bf16.msra.mxu0 %v7996_v34  ;;  %v8073_v32 = vld [vmem:[%s8927_s7 + $0x284] ss:$16 sps:$4 sm:$0xff]   ;;  %v8068_v34 = vld [vmem:[%s8927_s7 + $0x80] ss:$16 sps:$4 sm:$0xff]  }
 0x1b9   : > { %3551 = vmatpush1.bf16.msra.mxu1 %v7999_v35  ;;  %3511 = vmatprep.subr.bf16.mxu0 %v8004_v37  ;;  %v8071_v35 = vld [vmem:[%s8927_s7 + $0x280] ss:$16 sps:$4 sm:$0xff]   ;;  %v8076_v37 = vld [vmem:[%s8927_s7 + $0xa4] ss:$16 sps:$4 sm:$0xff]  }
 0x1ba   : > { %3552 = vmatprep.subr.bf16.mxu1 %v8007_v3  ;;  %v8079_v3 = vld [vmem:[%s8927_s7 + $0x2a4] ss:$16 sps:$4 sm:$0xff]  }
 0x1bc   : > { %3512 = vmatpush1.bf16.msra.mxu0 %v8002_v40  ;;  %v8074_v40 = vld [vmem:[%s8927_s7 + $0xa0] ss:$16 sps:$4 sm:$0xff]  }
 0x1bd   : > { %3553 = vmatpush1.bf16.msra.mxu1 %v8005_v1  ;;  %3513 = vmatprep.subr.bf16.mxu0 %v8010_v4  ;;  %v8077_v1 = vld [vmem:[%s8927_s7 + $0x2a0] ss:$16 sps:$4 sm:$0xff]   ;;  %v8082_v4 = vld [vmem:[%s8927_s7 + $0xc4] ss:$16 sps:$4 sm:$0xff]  }
 0x1be   : > { %3554 = vmatprep.subr.bf16.mxu1 %v8013_v41  ;;  %v8085_v41 = vld [vmem:[%s8927_s7 + $0x2c4] ss:$16 sps:$4 sm:$0xff]  }
 0x1c0   : > { %3514 = vmatpush1.bf16.msra.mxu0 %v8008_v42 }
 0x1c1   : > { %3555 = vmatpush1.bf16.msra.mxu1 %v8011_v46  ;;  %3515 = vmatprep.subr.bf16.mxu0 %v8016_v47  ;;  %v8080_v47 = vld [vmem:[%s8927_s7 + $0xc0] ss:$16 sps:$4 sm:$0xff]  }
 0x1c2   : > { %3556 = vmatprep.subr.bf16.mxu1 %v8019_v48  ;;  %v8083_v48 = vld [vmem:[%s8927_s7 + $0x2c0] ss:$16 sps:$4 sm:$0xff]  }
 0x1c4   : > { %3516 = vmatpush1.bf16.msra.mxu0 %v8014_v44 }
 0x1c5   : > { %3557 = vmatpush1.bf16.msra.mxu1 %v8017_v45  ;;  %3517 = vmatprep.subr.bf16.mxu0 %v8022_v51 }
 0x1c6   : > { %3558 = vmatprep.subr.bf16.mxu1 %v8025_v52 }
 0x1c8   : > { %3518 = vmatpush1.bf16.msra.mxu0 %v8020_v57 }
 0x1c9   : > { %3559 = vmatpush1.bf16.msra.mxu1 %v8023_v53  ;;  %3519 = vmatprep.subr.bf16.mxu0 %v8028_v63 }
 0x1ca   : > { %3560 = vmatprep.subr.bf16.mxu1 %v8031_v54 }
 0x1cc   : > { %3520 = vmatpush1.bf16.msra.mxu0 %v8026_v56 }
 0x1cd   : > { %3561 = vmatpush1.bf16.msra.mxu1 %v8029_v59  ;;  %3521 = vmatprep.subr.bf16.mxu0 %v8034_v60  ;;  %v8091_v59 = vld [vmem:[%s8927_s7 + $0x2e4] ss:$16 sps:$4 sm:$0xff]  }
 0x1ce   : > { %3562 = vmatprep.subr.bf16.mxu1 %v8037_v62  ;;  %v8089_v62 = vld [vmem:[%s8927_s7 + $0x2e0] ss:$16 sps:$4 sm:$0xff]  }
 0x1d0   : > { %3522 = vmatpush1.bf16.msra.mxu0 %v8032_v0  ;;  %v8094_v0 = vld [vmem:[%s8927_s7 + $0x104] ss:$16 sps:$4 sm:$0xff]  }
 0x1d1   : > { %3563 = vmatpush1.bf16.msra.mxu1 %v8035_v5  ;;  %3523 = vmatprep.subr.bf16.mxu0 %v8040_v6  ;;  %v8097_v5 = vld [vmem:[%s8927_s7 + $0x304] ss:$16 sps:$4 sm:$0xff]   ;;  %v8092_v6 = vld [vmem:[%s8927_s7 + $0x100] ss:$16 sps:$4 sm:$0xff]  }
 0x1d2   : > { %3564 = vmatprep.subr.bf16.mxu1 %v8043_v7  ;;  %v8095_v7 = vld [vmem:[%s8927_s7 + $0x300] ss:$16 sps:$4 sm:$0xff]  }
 0x1d4   : > { %3524 = vmatpush1.bf16.msra.mxu0 %v8038_v22  ;;  %v8100_v22 = vld [vmem:[%s8927_s7 + $0x124] ss:$16 sps:$4 sm:$0xff]  }
 0x1d5   : > { %3565 = vmatpush1.bf16.msra.mxu1 %v8041_v23  ;;  %5507 = vmatprep.subr.bf16.mxu0 %v8046_v8  ;;  %v8103_v23 = vld [vmem:[%s8927_s7 + $0x324] ss:$16 sps:$4 sm:$0xff]   ;;  %v8098_v8 = vld [vmem:[%s8927_s7 + $0x120] ss:$16 sps:$4 sm:$0xff]  }
 0x1d6   : > { %5548 = vmatprep.subr.bf16.mxu1 %v8049_v11  ;;  %v8101_v11 = vld [vmem:[%s8927_s7 + $0x320] ss:$16 sps:$4 sm:$0xff]  }
 0x1d7   : > { %3526 = vmatmul.mubr.bf16.vlgmr.msra.gmra.mrb[20].mxu0 %v1140_v20  ;;  %v8056_v20 = vld [vmem:[%s8927_s7 + $0x40] ss:$16 sps:$4 sm:$0xff]  }
 0x1d8   : > { %3567 = vmatmul.mubr.bf16.vlgmr.msra.gmra.mrb[20].mxu1 %v1146_v24  ;;  %5508 = vmatpush1.bf16.msra.mxu0 %v8044_v28  ;;  %v8059_v24 = vld [vmem:[%s8927_s7 + $0x240] ss:$16 sps:$4 sm:$0xff]   ;;  %v8106_v28 = vld [vmem:[%s8927_s7 + $0x144] ss:$16 sps:$4 sm:$0xff]  }
 0x1d9   : > { %5549 = vmatpush1.bf16.msra.mxu1 %v8047_v12  ;;  %5509 = vmatprep.subr.bf16.mxu0 %v8052_v29  ;;  %v8109_v12 = vld [vmem:[%s8927_s7 + $0x344] ss:$16 sps:$4 sm:$0xff]   ;;  %v8104_v29 = vld [vmem:[%s8927_s7 + $0x140] ss:$16 sps:$4 sm:$0xff]  }
 0x1da   : > { %5550 = vmatprep.subr.bf16.mxu1 %v8055_v13  ;;  %5539 = vmatprep.mubr.bf16.mxu0 %v9008_v61  ;;  %v8107_v13 = vld [vmem:[%s8927_s7 + $0x340] ss:$16 sps:$4 sm:$0xff]  }
 0x1db   : > { %5580 = vmatprep.mubr.bf16.mxu1 %v9016_v2 }
 0x1dc   : > { %5510 = vmatpush1.bf16.msra.mxu0 %v8050_v14  ;;  %v8112_v14 = vld [vmem:[%s8927_s7 + $0x164] ss:$16 sps:$4 sm:$0xff]  }
 0x1dd   : > { %5551 = vmatpush1.bf16.msra.mxu1 %v8053_v50  ;;  %5511 = vmatprep.subr.bf16.mxu0 %v8058_v19  ;;  %v8115_v50 = vld [vmem:[%s8927_s7 + $0x364] ss:$16 sps:$4 sm:$0xff]   ;;  %v8110_v19 = vld [vmem:[%s8927_s7 + $0x160] ss:$16 sps:$4 sm:$0xff]  }
 0x1de   : > { %5552 = vmatprep.subr.bf16.mxu1 %v8061_v25  ;;  %v8113_v25 = vld [vmem:[%s8927_s7 + $0x360] ss:$16 sps:$4 sm:$0xff]  }
 0x1e0   : > { %5512 = vmatpush1.bf16.msra.mxu0 %v8056_v20  ;;  %v8118_v20 = vld [vmem:[%s8927_s7 + $0x184] ss:$16 sps:$4 sm:$0xff]  }
 0x1e1   : > { %5553 = vmatpush1.bf16.msra.mxu1 %v8059_v24  ;;  %5513 = vmatprep.subr.bf16.mxu0 %v8064_v36  ;;  %v8121_v24 = vld [vmem:[%s8927_s7 + $0x384] ss:$16 sps:$4 sm:$0xff]   ;;  %v8116_v36 = vld [vmem:[%s8927_s7 + $0x180] ss:$16 sps:$4 sm:$0xff]  }
 0x1e2   : > { %5554 = vmatprep.subr.bf16.mxu1 %v8067_v26  ;;  %v8119_v26 = vld [vmem:[%s8927_s7 + $0x380] ss:$16 sps:$4 sm:$0xff]  }
 0x1e4   : > { %5514 = vmatpush1.bf16.msra.mxu0 %v8062_v39  ;;  %v8124_v39 = vld [vmem:[%s8927_s7 + $0x1a4] ss:$16 sps:$4 sm:$0xff]  }
 0x1e5   : > { %5555 = vmatpush1.bf16.msra.mxu1 %v8065_v30  ;;  %5515 = vmatprep.subr.bf16.mxu0 %v8070_v31  ;;  %v8127_v30 = vld [vmem:[%s8927_s7 + $0x3a4] ss:$16 sps:$4 sm:$0xff]   ;;  %v8122_v31 = vld [vmem:[%s8927_s7 + $0x1a0] ss:$16 sps:$4 sm:$0xff]  }
 0x1e6   : > { %5556 = vmatprep.subr.bf16.mxu1 %v8073_v32  ;;  %v8125_v32 = vld [vmem:[%s8927_s7 + $0x3a0] ss:$16 sps:$4 sm:$0xff]  }
 0x1e8   : > { %5516 = vmatpush1.bf16.msra.mxu0 %v8068_v34  ;;  %v8130_v34 = vld [vmem:[%s8927_s7 + $0x1c4] ss:$16 sps:$4 sm:$0xff]  }
 0x1e9   : > { %5557 = vmatpush1.bf16.msra.mxu1 %v8071_v35  ;;  %5517 = vmatprep.subr.bf16.mxu0 %v8076_v37  ;;  %v8133_v35 = vld [vmem:[%s8927_s7 + $0x3c4] ss:$16 sps:$4 sm:$0xff]   ;;  %v8128_v37 = vld [vmem:[%s8927_s7 + $0x1c0] ss:$16 sps:$4 sm:$0xff]  }
 0x1ea   : > { %5558 = vmatprep.subr.bf16.mxu1 %v8079_v3  ;;  %v3281_v42 = vpop.f32.mrb[8].mxu0  ;;  %v8131_v3 = vld [vmem:[%s8927_s7 + $0x3c0] ss:$16 sps:$4 sm:$0xff]  }
 0x1eb   : > { %v3322_v46 = vpop.f32.mrb[8].mxu1  ;;  %v3282_v44 = vadd.f32 %v3281_v42, %v9420_v18  ;;  %v3283_v45 = vpop.f32.mrb[9].mxu0  ;;  %v8088_v18 = vld [vmem:[%s8927_s7 + $0xe4] ss:$16 sps:$4 sm:$0xff]  }
 0x1ec   : > { %v3324_v51 = vpop.f32.mrb[9].mxu1  ;;  %v3284_v52 = vadd.f32 %v3283_v45, %v9424_v27  ;;  %v3285_v57 = vpop.f32.mrb[10].mxu0  ;;  %5518 = vmatpush1.bf16.msra.mxu0 %v8074_v40  ;;  %v8086_v27 = vld [vmem:[%s8927_s7 + $0xe0] ss:$16 sps:$4 sm:$0xff]   ;;  %v8136_v40 = vld [vmem:[%s8927_s7 + $0x1e4] ss:$16 sps:$4 sm:$0xff]  }
 0x1ed   : > { %v3326_v53 = vpop.f32.mrb[10].mxu1  ;;  %5559 = vmatpush1.bf16.msra.mxu1 %v8077_v1  ;;  %v9496_v63 = vadd.f32 %v3322_v46, %v3282_v44  ;;  %v3286_v54 = vpop.f32.mrb[11].mxu0  ;;  %5519 = vmatprep.subr.bf16.mxu0 %v8082_v4  ;;  %v8139_v1 = vld [vmem:[%s8927_s7 + $0x3e4] ss:$16 sps:$4 sm:$0xff]   ;;  %v8134_v4 = vld [vmem:[%s8927_s7 + $0x1e0] ss:$16 sps:$4 sm:$0xff]  }
 0x1ee   : > { %v3327_v56 = vpop.f32.mrb[11].mxu1  ;;  %5560 = vmatprep.subr.bf16.mxu1 %v8085_v41  ;;  %v9500_v60 = vadd.f32 %v3324_v51, %v3284_v52  ;;  %v8137_v41 = vld [vmem:[%s8927_s7 + $0x3e0] ss:$16 sps:$4 sm:$0xff]   ;;  %v8142_v42 = vld [vmem:[%s8927_s7 + $0x404] ss:$16 sps:$4 sm:$0xff]  }
 0x1ef   : > { %v8145_v46 = vld [vmem:[%s8927_s7 + $0x604] ss:$16 sps:$4 sm:$0xff]   ;;  %v8146_v51 = vld [vmem:[%s8927_s7 + $0x420] ss:$16 sps:$4 sm:$0xff]  }
 0x1f0   : > { %5520 = vmatpush1.bf16.msra.mxu0 %v8080_v47  ;;  %v8140_v47 = vld [vmem:[%s8927_s7 + $0x400] ss:$16 sps:$4 sm:$0xff]   ;;  %v8148_v44 = vld [vmem:[%s8927_s7 + $0x424] ss:$16 sps:$4 sm:$0xff]  }
 0x1f1   : > { %5561 = vmatpush1.bf16.msra.mxu1 %v8083_v48  ;;  %5521 = vmatprep.subr.bf16.mxu0 %v8088_v18  ;;  %v8143_v48 = vld [vmem:[%s8927_s7 + $0x600] ss:$16 sps:$4 sm:$0xff]   ;;  %v8151_v45 = vld [vmem:[%s8927_s7 + $0x624] ss:$16 sps:$4 sm:$0xff]  }
 0x1f2   : > { %5562 = vmatprep.subr.bf16.mxu1 %v8091_v59  ;;  %v8149_v52 = vld [vmem:[%s8927_s7 + $0x620] ss:$16 sps:$4 sm:$0xff]   ;;  %v8154_v57 = vld [vmem:[%s8927_s7 + $0x444] ss:$16 sps:$4 sm:$0xff]  }
 0x1f3   : > { %v8157_v53 = vld [vmem:[%s8927_s7 + $0x644] ss:$16 sps:$4 sm:$0xff]   ;;  %v8152_v54 = vld [vmem:[%s8927_s7 + $0x440] ss:$16 sps:$4 sm:$0xff]  }
 0x1f4   : > { %5522 = vmatpush1.bf16.msra.mxu0 %v8086_v27  ;;  %v8155_v56 = vld [vmem:[%s8927_s7 + $0x640] ss:$16 sps:$4 sm:$0xff]   ;;  %v8160_v18 = vld [vmem:[%s8927_s7 + $0x464] ss:$16 sps:$4 sm:$0xff]  }
 0x1f5   : > { %5563 = vmatpush1.bf16.msra.mxu1 %v8089_v62  ;;  %5523 = vmatprep.subr.bf16.mxu0 %v8094_v0  ;;  %v8163_v59 = vld [vmem:[%s8927_s7 + $0x664] ss:$16 sps:$4 sm:$0xff]   ;;  %v8158_v27 = vld [vmem:[%s8927_s7 + $0x460] ss:$16 sps:$4 sm:$0xff]  }
 0x1f6   : > { %5564 = vmatprep.subr.bf16.mxu1 %v8097_v5  ;;  %v8161_v62 = vld [vmem:[%s8927_s7 + $0x660] ss:$16 sps:$4 sm:$0xff]   ;;  %v8166_v0 = vld [vmem:[%s8927_s7 + $0x484] ss:$16 sps:$4 sm:$0xff]  }
 0x1f7   : > { %v8169_v5 = vld [vmem:[%s8927_s7 + $0x684] ss:$16 sps:$4 sm:$0xff]  }
 0x1f8   : > { %5524 = vmatpush1.bf16.msra.mxu0 %v8092_v6  ;;  %v8164_v6 = vld [vmem:[%s8927_s7 + $0x480] ss:$16 sps:$4 sm:$0xff]  }
 0x1f9   : > { %5565 = vmatpush1.bf16.msra.mxu1 %v8095_v7  ;;  %5525 = vmatprep.subr.bf16.mxu0 %v8100_v22  ;;  %v8167_v7 = vld [vmem:[%s8927_s7 + $0x680] ss:$16 sps:$4 sm:$0xff]   ;;  %v8172_v22 = vld [vmem:[%s8927_s7 + $0x4a4] ss:$16 sps:$4 sm:$0xff]  }
 0x1fa   : > { %5566 = vmatprep.subr.bf16.mxu1 %v8103_v23  ;;  %v8175_v23 = vld [vmem:[%s8927_s7 + $0x6a4] ss:$16 sps:$4 sm:$0xff]  }
 0x1fc   : > { %5526 = vmatpush1.bf16.msra.mxu0 %v8098_v8  ;;  %v8170_v8 = vld [vmem:[%s8927_s7 + $0x4a0] ss:$16 sps:$4 sm:$0xff]  }
 0x1fd   : > { %5567 = vmatpush1.bf16.msra.mxu1 %v8101_v11  ;;  %5527 = vmatprep.subr.bf16.mxu0 %v8106_v28  ;;  %v8173_v11 = vld [vmem:[%s8927_s7 + $0x6a0] ss:$16 sps:$4 sm:$0xff]   ;;  %v8178_v28 = vld [vmem:[%s8927_s7 + $0x4c4] ss:$16 sps:$4 sm:$0xff]  }
 0x1fe   : > { %5568 = vmatprep.subr.bf16.mxu1 %v8109_v12  ;;  %v8181_v12 = vld [vmem:[%s8927_s7 + $0x6c4] ss:$16 sps:$4 sm:$0xff]  }
 0x200   : > { %5528 = vmatpush1.bf16.msra.mxu0 %v8104_v29 }
 0x201   : > { %5569 = vmatpush1.bf16.msra.mxu1 %v8107_v13  ;;  %5529 = vmatprep.subr.bf16.mxu0 %v8112_v14 }
 0x202   : > { %5570 = vmatprep.subr.bf16.mxu1 %v8115_v50 }
 0x204   : > { %5530 = vmatpush1.bf16.msra.mxu0 %v8110_v19 }
 0x205   : > { %5571 = vmatpush1.bf16.msra.mxu1 %v8113_v25  ;;  %5531 = vmatprep.subr.bf16.mxu0 %v8118_v20 }
 0x206   : > { %5572 = vmatprep.subr.bf16.mxu1 %v8121_v24 }
 0x208   : > { %5532 = vmatpush1.bf16.msra.mxu0 %v8116_v36  ;;  %v8176_v36 = vld [vmem:[%s8927_s7 + $0x4c0] ss:$16 sps:$4 sm:$0xff]  }
 0x209   : > { %5573 = vmatpush1.bf16.msra.mxu1 %v8119_v26  ;;  %5533 = vmatprep.subr.bf16.mxu0 %v8124_v39  ;;  %v8179_v26 = vld [vmem:[%s8927_s7 + $0x6c0] ss:$16 sps:$4 sm:$0xff]  }
 0x20a   : > { %5574 = vmatprep.subr.bf16.mxu1 %v8127_v30 }
 0x20c   : > { %5534 = vmatpush1.bf16.msra.mxu0 %v8122_v31  ;;  %v8184_v31 = vld [vmem:[%s8927_s7 + $0x4e4] ss:$16 sps:$4 sm:$0xff]  }
 0x20d   : > { %5575 = vmatpush1.bf16.msra.mxu1 %v8125_v32  ;;  %5535 = vmatprep.subr.bf16.mxu0 %v8130_v34  ;;  %v8187_v32 = vld [vmem:[%s8927_s7 + $0x6e4] ss:$16 sps:$4 sm:$0xff]   ;;  %v8182_v34 = vld [vmem:[%s8927_s7 + $0x4e0] ss:$16 sps:$4 sm:$0xff]  }
 0x20e   : > { %5576 = vmatprep.subr.bf16.mxu1 %v8133_v35  ;;  %v8185_v35 = vld [vmem:[%s8927_s7 + $0x6e0] ss:$16 sps:$4 sm:$0xff]  }
 0x210   : > { %5536 = vmatpush1.bf16.msra.mxu0 %v8128_v37  ;;  %v8190_v37 = vld [vmem:[%s8927_s7 + $0x504] ss:$16 sps:$4 sm:$0xff]  }
 0x211   : > { %5577 = vmatpush1.bf16.msra.mxu1 %v8131_v3  ;;  %5537 = vmatprep.subr.bf16.mxu0 %v8136_v40  ;;  %v8193_v3 = vld [vmem:[%s8927_s7 + $0x704] ss:$16 sps:$4 sm:$0xff]   ;;  %v8188_v40 = vld [vmem:[%s8927_s7 + $0x500] ss:$16 sps:$4 sm:$0xff]  }
 0x212   : > { %5578 = vmatprep.subr.bf16.mxu1 %v8139_v1  ;;  %v8191_v1 = vld [vmem:[%s8927_s7 + $0x700] ss:$16 sps:$4 sm:$0xff]  }
 0x214   : > { %5538 = vmatpush1.bf16.msra.mxu0 %v8134_v4  ;;  %v8196_v4 = vld [vmem:[%s8927_s7 + $0x524] ss:$16 sps:$4 sm:$0xff]  }
 0x215   : > { %5579 = vmatpush1.bf16.msra.mxu1 %v8137_v41  ;;  %5589 = vmatprep.subr.bf16.mxu0 %v8142_v42  ;;  %v8199_v41 = vld [vmem:[%s8927_s7 + $0x724] ss:$16 sps:$4 sm:$0xff]   ;;  %v8194_v42 = vld [vmem:[%s8927_s7 + $0x520] ss:$16 sps:$4 sm:$0xff]  }
 0x216   : > { %5630 = vmatprep.subr.bf16.mxu1 %v8145_v46  ;;  %v8197_v46 = vld [vmem:[%s8927_s7 + $0x720] ss:$16 sps:$4 sm:$0xff]  }
 0x217   : > { %5540 = vmatmul.mubr.bf16.vlgmr.msra.gmra.mrb[24].mxu0 %v9033_v10 }
 0x218   : > { %5581 = vmatmul.mubr.bf16.vlgmr.msra.gmra.mrb[24].mxu1 %v9044_v16  ;;  %5590 = vmatpush1.bf16.msra.mxu0 %v8140_v47  ;;  %v8202_v47 = vld [vmem:[%s8927_s7 + $0x544] ss:$16 sps:$4 sm:$0xff]  }
 0x219   : > { %5631 = vmatpush1.bf16.msra.mxu1 %v8143_v48  ;;  %5591 = vmatprep.subr.bf16.mxu0 %v8148_v44  ;;  %v8205_v48 = vld [vmem:[%s8927_s7 + $0x744] ss:$16 sps:$4 sm:$0xff]   ;;  %v8200_v44 = vld [vmem:[%s8927_s7 + $0x540] ss:$16 sps:$4 sm:$0xff]  }
 0x21a   : > { %5632 = vmatprep.subr.bf16.mxu1 %v8151_v45  ;;  %5621 = vmatprep.mubr.bf16.mxu0 %v9040_v15  ;;  %v8203_v45 = vld [vmem:[%s8927_s7 + $0x740] ss:$16 sps:$4 sm:$0xff]  }
 0x21b   : > { %5662 = vmatprep.mubr.bf16.mxu1 %v9052_v21 }
 0x21c   : > { %5592 = vmatpush1.bf16.msra.mxu0 %v8146_v51  ;;  %v8208_v51 = vld [vmem:[%s8927_s7 + $0x564] ss:$16 sps:$4 sm:$0xff]  }
 0x21d   : > { %5633 = vmatpush1.bf16.msra.mxu1 %v8149_v52  ;;  %5593 = vmatprep.subr.bf16.mxu0 %v8154_v57  ;;  %v8211_v52 = vld [vmem:[%s8927_s7 + $0x764] ss:$16 sps:$4 sm:$0xff]   ;;  %v8206_v57 = vld [vmem:[%s8927_s7 + $0x560] ss:$16 sps:$4 sm:$0xff]  }
 0x21e   : > { %5634 = vmatprep.subr.bf16.mxu1 %v8157_v53  ;;  %v8209_v53 = vld [vmem:[%s8927_s7 + $0x760] ss:$16 sps:$4 sm:$0xff]  }
 0x220   : > { %5594 = vmatpush1.bf16.msra.mxu0 %v8152_v54  ;;  %v8214_v54 = vld [vmem:[%s8927_s7 + $0x584] ss:$16 sps:$4 sm:$0xff]  }
 0x221   : > { %5635 = vmatpush1.bf16.msra.mxu1 %v8155_v56  ;;  %5595 = vmatprep.subr.bf16.mxu0 %v8160_v18  ;;  %v8217_v56 = vld [vmem:[%s8927_s7 + $0x784] ss:$16 sps:$4 sm:$0xff]   ;;  %v8212_v18 = vld [vmem:[%s8927_s7 + $0x580] ss:$16 sps:$4 sm:$0xff]  }
 0x222   : > { %5636 = vmatprep.subr.bf16.mxu1 %v8163_v59  ;;  %v8215_v59 = vld [vmem:[%s8927_s7 + $0x780] ss:$16 sps:$4 sm:$0xff]  }
 0x224   : > { %5596 = vmatpush1.bf16.msra.mxu0 %v8158_v27  ;;  %v8220_v27 = vld [vmem:[%s8927_s7 + $0x5a4] ss:$16 sps:$4 sm:$0xff]  }
 0x225   : > { %5637 = vmatpush1.bf16.msra.mxu1 %v8161_v62  ;;  %5597 = vmatprep.subr.bf16.mxu0 %v8166_v0  ;;  %v8223_v62 = vld [vmem:[%s8927_s7 + $0x7a4] ss:$16 sps:$4 sm:$0xff]   ;;  %v8218_v0 = vld [vmem:[%s8927_s7 + $0x5a0] ss:$16 sps:$4 sm:$0xff]  }
 0x226   : > { %5638 = vmatprep.subr.bf16.mxu1 %v8169_v5  ;;  %v8221_v5 = vld [vmem:[%s8927_s7 + $0x7a0] ss:$16 sps:$4 sm:$0xff]  }
 0x228   : > { %5598 = vmatpush1.bf16.msra.mxu0 %v8164_v6  ;;  %v8226_v6 = vld [vmem:[%s8927_s7 + $0x5c4] ss:$16 sps:$4 sm:$0xff]  }
 0x229   : > { %5639 = vmatpush1.bf16.msra.mxu1 %v8167_v7  ;;  %5599 = vmatprep.subr.bf16.mxu0 %v8172_v22  ;;  %v8229_v7 = vld [vmem:[%s8927_s7 + $0x7c4] ss:$16 sps:$4 sm:$0xff]   ;;  %v8224_v22 = vld [vmem:[%s8927_s7 + $0x5c0] ss:$16 sps:$4 sm:$0xff]  }
 0x22a   : > { %5640 = vmatprep.subr.bf16.mxu1 %v8175_v23  ;;  %v3363_v29 = vpop.f32.mrb[12].mxu0  ;;  %v8227_v23 = vld [vmem:[%s8927_s7 + $0x7c0] ss:$16 sps:$4 sm:$0xff]  }
 0x22b   : > { %v3404_v13 = vpop.f32.mrb[12].mxu1  ;;  %v3365_v50 = vpop.f32.mrb[13].mxu0 }
 0x22c   : > { %v9566_v14 = vadd.f32 %v3404_v13, %v3363_v29  ;;  %v3406_v19 = vpop.f32.mrb[13].mxu1  ;;  %v3367_v20 = vpop.f32.mrb[14].mxu0  ;;  %5600 = vmatpush1.bf16.msra.mxu0 %v8170_v8  ;;  %v8232_v8 = vld [vmem:[%s8927_s7 + $0x5e4] ss:$16 sps:$4 sm:$0xff]  }
 0x22d   : > { %v9568_v25 = vadd.f32 %v3406_v19, %v3365_v50  ;;  %v3408_v24 = vpop.f32.mrb[14].mxu1  ;;  %5641 = vmatpush1.bf16.msra.mxu1 %v8173_v11  ;;  %v3368_v39 = vpop.f32.mrb[15].mxu0  ;;  %5601 = vmatprep.subr.bf16.mxu0 %v8178_v28  ;;  %v8235_v11 = vld [vmem:[%s8927_s7 + $0x7e4] ss:$16 sps:$4 sm:$0xff]   ;;  %v8230_v28 = vld [vmem:[%s8927_s7 + $0x5e0] ss:$16 sps:$4 sm:$0xff]  }
 0x22e   : > { %v3409_v30 = vpop.f32.mrb[15].mxu1  ;;  %5642 = vmatprep.subr.bf16.mxu1 %v8181_v12  ;;  %v8233_v12 = vld [vmem:[%s8927_s7 + $0x7e0] ss:$16 sps:$4 sm:$0xff]   ;;  %v8238_v29 = vld [vmem:[%s8927_s7 + $0x804] ss:$16 sps:$4 sm:$0xff]  }
 0x22f   : > { %v8241_v13 = vld [vmem:[%s8927_s7 + $0xa04] ss:$16 sps:$4 sm:$0xff]   ;;  %v8236_v50 = vld [vmem:[%s8927_s7 + $0x800] ss:$16 sps:$4 sm:$0xff]  }
 0x230   : > { %5602 = vmatpush1.bf16.msra.mxu0 %v8176_v36  ;;  %v8239_v19 = vld [vmem:[%s8927_s7 + $0xa00] ss:$16 sps:$4 sm:$0xff]   ;;  %v8244_v20 = vld [vmem:[%s8927_s7 + $0x824] ss:$16 sps:$4 sm:$0xff]  }
 0x231   : > { %5643 = vmatpush1.bf16.msra.mxu1 %v8179_v26  ;;  %5603 = vmatprep.subr.bf16.mxu0 %v8184_v31  ;;  %v8247_v24 = vld [vmem:[%s8927_s7 + $0xa24] ss:$16 sps:$4 sm:$0xff]   ;;  %v8242_v36 = vld [vmem:[%s8927_s7 + $0x820] ss:$16 sps:$4 sm:$0xff]  }
 0x232   : > { %5644 = vmatprep.subr.bf16.mxu1 %v8187_v32  ;;  %v8245_v26 = vld [vmem:[%s8927_s7 + $0xa20] ss:$16 sps:$4 sm:$0xff]   ;;  %v8250_v39 = vld [vmem:[%s8927_s7 + $0x844] ss:$16 sps:$4 sm:$0xff]  }
 0x233   : > { %v8253_v30 = vld [vmem:[%s8927_s7 + $0xa44] ss:$16 sps:$4 sm:$0xff]   ;;  %v8248_v31 = vld [vmem:[%s8927_s7 + $0x840] ss:$16 sps:$4 sm:$0xff]  }
 0x234   : > { %5604 = vmatpush1.bf16.msra.mxu0 %v8182_v34  ;;  %v8251_v32 = vld [vmem:[%s8927_s7 + $0xa40] ss:$16 sps:$4 sm:$0xff]   ;;  %v8256_v34 = vld [vmem:[%s8927_s7 + $0x864] ss:$16 sps:$4 sm:$0xff]  }
 0x235   : > { %5645 = vmatpush1.bf16.msra.mxu1 %v8185_v35  ;;  %5605 = vmatprep.subr.bf16.mxu0 %v8190_v37  ;;  %v8259_v35 = vld [vmem:[%s8927_s7 + $0xa64] ss:$16 sps:$4 sm:$0xff]   ;;  %v8254_v37 = vld [vmem:[%s8927_s7 + $0x860] ss:$16 sps:$4 sm:$0xff]  }
 0x236   : > { %5646 = vmatprep.subr.bf16.mxu1 %v8193_v3  ;;  %v8257_v3 = vld [vmem:[%s8927_s7 + $0xa60] ss:$16 sps:$4 sm:$0xff]  }
 0x238   : > { %5606 = vmatpush1.bf16.msra.mxu0 %v8188_v40  ;;  %v8262_v40 = vld [vmem:[%s8927_s7 + $0x884] ss:$16 sps:$4 sm:$0xff]  }
 0x239   : > { %5647 = vmatpush1.bf16.msra.mxu1 %v8191_v1  ;;  %5607 = vmatprep.subr.bf16.mxu0 %v8196_v4  ;;  %v8265_v1 = vld [vmem:[%s8927_s7 + $0xa84] ss:$16 sps:$4 sm:$0xff]   ;;  %v8260_v4 = vld [vmem:[%s8927_s7 + $0x880] ss:$16 sps:$4 sm:$0xff]  }
 0x23a   : > { %5648 = vmatprep.subr.bf16.mxu1 %v8199_v41  ;;  %v8263_v41 = vld [vmem:[%s8927_s7 + $0xa80] ss:$16 sps:$4 sm:$0xff]  }
 0x23c   : > { %5608 = vmatpush1.bf16.msra.mxu0 %v8194_v42  ;;  %v8268_v42 = vld [vmem:[%s8927_s7 + $0x8a4] ss:$16 sps:$4 sm:$0xff]  }
 0x23d   : > { %5649 = vmatpush1.bf16.msra.mxu1 %v8197_v46  ;;  %5609 = vmatprep.subr.bf16.mxu0 %v8202_v47  ;;  %v8271_v46 = vld [vmem:[%s8927_s7 + $0xaa4] ss:$16 sps:$4 sm:$0xff]   ;;  %v8266_v47 = vld [vmem:[%s8927_s7 + $0x8a0] ss:$16 sps:$4 sm:$0xff]  }
 0x23e   : > { %5650 = vmatprep.subr.bf16.mxu1 %v8205_v48  ;;  %v8269_v48 = vld [vmem:[%s8927_s7 + $0xaa0] ss:$16 sps:$4 sm:$0xff]  }
 0x240   : > { %5610 = vmatpush1.bf16.msra.mxu0 %v8200_v44  ;;  %v8274_v44 = vld [vmem:[%s8927_s7 + $0x8c4] ss:$16 sps:$4 sm:$0xff]  }
 0x241   : > { %5651 = vmatpush1.bf16.msra.mxu1 %v8203_v45  ;;  %5611 = vmatprep.subr.bf16.mxu0 %v8208_v51  ;;  %v8277_v45 = vld [vmem:[%s8927_s7 + $0xac4] ss:$16 sps:$4 sm:$0xff]  }
 0x242   : > { %5652 = vmatprep.subr.bf16.mxu1 %v8211_v52 }
 0x244   : > { %5612 = vmatpush1.bf16.msra.mxu0 %v8206_v57 }
 0x245   : > { %5653 = vmatpush1.bf16.msra.mxu1 %v8209_v53  ;;  %5613 = vmatprep.subr.bf16.mxu0 %v8214_v54 }
 0x246   : > { %5654 = vmatprep.subr.bf16.mxu1 %v8217_v56 }
 0x248   : > { %5614 = vmatpush1.bf16.msra.mxu0 %v8212_v18 }
 0x249   : > { %5655 = vmatpush1.bf16.msra.mxu1 %v8215_v59  ;;  %5615 = vmatprep.subr.bf16.mxu0 %v8220_v27  ;;  %v8272_v27 = vld [vmem:[%s8927_s7 + $0x8c0] ss:$16 sps:$4 sm:$0xff]  }
 0x24a   : > { %5656 = vmatprep.subr.bf16.mxu1 %v8223_v62  ;;  %v8275_v62 = vld [vmem:[%s8927_s7 + $0xac0] ss:$16 sps:$4 sm:$0xff]  }
 0x24c   : > { %5616 = vmatpush1.bf16.msra.mxu0 %v8218_v0 }
 0x24d   : > { %5657 = vmatpush1.bf16.msra.mxu1 %v8221_v5  ;;  %5617 = vmatprep.subr.bf16.mxu0 %v8226_v6 }
 0x24e   : > { %5658 = vmatprep.subr.bf16.mxu1 %v8229_v7 }
 0x250   : > { %5618 = vmatpush1.bf16.msra.mxu0 %v8224_v22  ;;  %v8278_v22 = vld [vmem:[%s8927_s7 + $0x8e0] ss:$16 sps:$4 sm:$0xff]  }
 0x251   : > { %5659 = vmatpush1.bf16.msra.mxu1 %v8227_v23  ;;  %5619 = vmatprep.subr.bf16.mxu0 %v8232_v8  ;;  %v8281_v23 = vld [vmem:[%s8927_s7 + $0xae0] ss:$16 sps:$4 sm:$0xff]   ;;  %v8286_v8 = vld [vmem:[%s8927_s7 + $0x904] ss:$16 sps:$4 sm:$0xff]  }
 0x252   : > { %5660 = vmatprep.subr.bf16.mxu1 %v8235_v11  ;;  %v8289_v11 = vld [vmem:[%s8927_s7 + $0xb04] ss:$16 sps:$4 sm:$0xff]  }
 0x254   : > { %5620 = vmatpush1.bf16.msra.mxu0 %v8230_v28  ;;  %v8284_v28 = vld [vmem:[%s8927_s7 + $0x900] ss:$16 sps:$4 sm:$0xff]  }
 0x255   : > { %5661 = vmatpush1.bf16.msra.mxu1 %v8233_v12  ;;  %5671 = vmatprep.subr.bf16.mxu0 %v8238_v29  ;;  %v8287_v12 = vld [vmem:[%s8927_s7 + $0xb00] ss:$16 sps:$4 sm:$0xff]   ;;  %v8292_v29 = vld [vmem:[%s8927_s7 + $0x924] ss:$16 sps:$4 sm:$0xff]  }
 0x256   : > { %5712 = vmatprep.subr.bf16.mxu1 %v8241_v13  ;;  %v8295_v13 = vld [vmem:[%s8927_s7 + $0xb24] ss:$16 sps:$4 sm:$0xff]  }
 0x257   : > { %5622 = vmatmul.mubr.bf16.vlgmr.msra.gmra.mrb[28].mxu0 %v9124_v33 }
 0x258   : > { %5663 = vmatmul.mubr.bf16.vlgmr.msra.gmra.mrb[28].mxu1 %v9132_v38  ;;  %5672 = vmatpush1.bf16.msra.mxu0 %v8236_v50  ;;  %v8290_v50 = vld [vmem:[%s8927_s7 + $0x920] ss:$16 sps:$4 sm:$0xff]  }
 0x259   : > { %5713 = vmatpush1.bf16.msra.mxu1 %v8239_v19  ;;  %5673 = vmatprep.subr.bf16.mxu0 %v8244_v20  ;;  %v8293_v19 = vld [vmem:[%s8927_s7 + $0xb20] ss:$16 sps:$4 sm:$0xff]   ;;  %v8298_v20 = vld [vmem:[%s8927_s7 + $0x944] ss:$16 sps:$4 sm:$0xff]  }
 0x25a   : > { %5714 = vmatprep.subr.bf16.mxu1 %v8247_v24  ;;  %5703 = vmatprep.mubr.bf16.mxu0 %v9157_v55  ;;  %v8301_v24 = vld [vmem:[%s8927_s7 + $0xb44] ss:$16 sps:$4 sm:$0xff]  }
 0x25b   : > { %5744 = vmatprep.mubr.bf16.mxu1 %v9163_v58 }
 0x25c   : > { %5674 = vmatpush1.bf16.msra.mxu0 %v8242_v36  ;;  %v8296_v36 = vld [vmem:[%s8927_s7 + $0x940] ss:$16 sps:$4 sm:$0xff]  }
 0x25d   : > { %5715 = vmatpush1.bf16.msra.mxu1 %v8245_v26  ;;  %5675 = vmatprep.subr.bf16.mxu0 %v8250_v39  ;;  %v8299_v26 = vld [vmem:[%s8927_s7 + $0xb40] ss:$16 sps:$4 sm:$0xff]   ;;  %v8304_v39 = vld [vmem:[%s8927_s7 + $0x964] ss:$16 sps:$4 sm:$0xff]  }
 0x25e   : > { %5716 = vmatprep.subr.bf16.mxu1 %v8253_v30  ;;  %v8307_v30 = vld [vmem:[%s8927_s7 + $0xb64] ss:$16 sps:$4 sm:$0xff]  }
 0x260   : > { %5676 = vmatpush1.bf16.msra.mxu0 %v8248_v31  ;;  %v8302_v31 = vld [vmem:[%s8927_s7 + $0x960] ss:$16 sps:$4 sm:$0xff]  }
 0x261   : > { %5717 = vmatpush1.bf16.msra.mxu1 %v8251_v32  ;;  %5677 = vmatprep.subr.bf16.mxu0 %v8256_v34  ;;  %v8305_v32 = vld [vmem:[%s8927_s7 + $0xb60] ss:$16 sps:$4 sm:$0xff]   ;;  %v8310_v34 = vld [vmem:[%s8927_s7 + $0x984] ss:$16 sps:$4 sm:$0xff]  }
 0x262   : > { %5718 = vmatprep.subr.bf16.mxu1 %v8259_v35  ;;  %v8313_v35 = vld [vmem:[%s8927_s7 + $0xb84] ss:$16 sps:$4 sm:$0xff]  }
 0x264   : > { %5678 = vmatpush1.bf16.msra.mxu0 %v8254_v37  ;;  %v8308_v37 = vld [vmem:[%s8927_s7 + $0x980] ss:$16 sps:$4 sm:$0xff]  }
 0x265   : > { %5719 = vmatpush1.bf16.msra.mxu1 %v8257_v3  ;;  %5679 = vmatprep.subr.bf16.mxu0 %v8262_v40  ;;  %v8311_v3 = vld [vmem:[%s8927_s7 + $0xb80] ss:$16 sps:$4 sm:$0xff]   ;;  %v8316_v40 = vld [vmem:[%s8927_s7 + $0x9a4] ss:$16 sps:$4 sm:$0xff]  }
 0x266   : > { %5720 = vmatprep.subr.bf16.mxu1 %v8265_v1  ;;  %v8319_v1 = vld [vmem:[%s8927_s7 + $0xba4] ss:$16 sps:$4 sm:$0xff]  }
 0x268   : > { %5680 = vmatpush1.bf16.msra.mxu0 %v8260_v4  ;;  %v8314_v4 = vld [vmem:[%s8927_s7 + $0x9a0] ss:$16 sps:$4 sm:$0xff]  }
 0x269   : > { %5721 = vmatpush1.bf16.msra.mxu1 %v8263_v41  ;;  %5681 = vmatprep.subr.bf16.mxu0 %v8268_v42  ;;  %v8317_v41 = vld [vmem:[%s8927_s7 + $0xba0] ss:$16 sps:$4 sm:$0xff]   ;;  %v8322_v42 = vld [vmem:[%s8927_s7 + $0x9c4] ss:$16 sps:$4 sm:$0xff]  }
 0x26a   : > { %5722 = vmatprep.subr.bf16.mxu1 %v8271_v46  ;;  %v3445_v51 = vpop.f32.mrb[16].mxu0  ;;  %v8325_v46 = vld [vmem:[%s8927_s7 + $0xbc4] ss:$16 sps:$4 sm:$0xff]  }
 0x26b   : > { %v3486_v52 = vpop.f32.mrb[16].mxu1  ;;  %v3446_v57 = vadd.f32 %v3445_v51, %v9566_v14  ;;  %v3447_v53 = vpop.f32.mrb[17].mxu0  ;;  %v8280_v14 = vld [vmem:[%s8927_s7 + $0x8e4] ss:$16 sps:$4 sm:$0xff]   ;;  %v8326_v51 = vld [vmem:[%s8927_s7 + $0x9e0] ss:$16 sps:$4 sm:$0xff]  }
 0x26c   : > { %v3488_v54 = vpop.f32.mrb[17].mxu1  ;;  %v3448_v56 = vadd.f32 %v3447_v53, %v9568_v25  ;;  %v3449_v18 = vpop.f32.mrb[18].mxu0  ;;  %5682 = vmatpush1.bf16.msra.mxu0 %v8266_v47  ;;  %v8283_v25 = vld [vmem:[%s8927_s7 + $0xae4] ss:$16 sps:$4 sm:$0xff]   ;;  %v8320_v47 = vld [vmem:[%s8927_s7 + $0x9c0] ss:$16 sps:$4 sm:$0xff]  }
 0x26d   : > { %v3490_v59 = vpop.f32.mrb[18].mxu1  ;;  %5723 = vmatpush1.bf16.msra.mxu1 %v8269_v48  ;;  %v9642_v0 = vadd.f32 %v3486_v52, %v3446_v57  ;;  %v3450_v5 = vpop.f32.mrb[19].mxu0  ;;  %5683 = vmatprep.subr.bf16.mxu0 %v8274_v44  ;;  %v8323_v48 = vld [vmem:[%s8927_s7 + $0xbc0] ss:$16 sps:$4 sm:$0xff]   ;;  %v8328_v44 = vld [vmem:[%s8927_s7 + $0x9e4] ss:$16 sps:$4 sm:$0xff]  }
 0x26e   : > { %v3491_v6 = vpop.f32.mrb[19].mxu1  ;;  %5724 = vmatprep.subr.bf16.mxu1 %v8277_v45  ;;  %v9646_v7 = vadd.f32 %v3488_v54, %v3448_v56  ;;  %v8331_v45 = vld [vmem:[%s8927_s7 + $0xbe4] ss:$16 sps:$4 sm:$0xff]   ;;  %v8329_v52 = vld [vmem:[%s8927_s7 + $0xbe0] ss:$16 sps:$4 sm:$0xff]  }
 0x26f   : > { %v8334_v57 = vld [vmem:[%s8927_s7 + $0xc] ss:$16 sps:$4 sm:$0xff]   ;;  %v8332_v54 = vld [vmem:[%s8927_s7 + $0x8] ss:$16 sps:$4 sm:$0xff]  }
 0x270   : > { %5684 = vmatpush1.bf16.msra.mxu0 %v8272_v27  ;;  %v8337_v53 = vld [vmem:[%s8927_s7 + $0x20c] ss:$16 sps:$4 sm:$0xff]   ;;  %v8335_v56 = vld [vmem:[%s8927_s7 + $0x208] ss:$16 sps:$4 sm:$0xff]  }
 0x271   : > { %5725 = vmatpush1.bf16.msra.mxu1 %v8275_v62  ;;  %5685 = vmatprep.subr.bf16.mxu0 %v8280_v14  ;;  %v8340_v18 = vld [vmem:[%s8927_s7 + $0x2c] ss:$16 sps:$4 sm:$0xff]   ;;  %v8338_v27 = vld [vmem:[%s8927_s7 + $0x28] ss:$16 sps:$4 sm:$0xff]  }
 0x272   : > { %5726 = vmatprep.subr.bf16.mxu1 %v8283_v25  ;;  %v8343_v59 = vld [vmem:[%s8927_s7 + $0x22c] ss:$16 sps:$4 sm:$0xff]   ;;  %v8341_v62 = vld [vmem:[%s8927_s7 + $0x228] ss:$16 sps:$4 sm:$0xff]  }
 0x273   : > { %v8346_v5 = vld [vmem:[%s8927_s7 + $0x4c] ss:$16 sps:$4 sm:$0xff]   ;;  %v8344_v14 = vld [vmem:[%s8927_s7 + $0x48] ss:$16 sps:$4 sm:$0xff]  }
 0x274   : > { %5686 = vmatpush1.bf16.msra.mxu0 %v8278_v22  ;;  %v8349_v6 = vld [vmem:[%s8927_s7 + $0x24c] ss:$16 sps:$4 sm:$0xff]   ;;  %v8347_v25 = vld [vmem:[%s8927_s7 + $0x248] ss:$16 sps:$4 sm:$0xff]  }
 0x275   : > { %5727 = vmatpush1.bf16.msra.mxu1 %v8281_v23  ;;  %5687 = vmatprep.subr.bf16.mxu0 %v8286_v8  ;;  %v8352_v22 = vld [vmem:[%s8927_s7 + $0x6c] ss:$16 sps:$4 sm:$0xff]   ;;  %v8350_v8 = vld [vmem:[%s8927_s7 + $0x68] ss:$16 sps:$4 sm:$0xff]  }
 0x276   : > { %5728 = vmatprep.subr.bf16.mxu1 %v8289_v11  ;;  %v8355_v23 = vld [vmem:[%s8927_s7 + $0x26c] ss:$16 sps:$4 sm:$0xff]  }
 0x277   : > { %v8361_v11 = vld [vmem:[%s8927_s7 + $0x28c] ss:$16 sps:$4 sm:$0xff]  }
 0x278   : > { %5688 = vmatpush1.bf16.msra.mxu0 %v8284_v28  ;;  %v8356_v28 = vld [vmem:[%s8927_s7 + $0x88] ss:$16 sps:$4 sm:$0xff]  }
 0x279   : > { %5729 = vmatpush1.bf16.msra.mxu1 %v8287_v12  ;;  %5689 = vmatprep.subr.bf16.mxu0 %v8292_v29  ;;  %v8359_v12 = vld [vmem:[%s8927_s7 + $0x288] ss:$16 sps:$4 sm:$0xff]   ;;  %v8364_v29 = vld [vmem:[%s8927_s7 + $0xac] ss:$16 sps:$4 sm:$0xff]  }
 0x27a   : > { %5730 = vmatprep.subr.bf16.mxu1 %v8295_v13  ;;  %v8367_v13 = vld [vmem:[%s8927_s7 + $0x2ac] ss:$16 sps:$4 sm:$0xff]  }
 0x27c   : > { %5690 = vmatpush1.bf16.msra.mxu0 %v8290_v50  ;;  %v8362_v50 = vld [vmem:[%s8927_s7 + $0xa8] ss:$16 sps:$4 sm:$0xff]  }
 0x27d   : > { %5731 = vmatpush1.bf16.msra.mxu1 %v8293_v19  ;;  %5691 = vmatprep.subr.bf16.mxu0 %v8298_v20  ;;  %v8365_v19 = vld [vmem:[%s8927_s7 + $0x2a8] ss:$16 sps:$4 sm:$0xff]   ;;  %v8370_v20 = vld [vmem:[%s8927_s7 + $0xcc] ss:$16 sps:$4 sm:$0xff]  }
 0x27e   : > { %5732 = vmatprep.subr.bf16.mxu1 %v8301_v24  ;;  %v8373_v24 = vld [vmem:[%s8927_s7 + $0x2cc] ss:$16 sps:$4 sm:$0xff]  }
 0x280   : > { %5692 = vmatpush1.bf16.msra.mxu0 %v8296_v36 }
 0x281   : > { %5733 = vmatpush1.bf16.msra.mxu1 %v8299_v26  ;;  %5693 = vmatprep.subr.bf16.mxu0 %v8304_v39 }
 0x282   : > { %5734 = vmatprep.subr.bf16.mxu1 %v8307_v30 }
 0x284   : > { %5694 = vmatpush1.bf16.msra.mxu0 %v8302_v31 }
 0x285   : > { %5735 = vmatpush1.bf16.msra.mxu1 %v8305_v32  ;;  %5695 = vmatprep.subr.bf16.mxu0 %v8310_v34 }
 0x286   : > { %5736 = vmatprep.subr.bf16.mxu1 %v8313_v35 }
 0x288   : > { %5696 = vmatpush1.bf16.msra.mxu0 %v8308_v37  ;;  %v8368_v37 = vld [vmem:[%s8927_s7 + $0xc8] ss:$16 sps:$4 sm:$0xff]  }
 0x289   : > { %5737 = vmatpush1.bf16.msra.mxu1 %v8311_v3  ;;  %5697 = vmatprep.subr.bf16.mxu0 %v8316_v40  ;;  %v8371_v3 = vld [vmem:[%s8927_s7 + $0x2c8] ss:$16 sps:$4 sm:$0xff]  }
 0x28a   : > { %5738 = vmatprep.subr.bf16.mxu1 %v8319_v1 }
 0x28c   : > { %5698 = vmatpush1.bf16.msra.mxu0 %v8314_v4 }
 0x28d   : > { %5739 = vmatpush1.bf16.msra.mxu1 %v8317_v41  ;;  %5699 = vmatprep.subr.bf16.mxu0 %v8322_v42  ;;  %v8374_v42 = vld [vmem:[%s8927_s7 + $0xe8] ss:$16 sps:$4 sm:$0xff]  }
 0x28e   : > { %5740 = vmatprep.subr.bf16.mxu1 %v8325_v46  ;;  %v8377_v46 = vld [vmem:[%s8927_s7 + $0x2e8] ss:$16 sps:$4 sm:$0xff]  }
 0x290   : > { %5700 = vmatpush1.bf16.msra.mxu0 %v8320_v47  ;;  %v8382_v47 = vld [vmem:[%s8927_s7 + $0x10c] ss:$16 sps:$4 sm:$0xff]  }
 0x291   : > { %5741 = vmatpush1.bf16.msra.mxu1 %v8323_v48  ;;  %5701 = vmatprep.subr.bf16.mxu0 %v8328_v44  ;;  %v8385_v48 = vld [vmem:[%s8927_s7 + $0x30c] ss:$16 sps:$4 sm:$0xff]   ;;  %v8380_v44 = vld [vmem:[%s8927_s7 + $0x108] ss:$16 sps:$4 sm:$0xff]  }
 0x292   : > { %5742 = vmatprep.subr.bf16.mxu1 %v8331_v45  ;;  %v8383_v45 = vld [vmem:[%s8927_s7 + $0x308] ss:$16 sps:$4 sm:$0xff]  }
 0x294   : > { %5702 = vmatpush1.bf16.msra.mxu0 %v8326_v51  ;;  %v8388_v51 = vld [vmem:[%s8927_s7 + $0x12c] ss:$16 sps:$4 sm:$0xff]  }
 0x295   : > { %5743 = vmatpush1.bf16.msra.mxu1 %v8329_v52  ;;  %5753 = vmatprep.subr.bf16.mxu0 %v8334_v57  ;;  %v8391_v52 = vld [vmem:[%s8927_s7 + $0x32c] ss:$16 sps:$4 sm:$0xff]   ;;  %v8386_v57 = vld [vmem:[%s8927_s7 + $0x128] ss:$16 sps:$4 sm:$0xff]  }
 0x296   : > { %5794 = vmatprep.subr.bf16.mxu1 %v8337_v53  ;;  %v8389_v53 = vld [vmem:[%s8927_s7 + $0x328] ss:$16 sps:$4 sm:$0xff]  }
 0x297   : > { %5704 = vmatmul.mubr.bf16.vlgmr.msra.gmra.mrb[32].mxu0 %v9221_v9 }
 0x298   : > { %5745 = vmatmul.mubr.bf16.vlgmr.msra.gmra.mrb[32].mxu1 %v9229_v17  ;;  %5754 = vmatpush1.bf16.msra.mxu0 %v8332_v54  ;;  %v8394_v54 = vld [vmem:[%s8927_s7 + $0x14c] ss:$16 sps:$4 sm:$0xff]  }
 0x299   : > { %5795 = vmatpush1.bf16.msra.mxu1 %v8335_v56  ;;  %5755 = vmatprep.subr.bf16.mxu0 %v8340_v18  ;;  %v8397_v56 = vld [vmem:[%s8927_s7 + $0x34c] ss:$16 sps:$4 sm:$0xff]   ;;  %v8392_v18 = vld [vmem:[%s8927_s7 + $0x148] ss:$16 sps:$4 sm:$0xff]  }
 0x29a   : > { %5796 = vmatprep.subr.bf16.mxu1 %v8343_v59  ;;  %5785 = vmatprep.mubr.bf16.mxu0 %v9008_v61  ;;  %v8353_v61 = vld [vmem:[%s8927_s7 + $0x268] ss:$16 sps:$4 sm:$0xff]  }
 0x29b   : > { %5826 = vmatprep.mubr.bf16.mxu1 %v9016_v2  ;;  %v8358_v2 = vld [vmem:[%s8927_s7 + $0x8c] ss:$16 sps:$4 sm:$0xff]   ;;  %v8395_v59 = vld [vmem:[%s8927_s7 + $0x348] ss:$16 sps:$4 sm:$0xff]  }
 0x29c   : > { %5756 = vmatpush1.bf16.msra.mxu0 %v8338_v27  ;;  %v8400_v27 = vld [vmem:[%s8927_s7 + $0x16c] ss:$16 sps:$4 sm:$0xff]  }
 0x29d   : > { %5797 = vmatpush1.bf16.msra.mxu1 %v8341_v62  ;;  %5757 = vmatprep.subr.bf16.mxu0 %v8346_v5  ;;  %v8403_v62 = vld [vmem:[%s8927_s7 + $0x36c] ss:$16 sps:$4 sm:$0xff]   ;;  %v8398_v5 = vld [vmem:[%s8927_s7 + $0x168] ss:$16 sps:$4 sm:$0xff]  }
 0x29e   : > { %5798 = vmatprep.subr.bf16.mxu1 %v8349_v6  ;;  %v8401_v6 = vld [vmem:[%s8927_s7 + $0x368] ss:$16 sps:$4 sm:$0xff]  }
 0x2a0   : > { %5758 = vmatpush1.bf16.msra.mxu0 %v8344_v14  ;;  %v8406_v14 = vld [vmem:[%s8927_s7 + $0x18c] ss:$16 sps:$4 sm:$0xff]  }
 0x2a1   : > { %5799 = vmatpush1.bf16.msra.mxu1 %v8347_v25  ;;  %5759 = vmatprep.subr.bf16.mxu0 %v8352_v22  ;;  %v8409_v25 = vld [vmem:[%s8927_s7 + $0x38c] ss:$16 sps:$4 sm:$0xff]   ;;  %v8404_v22 = vld [vmem:[%s8927_s7 + $0x188] ss:$16 sps:$4 sm:$0xff]  }
 0x2a2   : > { %5800 = vmatprep.subr.bf16.mxu1 %v8355_v23  ;;  %v8407_v23 = vld [vmem:[%s8927_s7 + $0x388] ss:$16 sps:$4 sm:$0xff]  }
 0x2a4   : > { %5760 = vmatpush1.bf16.msra.mxu0 %v8350_v8  ;;  %v8412_v8 = vld [vmem:[%s8927_s7 + $0x1ac] ss:$16 sps:$4 sm:$0xff]  }
 0x2a5   : > { %5801 = vmatpush1.bf16.msra.mxu1 %v8353_v61  ;;  %5761 = vmatprep.subr.bf16.mxu0 %v8358_v2  ;;  %v8415_v61 = vld [vmem:[%s8927_s7 + $0x3ac] ss:$16 sps:$4 sm:$0xff]   ;;  %v8410_v2 = vld [vmem:[%s8927_s7 + $0x1a8] ss:$16 sps:$4 sm:$0xff]  }
 0x2a6   : > { %5802 = vmatprep.subr.bf16.mxu1 %v8361_v11  ;;  %v8413_v11 = vld [vmem:[%s8927_s7 + $0x3a8] ss:$16 sps:$4 sm:$0xff]  }
 0x2a8   : > { %5762 = vmatpush1.bf16.msra.mxu0 %v8356_v28  ;;  %v8418_v28 = vld [vmem:[%s8927_s7 + $0x1cc] ss:$16 sps:$4 sm:$0xff]  }
 0x2a9   : > { %5803 = vmatpush1.bf16.msra.mxu1 %v8359_v12  ;;  %5763 = vmatprep.subr.bf16.mxu0 %v8364_v29  ;;  %v8421_v12 = vld [vmem:[%s8927_s7 + $0x3cc] ss:$16 sps:$4 sm:$0xff]   ;;  %v8416_v29 = vld [vmem:[%s8927_s7 + $0x1c8] ss:$16 sps:$4 sm:$0xff]  }
 0x2aa   : > { %5804 = vmatprep.subr.bf16.mxu1 %v8367_v13  ;;  %v3527_v36 = vpop.f32.mrb[20].mxu0  ;;  %v8419_v13 = vld [vmem:[%s8927_s7 + $0x3c8] ss:$16 sps:$4 sm:$0xff]  }
 0x2ab   : > { %v3568_v26 = vpop.f32.mrb[20].mxu1  ;;  %v3528_v39 = vadd.f32 %v3527_v36, %v9642_v0  ;;  %v3529_v30 = vpop.f32.mrb[21].mxu0  ;;  %v8376_v0 = vld [vmem:[%s8927_s7 + $0xec] ss:$16 sps:$4 sm:$0xff]  }
 0x2ac   : > { %v3570_v31 = vpop.f32.mrb[21].mxu1  ;;  %v3530_v32 = vadd.f32 %v3529_v30, %v9646_v7  ;;  %v3531_v34 = vpop.f32.mrb[22].mxu0  ;;  %5764 = vmatpush1.bf16.msra.mxu0 %v8362_v50  ;;  %v8379_v7 = vld [vmem:[%s8927_s7 + $0x2ec] ss:$16 sps:$4 sm:$0xff]   ;;  %v8431_v30 = vld [vmem:[%s8927_s7 + $0x608] ss:$16 sps:$4 sm:$0xff]  }
 0x2ad   : > { %v3572_v35 = vpop.f32.mrb[22].mxu1  ;;  %5805 = vmatpush1.bf16.msra.mxu1 %v8365_v19  ;;  %v9716_v40 = vadd.f32 %v3568_v26, %v3528_v39  ;;  %v3532_v1 = vpop.f32.mrb[23].mxu0  ;;  %5765 = vmatprep.subr.bf16.mxu0 %v8370_v20  ;;  %v8424_v50 = vld [vmem:[%s8927_s7 + $0x1ec] ss:$16 sps:$4 sm:$0xff]   ;;  %v8422_v20 = vld [vmem:[%s8927_s7 + $0x1e8] ss:$16 sps:$4 sm:$0xff]  }
 0x2ae   : > { %v3573_v4 = vpop.f32.mrb[23].mxu1  ;;  %5806 = vmatprep.subr.bf16.mxu1 %v8373_v24  ;;  %v9720_v41 = vadd.f32 %v3570_v31, %v3530_v32  ;;  %v8427_v19 = vld [vmem:[%s8927_s7 + $0x3ec] ss:$16 sps:$4 sm:$0xff]   ;;  %v8425_v24 = vld [vmem:[%s8927_s7 + $0x3e8] ss:$16 sps:$4 sm:$0xff]  }
 0x2af   : > { %v8430_v36 = vld [vmem:[%s8927_s7 + $0x40c] ss:$16 sps:$4 sm:$0xff]   ;;  %v8428_v39 = vld [vmem:[%s8927_s7 + $0x408] ss:$16 sps:$4 sm:$0xff]  }
 0x2b0   : > { %5766 = vmatpush1.bf16.msra.mxu0 %v8368_v37  ;;  %v8433_v26 = vld [vmem:[%s8927_s7 + $0x60c] ss:$16 sps:$4 sm:$0xff]   ;;  %v8434_v34 = vld [vmem:[%s8927_s7 + $0x428] ss:$16 sps:$4 sm:$0xff]  }
 0x2b1   : > { %5807 = vmatpush1.bf16.msra.mxu1 %v8371_v3  ;;  %5767 = vmatprep.subr.bf16.mxu0 %v8376_v0  ;;  %v8436_v31 = vld [vmem:[%s8927_s7 + $0x42c] ss:$16 sps:$4 sm:$0xff]   ;;  %v8437_v35 = vld [vmem:[%s8927_s7 + $0x628] ss:$16 sps:$4 sm:$0xff]  }
 0x2b2   : > { %5808 = vmatprep.subr.bf16.mxu1 %v8379_v7  ;;  %v8439_v32 = vld [vmem:[%s8927_s7 + $0x62c] ss:$16 sps:$4 sm:$0xff]   ;;  %v8446_v0 = vld [vmem:[%s8927_s7 + $0x468] ss:$16 sps:$4 sm:$0xff]  }
 0x2b3   : > { %v8442_v37 = vld [vmem:[%s8927_s7 + $0x44c] ss:$16 sps:$4 sm:$0xff]  }
 0x2b4   : > { %5768 = vmatpush1.bf16.msra.mxu0 %v8374_v42  ;;  %v8445_v3 = vld [vmem:[%s8927_s7 + $0x64c] ss:$16 sps:$4 sm:$0xff]   ;;  %v8452_v42 = vld [vmem:[%s8927_s7 + $0x488] ss:$16 sps:$4 sm:$0xff]  }
 0x2b5   : > { %5809 = vmatpush1.bf16.msra.mxu1 %v8377_v46  ;;  %5769 = vmatprep.subr.bf16.mxu0 %v8382_v47  ;;  %v8448_v1 = vld [vmem:[%s8927_s7 + $0x46c] ss:$16 sps:$4 sm:$0xff]   ;;  %v8455_v46 = vld [vmem:[%s8927_s7 + $0x688] ss:$16 sps:$4 sm:$0xff]  }
 0x2b6   : > { %5810 = vmatprep.subr.bf16.mxu1 %v8385_v48  ;;  %v8451_v4 = vld [vmem:[%s8927_s7 + $0x66c] ss:$16 sps:$4 sm:$0xff]  }
 0x2b7   : > { %v8457_v7 = vld [vmem:[%s8927_s7 + $0x68c] ss:$16 sps:$4 sm:$0xff]  }
 0x2b8   : > { %5770 = vmatpush1.bf16.msra.mxu0 %v8380_v44  ;;  %v8460_v47 = vld [vmem:[%s8927_s7 + $0x4ac] ss:$16 sps:$4 sm:$0xff]   ;;  %v8458_v44 = vld [vmem:[%s8927_s7 + $0x4a8] ss:$16 sps:$4 sm:$0xff]  }
 0x2b9   : > { %5811 = vmatpush1.bf16.msra.mxu1 %v8383_v45  ;;  %5771 = vmatprep.subr.bf16.mxu0 %v8388_v51  ;;  %v8463_v48 = vld [vmem:[%s8927_s7 + $0x6ac] ss:$16 sps:$4 sm:$0xff]   ;;  %v8461_v45 = vld [vmem:[%s8927_s7 + $0x6a8] ss:$16 sps:$4 sm:$0xff]  }
 0x2ba   : > { %5812 = vmatprep.subr.bf16.mxu1 %v8391_v52  ;;  %v8466_v51 = vld [vmem:[%s8927_s7 + $0x4cc] ss:$16 sps:$4 sm:$0xff]  }
 0x2bb   : > { %v8469_v52 = vld [vmem:[%s8927_s7 + $0x6cc] ss:$16 sps:$4 sm:$0xff]  }
 0x2bc   : > { %5772 = vmatpush1.bf16.msra.mxu0 %v8386_v57 }
 0x2bd   : > { %5813 = vmatpush1.bf16.msra.mxu1 %v8389_v53  ;;  %5773 = vmatprep.subr.bf16.mxu0 %v8394_v54 }
 0x2be   : > { %5814 = vmatprep.subr.bf16.mxu1 %v8397_v56 }
 0x2c0   : > { %5774 = vmatpush1.bf16.msra.mxu0 %v8392_v18 }
 0x2c1   : > { %5815 = vmatpush1.bf16.msra.mxu1 %v8395_v59  ;;  %5775 = vmatprep.subr.bf16.mxu0 %v8400_v27 }
 0x2c2   : > { %5816 = vmatprep.subr.bf16.mxu1 %v8403_v62 }
 0x2c4   : > { %5776 = vmatpush1.bf16.msra.mxu0 %v8398_v5  ;;  %v8464_v5 = vld [vmem:[%s8927_s7 + $0x4c8] ss:$16 sps:$4 sm:$0xff]  }
 0x2c5   : > { %5817 = vmatpush1.bf16.msra.mxu1 %v8401_v6  ;;  %5777 = vmatprep.subr.bf16.mxu0 %v8406_v14  ;;  %v8467_v6 = vld [vmem:[%s8927_s7 + $0x6c8] ss:$16 sps:$4 sm:$0xff]  }
 0x2c6   : > { %5818 = vmatprep.subr.bf16.mxu1 %v8409_v25 }
 0x2c8   : > { %5778 = vmatpush1.bf16.msra.mxu0 %v8404_v22 }
 0x2c9   : > { %5819 = vmatpush1.bf16.msra.mxu1 %v8407_v23  ;;  %5779 = vmatprep.subr.bf16.mxu0 %v8412_v8  ;;  %v8470_v8 = vld [vmem:[%s8927_s7 + $0x4e8] ss:$16 sps:$4 sm:$0xff]  }
 0x2ca   : > { %5820 = vmatprep.subr.bf16.mxu1 %v8415_v61  ;;  %v8473_v61 = vld [vmem:[%s8927_s7 + $0x6e8] ss:$16 sps:$4 sm:$0xff]  }
 0x2cc   : > { %5780 = vmatpush1.bf16.msra.mxu0 %v8410_v2  ;;  %v8478_v2 = vld [vmem:[%s8927_s7 + $0x50c] ss:$16 sps:$4 sm:$0xff]  }
 0x2cd   : > { %5821 = vmatpush1.bf16.msra.mxu1 %v8413_v11  ;;  %5781 = vmatprep.subr.bf16.mxu0 %v8418_v28  ;;  %v8481_v11 = vld [vmem:[%s8927_s7 + $0x70c] ss:$16 sps:$4 sm:$0xff]   ;;  %v8476_v28 = vld [vmem:[%s8927_s7 + $0x508] ss:$16 sps:$4 sm:$0xff]  }
 0x2ce   : > { %5822 = vmatprep.subr.bf16.mxu1 %v8421_v12  ;;  %v8479_v12 = vld [vmem:[%s8927_s7 + $0x708] ss:$16 sps:$4 sm:$0xff]  }
 0x2d0   : > { %5782 = vmatpush1.bf16.msra.mxu0 %v8416_v29  ;;  %v8484_v29 = vld [vmem:[%s8927_s7 + $0x52c] ss:$16 sps:$4 sm:$0xff]  }
 0x2d1   : > { %5823 = vmatpush1.bf16.msra.mxu1 %v8419_v13  ;;  %5783 = vmatprep.subr.bf16.mxu0 %v8424_v50  ;;  %v8487_v13 = vld [vmem:[%s8927_s7 + $0x72c] ss:$16 sps:$4 sm:$0xff]   ;;  %v8482_v50 = vld [vmem:[%s8927_s7 + $0x528] ss:$16 sps:$4 sm:$0xff]  }
 0x2d2   : > { %5824 = vmatprep.subr.bf16.mxu1 %v8427_v19  ;;  %v8485_v19 = vld [vmem:[%s8927_s7 + $0x728] ss:$16 sps:$4 sm:$0xff]  }
 0x2d4   : > { %5784 = vmatpush1.bf16.msra.mxu0 %v8422_v20  ;;  %v8490_v20 = vld [vmem:[%s8927_s7 + $0x54c] ss:$16 sps:$4 sm:$0xff]  }
 0x2d5   : > { %5825 = vmatpush1.bf16.msra.mxu1 %v8425_v24  ;;  %5835 = vmatprep.subr.bf16.mxu0 %v8430_v36  ;;  %v8493_v24 = vld [vmem:[%s8927_s7 + $0x74c] ss:$16 sps:$4 sm:$0xff]   ;;  %v8488_v36 = vld [vmem:[%s8927_s7 + $0x548] ss:$16 sps:$4 sm:$0xff]  }
 0x2d6   : > { %5876 = vmatprep.subr.bf16.mxu1 %v8433_v26  ;;  %v8491_v26 = vld [vmem:[%s8927_s7 + $0x748] ss:$16 sps:$4 sm:$0xff]  }
 0x2d7   : > { %5786 = vmatmul.mubr.bf16.vlgmr.msra.gmra.mrb[36].mxu0 %v9033_v10  ;;  %v8440_v10 = vld [vmem:[%s8927_s7 + $0x448] ss:$16 sps:$4 sm:$0xff]  }
 0x2d8   : > { %5827 = vmatmul.mubr.bf16.vlgmr.msra.gmra.mrb[36].mxu1 %v9044_v16  ;;  %5836 = vmatpush1.bf16.msra.mxu0 %v8428_v39  ;;  %v8443_v16 = vld [vmem:[%s8927_s7 + $0x648] ss:$16 sps:$4 sm:$0xff]   ;;  %v8496_v39 = vld [vmem:[%s8927_s7 + $0x56c] ss:$16 sps:$4 sm:$0xff]  }
 0x2d9   : > { %5877 = vmatpush1.bf16.msra.mxu1 %v8431_v30  ;;  %5837 = vmatprep.subr.bf16.mxu0 %v8436_v31  ;;  %v8499_v30 = vld [vmem:[%s8927_s7 + $0x76c] ss:$16 sps:$4 sm:$0xff]   ;;  %v8494_v31 = vld [vmem:[%s8927_s7 + $0x568] ss:$16 sps:$4 sm:$0xff]  }
 0x2da   : > { %5878 = vmatprep.subr.bf16.mxu1 %v8439_v32  ;;  %5867 = vmatprep.mubr.bf16.mxu0 %v9040_v15  ;;  %v8449_v15 = vld [vmem:[%s8927_s7 + $0x668] ss:$16 sps:$4 sm:$0xff]  }
 0x2db   : > { %5908 = vmatprep.mubr.bf16.mxu1 %v9052_v21  ;;  %v8454_v21 = vld [vmem:[%s8927_s7 + $0x48c] ss:$16 sps:$4 sm:$0xff]   ;;  %v8497_v32 = vld [vmem:[%s8927_s7 + $0x768] ss:$16 sps:$4 sm:$0xff]  }
 0x2dc   : > { %5838 = vmatpush1.bf16.msra.mxu0 %v8434_v34  ;;  %v8502_v34 = vld [vmem:[%s8927_s7 + $0x58c] ss:$16 sps:$4 sm:$0xff]  }
 0x2dd   : > { %5879 = vmatpush1.bf16.msra.mxu1 %v8437_v35  ;;  %5839 = vmatprep.subr.bf16.mxu0 %v8442_v37  ;;  %v8505_v35 = vld [vmem:[%s8927_s7 + $0x78c] ss:$16 sps:$4 sm:$0xff]   ;;  %v8500_v37 = vld [vmem:[%s8927_s7 + $0x588] ss:$16 sps:$4 sm:$0xff]  }
 0x2de   : > { %5880 = vmatprep.subr.bf16.mxu1 %v8445_v3  ;;  %v8503_v3 = vld [vmem:[%s8927_s7 + $0x788] ss:$16 sps:$4 sm:$0xff]  }
 0x2e0   : > { %5840 = vmatpush1.bf16.msra.mxu0 %v8440_v10  ;;  %v8508_v10 = vld [vmem:[%s8927_s7 + $0x5ac] ss:$16 sps:$4 sm:$0xff]  }
 0x2e1   : > { %5881 = vmatpush1.bf16.msra.mxu1 %v8443_v16  ;;  %5841 = vmatprep.subr.bf16.mxu0 %v8448_v1  ;;  %v8511_v16 = vld [vmem:[%s8927_s7 + $0x7ac] ss:$16 sps:$4 sm:$0xff]   ;;  %v8506_v1 = vld [vmem:[%s8927_s7 + $0x5a8] ss:$16 sps:$4 sm:$0xff]  }
 0x2e2   : > { %5882 = vmatprep.subr.bf16.mxu1 %v8451_v4  ;;  %v8509_v4 = vld [vmem:[%s8927_s7 + $0x7a8] ss:$16 sps:$4 sm:$0xff]  }
 0x2e4   : > { %5842 = vmatpush1.bf16.msra.mxu0 %v8446_v0  ;;  %v8514_v0 = vld [vmem:[%s8927_s7 + $0x5cc] ss:$16 sps:$4 sm:$0xff]  }
 0x2e5   : > { %5883 = vmatpush1.bf16.msra.mxu1 %v8449_v15  ;;  %5843 = vmatprep.subr.bf16.mxu0 %v8454_v21  ;;  %v8517_v15 = vld [vmem:[%s8927_s7 + $0x7cc] ss:$16 sps:$4 sm:$0xff]   ;;  %v8512_v21 = vld [vmem:[%s8927_s7 + $0x5c8] ss:$16 sps:$4 sm:$0xff]  }
 0x2e6   : > { %5884 = vmatprep.subr.bf16.mxu1 %v8457_v7  ;;  %v8515_v7 = vld [vmem:[%s8927_s7 + $0x7c8] ss:$16 sps:$4 sm:$0xff]  }
 0x2e8   : > { %5844 = vmatpush1.bf16.msra.mxu0 %v8452_v42  ;;  %v8520_v42 = vld [vmem:[%s8927_s7 + $0x5ec] ss:$16 sps:$4 sm:$0xff]  }
 0x2e9   : > { %5885 = vmatpush1.bf16.msra.mxu1 %v8455_v46  ;;  %5845 = vmatprep.subr.bf16.mxu0 %v8460_v47  ;;  %v8523_v46 = vld [vmem:[%s8927_s7 + $0x7ec] ss:$16 sps:$4 sm:$0xff]   ;;  %v8518_v47 = vld [vmem:[%s8927_s7 + $0x5e8] ss:$16 sps:$4 sm:$0xff]  }
 0x2ea   : > { %5886 = vmatprep.subr.bf16.mxu1 %v8463_v48  ;;  %v5541_v57 = vpop.f32.mrb[24].mxu0  ;;  %v8521_v48 = vld [vmem:[%s8927_s7 + $0x7e8] ss:$16 sps:$4 sm:$0xff]  }
 0x2eb   : > { %v5582_v53 = vpop.f32.mrb[24].mxu1  ;;  %v5542_v54 = vadd.f32 %v5541_v57, %v9496_v63  ;;  %v5543_v56 = vpop.f32.mrb[25].mxu0  ;;  %v8472_v63 = vld [vmem:[%s8927_s7 + $0x4ec] ss:$16 sps:$4 sm:$0xff]  }
 0x2ec   : > { %v5584_v18 = vpop.f32.mrb[25].mxu1  ;;  %v5544_v59 = vadd.f32 %v5543_v56, %v9500_v60  ;;  %v5545_v27 = vpop.f32.mrb[26].mxu0  ;;  %5846 = vmatpush1.bf16.msra.mxu0 %v8458_v44  ;;  %v8475_v60 = vld [vmem:[%s8927_s7 + $0x6ec] ss:$16 sps:$4 sm:$0xff]   ;;  %v8533_v56 = vld [vmem:[%s8927_s7 + $0xa28] ss:$16 sps:$4 sm:$0xff]  }
 0x2ed   : > { %v5586_v62 = vpop.f32.mrb[26].mxu1  ;;  %5887 = vmatpush1.bf16.msra.mxu1 %v8461_v45  ;;  %v9790_v14 = vadd.f32 %v5582_v53, %v5542_v54  ;;  %v5546_v25 = vpop.f32.mrb[27].mxu0  ;;  %5847 = vmatprep.subr.bf16.mxu0 %v8466_v51  ;;  %v8526_v44 = vld [vmem:[%s8927_s7 + $0x80c] ss:$16 sps:$4 sm:$0xff]   ;;  %v8524_v51 = vld [vmem:[%s8927_s7 + $0x808] ss:$16 sps:$4 sm:$0xff]  }
 0x2ee   : > { %v5587_v22 = vpop.f32.mrb[27].mxu1  ;;  %5888 = vmatprep.subr.bf16.mxu1 %v8469_v52  ;;  %v9794_v23 = vadd.f32 %v5584_v18, %v5544_v59  ;;  %v8529_v45 = vld [vmem:[%s8927_s7 + $0xa0c] ss:$16 sps:$4 sm:$0xff]   ;;  %v8527_v52 = vld [vmem:[%s8927_s7 + $0xa08] ss:$16 sps:$4 sm:$0xff]  }
 0x2ef   : > { %v8532_v57 = vld [vmem:[%s8927_s7 + $0x82c] ss:$16 sps:$4 sm:$0xff]   ;;  %v8530_v54 = vld [vmem:[%s8927_s7 + $0x828] ss:$16 sps:$4 sm:$0xff]  }
 0x2f0   : > { %5848 = vmatpush1.bf16.msra.mxu0 %v8464_v5  ;;  %v8535_v53 = vld [vmem:[%s8927_s7 + $0xa2c] ss:$16 sps:$4 sm:$0xff]   ;;  %v8542_v5 = vld [vmem:[%s8927_s7 + $0x868] ss:$16 sps:$4 sm:$0xff]  }
 0x2f1   : > { %5889 = vmatpush1.bf16.msra.mxu1 %v8467_v6  ;;  %5849 = vmatprep.subr.bf16.mxu0 %v8472_v63  ;;  %v8538_v18 = vld [vmem:[%s8927_s7 + $0x84c] ss:$16 sps:$4 sm:$0xff]   ;;  %v8548_v25 = vld [vmem:[%s8927_s7 + $0x888] ss:$16 sps:$4 sm:$0xff]  }
 0x2f2   : > { %5890 = vmatprep.subr.bf16.mxu1 %v8475_v60  ;;  %v8541_v59 = vld [vmem:[%s8927_s7 + $0xa4c] ss:$16 sps:$4 sm:$0xff]   ;;  %v8551_v22 = vld [vmem:[%s8927_s7 + $0xa88] ss:$16 sps:$4 sm:$0xff]  }
 0x2f3   : > { %v8544_v27 = vld [vmem:[%s8927_s7 + $0x86c] ss:$16 sps:$4 sm:$0xff]  }
 0x2f4   : > { %5850 = vmatpush1.bf16.msra.mxu0 %v8470_v8  ;;  %v8547_v62 = vld [vmem:[%s8927_s7 + $0xa6c] ss:$16 sps:$4 sm:$0xff]   ;;  %v8554_v8 = vld [vmem:[%s8927_s7 + $0x8a8] ss:$16 sps:$4 sm:$0xff]  }
 0x2f5   : > { %5891 = vmatpush1.bf16.msra.mxu1 %v8473_v61  ;;  %5851 = vmatprep.subr.bf16.mxu0 %v8478_v2  ;;  %v8553_v6 = vld [vmem:[%s8927_s7 + $0xa8c] ss:$16 sps:$4 sm:$0xff]   ;;  %v8557_v61 = vld [vmem:[%s8927_s7 + $0xaa8] ss:$16 sps:$4 sm:$0xff]  }
 0x2f6   : > { %5892 = vmatprep.subr.bf16.mxu1 %v8481_v11  ;;  %v8556_v63 = vld [vmem:[%s8927_s7 + $0x8ac] ss:$16 sps:$4 sm:$0xff]  }
 0x2f7   : > { %v8559_v60 = vld [vmem:[%s8927_s7 + $0xaac] ss:$16 sps:$4 sm:$0xff]  }
 0x2f8   : > { %5852 = vmatpush1.bf16.msra.mxu0 %v8476_v28  ;;  %v8562_v2 = vld [vmem:[%s8927_s7 + $0x8cc] ss:$16 sps:$4 sm:$0xff]  }
 0x2f9   : > { %5893 = vmatpush1.bf16.msra.mxu1 %v8479_v12  ;;  %5853 = vmatprep.subr.bf16.mxu0 %v8484_v29  ;;  %v8565_v11 = vld [vmem:[%s8927_s7 + $0xacc] ss:$16 sps:$4 sm:$0xff]  }
 0x2fa   : > { %5894 = vmatprep.subr.bf16.mxu1 %v8487_v13 }
 0x2fc   : > { %5854 = vmatpush1.bf16.msra.mxu0 %v8482_v50 }
 0x2fd   : > { %5895 = vmatpush1.bf16.msra.mxu1 %v8485_v19  ;;  %5855 = vmatprep.subr.bf16.mxu0 %v8490_v20 }
 0x2fe   : > { %5896 = vmatprep.subr.bf16.mxu1 %v8493_v24 }
 0x300   : > { %5856 = vmatpush1.bf16.msra.mxu0 %v8488_v36  ;;  %v8560_v36 = vld [vmem:[%s8927_s7 + $0x8c8] ss:$16 sps:$4 sm:$0xff]  }
 0x301   : > { %5897 = vmatpush1.bf16.msra.mxu1 %v8491_v26  ;;  %5857 = vmatprep.subr.bf16.mxu0 %v8496_v39  ;;  %v8563_v26 = vld [vmem:[%s8927_s7 + $0xac8] ss:$16 sps:$4 sm:$0xff]  }
 0x302   : > { %5898 = vmatprep.subr.bf16.mxu1 %v8499_v30 }
 0x304   : > { %5858 = vmatpush1.bf16.msra.mxu0 %v8494_v31 }
 0x305   : > { %5899 = vmatpush1.bf16.msra.mxu1 %v8497_v32  ;;  %5859 = vmatprep.subr.bf16.mxu0 %v8502_v34  ;;  %v8566_v34 = vld [vmem:[%s8927_s7 + $0x8e8] ss:$16 sps:$4 sm:$0xff]  }
 0x306   : > { %5900 = vmatprep.subr.bf16.mxu1 %v8505_v35  ;;  %v8569_v35 = vld [vmem:[%s8927_s7 + $0xae8] ss:$16 sps:$4 sm:$0xff]  }
 0x308   : > { %5860 = vmatpush1.bf16.msra.mxu0 %v8500_v37  ;;  %v8574_v37 = vld [vmem:[%s8927_s7 + $0x90c] ss:$16 sps:$4 sm:$0xff]  }
 0x309   : > { %5901 = vmatpush1.bf16.msra.mxu1 %v8503_v3  ;;  %5861 = vmatprep.subr.bf16.mxu0 %v8508_v10  ;;  %v8577_v3 = vld [vmem:[%s8927_s7 + $0xb0c] ss:$16 sps:$4 sm:$0xff]   ;;  %v8572_v10 = vld [vmem:[%s8927_s7 + $0x908] ss:$16 sps:$4 sm:$0xff]  }
 0x30a   : > { %5902 = vmatprep.subr.bf16.mxu1 %v8511_v16  ;;  %v8575_v16 = vld [vmem:[%s8927_s7 + $0xb08] ss:$16 sps:$4 sm:$0xff]  }
 0x30c   : > { %5862 = vmatpush1.bf16.msra.mxu0 %v8506_v1  ;;  %v8580_v1 = vld [vmem:[%s8927_s7 + $0x92c] ss:$16 sps:$4 sm:$0xff]  }
 0x30d   : > { %5903 = vmatpush1.bf16.msra.mxu1 %v8509_v4  ;;  %5863 = vmatprep.subr.bf16.mxu0 %v8514_v0  ;;  %v8583_v4 = vld [vmem:[%s8927_s7 + $0xb2c] ss:$16 sps:$4 sm:$0xff]   ;;  %v8578_v0 = vld [vmem:[%s8927_s7 + $0x928] ss:$16 sps:$4 sm:$0xff]  }
 0x30e   : > { %5904 = vmatprep.subr.bf16.mxu1 %v8517_v15  ;;  %v8581_v15 = vld [vmem:[%s8927_s7 + $0xb28] ss:$16 sps:$4 sm:$0xff]  }
 0x310   : > { %5864 = vmatpush1.bf16.msra.mxu0 %v8512_v21  ;;  %v8586_v21 = vld [vmem:[%s8927_s7 + $0x94c] ss:$16 sps:$4 sm:$0xff]  }
 0x311   : > { %5905 = vmatpush1.bf16.msra.mxu1 %v8515_v7  ;;  %5865 = vmatprep.subr.bf16.mxu0 %v8520_v42  ;;  %v8589_v7 = vld [vmem:[%s8927_s7 + $0xb4c] ss:$16 sps:$4 sm:$0xff]   ;;  %v8584_v42 = vld [vmem:[%s8927_s7 + $0x948] ss:$16 sps:$4 sm:$0xff]  }
 0x312   : > { %5906 = vmatprep.subr.bf16.mxu1 %v8523_v46  ;;  %v8587_v46 = vld [vmem:[%s8927_s7 + $0xb48] ss:$16 sps:$4 sm:$0xff]  }
 0x314   : > { %5866 = vmatpush1.bf16.msra.mxu0 %v8518_v47  ;;  %v8592_v47 = vld [vmem:[%s8927_s7 + $0x96c] ss:$16 sps:$4 sm:$0xff]  }
 0x315   : > { %5907 = vmatpush1.bf16.msra.mxu1 %v8521_v48  ;;  %5917 = vmatprep.subr.bf16.mxu0 %v8526_v44  ;;  %v8595_v48 = vld [vmem:[%s8927_s7 + $0xb6c] ss:$16 sps:$4 sm:$0xff]   ;;  %v8590_v44 = vld [vmem:[%s8927_s7 + $0x968] ss:$16 sps:$4 sm:$0xff]  }
 0x316   : > { %5958 = vmatprep.subr.bf16.mxu1 %v8529_v45  ;;  %v8593_v45 = vld [vmem:[%s8927_s7 + $0xb68] ss:$16 sps:$4 sm:$0xff]  }
 0x317   : > { %5868 = vmatmul.mubr.bf16.vlgmr.msra.gmra.mrb[40].mxu0 %v9124_v33  ;;  %v8536_v33 = vld [vmem:[%s8927_s7 + $0x848] ss:$16 sps:$4 sm:$0xff]  }
 0x318   : > { %5909 = vmatmul.mubr.bf16.vlgmr.msra.gmra.mrb[40].mxu1 %v9132_v38  ;;  %5918 = vmatpush1.bf16.msra.mxu0 %v8524_v51  ;;  %v8539_v38 = vld [vmem:[%s8927_s7 + $0xa48] ss:$16 sps:$4 sm:$0xff]   ;;  %v8598_v51 = vld [vmem:[%s8927_s7 + $0x98c] ss:$16 sps:$4 sm:$0xff]  }
 0x319   : > { %5959 = vmatpush1.bf16.msra.mxu1 %v8527_v52  ;;  %5919 = vmatprep.subr.bf16.mxu0 %v8532_v57  ;;  %v8601_v52 = vld [vmem:[%s8927_s7 + $0xb8c] ss:$16 sps:$4 sm:$0xff]   ;;  %v8596_v57 = vld [vmem:[%s8927_s7 + $0x988] ss:$16 sps:$4 sm:$0xff]  }
 0x31a   : > { %5960 = vmatprep.subr.bf16.mxu1 %v8535_v53  ;;  %5949 = vmatprep.mubr.bf16.mxu0 %v9157_v55  ;;  %v8545_v55 = vld [vmem:[%s8927_s7 + $0xa68] ss:$16 sps:$4 sm:$0xff]  }
 0x31b   : > { %5990 = vmatprep.mubr.bf16.mxu1 %v9163_v58  ;;  %v8550_v58 = vld [vmem:[%s8927_s7 + $0x88c] ss:$16 sps:$4 sm:$0xff]   ;;  %v8599_v53 = vld [vmem:[%s8927_s7 + $0xb88] ss:$16 sps:$4 sm:$0xff]  }
 0x31c   : > { %5920 = vmatpush1.bf16.msra.mxu0 %v8530_v54  ;;  %v8604_v54 = vld [vmem:[%s8927_s7 + $0x9ac] ss:$16 sps:$4 sm:$0xff]  }
 0x31d   : > { %5961 = vmatpush1.bf16.msra.mxu1 %v8533_v56  ;;  %5921 = vmatprep.subr.bf16.mxu0 %v8538_v18  ;;  %v8607_v56 = vld [vmem:[%s8927_s7 + $0xbac] ss:$16 sps:$4 sm:$0xff]   ;;  %v8602_v18 = vld [vmem:[%s8927_s7 + $0x9a8] ss:$16 sps:$4 sm:$0xff]  }
 0x31e   : > { %5962 = vmatprep.subr.bf16.mxu1 %v8541_v59  ;;  %v8605_v59 = vld [vmem:[%s8927_s7 + $0xba8] ss:$16 sps:$4 sm:$0xff]  }
 0x320   : > { %5922 = vmatpush1.bf16.msra.mxu0 %v8536_v33  ;;  %v8610_v33 = vld [vmem:[%s8927_s7 + $0x9cc] ss:$16 sps:$4 sm:$0xff]  }
 0x321   : > { %5963 = vmatpush1.bf16.msra.mxu1 %v8539_v38  ;;  %5923 = vmatprep.subr.bf16.mxu0 %v8544_v27  ;;  %v8613_v38 = vld [vmem:[%s8927_s7 + $0xbcc] ss:$16 sps:$4 sm:$0xff]   ;;  %v8608_v27 = vld [vmem:[%s8927_s7 + $0x9c8] ss:$16 sps:$4 sm:$0xff]  }
 0x322   : > { %5964 = vmatprep.subr.bf16.mxu1 %v8547_v62  ;;  %v8611_v62 = vld [vmem:[%s8927_s7 + $0xbc8] ss:$16 sps:$4 sm:$0xff]  }
 0x324   : > { %5924 = vmatpush1.bf16.msra.mxu0 %v8542_v5  ;;  %v8616_v5 = vld [vmem:[%s8927_s7 + $0x9ec] ss:$16 sps:$4 sm:$0xff]  }
 0x325   : > { %5965 = vmatpush1.bf16.msra.mxu1 %v8545_v55  ;;  %5925 = vmatprep.subr.bf16.mxu0 %v8550_v58  ;;  %v8619_v55 = vld [vmem:[%s8927_s7 + $0xbec] ss:$16 sps:$4 sm:$0xff]   ;;  %v8614_v58 = vld [vmem:[%s8927_s7 + $0x9e8] ss:$16 sps:$4 sm:$0xff]  }
 0x326   : > { %5966 = vmatprep.subr.bf16.mxu1 %v8553_v6  ;;  %v8617_v6 = vld [vmem:[%s8927_s7 + $0xbe8] ss:$16 sps:$4 sm:$0xff]  }
 0x328   : > { %5926 = vmatpush1.bf16.msra.mxu0 %v8548_v25  ;;  %v6003_v25 = vsub.s32 0, %v8983_v43 }
 0x329   : > { %5967 = vmatpush1.bf16.msra.mxu1 %v8551_v22  ;;  %5927 = vmatprep.subr.bf16.mxu0 %v8556_v63  ;;  %v5999_v22 = vld [vmem:[%s8933_s12] sm:$0xf]  ;;  %v6007_v63 = vsub.s32 1, %v8983_v43 }
 0x32a   : > { %5968 = vmatprep.subr.bf16.mxu1 %v8559_v60  ;;  %v5623_v28 = vpop.f32.mrb[28].mxu0 }
 0x32b   : > { %v5664_v12 = vpop.f32.mrb[28].mxu1  ;;  %v5624_v29 = vadd.f32 %v5623_v28, %v9790_v14  ;;  %v5625_v13 = vpop.f32.mrb[29].mxu0  ;;  %v8568_v14 = vld [vmem:[%s8927_s7 + $0x8ec] ss:$16 sps:$4 sm:$0xff]  }
 0x32c   : > { %v5666_v50 = vpop.f32.mrb[29].mxu1  ;;  %v5626_v19 = vadd.f32 %v5625_v13, %v9794_v23  ;;  %v5627_v20 = vpop.f32.mrb[30].mxu0  ;;  %5928 = vmatpush1.bf16.msra.mxu0 %v8554_v8  ;;  %v8571_v23 = vld [vmem:[%s8927_s7 + $0xaec] ss:$16 sps:$4 sm:$0xff]  }
 0x32d   : > { %v5668_v24 = vpop.f32.mrb[30].mxu1  ;;  %5969 = vmatpush1.bf16.msra.mxu1 %v8557_v61  ;;  %v9864_v39 = vadd.f32 %v5664_v12, %v5624_v29  ;;  %v5628_v30 = vpop.f32.mrb[31].mxu0  ;;  %5929 = vmatprep.subr.bf16.mxu0 %v8562_v2  ;;  %v6004_v2 = vrot.slane %v5999_v22, %v6003_v25  ;;  %v6008_v29 = vrot.slane %v5999_v22, %v6007_v63 }
 0x32e   : > { %v5669_v31 = vpop.f32.mrb[31].mxu1  ;;  %5970 = vmatprep.subr.bf16.mxu1 %v8565_v11  ;;  %v9868_v32 = vadd.f32 %v5666_v50, %v5626_v19 }
 0x330   : > { %5930 = vmatpush1.bf16.msra.mxu0 %v8560_v36 }
 0x331   : > { %5971 = vmatpush1.bf16.msra.mxu1 %v8563_v26  ;;  %5931 = vmatprep.subr.bf16.mxu0 %v8568_v14 }
 0x332   : > { %5972 = vmatprep.subr.bf16.mxu1 %v8571_v23 }
 0x334   : > { %5932 = vmatpush1.bf16.msra.mxu0 %v8566_v34 }
 0x335   : > { %5973 = vmatpush1.bf16.msra.mxu1 %v8569_v35  ;;  %5933 = vmatprep.subr.bf16.mxu0 %v8574_v37 }
 0x336   : > { %5974 = vmatprep.subr.bf16.mxu1 %v8577_v3 }
 0x338   : > { %5934 = vmatpush1.bf16.msra.mxu0 %v8572_v10 }
 0x339   : > { %5975 = vmatpush1.bf16.msra.mxu1 %v8575_v16  ;;  %5935 = vmatprep.subr.bf16.mxu0 %v8580_v1 }
 0x33a   : > { %5976 = vmatprep.subr.bf16.mxu1 %v8583_v4 }
 0x33c   : > { %5936 = vmatpush1.bf16.msra.mxu0 %v8578_v0 }
 0x33d   : > { %5977 = vmatpush1.bf16.msra.mxu1 %v8581_v15  ;;  %5937 = vmatprep.subr.bf16.mxu0 %v8586_v21 }
 0x33e   : > { %5978 = vmatprep.subr.bf16.mxu1 %v8589_v7 }
 0x340   : > { %5938 = vmatpush1.bf16.msra.mxu0 %v8584_v42 }
 0x341   : > { %5979 = vmatpush1.bf16.msra.mxu1 %v8587_v46  ;;  %5939 = vmatprep.subr.bf16.mxu0 %v8592_v47 }
 0x342   : > { %5980 = vmatprep.subr.bf16.mxu1 %v8595_v48 }
 0x344   : > { %5940 = vmatpush1.bf16.msra.mxu0 %v8590_v44 }
 0x345   : > { %5981 = vmatpush1.bf16.msra.mxu1 %v8593_v45  ;;  %5941 = vmatprep.subr.bf16.mxu0 %v8598_v51 }
 0x346   : > { %5982 = vmatprep.subr.bf16.mxu1 %v8601_v52 }
 0x348   : > { %5942 = vmatpush1.bf16.msra.mxu0 %v8596_v57 }
 0x349   : > { %5983 = vmatpush1.bf16.msra.mxu1 %v8599_v53  ;;  %5943 = vmatprep.subr.bf16.mxu0 %v8604_v54  ;;  %v6015_v53 = vsub.s32 3, %v8983_v43 }
 0x34a   : > { %5984 = vmatprep.subr.bf16.mxu1 %v8607_v56 }
 0x34c   : > { %5944 = vmatpush1.bf16.msra.mxu0 %v8602_v18 }
 0x34d   : > { %5985 = vmatpush1.bf16.msra.mxu1 %v8605_v59  ;;  %5945 = vmatprep.subr.bf16.mxu0 %v8610_v33 }
 0x34e   : > { %5986 = vmatprep.subr.bf16.mxu1 %v8613_v38 }
 0x350   : > { %5946 = vmatpush1.bf16.msra.mxu0 %v8608_v27 }
 0x351   : > { %5987 = vmatpush1.bf16.msra.mxu1 %v8611_v62  ;;  %5947 = vmatprep.subr.bf16.mxu0 %v8616_v5  ;;  %v6016_v62 = vrot.slane %v5999_v22, %v6015_v53 }
 0x352   : > { %5988 = vmatprep.subr.bf16.mxu1 %v8619_v55 }
 0x354   : > { %5948 = vmatpush1.bf16.msra.mxu0 %v8614_v58 }
 0x355   : > { %5989 = vmatpush1.bf16.msra.mxu1 %v8617_v6 }
 0x357   : > { %5950 = vmatmul.mubr.bf16.vlgmr.msra.gmra.mrb[44].mxu0 %v9221_v9 }
 0x358   : > { %5991 = vmatmul.mubr.bf16.vlgmr.msra.gmra.mrb[44].mxu1 %v9229_v17 }
 0x36a   : > { %v5705_v60 = vpop.f32.mrb[32].mxu0 }
 0x36b   : > { %v5746_v8 = vpop.f32.mrb[32].mxu1  ;;  %v5706_v61 = vadd.f32 %v5705_v60, %v9864_v39  ;;  %v5707_v11 = vpop.f32.mrb[33].mxu0 }
 0x36c   : > { %v5748_v28 = vpop.f32.mrb[33].mxu1  ;;  %v5708_v12 = vadd.f32 %v5707_v11, %v9868_v32  ;;  %v5709_v13 = vpop.f32.mrb[34].mxu0 }
 0x36d   : > { %v5750_v50 = vpop.f32.mrb[34].mxu1  ;;  %v5747_v9 = vadd.f32 %v5746_v8, %v5706_v61  ;;  %v5710_v19 = vpop.f32.mrb[35].mxu0 }
 0x36e   : > { %v5751_v17 = vpop.f32.mrb[35].mxu1  ;;  %v5749_v20 = vadd.f32 %v5748_v28, %v5708_v12 }
 0x36f   : > { %v6021_v24 = vadd.f32 %v6004_v2, %v5747_v9  ;;  %v6085_v9 = vld [vmem:[%s267_s15] sm:$0xf] }
 0x370   : > { %v6022_v36 = vadd.f32 %v6008_v29, %v5749_v20 }
 0x371   : > { %vm6025_vm0 = vcmp.ge.f32.partialorder %v6021_v24, 0.0  ;;  %v6029_v26 = vmul.f32 0.1, %v6021_v24 }
 0x372   : > { %vm6026_vm1 = vcmp.ge.f32.partialorder %v6022_v36, 0.0  ;;  %v6030_v30 = vmul.f32 0.1, %v6022_v36 }
 0x373   : > { %v9911_v31 = vsel %vm6025_vm0, %v6021_v24, %v6029_v26  ;;  %vm6080_vm0 = vmor %vm6079_vm13, %vm6076_vm12 }
 0x374   : > { %v9913_v39 = vsel %vm6026_vm1, %v6022_v36, %v6030_v30  ;;  %vm6083_vm1 = vmand %vm6081_vm14, %vm6082_vm15 }
 0x375   : > { %v7378_v14 = vpack.c.bf16 %v9913_v39, %v9911_v31  ;;  %vm6084_vm2 = vmor %vm6083_vm1, %vm6080_vm0 }
 0x377   : > { %v6053_v29 = vrot.slane %v7378_v14, %v8996_v49 }
 0x3aa   : > { %v5787_v23 = vpop.f32.mrb[36].mxu0 }
 0x3ab   : > { %v5828_v32 = vpop.f32.mrb[36].mxu1  ;;  %v5788_v34 = vadd.f32 %v5787_v23, %v9716_v40  ;;  %v5789_v35 = vpop.f32.mrb[37].mxu0 }
 0x3ac   : > { %v5830_v37 = vpop.f32.mrb[37].mxu1  ;;  %v5790_v3 = vadd.f32 %v5789_v35, %v9720_v41  ;;  %v5791_v10 = vpop.f32.mrb[38].mxu0  ;;  %v6011_v41 = vsub.s32 2, %v8983_v43 }
 0x3ad   : > { %v5832_v16 = vpop.f32.mrb[38].mxu1  ;;  %v5829_v1 = vadd.f32 %v5828_v32, %v5788_v34  ;;  %v5792_v4 = vpop.f32.mrb[39].mxu0 }
 0x3ae   : > { %v5833_v0 = vpop.f32.mrb[39].mxu1  ;;  %v5831_v15 = vadd.f32 %v5830_v37, %v5790_v3  ;;  %v6012_v59 = vrot.slane %v5999_v22, %v6011_v41 }
 0x3ea   : > { %v5869_v21 = vpop.f32.mrb[40].mxu0 }
 0x3eb   : > { %v5910_v7 = vpop.f32.mrb[40].mxu1  ;;  %v5870_v42 = vadd.f32 %v5869_v21, %v5829_v1  ;;  %v5871_v46 = vpop.f32.mrb[41].mxu0 }
 0x3ec   : > { %v5912_v47 = vpop.f32.mrb[41].mxu1  ;;  %v5872_v48 = vadd.f32 %v5871_v46, %v5831_v15  ;;  %v5873_v44 = vpop.f32.mrb[42].mxu0 }
 0x3ed   : > { %v5914_v45 = vpop.f32.mrb[42].mxu1  ;;  %v5911_v40 = vadd.f32 %v5910_v7, %v5870_v42  ;;  %v5874_v51 = vpop.f32.mrb[43].mxu0 }
 0x3ee   : > { %v5915_v52 = vpop.f32.mrb[43].mxu1  ;;  %v5913_v57 = vadd.f32 %v5912_v47, %v5872_v48 }
 0x42a   : > { %v5951_v54 = vpop.f32.mrb[44].mxu0 }
 0x42b   : > { %v5992_v56 = vpop.f32.mrb[44].mxu1  ;;  %v5952_v18 = vadd.f32 %v5951_v54, %v5911_v40  ;;  %v5953_v33 = vpop.f32.mrb[45].mxu0 }
 0x42c   : > { %v5994_v38 = vpop.f32.mrb[45].mxu1  ;;  %v5954_v27 = vadd.f32 %v5953_v33, %v5913_v57  ;;  %v5955_v43 = vpop.f32.mrb[46].mxu0 }
 0x42d   : > { %v5996_v5 = vpop.f32.mrb[46].mxu1  ;;  %v5993_v55 = vadd.f32 %v5992_v56, %v5952_v18  ;;  %v5956_v58 = vpop.f32.mrb[47].mxu0 }
 0x42e   : > { %v5997_v6 = vpop.f32.mrb[47].mxu1  ;;  %v5995_v25 = vadd.f32 %v5994_v38, %v5954_v27 }
 0x42f   : > { %v6023_v60 = vadd.f32 %v6012_v59, %v5993_v55 }
 0x430   : > { %v6024_v22 = vadd.f32 %v6016_v62, %v5995_v25 }
 0x431   : > { %vm6027_vm10 = vcmp.ge.f32.partialorder %v6023_v60, 0.0  ;;  %v6031_v61 = vmul.f32 0.1, %v6023_v60 }
 0x432   : > { %vm6028_vm11 = vcmp.ge.f32.partialorder %v6024_v22, 0.0  ;;  %v6032_v2 = vmul.f32 0.1, %v6024_v22 }
 0x433   : > { %v6035_v11 = vsel %vm6027_vm10, %v6023_v60, %v6031_v61 }
 0x434   : > { %v6036_v28 = vsel %vm6028_vm11, %v6024_v22, %v6032_v2 }
 0x435   : > { %v7379_v12 = vpack.c.bf16 %v6036_v28, %v6035_v11 }
 0x437   : > { %v6060_v13 = vrot.slane %v7379_v12, %v8996_v49 }
 0x439   : > { %v6061_v50 = vcombine.low %v6053_v29, %v6060_v13 }
 0x43b   : > { %v6068_v19 = vrot.slane %v6061_v50, %v8996_v49 }
 0x43d   : > { %v6086_v17 = vsel %vm6084_vm2, %v6068_v19, %v6085_v9 }
 0x43e   : > { %6087 = vst [vmem:[%s267_s15] sm:$0xf] %v6086_v17 }
 0x43f PF: > { %s19_s19 = sadd.s32 1, %s8750_s19   ;;  %s9991_s12 = smov %s8726_s13 }
 0x440   : > { %p16_p5 = scmp.ge.s32.totalorder %s19_s19, 14   ;;  %s9992_s13 = smov %s8730_s14 }
 0x441   : > { %s9993_s14 = smov %s8846_s30  ;;  %s9994_s15 = smov %s8742_s17 }
 0x442   : > { %s9995_s16 = smov %s8746_s18  ;;  %s9996_s17 = smov %s9999_s21 }
 0x443   : > { %s9997_s18 = smov %s10003_s22  ;;  %18 = sbr.rel (!%p16_p5) target bundleno = 7 (0x7), region = 89 }
 0x44a   :  { %6116 = vsyncpa [#allocation3], 1 }
 0x44b   :  { %6118 = vsyncpa [#allocation3 + $0x1], 1 }
 0x44c   :  { %6119 = vsyncpa [#allocation5], 1 }
 0x44d   :  { %6121 = vsyncpa [#allocation5 + $0x1], 1 }

// kernel: discriminator_p_forward.7
= control target key start
LH: loop header
LB: loop body
LE: loop exit
PB: predicated region body
PF: predicated region fallthrough
CT: control target
= control target key end

     0   :  { %8 = vsyncpa [#allocation3], 0  ;;  %s16242_s0 = inlined_call_operand.vmem [shape: bf16[6,5,1024], index: 0, kind: input, shape index: {}]   ;;  %s16243_s1 = inlined_call_operand.hbm [shape: bf16[5,1024,1024], index: 1, kind: input, shape index: {}]   ;;  %s16244_s2 = inlined_call_operand.hbm [shape: f32[1,1024], index: 2, kind: input, shape index: {}]   ;;  %s16245_s3 = inlined_call_operand.vmem [shape: bf16[6,1,1024], index: 3, kind: output, shape index: {}]  }
   0x1   :  { %10 = vsyncpa [#allocation3 + $0x1], 0 }
   0x2   :  { %11 = vsyncpa [#allocation5], 0 }
   0x3   :  { %13 = vsyncpa [#allocation5 + $0x1], 0  ;;  %s14435_s12 = smov 0   ;;  %s14437_s13 = smov 0  }
   0x4   :  { %s14439_s14 = smov 0   ;;  %s14441_s15 = smov 0  }
   0x5   :  { %s14443_s16 = smov 0   ;;  %s14445_s17 = smov 0  }
   0x6   :  { %s14447_s18 = smov 0   ;;  %s14449_s19 = smov 0  }
   0x7 LB: > { %s9933_s20 = sadd.s32 4294967295, %s14407_s19   ;;  %s28_s21 = sadd.s32 1, %s14399_s17  ;;  %s14407_s19 = sphi %s14449_s19, %s19_s19   ;;  %s14403_s18 = sphi %s14447_s18, %s16264_s18   ;;  %s14399_s17 = sphi %s14445_s17, %s16263_s17   ;;  %s14395_s16 = sphi %s14443_s16, %s16262_s16   ;;  %s14391_s15 = sphi %s14441_s15, %s16261_s15   ;;  %s14387_s14 = sphi %s14439_s14, %s16260_s14   ;;  %s14383_s13 = sphi %s14437_s13, %s16259_s13   ;;  %s14379_s12 = sphi %s14435_s12, %s16258_s12  }
   0x8   : > { %p29_p0 = scmp.ge.s32.totalorder %s28_s21, 6  ;;  %s31_s22 = sadd.s32 1, %s14403_s18 }
   0x9   : > { %s64_s23 = sadd.s32 1, %s14387_s14  ;;  %p71_p1 = scmp.ne.s32.totalorder %s14387_s14, %s14383_s13 }
   0xa   : > { %s16266_s21 = smov (%p29_p0, %s28_s21), 0  ;;  %s16268_s22 = smov (!%p29_p0, %s31_s22), %s14403_s18 }
   0xb   : > { %p72_p2 = scmp.eq.s32.totalorder %s14407_s19, 0  ;;  %p77_p3 = scmp.ne.s32.totalorder %s14383_s13, %s14379_s12 }
   0xc   : > { %p33_p4 = scmp.ge.s32.totalorder %s16268_s22, 2  ;;  %p78_p5 = scmp.eq.s32.totalorder %s9933_s20, 0 }
   0xd   : > { %p14484_p6 = por %p72_p2, %p71_p1  ;;  %p12280_p8 = scmp.lt.s32.totalorder %s14407_s19, 12 }
   0xe   : > { %s16270_s22 = smov (%p33_p4, %s16268_s22), 0  ;;  %p14490_p7 = por %p78_p5, %p77_p3 }
   0xf   : > { %s61_s26 = ssub.s32 %s14403_s18, %s16270_s22  ;;  %s14498_s27 = sand.u32 1, %s14387_s14  }
  0x10   : > { %s16248_s25 = scalar_select %p14490_p7, 1, 0 }
  0x11   : > { %p62_p9 = scmp.eq.s32.totalorder %s61_s26, 0  ;;  %s12267_s28 = smul.u32 10240, %s14498_s27 }
  0x12   : > { %s12264_s29 = sshll.u32 %s14403_s18, 8  ;;  %p14512_p10 = pnand %p12280_p8, %p14484_p6 }
  0x13   : > { %s14503_s30 = scalar_select %p62_p9, %s14387_s14, %s64_s23  }
  0x14   : > { %s14508_s6 = scalar_lea.hbm %s16243_s1, %s12264_s29  ;;  %s167_s7 = scalar_lea.vmem [#allocation2], %s12267_s28 }
  0x15   : > { %s174_s8 = sshll.u32 %s167_s7, 4  ;;  %s164_s10 = scalar_lea.sflag [#allocation3], %s14498_s27  ;;  %s14516_s8 = int_to_ptr.vmem [resolvable:$true] %s174_s8 }
  0x16   : > { %s14277_s11 = scalar_lea.hbm %s14508_s6, 163840  ;;  %p14279_p13 = pneg %p14512_p10 }
  0x17   : > { %p14278_p12 = scmp.ne.s32.totalorder %s14508_s6, %s14277_s11  ;;  %s14282_s23 = scalar_lea.hbm %s16243_s1, 327680 }
  0x18   : > { %p14283_p2 = scmp.lt.u32.totalorder %s14508_s6, %s16243_s1  ;;  %p14284_p3 = scmp.lt.u32.totalorder %s14282_s23, %s14277_s11 }
  0x19   : > { %p14280_p0 = pnand %p14279_p13, %p14278_p12  ;;  %p14286_p5 = scmp.lt.u32.totalorder %s14277_s11, %s14508_s6 }
  0x1a   : > { %p14285_p4 = por %p14284_p3, %p14283_p2 }
  0x1b   : > { %p14281_p1 = pneg %p14280_p0 }
  0x1c   : > { %p14287_p6 = por %p14286_p5, %p14285_p4 }
  0x1e   : > { %p14288_p8 = pnand %p14287_p6, %p14281_p1 }
  0x20   : > { %14291 = shalt.err (!%p14288_p8)
}
  0x21   : > { %s14292_s28 = scalar_lea.vmem %s14516_s8, 163840  ;;  %s14409_s29 = smov [#allocation2]  }
  0x22   : > { %p14293_p9 = scmp.ne.s32.totalorder %s14516_s8, %s14292_s28  ;;  %s14297_s4 = sshll.u32 %s14409_s29, 4  ;;  %s14298_s4 = int_to_ptr.vmem [resolvable:$false] %s14297_s4 }
  0x23   : > { %s14299_s5 = scalar_lea.vmem %s14298_s4, 327680  ;;  %p14300_p11 = scmp.lt.s32.totalorder %s14516_s8, %s14298_s4 }
  0x24   : > { %p14295_p12 = pnand %p14293_p9, %p14279_p13  ;;  %p14301_p2 = scmp.lt.s32.totalorder %s14299_s5, %s14292_s28 }
  0x26   : > { %p14296_p0 = pneg %p14295_p12  ;;  %p14302_p3 = por %p14301_p2, %p14300_p11 }
  0x28   : > { %p14303_p4 = pnand %p14302_p3, %p14296_p0 }
  0x2a   : > { %14306 = shalt.err (!%p14303_p4)
}
  0x2b   : > { %s14410_s7 = smov 512   ;;  %s14411_s11 = smov 256  }
  0x2c   : > { %s14412_s12 = smov 16   ;;  %p201_p1 = scmp.lt.s32.totalorder %s14407_s19, 13 }
  0x2d   : > { %12276 = dma.hbm_to_vmem [thread:$0]  (!%p14512_p10), %s14508_s6, 163840, %s14516_s8, %s164_s10, %s14410_s7, %s14411_s11, %s14412_s12  }
  0x2e   : > { %s9939_s20 = sshll.u32 %s14498_s27, 2  ;;  %s12265_s23 = sshll.u32 %s14403_s18, 6 }
  0x2f   : > { %p16250_p11 = scmp.ge.s32.totalorder %s14407_s19, 1  ;;  %s14559_s29 = scalar_lea.hbm %s16244_s2, %s12265_s23 }
  0x30   : > { %s188_s4 = scalar_lea.vmem [#allocation4], %s9939_s20  ;;  %s185_s6 = scalar_lea.sflag [#allocation5], %s14498_s27 }
  0x31   : > { %p14552_p5 = pnand %p16250_p11, %p201_p1  ;;  %s196_s5 = sshll.u32 %s188_s4, 4  ;;  %s197_s5 = int_to_ptr.vmem [resolvable:$true] %s196_s5 }
  0x32   : > { %s14307_s8 = scalar_lea.hbm %s14559_s29, 64  ;;  %s14312_s11 = scalar_lea.hbm %s16244_s2, 128 }
  0x33   : > { %s16251_s24 = scalar_select %p14552_p5, 1, 0 }
  0x34   : > { %p14308_p6 = scmp.ne.s32.totalorder %s14559_s29, %s14307_s8  ;;  %p14313_p12 = scmp.lt.u32.totalorder %s14559_s29, %s16244_s2 }
  0x35   : > { %p14314_p0 = scmp.lt.u32.totalorder %s14312_s11, %s14307_s8  ;;  %p14316_p3 = scmp.lt.u32.totalorder %s14307_s8, %s14559_s29 }
  0x36   : > { %p14310_p8 = pnand %p14308_p6, %p14279_p13 }
  0x37   : > { %p14315_p2 = por %p14314_p0, %p14313_p12 }
  0x38   : > { %p14311_p9 = pneg %p14310_p8 }
  0x39   : > { %p14317_p4 = por %p14316_p3, %p14315_p2 }
  0x3b   : > { %p14318_p1 = pnand %p14317_p4, %p14311_p9 }
  0x3d   : > { %14321 = shalt.err (!%p14318_p1)
}
  0x3e   : > { %s14322_s27 = scalar_lea.vmem %s197_s5, 64  ;;  %s14413_s20 = smov [#allocation4]  }
  0x3f   : > { %p14323_p11 = scmp.ne.s32.totalorder %s197_s5, %s14322_s27  ;;  %s14327_s26 = sshll.u32 %s14413_s20, 4  ;;  %s14328_s26 = int_to_ptr.vmem [resolvable:$false] %s14327_s26 }
  0x40   : > { %s14329_s28 = scalar_lea.vmem %s14328_s26, 128  ;;  %p14330_p7 = scmp.lt.s32.totalorder %s197_s5, %s14328_s26 }
  0x41   : > { %p14325_p6 = pnand %p14323_p11, %p14279_p13  ;;  %p14331_p5 = scmp.lt.s32.totalorder %s14329_s28, %s14322_s27 }
  0x43   : > { %p14326_p8 = pneg %p14325_p6  ;;  %p14332_p0 = por %p14331_p5, %p14330_p7 }
  0x45   : > { %p14333_p12 = pnand %p14332_p0, %p14326_p8 }
  0x47   : > { %14336 = shalt.err (!%p14333_p12)
}
  0x48   : > { %12279 = dma.hbm_to_vmem [thread:$0]  (!%p14512_p10), %s14559_s29, 64, %s197_s5, %s185_s6  }
  0x49   : > { %p16252_p9 = scmp.ne.s32.totalorder %s16251_s24, 0 }
  0x4a   : > { %s207_s4 = sand.u32 (!%p16252_p9), 1, %s14383_s13   ;;  %p16253_p13 = scmp.ne.s32.totalorder (!%p16252_p9), %s16248_s25, 0 }
  0x4b   : > { %205 = sbr.rel (%p16252_p9) target bundleno = 1601 (0x641), region = 32  ;;  %s208_s10 = scalar_lea.sflag (!%p16252_p9), [#allocation3], %s207_s4 }
  0x4c   : > { %s12268_s8 = smul.u32 (!%p16252_p9), 10240, %s207_s4 }
  0x4e   : > { %s14584_s7 = scalar_lea.vmem (!%p16252_p9), [#allocation2], %s12268_s8 }
  0x52   : > { %14370 = dma.done.wait (%p16253_p13), %s208_s10, 163840  }
  0x53   : > { %14372 = vsyncadd (%p16253_p13), %s208_s10, 4294803456  ;;  %s9943_s11 = sshll.u32 %s207_s4, 2  ;;  %s217_s9 = scalar_lea.sflag [#allocation5], %s207_s4 }
  0x54   : > { %s14590_s12 = scalar_lea.vmem [#allocation4], %s9943_s11 }
  0x55   : > { %14374 = dma.done.wait (%p16253_p13), %s217_s9, 64  }
  0x56   : > { %14376 = vsyncadd (%p16253_p13), %s217_s9, 4294967232  ;;  %v12349_v0 = vld [vmem:[%s14584_s7 + $0x804] ss:$16 sps:$4 sm:$0xff]   ;;  %v12353_v2 = vld [vmem:[%s14584_s7 + $0x800] ss:$16 sps:$4 sm:$0xff]   ;;  %p256_p7 = scmp.lt.s32.totalorder %s14391_s15, 5 }
  0x57   : > { %v12351_v1 = vld [vmem:[%s14584_s7 + $0xa04] ss:$16 sps:$4 sm:$0xff]   ;;  %2121 = vmatprep.subr.bf16.mxu0 %v12349_v0  ;;  %v12354_v3 = vld [vmem:[%s14584_s7 + $0xa00] ss:$16 sps:$4 sm:$0xff]   ;;  %s9946_s6 = sshll.u32 %s14395_s16, 2  ;;  %vm9791_vm2 = vcmask 1040384  }
  0x58   : > { %2162 = vmatprep.subr.bf16.mxu1 %v12351_v1  ;;  %v12355_v4 = vld [vmem:[%s14584_s7 + $0x824] ss:$16 sps:$4 sm:$0xff]   ;;  %2122 = vmatpush1.bf16.msra.mxu0 %v12353_v2  ;;  %v12359_v6 = vld [vmem:[%s14584_s7 + $0x820] ss:$16 sps:$4 sm:$0xff]   ;;  %s16272_s15 = smov (!%p256_p7, %s14391_s15), 5  ;;  %p266_p10 = scmp.lt.s32.totalorder %s9946_s6, 7 }
  0x59   : > { %2163 = vmatpush1.bf16.msra.mxu1 %v12354_v3  ;;  %v12357_v5 = vld [vmem:[%s14584_s7 + $0xa24] ss:$16 sps:$4 sm:$0xff]   ;;  %2123 = vmatprep.subr.bf16.mxu0 %v12355_v4  ;;  %v12360_v7 = vld [vmem:[%s14584_s7 + $0xa20] ss:$16 sps:$4 sm:$0xff]   ;;  %s12266_s25 = sshll.u32 %s16272_s15, 5  ;;  %vm9794_vm4 = vcmask 1041409  }
  0x5a   : > { %2164 = vmatprep.subr.bf16.mxu1 %v12357_v5  ;;  %v12361_v8 = vld [vmem:[%s14584_s7 + $0x844] ss:$16 sps:$4 sm:$0xff]   ;;  %v12365_v10 = vld [vmem:[%s14584_s7 + $0x840] ss:$16 sps:$4 sm:$0xff]   ;;  %s14648_s5 = scalar_lea.vmem %s16242_s0, %s12266_s25  ;;  %vm9792_vm3 = vsmask.f32 256 }
  0x5b   : > { %v12363_v9 = vld [vmem:[%s14584_s7 + $0xa44] ss:$16 sps:$4 sm:$0xff]   ;;  %v12366_v11 = vld [vmem:[%s14584_s7 + $0xa40] ss:$16 sps:$4 sm:$0xff]   ;;  %v273_v49 = vld [vmem:[%s14648_s5 + $0x8] sm:$0x77] }
  0x5c   : > { %2124 = vmatpush1.bf16.msra.mxu0 %v12359_v6  ;;  %v12367_v12 = vld [vmem:[%s14584_s7 + $0x864] ss:$16 sps:$4 sm:$0xff]   ;;  %v12371_v14 = vld [vmem:[%s14584_s7 + $0x860] ss:$16 sps:$4 sm:$0xff]   ;;  %v14659_v52 = vcombine.high %v273_v49, %v273_v49  ;;  %v14684_v5 = vcombine.low %v273_v49, %v273_v49  ;;  %vm9795_vm5 = vsmask.f32 1280  ;;  %vm16201_vm6 = vmand %vm9791_vm2, %vm9792_vm3 }
  0x5d   : > { %2165 = vmatpush1.bf16.msra.mxu1 %v12360_v7  ;;  %2125 = vmatprep.subr.bf16.mxu0 %v12361_v8  ;;  %v12369_v13 = vld [vmem:[%s14584_s7 + $0xa64] ss:$16 sps:$4 sm:$0xff]   ;;  %v12372_v15 = vld [vmem:[%s14584_s7 + $0xa60] ss:$16 sps:$4 sm:$0xff]   ;;  %vm16205_vm7 = vmand %vm9794_vm4, %vm9795_vm5  ;;  %s16274_s6 = smov (!%p266_p10, %s9946_s6), 7  ;;  %vm9798_vm8 = vcmask 1042434  }
  0x5e   : > { %2166 = vmatprep.subr.bf16.mxu1 %v12363_v9  ;;  %v12373_v16 = vld [vmem:[%s14584_s7 + $0x884] ss:$16 sps:$4 sm:$0xff]   ;;  %v12377_v18 = vld [vmem:[%s14584_s7 + $0x880] ss:$16 sps:$4 sm:$0xff]   ;;  %v14666_v55 = vshrl.u32 %v14659_v52, 16  ;;  %s9947_s16 = sshll.u32 %s16272_s15, 3  ;;  %vm9797_vm12 = vmor %vm16205_vm7, %vm16201_vm6 }
  0x5f   : > { %v12375_v17 = vld [vmem:[%s14584_s7 + $0xa84] ss:$16 sps:$4 sm:$0xff]   ;;  %v12378_v19 = vld [vmem:[%s14584_s7 + $0xa80] ss:$16 sps:$4 sm:$0xff]   ;;  %vm9799_vm9 = vsmask.f32 2304  ;;  %s269_s23 = sadd.s32 %s9947_s16, %s16274_s6 }
  0x60   : > { %2126 = vmatpush1.bf16.msra.mxu0 %v12365_v10  ;;  %v12379_v20 = vld [vmem:[%s14584_s7 + $0x8a4] ss:$16 sps:$4 sm:$0xff]   ;;  %v12383_v22 = vld [vmem:[%s14584_s7 + $0x8a0] ss:$16 sps:$4 sm:$0xff]   ;;  %2194 = vmatprep.mubr.bf16.mxu1 %v14666_v55  ;;  %vm9800_vm13 = vmand %vm9798_vm8, %vm9799_vm9  ;;  %vm9802_vm14 = vcmask 1043459   ;;  %s270_s20 = scalar_lea.vmem %s16245_s3, %s269_s23 }
  0x61   : > { %2167 = vmatpush1.bf16.msra.mxu1 %v12366_v11  ;;  %2127 = vmatprep.subr.bf16.mxu0 %v12367_v12  ;;  %v12381_v21 = vld [vmem:[%s14584_s7 + $0xaa4] ss:$16 sps:$4 sm:$0xff]   ;;  %v12384_v23 = vld [vmem:[%s14584_s7 + $0xaa0] ss:$16 sps:$4 sm:$0xff]   ;;  %v14694_v11 = vshrl.u32 %v14684_v5, 16 }
  0x62   : > { %2168 = vmatprep.subr.bf16.mxu1 %v12369_v13  ;;  %v12385_v24 = vld [vmem:[%s14584_s7 + $0x8c4] ss:$16 sps:$4 sm:$0xff]   ;;  %v12389_v26 = vld [vmem:[%s14584_s7 + $0x8c0] ss:$16 sps:$4 sm:$0xff]   ;;  %vm9803_vm15 = vsmask.f32 3328 }
  0x63   : > { %v12387_v25 = vld [vmem:[%s14584_s7 + $0xac4] ss:$16 sps:$4 sm:$0xff]   ;;  %v12390_v27 = vld [vmem:[%s14584_s7 + $0xac0] ss:$16 sps:$4 sm:$0xff]  }
  0x64   : > { %2128 = vmatpush1.bf16.msra.mxu0 %v12371_v14  ;;  %v12391_v28 = vld [vmem:[%s14584_s7 + $0x8e4] ss:$16 sps:$4 sm:$0xff]   ;;  %v12395_v30 = vld [vmem:[%s14584_s7 + $0x8e0] ss:$16 sps:$4 sm:$0xff]  }
  0x65   : > { %2169 = vmatpush1.bf16.msra.mxu1 %v12372_v15  ;;  %2129 = vmatprep.subr.bf16.mxu0 %v12373_v16  ;;  %v12393_v29 = vld [vmem:[%s14584_s7 + $0xae4] ss:$16 sps:$4 sm:$0xff]   ;;  %v12396_v31 = vld [vmem:[%s14584_s7 + $0xae0] ss:$16 sps:$4 sm:$0xff]  }
  0x66   : > { %2170 = vmatprep.subr.bf16.mxu1 %v12375_v17  ;;  %v12397_v32 = vld [vmem:[%s14584_s7 + $0x904] ss:$16 sps:$4 sm:$0xff]   ;;  %v12401_v34 = vld [vmem:[%s14584_s7 + $0x900] ss:$16 sps:$4 sm:$0xff]  }
  0x67   : > { %v12399_v33 = vld [vmem:[%s14584_s7 + $0xb04] ss:$16 sps:$4 sm:$0xff]   ;;  %v12402_v35 = vld [vmem:[%s14584_s7 + $0xb00] ss:$16 sps:$4 sm:$0xff]  }
  0x68   : > { %2130 = vmatpush1.bf16.msra.mxu0 %v12377_v18  ;;  %v12403_v36 = vld [vmem:[%s14584_s7 + $0x924] ss:$16 sps:$4 sm:$0xff]   ;;  %v12407_v38 = vld [vmem:[%s14584_s7 + $0x920] ss:$16 sps:$4 sm:$0xff]  }
  0x69   : > { %2171 = vmatpush1.bf16.msra.mxu1 %v12378_v19  ;;  %2131 = vmatprep.subr.bf16.mxu0 %v12379_v20  ;;  %v12405_v37 = vld [vmem:[%s14584_s7 + $0xb24] ss:$16 sps:$4 sm:$0xff]   ;;  %v12408_v39 = vld [vmem:[%s14584_s7 + $0xb20] ss:$16 sps:$4 sm:$0xff]  }
  0x6a   : > { %2172 = vmatprep.subr.bf16.mxu1 %v12381_v21  ;;  %v12409_v40 = vld [vmem:[%s14584_s7 + $0x944] ss:$16 sps:$4 sm:$0xff]   ;;  %v12413_v42 = vld [vmem:[%s14584_s7 + $0x940] ss:$16 sps:$4 sm:$0xff]  }
  0x6b   : > { %v12411_v41 = vld [vmem:[%s14584_s7 + $0xb44] ss:$16 sps:$4 sm:$0xff]   ;;  %v12414_v43 = vld [vmem:[%s14584_s7 + $0xb40] ss:$16 sps:$4 sm:$0xff]  }
  0x6c   : > { %2132 = vmatpush1.bf16.msra.mxu0 %v12383_v22  ;;  %v12415_v44 = vld [vmem:[%s14584_s7 + $0x964] ss:$16 sps:$4 sm:$0xff]   ;;  %v12419_v46 = vld [vmem:[%s14584_s7 + $0x960] ss:$16 sps:$4 sm:$0xff]  }
  0x6d   : > { %2173 = vmatpush1.bf16.msra.mxu1 %v12384_v23  ;;  %2133 = vmatprep.subr.bf16.mxu0 %v12385_v24  ;;  %v12417_v45 = vld [vmem:[%s14584_s7 + $0xb64] ss:$16 sps:$4 sm:$0xff]   ;;  %v12420_v50 = vld [vmem:[%s14584_s7 + $0xb60] ss:$16 sps:$4 sm:$0xff]  }
  0x6e   : > { %2174 = vmatprep.subr.bf16.mxu1 %v12387_v25  ;;  %v272_v47 = vld [vmem:[%s14648_s5] sm:$0x77] }
  0x6f   : > { %v14654_v48 = vcombine.high %v272_v47, %v272_v47  ;;  %v12421_v51 = vld [vmem:[%s14584_s7 + $0x984] ss:$16 sps:$4 sm:$0xff]   ;;  %v12425_v56 = vld [vmem:[%s14584_s7 + $0x980] ss:$16 sps:$4 sm:$0xff]   ;;  %v14682_v4 = vcombine.low %v272_v47, %v272_v47 }
  0x70   : > { %2134 = vmatpush1.bf16.msra.mxu0 %v12389_v26  ;;  %v12423_v53 = vld [vmem:[%s14584_s7 + $0xb84] ss:$16 sps:$4 sm:$0xff]   ;;  %v12426_v57 = vld [vmem:[%s14584_s7 + $0xb80] ss:$16 sps:$4 sm:$0xff]  }
  0x71   : > { %2175 = vmatpush1.bf16.msra.mxu1 %v12390_v27  ;;  %2135 = vmatprep.subr.bf16.mxu0 %v12391_v28  ;;  %v14663_v54 = vshrl.u32 %v14654_v48, 16  ;;  %v12427_v58 = vld [vmem:[%s14584_s7 + $0x9a4] ss:$16 sps:$4 sm:$0xff]   ;;  %v12431_v60 = vld [vmem:[%s14584_s7 + $0x9a0] ss:$16 sps:$4 sm:$0xff]   ;;  %v14691_v10 = vshrl.u32 %v14682_v4, 16 }
  0x72   : > { %2176 = vmatprep.subr.bf16.mxu1 %v12393_v29  ;;  %v12429_v59 = vld [vmem:[%s14584_s7 + $0xba4] ss:$16 sps:$4 sm:$0xff]   ;;  %v12432_v61 = vld [vmem:[%s14584_s7 + $0xba0] ss:$16 sps:$4 sm:$0xff]  }
  0x73   : > { %2153 = vmatprep.mubr.bf16.mxu0 %v14663_v54  ;;  %v12433_v62 = vld [vmem:[%s14584_s7 + $0x9c4] ss:$16 sps:$4 sm:$0xff]   ;;  %v12437_v0 = vld [vmem:[%s14584_s7 + $0x9c0] ss:$16 sps:$4 sm:$0xff]  }
  0x74   : > { %2136 = vmatpush1.bf16.msra.mxu0 %v12395_v30  ;;  %v12435_v63 = vld [vmem:[%s14584_s7 + $0xbc4] ss:$16 sps:$4 sm:$0xff]   ;;  %v12438_v1 = vld [vmem:[%s14584_s7 + $0xbc0] ss:$16 sps:$4 sm:$0xff]  }
  0x75   : > { %2177 = vmatpush1.bf16.msra.mxu1 %v12396_v31  ;;  %2137 = vmatprep.subr.bf16.mxu0 %v12397_v32  ;;  %v12439_v2 = vld [vmem:[%s14584_s7 + $0x9e4] ss:$16 sps:$4 sm:$0xff]   ;;  %v12443_v6 = vld [vmem:[%s14584_s7 + $0x9e0] ss:$16 sps:$4 sm:$0xff]  }
  0x76   : > { %2178 = vmatprep.subr.bf16.mxu1 %v12399_v33  ;;  %v12441_v3 = vld [vmem:[%s14584_s7 + $0xbe4] ss:$16 sps:$4 sm:$0xff]   ;;  %v12444_v7 = vld [vmem:[%s14584_s7 + $0xbe0] ss:$16 sps:$4 sm:$0xff]  }
  0x77   : > { %v12451_v8 = vld [vmem:[%s14584_s7 + $0xc04] ss:$16 sps:$4 sm:$0xff]   ;;  %v12449_v12 = vld [vmem:[%s14584_s7 + $0xc00] ss:$16 sps:$4 sm:$0xff]  }
  0x78   : > { %2138 = vmatpush1.bf16.msra.mxu0 %v12401_v34  ;;  %v12454_v9 = vld [vmem:[%s14584_s7 + $0xe04] ss:$16 sps:$4 sm:$0xff]   ;;  %v12452_v13 = vld [vmem:[%s14584_s7 + $0xe00] ss:$16 sps:$4 sm:$0xff]  }
  0x79   : > { %2179 = vmatpush1.bf16.msra.mxu1 %v12402_v35  ;;  %2139 = vmatprep.subr.bf16.mxu0 %v12403_v36  ;;  %v12457_v14 = vld [vmem:[%s14584_s7 + $0xc24] ss:$16 sps:$4 sm:$0xff]   ;;  %v12455_v16 = vld [vmem:[%s14584_s7 + $0xc20] ss:$16 sps:$4 sm:$0xff]  }
  0x7a   : > { %2180 = vmatprep.subr.bf16.mxu1 %v12405_v37  ;;  %v12460_v15 = vld [vmem:[%s14584_s7 + $0xe24] ss:$16 sps:$4 sm:$0xff]   ;;  %v12458_v17 = vld [vmem:[%s14584_s7 + $0xe20] ss:$16 sps:$4 sm:$0xff]   ;;  %v14726_v37 = vld [vmem:[%s14648_s5 + $0x18] sm:$0x77] }
  0x7b   : > { %v12463_v18 = vld [vmem:[%s14584_s7 + $0xc44] ss:$16 sps:$4 sm:$0xff]   ;;  %v12461_v20 = vld [vmem:[%s14584_s7 + $0xc40] ss:$16 sps:$4 sm:$0xff]  }
  0x7c   : > { %2140 = vmatpush1.bf16.msra.mxu0 %v12407_v38  ;;  %v12466_v19 = vld [vmem:[%s14584_s7 + $0xe44] ss:$16 sps:$4 sm:$0xff]   ;;  %v12464_v21 = vld [vmem:[%s14584_s7 + $0xe40] ss:$16 sps:$4 sm:$0xff]  }
  0x7d   : > { %2181 = vmatpush1.bf16.msra.mxu1 %v12408_v39  ;;  %2141 = vmatprep.subr.bf16.mxu0 %v12409_v40  ;;  %v12469_v22 = vld [vmem:[%s14584_s7 + $0xc64] ss:$16 sps:$4 sm:$0xff]   ;;  %v12467_v24 = vld [vmem:[%s14584_s7 + $0xc60] ss:$16 sps:$4 sm:$0xff]   ;;  %v14735_v40 = vcombine.high %v14726_v37, %v14726_v37 }
  0x7e   : > { %2182 = vmatprep.subr.bf16.mxu1 %v12411_v41  ;;  %v12472_v23 = vld [vmem:[%s14584_s7 + $0xe64] ss:$16 sps:$4 sm:$0xff]   ;;  %v12470_v25 = vld [vmem:[%s14584_s7 + $0xe60] ss:$16 sps:$4 sm:$0xff]  }
  0x7f   : > { %v12475_v26 = vld [vmem:[%s14584_s7 + $0xc84] ss:$16 sps:$4 sm:$0xff]   ;;  %v12473_v28 = vld [vmem:[%s14584_s7 + $0xc80] ss:$16 sps:$4 sm:$0xff]  }
  0x80   : > { %2142 = vmatpush1.bf16.msra.mxu0 %v12413_v42  ;;  %v12478_v27 = vld [vmem:[%s14584_s7 + $0xe84] ss:$16 sps:$4 sm:$0xff]   ;;  %v12476_v29 = vld [vmem:[%s14584_s7 + $0xe80] ss:$16 sps:$4 sm:$0xff]  }
  0x81   : > { %2183 = vmatpush1.bf16.msra.mxu1 %v12414_v43  ;;  %2143 = vmatprep.subr.bf16.mxu0 %v12415_v44  ;;  %v12481_v30 = vld [vmem:[%s14584_s7 + $0xca4] ss:$16 sps:$4 sm:$0xff]   ;;  %v12479_v32 = vld [vmem:[%s14584_s7 + $0xca0] ss:$16 sps:$4 sm:$0xff]  }
  0x82   : > { %2184 = vmatprep.subr.bf16.mxu1 %v12417_v45  ;;  %v12484_v31 = vld [vmem:[%s14584_s7 + $0xea4] ss:$16 sps:$4 sm:$0xff]   ;;  %v12482_v33 = vld [vmem:[%s14584_s7 + $0xea0] ss:$16 sps:$4 sm:$0xff]   ;;  %v14744_v45 = vshrl.u32 %v14735_v40, 16 }
  0x83   : > { %v12487_v34 = vld [vmem:[%s14584_s7 + $0xcc4] ss:$16 sps:$4 sm:$0xff]   ;;  %v12485_v38 = vld [vmem:[%s14584_s7 + $0xcc0] ss:$16 sps:$4 sm:$0xff]  }
  0x84   : > { %2144 = vmatpush1.bf16.msra.mxu0 %v12419_v46  ;;  %v12490_v35 = vld [vmem:[%s14584_s7 + $0xec4] ss:$16 sps:$4 sm:$0xff]   ;;  %v12488_v41 = vld [vmem:[%s14584_s7 + $0xec0] ss:$16 sps:$4 sm:$0xff]  }
  0x85   : > { %2185 = vmatpush1.bf16.msra.mxu1 %v12420_v50  ;;  %2145 = vmatprep.subr.bf16.mxu0 %v12421_v51  ;;  %v14723_v36 = vld [vmem:[%s14648_s5 + $0x10] sm:$0x77] }
  0x86   : > { %2186 = vmatprep.subr.bf16.mxu1 %v12423_v53  ;;  %v14731_v39 = vcombine.high %v14723_v36, %v14723_v36  ;;  %v12493_v42 = vld [vmem:[%s14584_s7 + $0xce4] ss:$16 sps:$4 sm:$0xff]   ;;  %v12491_v46 = vld [vmem:[%s14584_s7 + $0xce0] ss:$16 sps:$4 sm:$0xff]  }
  0x87   : > { %v12496_v43 = vld [vmem:[%s14584_s7 + $0xee4] ss:$16 sps:$4 sm:$0xff]   ;;  %v12494_v47 = vld [vmem:[%s14584_s7 + $0xee0] ss:$16 sps:$4 sm:$0xff]  }
  0x88   : > { %2146 = vmatpush1.bf16.msra.mxu0 %v12425_v56  ;;  %v14741_v44 = vshrl.u32 %v14731_v39, 16  ;;  %v12499_v49 = vld [vmem:[%s14584_s7 + $0xd04] ss:$16 sps:$4 sm:$0xff]   ;;  %v12497_v51 = vld [vmem:[%s14584_s7 + $0xd00] ss:$16 sps:$4 sm:$0xff]  }
  0x89   : > { %2187 = vmatpush1.bf16.msra.mxu1 %v12426_v57  ;;  %2147 = vmatprep.subr.bf16.mxu0 %v12427_v58  ;;  %v12502_v50 = vld [vmem:[%s14584_s7 + $0xf04] ss:$16 sps:$4 sm:$0xff]   ;;  %v12500_v53 = vld [vmem:[%s14584_s7 + $0xf00] ss:$16 sps:$4 sm:$0xff]  }
  0x8a   : > { %2188 = vmatprep.subr.bf16.mxu1 %v12429_v59  ;;  %v12505_v56 = vld [vmem:[%s14584_s7 + $0xd24] ss:$16 sps:$4 sm:$0xff]   ;;  %v12503_v58 = vld [vmem:[%s14584_s7 + $0xd20] ss:$16 sps:$4 sm:$0xff]  }
  0x8b   : > { %v12508_v57 = vld [vmem:[%s14584_s7 + $0xf24] ss:$16 sps:$4 sm:$0xff]   ;;  %v12506_v59 = vld [vmem:[%s14584_s7 + $0xf20] ss:$16 sps:$4 sm:$0xff]  }
  0x8c   : > { %2148 = vmatpush1.bf16.msra.mxu0 %v12431_v60  ;;  %v12511_v60 = vld [vmem:[%s14584_s7 + $0xd44] ss:$16 sps:$4 sm:$0xff]  }
  0x8d   : > { %2189 = vmatpush1.bf16.msra.mxu1 %v12432_v61  ;;  %2149 = vmatprep.subr.bf16.mxu0 %v12433_v62  ;;  %v12514_v61 = vld [vmem:[%s14584_s7 + $0xf44] ss:$16 sps:$4 sm:$0xff]   ;;  %v12509_v62 = vld [vmem:[%s14584_s7 + $0xd40] ss:$16 sps:$4 sm:$0xff]  }
  0x8e   : > { %2190 = vmatprep.subr.bf16.mxu1 %v12435_v63  ;;  %v12512_v63 = vld [vmem:[%s14584_s7 + $0xf40] ss:$16 sps:$4 sm:$0xff]  }
  0x90   : > { %2150 = vmatpush1.bf16.msra.mxu0 %v12437_v0  ;;  %v12517_v0 = vld [vmem:[%s14584_s7 + $0xd64] ss:$16 sps:$4 sm:$0xff]  }
  0x91   : > { %2191 = vmatpush1.bf16.msra.mxu1 %v12438_v1  ;;  %2151 = vmatprep.subr.bf16.mxu0 %v12439_v2  ;;  %v12520_v1 = vld [vmem:[%s14584_s7 + $0xf64] ss:$16 sps:$4 sm:$0xff]   ;;  %v12515_v2 = vld [vmem:[%s14584_s7 + $0xd60] ss:$16 sps:$4 sm:$0xff]  }
  0x92   : > { %2192 = vmatprep.subr.bf16.mxu1 %v12441_v3  ;;  %v12518_v3 = vld [vmem:[%s14584_s7 + $0xf60] ss:$16 sps:$4 sm:$0xff]  }
  0x94   : > { %2152 = vmatpush1.bf16.msra.mxu0 %v12443_v6  ;;  %v12523_v6 = vld [vmem:[%s14584_s7 + $0xd84] ss:$16 sps:$4 sm:$0xff]  }
  0x95   : > { %2193 = vmatpush1.bf16.msra.mxu1 %v12444_v7  ;;  %2203 = vmatprep.subr.bf16.mxu0 %v12451_v8  ;;  %v12526_v7 = vld [vmem:[%s14584_s7 + $0xf84] ss:$16 sps:$4 sm:$0xff]   ;;  %v12521_v8 = vld [vmem:[%s14584_s7 + $0xd80] ss:$16 sps:$4 sm:$0xff]  }
  0x96   : > { %2244 = vmatprep.subr.bf16.mxu1 %v12454_v9  ;;  %v12524_v9 = vld [vmem:[%s14584_s7 + $0xf80] ss:$16 sps:$4 sm:$0xff]  }
  0x97   : > { %2154 = vmatmul.mubr.bf16.vlgmr.msra.gmra.mrb[0].mxu0 %v14691_v10 }
  0x98   : > { %2195 = vmatmul.mubr.bf16.vlgmr.msra.gmra.mrb[0].mxu1 %v14694_v11  ;;  %2204 = vmatpush1.bf16.msra.mxu0 %v12449_v12  ;;  %v12529_v12 = vld [vmem:[%s14584_s7 + $0xda4] ss:$16 sps:$4 sm:$0xff]  }
  0x99   : > { %2245 = vmatpush1.bf16.msra.mxu1 %v12452_v13  ;;  %2205 = vmatprep.subr.bf16.mxu0 %v12457_v14  ;;  %v12532_v13 = vld [vmem:[%s14584_s7 + $0xfa4] ss:$16 sps:$4 sm:$0xff]   ;;  %v12527_v14 = vld [vmem:[%s14584_s7 + $0xda0] ss:$16 sps:$4 sm:$0xff]  }
  0x9a   : > { %2246 = vmatprep.subr.bf16.mxu1 %v12460_v15  ;;  %2235 = vmatprep.mubr.bf16.mxu0 %v14741_v44  ;;  %v12530_v15 = vld [vmem:[%s14584_s7 + $0xfa0] ss:$16 sps:$4 sm:$0xff]  }
  0x9b   : > { %2276 = vmatprep.mubr.bf16.mxu1 %v14744_v45 }
  0x9c   : > { %2206 = vmatpush1.bf16.msra.mxu0 %v12455_v16  ;;  %v12535_v16 = vld [vmem:[%s14584_s7 + $0xdc4] ss:$16 sps:$4 sm:$0xff]  }
  0x9d   : > { %2247 = vmatpush1.bf16.msra.mxu1 %v12458_v17  ;;  %2207 = vmatprep.subr.bf16.mxu0 %v12463_v18  ;;  %v12538_v17 = vld [vmem:[%s14584_s7 + $0xfc4] ss:$16 sps:$4 sm:$0xff]   ;;  %v12533_v18 = vld [vmem:[%s14584_s7 + $0xdc0] ss:$16 sps:$4 sm:$0xff]  }
  0x9e   : > { %2248 = vmatprep.subr.bf16.mxu1 %v12466_v19  ;;  %v12536_v19 = vld [vmem:[%s14584_s7 + $0xfc0] ss:$16 sps:$4 sm:$0xff]  }
  0xa0   : > { %2208 = vmatpush1.bf16.msra.mxu0 %v12461_v20  ;;  %v12541_v20 = vld [vmem:[%s14584_s7 + $0xde4] ss:$16 sps:$4 sm:$0xff]  }
  0xa1   : > { %2249 = vmatpush1.bf16.msra.mxu1 %v12464_v21  ;;  %2209 = vmatprep.subr.bf16.mxu0 %v12469_v22  ;;  %v12544_v21 = vld [vmem:[%s14584_s7 + $0xfe4] ss:$16 sps:$4 sm:$0xff]   ;;  %v14782_v22 = vcombine.low %v14723_v36, %v14723_v36  ;;  %v12563_v36 = vld [vmem:[%s14584_s7 + $0x84c] ss:$16 sps:$4 sm:$0xff]  }
  0xa2   : > { %2250 = vmatprep.subr.bf16.mxu1 %v12472_v23  ;;  %v14786_v23 = vcombine.low %v14726_v37, %v14726_v37  ;;  %v12566_v37 = vld [vmem:[%s14584_s7 + $0xa4c] ss:$16 sps:$4 sm:$0xff]  }
  0xa4   : > { %2210 = vmatpush1.bf16.msra.mxu0 %v12467_v24  ;;  %v12539_v24 = vld [vmem:[%s14584_s7 + $0xde0] ss:$16 sps:$4 sm:$0xff]  }
  0xa5   : > { %2251 = vmatpush1.bf16.msra.mxu1 %v12470_v25  ;;  %2211 = vmatprep.subr.bf16.mxu0 %v12475_v26  ;;  %v12542_v25 = vld [vmem:[%s14584_s7 + $0xfe0] ss:$16 sps:$4 sm:$0xff]   ;;  %v12551_v26 = vld [vmem:[%s14584_s7 + $0x80c] ss:$16 sps:$4 sm:$0xff]  }
  0xa6   : > { %2252 = vmatprep.subr.bf16.mxu1 %v12478_v27  ;;  %v12554_v27 = vld [vmem:[%s14584_s7 + $0xa0c] ss:$16 sps:$4 sm:$0xff]  }
  0xa8   : > { %2212 = vmatpush1.bf16.msra.mxu0 %v12473_v28  ;;  %v14793_v28 = vshrl.u32 %v14782_v22, 16 }
  0xa9   : > { %2253 = vmatpush1.bf16.msra.mxu1 %v12476_v29  ;;  %2213 = vmatprep.subr.bf16.mxu0 %v12481_v30  ;;  %v14796_v29 = vshrl.u32 %v14786_v23, 16  ;;  %v12549_v30 = vld [vmem:[%s14584_s7 + $0x808] ss:$16 sps:$4 sm:$0xff]  }
  0xaa   : > { %2254 = vmatprep.subr.bf16.mxu1 %v12484_v31  ;;  %v12552_v31 = vld [vmem:[%s14584_s7 + $0xa08] ss:$16 sps:$4 sm:$0xff]  }
  0xac   : > { %2214 = vmatpush1.bf16.msra.mxu0 %v12479_v32  ;;  %v12557_v32 = vld [vmem:[%s14584_s7 + $0x82c] ss:$16 sps:$4 sm:$0xff]  }
  0xad   : > { %2255 = vmatpush1.bf16.msra.mxu1 %v12482_v33  ;;  %2215 = vmatprep.subr.bf16.mxu0 %v12487_v34  ;;  %v12560_v33 = vld [vmem:[%s14584_s7 + $0xa2c] ss:$16 sps:$4 sm:$0xff]   ;;  %v12555_v34 = vld [vmem:[%s14584_s7 + $0x828] ss:$16 sps:$4 sm:$0xff]  }
  0xae   : > { %2256 = vmatprep.subr.bf16.mxu1 %v12490_v35  ;;  %v12558_v35 = vld [vmem:[%s14584_s7 + $0xa28] ss:$16 sps:$4 sm:$0xff]  }
  0xb0   : > { %2216 = vmatpush1.bf16.msra.mxu0 %v12485_v38  ;;  %v12561_v38 = vld [vmem:[%s14584_s7 + $0x848] ss:$16 sps:$4 sm:$0xff]  }
  0xb1   : > { %2257 = vmatpush1.bf16.msra.mxu1 %v12488_v41  ;;  %2217 = vmatprep.subr.bf16.mxu0 %v12493_v42  ;;  %v12564_v41 = vld [vmem:[%s14584_s7 + $0xa48] ss:$16 sps:$4 sm:$0xff]   ;;  %v12569_v42 = vld [vmem:[%s14584_s7 + $0x86c] ss:$16 sps:$4 sm:$0xff]  }
  0xb2   : > { %2258 = vmatprep.subr.bf16.mxu1 %v12496_v43  ;;  %v12572_v43 = vld [vmem:[%s14584_s7 + $0xa6c] ss:$16 sps:$4 sm:$0xff]  }
  0xb4   : > { %2218 = vmatpush1.bf16.msra.mxu0 %v12491_v46  ;;  %v12567_v46 = vld [vmem:[%s14584_s7 + $0x868] ss:$16 sps:$4 sm:$0xff]  }
  0xb5   : > { %2259 = vmatpush1.bf16.msra.mxu1 %v12494_v47  ;;  %2219 = vmatprep.subr.bf16.mxu0 %v12499_v49  ;;  %v12570_v47 = vld [vmem:[%s14584_s7 + $0xa68] ss:$16 sps:$4 sm:$0xff]   ;;  %v12575_v49 = vld [vmem:[%s14584_s7 + $0x88c] ss:$16 sps:$4 sm:$0xff]  }
  0xb6   : > { %2260 = vmatprep.subr.bf16.mxu1 %v12502_v50  ;;  %v12578_v50 = vld [vmem:[%s14584_s7 + $0xa8c] ss:$16 sps:$4 sm:$0xff]  }
  0xb8   : > { %2220 = vmatpush1.bf16.msra.mxu0 %v12497_v51  ;;  %v12573_v51 = vld [vmem:[%s14584_s7 + $0x888] ss:$16 sps:$4 sm:$0xff]  }
  0xb9   : > { %2261 = vmatpush1.bf16.msra.mxu1 %v12500_v53  ;;  %2221 = vmatprep.subr.bf16.mxu0 %v12505_v56  ;;  %v12576_v53 = vld [vmem:[%s14584_s7 + $0xa88] ss:$16 sps:$4 sm:$0xff]   ;;  %v12581_v56 = vld [vmem:[%s14584_s7 + $0x8ac] ss:$16 sps:$4 sm:$0xff]  }
  0xba   : > { %2262 = vmatprep.subr.bf16.mxu1 %v12508_v57  ;;  %v12584_v57 = vld [vmem:[%s14584_s7 + $0xaac] ss:$16 sps:$4 sm:$0xff]  }
  0xbc   : > { %2222 = vmatpush1.bf16.msra.mxu0 %v12503_v58  ;;  %v12579_v58 = vld [vmem:[%s14584_s7 + $0x8a8] ss:$16 sps:$4 sm:$0xff]  }
  0xbd   : > { %2263 = vmatpush1.bf16.msra.mxu1 %v12506_v59  ;;  %2223 = vmatprep.subr.bf16.mxu0 %v12511_v60  ;;  %v12582_v59 = vld [vmem:[%s14584_s7 + $0xaa8] ss:$16 sps:$4 sm:$0xff]   ;;  %v12587_v60 = vld [vmem:[%s14584_s7 + $0x8cc] ss:$16 sps:$4 sm:$0xff]  }
  0xbe   : > { %2264 = vmatprep.subr.bf16.mxu1 %v12514_v61  ;;  %v12590_v61 = vld [vmem:[%s14584_s7 + $0xacc] ss:$16 sps:$4 sm:$0xff]  }
  0xc0   : > { %2224 = vmatpush1.bf16.msra.mxu0 %v12509_v62  ;;  %v12585_v62 = vld [vmem:[%s14584_s7 + $0x8c8] ss:$16 sps:$4 sm:$0xff]  }
  0xc1   : > { %2265 = vmatpush1.bf16.msra.mxu1 %v12512_v63  ;;  %2225 = vmatprep.subr.bf16.mxu0 %v12517_v0  ;;  %v12588_v63 = vld [vmem:[%s14584_s7 + $0xac8] ss:$16 sps:$4 sm:$0xff]   ;;  %v12593_v0 = vld [vmem:[%s14584_s7 + $0x8ec] ss:$16 sps:$4 sm:$0xff]  }
  0xc2   : > { %2266 = vmatprep.subr.bf16.mxu1 %v12520_v1  ;;  %v12596_v1 = vld [vmem:[%s14584_s7 + $0xaec] ss:$16 sps:$4 sm:$0xff]  }
  0xc4   : > { %2226 = vmatpush1.bf16.msra.mxu0 %v12515_v2  ;;  %v12591_v2 = vld [vmem:[%s14584_s7 + $0x8e8] ss:$16 sps:$4 sm:$0xff]  }
  0xc5   : > { %2267 = vmatpush1.bf16.msra.mxu1 %v12518_v3  ;;  %2227 = vmatprep.subr.bf16.mxu0 %v12523_v6  ;;  %v12594_v3 = vld [vmem:[%s14584_s7 + $0xae8] ss:$16 sps:$4 sm:$0xff]   ;;  %v12599_v6 = vld [vmem:[%s14584_s7 + $0x90c] ss:$16 sps:$4 sm:$0xff]  }
  0xc6   : > { %2268 = vmatprep.subr.bf16.mxu1 %v12526_v7  ;;  %v12602_v7 = vld [vmem:[%s14584_s7 + $0xb0c] ss:$16 sps:$4 sm:$0xff]  }
  0xc8   : > { %2228 = vmatpush1.bf16.msra.mxu0 %v12521_v8  ;;  %v12597_v8 = vld [vmem:[%s14584_s7 + $0x908] ss:$16 sps:$4 sm:$0xff]  }
  0xc9   : > { %2269 = vmatpush1.bf16.msra.mxu1 %v12524_v9  ;;  %2229 = vmatprep.subr.bf16.mxu0 %v12529_v12  ;;  %v12600_v9 = vld [vmem:[%s14584_s7 + $0xb08] ss:$16 sps:$4 sm:$0xff]   ;;  %v12605_v12 = vld [vmem:[%s14584_s7 + $0x92c] ss:$16 sps:$4 sm:$0xff]  }
  0xca   : > { %2270 = vmatprep.subr.bf16.mxu1 %v12532_v13  ;;  %v12608_v13 = vld [vmem:[%s14584_s7 + $0xb2c] ss:$16 sps:$4 sm:$0xff]  }
  0xcc   : > { %2230 = vmatpush1.bf16.msra.mxu0 %v12527_v14  ;;  %v12603_v14 = vld [vmem:[%s14584_s7 + $0x928] ss:$16 sps:$4 sm:$0xff]  }
  0xcd   : > { %2271 = vmatpush1.bf16.msra.mxu1 %v12530_v15  ;;  %2231 = vmatprep.subr.bf16.mxu0 %v12535_v16  ;;  %v12606_v15 = vld [vmem:[%s14584_s7 + $0xb28] ss:$16 sps:$4 sm:$0xff]   ;;  %v12611_v16 = vld [vmem:[%s14584_s7 + $0x94c] ss:$16 sps:$4 sm:$0xff]  }
  0xce   : > { %2272 = vmatprep.subr.bf16.mxu1 %v12538_v17  ;;  %v12614_v17 = vld [vmem:[%s14584_s7 + $0xb4c] ss:$16 sps:$4 sm:$0xff]  }
  0xd0   : > { %2232 = vmatpush1.bf16.msra.mxu0 %v12533_v18  ;;  %v12609_v18 = vld [vmem:[%s14584_s7 + $0x948] ss:$16 sps:$4 sm:$0xff]  }
  0xd1   : > { %2273 = vmatpush1.bf16.msra.mxu1 %v12536_v19  ;;  %2233 = vmatprep.subr.bf16.mxu0 %v12541_v20  ;;  %v12612_v19 = vld [vmem:[%s14584_s7 + $0xb48] ss:$16 sps:$4 sm:$0xff]   ;;  %v12617_v20 = vld [vmem:[%s14584_s7 + $0x96c] ss:$16 sps:$4 sm:$0xff]  }
  0xd2   : > { %2274 = vmatprep.subr.bf16.mxu1 %v12544_v21  ;;  %v12620_v21 = vld [vmem:[%s14584_s7 + $0xb6c] ss:$16 sps:$4 sm:$0xff]  }
  0xd4   : > { %2234 = vmatpush1.bf16.msra.mxu0 %v12539_v24  ;;  %v12615_v24 = vld [vmem:[%s14584_s7 + $0x968] ss:$16 sps:$4 sm:$0xff]  }
  0xd5   : > { %2275 = vmatpush1.bf16.msra.mxu1 %v12542_v25  ;;  %2285 = vmatprep.subr.bf16.mxu0 %v12551_v26  ;;  %v12618_v25 = vld [vmem:[%s14584_s7 + $0xb68] ss:$16 sps:$4 sm:$0xff]   ;;  %v12623_v26 = vld [vmem:[%s14584_s7 + $0x98c] ss:$16 sps:$4 sm:$0xff]  }
  0xd6   : > { %2326 = vmatprep.subr.bf16.mxu1 %v12554_v27  ;;  %v12626_v27 = vld [vmem:[%s14584_s7 + $0xb8c] ss:$16 sps:$4 sm:$0xff]  }
  0xd7   : > { %2236 = vmatmul.mubr.bf16.vlgmr.msra.gmra.mrb[4].mxu0 %v14793_v28 }
  0xd8   : > { %2277 = vmatmul.mubr.bf16.vlgmr.msra.gmra.mrb[4].mxu1 %v14796_v29  ;;  %2286 = vmatpush1.bf16.msra.mxu0 %v12549_v30  ;;  %v12621_v30 = vld [vmem:[%s14584_s7 + $0x988] ss:$16 sps:$4 sm:$0xff]  }
  0xd9   : > { %2327 = vmatpush1.bf16.msra.mxu1 %v12552_v31  ;;  %2287 = vmatprep.subr.bf16.mxu0 %v12557_v32  ;;  %v12624_v31 = vld [vmem:[%s14584_s7 + $0xb88] ss:$16 sps:$4 sm:$0xff]   ;;  %v12629_v32 = vld [vmem:[%s14584_s7 + $0x9ac] ss:$16 sps:$4 sm:$0xff]  }
  0xda   : > { %2328 = vmatprep.subr.bf16.mxu1 %v12560_v33  ;;  %2317 = vmatprep.mubr.bf16.mxu0 %v14663_v54  ;;  %v12632_v33 = vld [vmem:[%s14584_s7 + $0xbac] ss:$16 sps:$4 sm:$0xff]  }
  0xdb   : > { %2358 = vmatprep.mubr.bf16.mxu1 %v14666_v55 }
  0xdc   : > { %2288 = vmatpush1.bf16.msra.mxu0 %v12555_v34  ;;  %v12627_v34 = vld [vmem:[%s14584_s7 + $0x9a8] ss:$16 sps:$4 sm:$0xff]  }
  0xdd   : > { %2329 = vmatpush1.bf16.msra.mxu1 %v12558_v35  ;;  %2289 = vmatprep.subr.bf16.mxu0 %v12563_v36  ;;  %v12630_v35 = vld [vmem:[%s14584_s7 + $0xba8] ss:$16 sps:$4 sm:$0xff]   ;;  %v12635_v36 = vld [vmem:[%s14584_s7 + $0x9cc] ss:$16 sps:$4 sm:$0xff]  }
  0xde   : > { %2330 = vmatprep.subr.bf16.mxu1 %v12566_v37  ;;  %v12638_v37 = vld [vmem:[%s14584_s7 + $0xbcc] ss:$16 sps:$4 sm:$0xff]  }
  0xe0   : > { %2290 = vmatpush1.bf16.msra.mxu0 %v12561_v38  ;;  %v12633_v38 = vld [vmem:[%s14584_s7 + $0x9c8] ss:$16 sps:$4 sm:$0xff]  }
  0xe1   : > { %2331 = vmatpush1.bf16.msra.mxu1 %v12564_v41  ;;  %2291 = vmatprep.subr.bf16.mxu0 %v12569_v42  ;;  %v12636_v41 = vld [vmem:[%s14584_s7 + $0xbc8] ss:$16 sps:$4 sm:$0xff]   ;;  %v12641_v42 = vld [vmem:[%s14584_s7 + $0x9ec] ss:$16 sps:$4 sm:$0xff]  }
  0xe2   : > { %2332 = vmatprep.subr.bf16.mxu1 %v12572_v43  ;;  %v12644_v43 = vld [vmem:[%s14584_s7 + $0xbec] ss:$16 sps:$4 sm:$0xff]  }
  0xe4   : > { %2292 = vmatpush1.bf16.msra.mxu0 %v12567_v46  ;;  %v12639_v46 = vld [vmem:[%s14584_s7 + $0x9e8] ss:$16 sps:$4 sm:$0xff]  }
  0xe5   : > { %2333 = vmatpush1.bf16.msra.mxu1 %v12570_v47  ;;  %2293 = vmatprep.subr.bf16.mxu0 %v12575_v49  ;;  %v12642_v47 = vld [vmem:[%s14584_s7 + $0xbe8] ss:$16 sps:$4 sm:$0xff]   ;;  %v12647_v49 = vld [vmem:[%s14584_s7 + $0xc0c] ss:$16 sps:$4 sm:$0xff]  }
  0xe6   : > { %2334 = vmatprep.subr.bf16.mxu1 %v12578_v50  ;;  %v12650_v50 = vld [vmem:[%s14584_s7 + $0xe0c] ss:$16 sps:$4 sm:$0xff]  }
  0xe8   : > { %2294 = vmatpush1.bf16.msra.mxu0 %v12573_v51  ;;  %v12645_v51 = vld [vmem:[%s14584_s7 + $0xc08] ss:$16 sps:$4 sm:$0xff]  }
  0xe9   : > { %2335 = vmatpush1.bf16.msra.mxu1 %v12576_v53  ;;  %2295 = vmatprep.subr.bf16.mxu0 %v12581_v56  ;;  %v12648_v53 = vld [vmem:[%s14584_s7 + $0xe08] ss:$16 sps:$4 sm:$0xff]   ;;  %v12653_v56 = vld [vmem:[%s14584_s7 + $0xc2c] ss:$16 sps:$4 sm:$0xff]  }
  0xea   : > { %2336 = vmatprep.subr.bf16.mxu1 %v12584_v57  ;;  %v12656_v57 = vld [vmem:[%s14584_s7 + $0xe2c] ss:$16 sps:$4 sm:$0xff]  }
  0xec   : > { %2296 = vmatpush1.bf16.msra.mxu0 %v12579_v58  ;;  %v12651_v58 = vld [vmem:[%s14584_s7 + $0xc28] ss:$16 sps:$4 sm:$0xff]  }
  0xed   : > { %2337 = vmatpush1.bf16.msra.mxu1 %v12582_v59  ;;  %2297 = vmatprep.subr.bf16.mxu0 %v12587_v60  ;;  %v12654_v59 = vld [vmem:[%s14584_s7 + $0xe28] ss:$16 sps:$4 sm:$0xff]   ;;  %v12659_v60 = vld [vmem:[%s14584_s7 + $0xc4c] ss:$16 sps:$4 sm:$0xff]  }
  0xee   : > { %2338 = vmatprep.subr.bf16.mxu1 %v12590_v61  ;;  %v12662_v61 = vld [vmem:[%s14584_s7 + $0xe4c] ss:$16 sps:$4 sm:$0xff]  }
  0xf0   : > { %2298 = vmatpush1.bf16.msra.mxu0 %v12585_v62  ;;  %v12657_v62 = vld [vmem:[%s14584_s7 + $0xc48] ss:$16 sps:$4 sm:$0xff]  }
  0xf1   : > { %2339 = vmatpush1.bf16.msra.mxu1 %v12588_v63  ;;  %2299 = vmatprep.subr.bf16.mxu0 %v12593_v0  ;;  %v12660_v63 = vld [vmem:[%s14584_s7 + $0xe48] ss:$16 sps:$4 sm:$0xff]   ;;  %v12665_v0 = vld [vmem:[%s14584_s7 + $0xc6c] ss:$16 sps:$4 sm:$0xff]  }
  0xf2   : > { %2340 = vmatprep.subr.bf16.mxu1 %v12596_v1  ;;  %v12668_v1 = vld [vmem:[%s14584_s7 + $0xe6c] ss:$16 sps:$4 sm:$0xff]  }
  0xf4   : > { %2300 = vmatpush1.bf16.msra.mxu0 %v12591_v2  ;;  %v12663_v2 = vld [vmem:[%s14584_s7 + $0xc68] ss:$16 sps:$4 sm:$0xff]  }
  0xf5   : > { %2341 = vmatpush1.bf16.msra.mxu1 %v12594_v3  ;;  %2301 = vmatprep.subr.bf16.mxu0 %v12599_v6  ;;  %v12666_v3 = vld [vmem:[%s14584_s7 + $0xe68] ss:$16 sps:$4 sm:$0xff]   ;;  %v12671_v6 = vld [vmem:[%s14584_s7 + $0xc8c] ss:$16 sps:$4 sm:$0xff]  }
  0xf6   : > { %2342 = vmatprep.subr.bf16.mxu1 %v12602_v7  ;;  %v12674_v7 = vld [vmem:[%s14584_s7 + $0xe8c] ss:$16 sps:$4 sm:$0xff]  }
  0xf8   : > { %2302 = vmatpush1.bf16.msra.mxu0 %v12597_v8  ;;  %v12669_v8 = vld [vmem:[%s14584_s7 + $0xc88] ss:$16 sps:$4 sm:$0xff]  }
  0xf9   : > { %2343 = vmatpush1.bf16.msra.mxu1 %v12600_v9  ;;  %2303 = vmatprep.subr.bf16.mxu0 %v12605_v12  ;;  %v12672_v9 = vld [vmem:[%s14584_s7 + $0xe88] ss:$16 sps:$4 sm:$0xff]   ;;  %v12677_v12 = vld [vmem:[%s14584_s7 + $0xcac] ss:$16 sps:$4 sm:$0xff]  }
  0xfa   : > { %2344 = vmatprep.subr.bf16.mxu1 %v12608_v13  ;;  %v12680_v13 = vld [vmem:[%s14584_s7 + $0xeac] ss:$16 sps:$4 sm:$0xff]  }
  0xfc   : > { %2304 = vmatpush1.bf16.msra.mxu0 %v12603_v14  ;;  %v12675_v14 = vld [vmem:[%s14584_s7 + $0xca8] ss:$16 sps:$4 sm:$0xff]  }
  0xfd   : > { %2345 = vmatpush1.bf16.msra.mxu1 %v12606_v15  ;;  %2305 = vmatprep.subr.bf16.mxu0 %v12611_v16  ;;  %v12678_v15 = vld [vmem:[%s14584_s7 + $0xea8] ss:$16 sps:$4 sm:$0xff]   ;;  %v12683_v16 = vld [vmem:[%s14584_s7 + $0xccc] ss:$16 sps:$4 sm:$0xff]  }
  0xfe   : > { %2346 = vmatprep.subr.bf16.mxu1 %v12614_v17  ;;  %v12686_v17 = vld [vmem:[%s14584_s7 + $0xecc] ss:$16 sps:$4 sm:$0xff]  }
 0x100   : > { %2306 = vmatpush1.bf16.msra.mxu0 %v12609_v18  ;;  %v12681_v18 = vld [vmem:[%s14584_s7 + $0xcc8] ss:$16 sps:$4 sm:$0xff]  }
 0x101   : > { %2347 = vmatpush1.bf16.msra.mxu1 %v12612_v19  ;;  %2307 = vmatprep.subr.bf16.mxu0 %v12617_v20  ;;  %v12684_v19 = vld [vmem:[%s14584_s7 + $0xec8] ss:$16 sps:$4 sm:$0xff]   ;;  %v12689_v20 = vld [vmem:[%s14584_s7 + $0xcec] ss:$16 sps:$4 sm:$0xff]  }
 0x102   : > { %2348 = vmatprep.subr.bf16.mxu1 %v12620_v21  ;;  %v12692_v21 = vld [vmem:[%s14584_s7 + $0xeec] ss:$16 sps:$4 sm:$0xff]  }
 0x104   : > { %2308 = vmatpush1.bf16.msra.mxu0 %v12615_v24  ;;  %v12687_v24 = vld [vmem:[%s14584_s7 + $0xce8] ss:$16 sps:$4 sm:$0xff]  }
 0x105   : > { %2349 = vmatpush1.bf16.msra.mxu1 %v12618_v25  ;;  %2309 = vmatprep.subr.bf16.mxu0 %v12623_v26  ;;  %v12690_v25 = vld [vmem:[%s14584_s7 + $0xee8] ss:$16 sps:$4 sm:$0xff]   ;;  %v12695_v26 = vld [vmem:[%s14584_s7 + $0xd0c] ss:$16 sps:$4 sm:$0xff]  }
 0x106   : > { %2350 = vmatprep.subr.bf16.mxu1 %v12626_v27  ;;  %v12698_v27 = vld [vmem:[%s14584_s7 + $0xf0c] ss:$16 sps:$4 sm:$0xff]  }
 0x108   : > { %2310 = vmatpush1.bf16.msra.mxu0 %v12621_v30  ;;  %v12693_v30 = vld [vmem:[%s14584_s7 + $0xd08] ss:$16 sps:$4 sm:$0xff]  }
 0x109   : > { %2351 = vmatpush1.bf16.msra.mxu1 %v12624_v31  ;;  %2311 = vmatprep.subr.bf16.mxu0 %v12629_v32  ;;  %v12696_v31 = vld [vmem:[%s14584_s7 + $0xf08] ss:$16 sps:$4 sm:$0xff]   ;;  %v12701_v32 = vld [vmem:[%s14584_s7 + $0xd2c] ss:$16 sps:$4 sm:$0xff]  }
 0x10a   : > { %2352 = vmatprep.subr.bf16.mxu1 %v12632_v33  ;;  %v12704_v33 = vld [vmem:[%s14584_s7 + $0xf2c] ss:$16 sps:$4 sm:$0xff]  }
 0x10c   : > { %2312 = vmatpush1.bf16.msra.mxu0 %v12627_v34  ;;  %v12699_v34 = vld [vmem:[%s14584_s7 + $0xd28] ss:$16 sps:$4 sm:$0xff]  }
 0x10d   : > { %2353 = vmatpush1.bf16.msra.mxu1 %v12630_v35  ;;  %2313 = vmatprep.subr.bf16.mxu0 %v12635_v36  ;;  %v12702_v35 = vld [vmem:[%s14584_s7 + $0xf28] ss:$16 sps:$4 sm:$0xff]   ;;  %v12707_v36 = vld [vmem:[%s14584_s7 + $0xd4c] ss:$16 sps:$4 sm:$0xff]  }
 0x10e   : > { %2354 = vmatprep.subr.bf16.mxu1 %v12638_v37  ;;  %v12710_v37 = vld [vmem:[%s14584_s7 + $0xf4c] ss:$16 sps:$4 sm:$0xff]  }
 0x110   : > { %2314 = vmatpush1.bf16.msra.mxu0 %v12633_v38  ;;  %v12705_v38 = vld [vmem:[%s14584_s7 + $0xd48] ss:$16 sps:$4 sm:$0xff]  }
 0x111   : > { %2355 = vmatpush1.bf16.msra.mxu1 %v12636_v41  ;;  %2315 = vmatprep.subr.bf16.mxu0 %v12641_v42  ;;  %v12708_v41 = vld [vmem:[%s14584_s7 + $0xf48] ss:$16 sps:$4 sm:$0xff]   ;;  %v12713_v42 = vld [vmem:[%s14584_s7 + $0xd6c] ss:$16 sps:$4 sm:$0xff]  }
 0x112   : > { %2356 = vmatprep.subr.bf16.mxu1 %v12644_v43  ;;  %v12716_v43 = vld [vmem:[%s14584_s7 + $0xf6c] ss:$16 sps:$4 sm:$0xff]  }
 0x114   : > { %2316 = vmatpush1.bf16.msra.mxu0 %v12639_v46  ;;  %v12711_v46 = vld [vmem:[%s14584_s7 + $0xd68] ss:$16 sps:$4 sm:$0xff]  }
 0x115   : > { %2357 = vmatpush1.bf16.msra.mxu1 %v12642_v47  ;;  %2367 = vmatprep.subr.bf16.mxu0 %v12647_v49  ;;  %v12714_v47 = vld [vmem:[%s14584_s7 + $0xf68] ss:$16 sps:$4 sm:$0xff]   ;;  %v12719_v49 = vld [vmem:[%s14584_s7 + $0xd8c] ss:$16 sps:$4 sm:$0xff]  }
 0x116   : > { %2408 = vmatprep.subr.bf16.mxu1 %v12650_v50  ;;  %v12722_v50 = vld [vmem:[%s14584_s7 + $0xf8c] ss:$16 sps:$4 sm:$0xff]  }
 0x117   : > { %2318 = vmatmul.mubr.bf16.vlgmr.msra.gmra.mrb[8].mxu0 %v14691_v10 }
 0x118   : > { %2359 = vmatmul.mubr.bf16.vlgmr.msra.gmra.mrb[8].mxu1 %v14694_v11  ;;  %2368 = vmatpush1.bf16.msra.mxu0 %v12645_v51  ;;  %v12717_v51 = vld [vmem:[%s14584_s7 + $0xd88] ss:$16 sps:$4 sm:$0xff]  }
 0x119   : > { %2409 = vmatpush1.bf16.msra.mxu1 %v12648_v53  ;;  %2369 = vmatprep.subr.bf16.mxu0 %v12653_v56  ;;  %v12720_v53 = vld [vmem:[%s14584_s7 + $0xf88] ss:$16 sps:$4 sm:$0xff]   ;;  %v12725_v56 = vld [vmem:[%s14584_s7 + $0xdac] ss:$16 sps:$4 sm:$0xff]  }
 0x11a   : > { %2410 = vmatprep.subr.bf16.mxu1 %v12656_v57  ;;  %2399 = vmatprep.mubr.bf16.mxu0 %v14741_v44  ;;  %v12728_v57 = vld [vmem:[%s14584_s7 + $0xfac] ss:$16 sps:$4 sm:$0xff]  }
 0x11b   : > { %2440 = vmatprep.mubr.bf16.mxu1 %v14744_v45 }
 0x11c   : > { %2370 = vmatpush1.bf16.msra.mxu0 %v12651_v58  ;;  %v12723_v58 = vld [vmem:[%s14584_s7 + $0xda8] ss:$16 sps:$4 sm:$0xff]  }
 0x11d   : > { %2411 = vmatpush1.bf16.msra.mxu1 %v12654_v59  ;;  %2371 = vmatprep.subr.bf16.mxu0 %v12659_v60  ;;  %v12726_v59 = vld [vmem:[%s14584_s7 + $0xfa8] ss:$16 sps:$4 sm:$0xff]   ;;  %v12731_v60 = vld [vmem:[%s14584_s7 + $0xdcc] ss:$16 sps:$4 sm:$0xff]  }
 0x11e   : > { %2412 = vmatprep.subr.bf16.mxu1 %v12662_v61  ;;  %v12734_v61 = vld [vmem:[%s14584_s7 + $0xfcc] ss:$16 sps:$4 sm:$0xff]  }
 0x120   : > { %2372 = vmatpush1.bf16.msra.mxu0 %v12657_v62  ;;  %v12729_v62 = vld [vmem:[%s14584_s7 + $0xdc8] ss:$16 sps:$4 sm:$0xff]  }
 0x121   : > { %2413 = vmatpush1.bf16.msra.mxu1 %v12660_v63  ;;  %2373 = vmatprep.subr.bf16.mxu0 %v12665_v0  ;;  %v12732_v63 = vld [vmem:[%s14584_s7 + $0xfc8] ss:$16 sps:$4 sm:$0xff]   ;;  %v12737_v0 = vld [vmem:[%s14584_s7 + $0xdec] ss:$16 sps:$4 sm:$0xff]  }
 0x122   : > { %2414 = vmatprep.subr.bf16.mxu1 %v12668_v1  ;;  %v12740_v1 = vld [vmem:[%s14584_s7 + $0xfec] ss:$16 sps:$4 sm:$0xff]  }
 0x124   : > { %2374 = vmatpush1.bf16.msra.mxu0 %v12663_v2  ;;  %v12735_v2 = vld [vmem:[%s14584_s7 + $0xde8] ss:$16 sps:$4 sm:$0xff]  }
 0x125   : > { %2415 = vmatpush1.bf16.msra.mxu1 %v12666_v3  ;;  %2375 = vmatprep.subr.bf16.mxu0 %v12671_v6  ;;  %v12738_v3 = vld [vmem:[%s14584_s7 + $0xfe8] ss:$16 sps:$4 sm:$0xff]   ;;  %v12743_v6 = vld [vmem:[%s14584_s7 + $0x4] ss:$16 sps:$4 sm:$0xff]  }
 0x126   : > { %2416 = vmatprep.subr.bf16.mxu1 %v12674_v7  ;;  %v12746_v7 = vld [vmem:[%s14584_s7 + $0x204] ss:$16 sps:$4 sm:$0xff]  }
 0x128   : > { %2376 = vmatpush1.bf16.msra.mxu0 %v12669_v8  ;;  %v12741_v8 = vld [vmem:[%s14584_s7] ss:$16 sps:$4 sm:$0xff]  }
 0x129   : > { %2417 = vmatpush1.bf16.msra.mxu1 %v12672_v9  ;;  %2377 = vmatprep.subr.bf16.mxu0 %v12677_v12  ;;  %v12744_v9 = vld [vmem:[%s14584_s7 + $0x200] ss:$16 sps:$4 sm:$0xff]   ;;  %v12749_v12 = vld [vmem:[%s14584_s7 + $0x24] ss:$16 sps:$4 sm:$0xff]  }
 0x12a   : > { %2418 = vmatprep.subr.bf16.mxu1 %v12680_v13  ;;  %v12752_v13 = vld [vmem:[%s14584_s7 + $0x224] ss:$16 sps:$4 sm:$0xff]  }
 0x12c   : > { %2378 = vmatpush1.bf16.msra.mxu0 %v12675_v14  ;;  %v12747_v14 = vld [vmem:[%s14584_s7 + $0x20] ss:$16 sps:$4 sm:$0xff]  }
 0x12d   : > { %2419 = vmatpush1.bf16.msra.mxu1 %v12678_v15  ;;  %2379 = vmatprep.subr.bf16.mxu0 %v12683_v16  ;;  %v12750_v15 = vld [vmem:[%s14584_s7 + $0x220] ss:$16 sps:$4 sm:$0xff]   ;;  %v12755_v16 = vld [vmem:[%s14584_s7 + $0x44] ss:$16 sps:$4 sm:$0xff]  }
 0x12e   : > { %2420 = vmatprep.subr.bf16.mxu1 %v12686_v17  ;;  %v12758_v17 = vld [vmem:[%s14584_s7 + $0x244] ss:$16 sps:$4 sm:$0xff]  }
 0x130   : > { %2380 = vmatpush1.bf16.msra.mxu0 %v12681_v18  ;;  %v12753_v18 = vld [vmem:[%s14584_s7 + $0x40] ss:$16 sps:$4 sm:$0xff]  }
 0x131   : > { %2421 = vmatpush1.bf16.msra.mxu1 %v12684_v19  ;;  %2381 = vmatprep.subr.bf16.mxu0 %v12689_v20  ;;  %v12756_v19 = vld [vmem:[%s14584_s7 + $0x240] ss:$16 sps:$4 sm:$0xff]   ;;  %v12761_v20 = vld [vmem:[%s14584_s7 + $0x64] ss:$16 sps:$4 sm:$0xff]  }
 0x132   : > { %2422 = vmatprep.subr.bf16.mxu1 %v12692_v21  ;;  %v12764_v21 = vld [vmem:[%s14584_s7 + $0x264] ss:$16 sps:$4 sm:$0xff]  }
 0x134   : > { %2382 = vmatpush1.bf16.msra.mxu0 %v12687_v24  ;;  %v12759_v24 = vld [vmem:[%s14584_s7 + $0x60] ss:$16 sps:$4 sm:$0xff]  }
 0x135   : > { %2423 = vmatpush1.bf16.msra.mxu1 %v12690_v25  ;;  %2383 = vmatprep.subr.bf16.mxu0 %v12695_v26  ;;  %v12762_v25 = vld [vmem:[%s14584_s7 + $0x260] ss:$16 sps:$4 sm:$0xff]   ;;  %v12767_v26 = vld [vmem:[%s14584_s7 + $0x84] ss:$16 sps:$4 sm:$0xff]  }
 0x136   : > { %2424 = vmatprep.subr.bf16.mxu1 %v12698_v27  ;;  %v12770_v27 = vld [vmem:[%s14584_s7 + $0x284] ss:$16 sps:$4 sm:$0xff]  }
 0x138   : > { %2384 = vmatpush1.bf16.msra.mxu0 %v12693_v30  ;;  %v12765_v30 = vld [vmem:[%s14584_s7 + $0x80] ss:$16 sps:$4 sm:$0xff]  }
 0x139   : > { %2425 = vmatpush1.bf16.msra.mxu1 %v12696_v31  ;;  %2385 = vmatprep.subr.bf16.mxu0 %v12701_v32  ;;  %v12768_v31 = vld [vmem:[%s14584_s7 + $0x280] ss:$16 sps:$4 sm:$0xff]   ;;  %v12773_v32 = vld [vmem:[%s14584_s7 + $0xa4] ss:$16 sps:$4 sm:$0xff]  }
 0x13a   : > { %2426 = vmatprep.subr.bf16.mxu1 %v12704_v33  ;;  %v12776_v33 = vld [vmem:[%s14584_s7 + $0x2a4] ss:$16 sps:$4 sm:$0xff]  }
 0x13c   : > { %2386 = vmatpush1.bf16.msra.mxu0 %v12699_v34  ;;  %v12771_v34 = vld [vmem:[%s14584_s7 + $0xa0] ss:$16 sps:$4 sm:$0xff]  }
 0x13d   : > { %2427 = vmatpush1.bf16.msra.mxu1 %v12702_v35  ;;  %2387 = vmatprep.subr.bf16.mxu0 %v12707_v36  ;;  %v12774_v35 = vld [vmem:[%s14584_s7 + $0x2a0] ss:$16 sps:$4 sm:$0xff]   ;;  %v12779_v36 = vld [vmem:[%s14584_s7 + $0xc4] ss:$16 sps:$4 sm:$0xff]  }
 0x13e   : > { %2428 = vmatprep.subr.bf16.mxu1 %v12710_v37  ;;  %v12782_v37 = vld [vmem:[%s14584_s7 + $0x2c4] ss:$16 sps:$4 sm:$0xff]  }
 0x140   : > { %2388 = vmatpush1.bf16.msra.mxu0 %v12705_v38 }
 0x141   : > { %2429 = vmatpush1.bf16.msra.mxu1 %v12708_v41  ;;  %2389 = vmatprep.subr.bf16.mxu0 %v12713_v42  ;;  %v12777_v42 = vld [vmem:[%s14584_s7 + $0xc0] ss:$16 sps:$4 sm:$0xff]  }
 0x142   : > { %2430 = vmatprep.subr.bf16.mxu1 %v12716_v43  ;;  %v12780_v43 = vld [vmem:[%s14584_s7 + $0x2c0] ss:$16 sps:$4 sm:$0xff]  }
 0x144   : > { %2390 = vmatpush1.bf16.msra.mxu0 %v12711_v46 }
 0x145   : > { %2431 = vmatpush1.bf16.msra.mxu1 %v12714_v47  ;;  %2391 = vmatprep.subr.bf16.mxu0 %v12719_v49 }
 0x146   : > { %2432 = vmatprep.subr.bf16.mxu1 %v12722_v50 }
 0x148   : > { %2392 = vmatpush1.bf16.msra.mxu0 %v12717_v51 }
 0x149   : > { %2433 = vmatpush1.bf16.msra.mxu1 %v12720_v53  ;;  %2393 = vmatprep.subr.bf16.mxu0 %v12725_v56 }
 0x14a   : > { %2434 = vmatprep.subr.bf16.mxu1 %v12728_v57 }
 0x14c   : > { %2394 = vmatpush1.bf16.msra.mxu0 %v12723_v58  ;;  %v12785_v58 = vld [vmem:[%s14584_s7 + $0xe4] ss:$16 sps:$4 sm:$0xff]  }
 0x14d   : > { %2435 = vmatpush1.bf16.msra.mxu1 %v12726_v59  ;;  %2395 = vmatprep.subr.bf16.mxu0 %v12731_v60  ;;  %v12788_v59 = vld [vmem:[%s14584_s7 + $0x2e4] ss:$16 sps:$4 sm:$0xff]   ;;  %v12783_v60 = vld [vmem:[%s14584_s7 + $0xe0] ss:$16 sps:$4 sm:$0xff]  }
 0x14e   : > { %2436 = vmatprep.subr.bf16.mxu1 %v12734_v61  ;;  %v12786_v61 = vld [vmem:[%s14584_s7 + $0x2e0] ss:$16 sps:$4 sm:$0xff]  }
 0x150   : > { %2396 = vmatpush1.bf16.msra.mxu0 %v12729_v62  ;;  %v12791_v62 = vld [vmem:[%s14584_s7 + $0x104] ss:$16 sps:$4 sm:$0xff]  }
 0x151   : > { %2437 = vmatpush1.bf16.msra.mxu1 %v12732_v63  ;;  %2397 = vmatprep.subr.bf16.mxu0 %v12737_v0  ;;  %v12794_v63 = vld [vmem:[%s14584_s7 + $0x304] ss:$16 sps:$4 sm:$0xff]   ;;  %v12789_v0 = vld [vmem:[%s14584_s7 + $0x100] ss:$16 sps:$4 sm:$0xff]  }
 0x152   : > { %2438 = vmatprep.subr.bf16.mxu1 %v12740_v1  ;;  %v12792_v1 = vld [vmem:[%s14584_s7 + $0x300] ss:$16 sps:$4 sm:$0xff]  }
 0x154   : > { %2398 = vmatpush1.bf16.msra.mxu0 %v12735_v2  ;;  %v12797_v2 = vld [vmem:[%s14584_s7 + $0x124] ss:$16 sps:$4 sm:$0xff]  }
 0x155   : > { %2439 = vmatpush1.bf16.msra.mxu1 %v12738_v3  ;;  %3737 = vmatprep.subr.bf16.mxu0 %v12743_v6  ;;  %v12800_v3 = vld [vmem:[%s14584_s7 + $0x324] ss:$16 sps:$4 sm:$0xff]   ;;  %v12795_v6 = vld [vmem:[%s14584_s7 + $0x120] ss:$16 sps:$4 sm:$0xff]  }
 0x156   : > { %3778 = vmatprep.subr.bf16.mxu1 %v12746_v7  ;;  %v12798_v7 = vld [vmem:[%s14584_s7 + $0x320] ss:$16 sps:$4 sm:$0xff]  }
 0x157   : > { %2400 = vmatmul.mubr.bf16.vlgmr.msra.gmra.mrb[12].mxu0 %v14793_v28 }
 0x158   : > { %2441 = vmatmul.mubr.bf16.vlgmr.msra.gmra.mrb[12].mxu1 %v14796_v29  ;;  %3738 = vmatpush1.bf16.msra.mxu0 %v12741_v8  ;;  %v12803_v8 = vld [vmem:[%s14584_s7 + $0x144] ss:$16 sps:$4 sm:$0xff]  }
 0x159   : > { %3779 = vmatpush1.bf16.msra.mxu1 %v12744_v9  ;;  %3739 = vmatprep.subr.bf16.mxu0 %v12749_v12  ;;  %v12806_v9 = vld [vmem:[%s14584_s7 + $0x344] ss:$16 sps:$4 sm:$0xff]   ;;  %v12801_v12 = vld [vmem:[%s14584_s7 + $0x140] ss:$16 sps:$4 sm:$0xff]  }
 0x15a   : > { %3780 = vmatprep.subr.bf16.mxu1 %v12752_v13  ;;  %3769 = vmatprep.mubr.bf16.mxu0 %v14654_v48  ;;  %v12804_v13 = vld [vmem:[%s14584_s7 + $0x340] ss:$16 sps:$4 sm:$0xff]  }
 0x15b   : > { %3810 = vmatprep.mubr.bf16.mxu1 %v14659_v52 }
 0x15c   : > { %3740 = vmatpush1.bf16.msra.mxu0 %v12747_v14  ;;  %v12809_v14 = vld [vmem:[%s14584_s7 + $0x164] ss:$16 sps:$4 sm:$0xff]  }
 0x15d   : > { %3781 = vmatpush1.bf16.msra.mxu1 %v12750_v15  ;;  %3741 = vmatprep.subr.bf16.mxu0 %v12755_v16  ;;  %v12812_v15 = vld [vmem:[%s14584_s7 + $0x364] ss:$16 sps:$4 sm:$0xff]   ;;  %v12807_v16 = vld [vmem:[%s14584_s7 + $0x160] ss:$16 sps:$4 sm:$0xff]  }
 0x15e   : > { %3782 = vmatprep.subr.bf16.mxu1 %v12758_v17  ;;  %v12810_v17 = vld [vmem:[%s14584_s7 + $0x360] ss:$16 sps:$4 sm:$0xff]  }
 0x160   : > { %3742 = vmatpush1.bf16.msra.mxu0 %v12753_v18  ;;  %v12815_v18 = vld [vmem:[%s14584_s7 + $0x184] ss:$16 sps:$4 sm:$0xff]  }
 0x161   : > { %3783 = vmatpush1.bf16.msra.mxu1 %v12756_v19  ;;  %3743 = vmatprep.subr.bf16.mxu0 %v12761_v20  ;;  %v12818_v19 = vld [vmem:[%s14584_s7 + $0x384] ss:$16 sps:$4 sm:$0xff]   ;;  %v12813_v20 = vld [vmem:[%s14584_s7 + $0x180] ss:$16 sps:$4 sm:$0xff]  }
 0x162   : > { %3784 = vmatprep.subr.bf16.mxu1 %v12764_v21  ;;  %v12816_v21 = vld [vmem:[%s14584_s7 + $0x380] ss:$16 sps:$4 sm:$0xff]  }
 0x164   : > { %3744 = vmatpush1.bf16.msra.mxu0 %v12759_v24  ;;  %v12821_v24 = vld [vmem:[%s14584_s7 + $0x1a4] ss:$16 sps:$4 sm:$0xff]  }
 0x165   : > { %3785 = vmatpush1.bf16.msra.mxu1 %v12762_v25  ;;  %3745 = vmatprep.subr.bf16.mxu0 %v12767_v26  ;;  %v12824_v25 = vld [vmem:[%s14584_s7 + $0x3a4] ss:$16 sps:$4 sm:$0xff]   ;;  %v12819_v26 = vld [vmem:[%s14584_s7 + $0x1a0] ss:$16 sps:$4 sm:$0xff]  }
 0x166   : > { %3786 = vmatprep.subr.bf16.mxu1 %v12770_v27  ;;  %v12822_v27 = vld [vmem:[%s14584_s7 + $0x3a0] ss:$16 sps:$4 sm:$0xff]  }
 0x168   : > { %3746 = vmatpush1.bf16.msra.mxu0 %v12765_v30  ;;  %v12827_v30 = vld [vmem:[%s14584_s7 + $0x1c4] ss:$16 sps:$4 sm:$0xff]  }
 0x169   : > { %3787 = vmatpush1.bf16.msra.mxu1 %v12768_v31  ;;  %3747 = vmatprep.subr.bf16.mxu0 %v12773_v32  ;;  %v12830_v31 = vld [vmem:[%s14584_s7 + $0x3c4] ss:$16 sps:$4 sm:$0xff]   ;;  %v12825_v32 = vld [vmem:[%s14584_s7 + $0x1c0] ss:$16 sps:$4 sm:$0xff]  }
 0x16a   : > { %3788 = vmatprep.subr.bf16.mxu1 %v12776_v33  ;;  %v2155_v38 = vpop.f32.mrb[0].mxu0  ;;  %v12828_v33 = vld [vmem:[%s14584_s7 + $0x3c0] ss:$16 sps:$4 sm:$0xff]  }
 0x16b   : > { %v2196_v41 = vpop.f32.mrb[0].mxu1  ;;  %v2157_v47 = vpop.f32.mrb[1].mxu0 }
 0x16c   : > { %v14964_v46 = vadd.f32 %v2196_v41, %v2155_v38  ;;  %v2198_v49 = vpop.f32.mrb[1].mxu1  ;;  %v2159_v51 = vpop.f32.mrb[2].mxu0  ;;  %3748 = vmatpush1.bf16.msra.mxu0 %v12771_v34  ;;  %v12833_v34 = vld [vmem:[%s14584_s7 + $0x1e4] ss:$16 sps:$4 sm:$0xff]  }
 0x16d   : > { %v14966_v50 = vadd.f32 %v2198_v49, %v2157_v47  ;;  %v2200_v53 = vpop.f32.mrb[2].mxu1  ;;  %3789 = vmatpush1.bf16.msra.mxu1 %v12774_v35  ;;  %v2160_v56 = vpop.f32.mrb[3].mxu0  ;;  %3749 = vmatprep.subr.bf16.mxu0 %v12779_v36  ;;  %v12836_v35 = vld [vmem:[%s14584_s7 + $0x3e4] ss:$16 sps:$4 sm:$0xff]   ;;  %v12831_v36 = vld [vmem:[%s14584_s7 + $0x1e0] ss:$16 sps:$4 sm:$0xff]  }
 0x16e   : > { %v2201_v57 = vpop.f32.mrb[3].mxu1  ;;  %3790 = vmatprep.subr.bf16.mxu1 %v12782_v37  ;;  %v12834_v37 = vld [vmem:[%s14584_s7 + $0x3e0] ss:$16 sps:$4 sm:$0xff]   ;;  %v12839_v38 = vld [vmem:[%s14584_s7 + $0x404] ss:$16 sps:$4 sm:$0xff]  }
 0x16f   : > { %v12842_v41 = vld [vmem:[%s14584_s7 + $0x604] ss:$16 sps:$4 sm:$0xff]   ;;  %v12843_v51 = vld [vmem:[%s14584_s7 + $0x420] ss:$16 sps:$4 sm:$0xff]  }
 0x170   : > { %3750 = vmatpush1.bf16.msra.mxu0 %v12777_v42  ;;  %v12837_v42 = vld [vmem:[%s14584_s7 + $0x400] ss:$16 sps:$4 sm:$0xff]   ;;  %v12845_v47 = vld [vmem:[%s14584_s7 + $0x424] ss:$16 sps:$4 sm:$0xff]  }
 0x171   : > { %3791 = vmatpush1.bf16.msra.mxu1 %v12780_v43  ;;  %3751 = vmatprep.subr.bf16.mxu0 %v12785_v58  ;;  %v12840_v43 = vld [vmem:[%s14584_s7 + $0x600] ss:$16 sps:$4 sm:$0xff]   ;;  %v12848_v49 = vld [vmem:[%s14584_s7 + $0x624] ss:$16 sps:$4 sm:$0xff]  }
 0x172   : > { %3792 = vmatprep.subr.bf16.mxu1 %v12788_v59  ;;  %v12846_v53 = vld [vmem:[%s14584_s7 + $0x620] ss:$16 sps:$4 sm:$0xff]   ;;  %v12851_v56 = vld [vmem:[%s14584_s7 + $0x444] ss:$16 sps:$4 sm:$0xff]  }
 0x173   : > { %v12854_v57 = vld [vmem:[%s14584_s7 + $0x644] ss:$16 sps:$4 sm:$0xff]   ;;  %v12849_v58 = vld [vmem:[%s14584_s7 + $0x440] ss:$16 sps:$4 sm:$0xff]  }
 0x174   : > { %3752 = vmatpush1.bf16.msra.mxu0 %v12783_v60  ;;  %v12852_v59 = vld [vmem:[%s14584_s7 + $0x640] ss:$16 sps:$4 sm:$0xff]   ;;  %v12857_v60 = vld [vmem:[%s14584_s7 + $0x464] ss:$16 sps:$4 sm:$0xff]  }
 0x175   : > { %3793 = vmatpush1.bf16.msra.mxu1 %v12786_v61  ;;  %3753 = vmatprep.subr.bf16.mxu0 %v12791_v62  ;;  %v12860_v61 = vld [vmem:[%s14584_s7 + $0x664] ss:$16 sps:$4 sm:$0xff]   ;;  %v12855_v62 = vld [vmem:[%s14584_s7 + $0x460] ss:$16 sps:$4 sm:$0xff]  }
 0x176   : > { %3794 = vmatprep.subr.bf16.mxu1 %v12794_v63  ;;  %v12858_v63 = vld [vmem:[%s14584_s7 + $0x660] ss:$16 sps:$4 sm:$0xff]  }
 0x178   : > { %3754 = vmatpush1.bf16.msra.mxu0 %v12789_v0  ;;  %v12863_v0 = vld [vmem:[%s14584_s7 + $0x484] ss:$16 sps:$4 sm:$0xff]  }
 0x179   : > { %3795 = vmatpush1.bf16.msra.mxu1 %v12792_v1  ;;  %3755 = vmatprep.subr.bf16.mxu0 %v12797_v2  ;;  %v12866_v1 = vld [vmem:[%s14584_s7 + $0x684] ss:$16 sps:$4 sm:$0xff]   ;;  %v12861_v2 = vld [vmem:[%s14584_s7 + $0x480] ss:$16 sps:$4 sm:$0xff]  }
 0x17a   : > { %3796 = vmatprep.subr.bf16.mxu1 %v12800_v3  ;;  %v12864_v3 = vld [vmem:[%s14584_s7 + $0x680] ss:$16 sps:$4 sm:$0xff]  }
 0x17c   : > { %3756 = vmatpush1.bf16.msra.mxu0 %v12795_v6  ;;  %v12869_v6 = vld [vmem:[%s14584_s7 + $0x4a4] ss:$16 sps:$4 sm:$0xff]  }
 0x17d   : > { %3797 = vmatpush1.bf16.msra.mxu1 %v12798_v7  ;;  %3757 = vmatprep.subr.bf16.mxu0 %v12803_v8  ;;  %v12872_v7 = vld [vmem:[%s14584_s7 + $0x6a4] ss:$16 sps:$4 sm:$0xff]   ;;  %v12867_v8 = vld [vmem:[%s14584_s7 + $0x4a0] ss:$16 sps:$4 sm:$0xff]  }
 0x17e   : > { %3798 = vmatprep.subr.bf16.mxu1 %v12806_v9  ;;  %v12870_v9 = vld [vmem:[%s14584_s7 + $0x6a0] ss:$16 sps:$4 sm:$0xff]  }
 0x180   : > { %3758 = vmatpush1.bf16.msra.mxu0 %v12801_v12  ;;  %v12875_v12 = vld [vmem:[%s14584_s7 + $0x4c4] ss:$16 sps:$4 sm:$0xff]  }
 0x181   : > { %3799 = vmatpush1.bf16.msra.mxu1 %v12804_v13  ;;  %3759 = vmatprep.subr.bf16.mxu0 %v12809_v14  ;;  %v12878_v13 = vld [vmem:[%s14584_s7 + $0x6c4] ss:$16 sps:$4 sm:$0xff]  }
 0x182   : > { %3800 = vmatprep.subr.bf16.mxu1 %v12812_v15 }
 0x184   : > { %3760 = vmatpush1.bf16.msra.mxu0 %v12807_v16  ;;  %v12873_v16 = vld [vmem:[%s14584_s7 + $0x4c0] ss:$16 sps:$4 sm:$0xff]  }
 0x185   : > { %3801 = vmatpush1.bf16.msra.mxu1 %v12810_v17  ;;  %3761 = vmatprep.subr.bf16.mxu0 %v12815_v18  ;;  %v12876_v17 = vld [vmem:[%s14584_s7 + $0x6c0] ss:$16 sps:$4 sm:$0xff]  }
 0x186   : > { %3802 = vmatprep.subr.bf16.mxu1 %v12818_v19 }
 0x188   : > { %3762 = vmatpush1.bf16.msra.mxu0 %v12813_v20 }
 0x189   : > { %3803 = vmatpush1.bf16.msra.mxu1 %v12816_v21  ;;  %3763 = vmatprep.subr.bf16.mxu0 %v12821_v24 }
 0x18a   : > { %3804 = vmatprep.subr.bf16.mxu1 %v12824_v25 }
 0x18c   : > { %3764 = vmatpush1.bf16.msra.mxu0 %v12819_v26 }
 0x18d   : > { %3805 = vmatpush1.bf16.msra.mxu1 %v12822_v27  ;;  %3765 = vmatprep.subr.bf16.mxu0 %v12827_v30 }
 0x18e   : > { %3806 = vmatprep.subr.bf16.mxu1 %v12830_v31  ;;  %v12884_v31 = vld [vmem:[%s14584_s7 + $0x6e4] ss:$16 sps:$4 sm:$0xff]  }
 0x190   : > { %3766 = vmatpush1.bf16.msra.mxu0 %v12825_v32 }
 0x191   : > { %3807 = vmatpush1.bf16.msra.mxu1 %v12828_v33  ;;  %3767 = vmatprep.subr.bf16.mxu0 %v12833_v34  ;;  %v12882_v33 = vld [vmem:[%s14584_s7 + $0x6e0] ss:$16 sps:$4 sm:$0xff]   ;;  %v12887_v34 = vld [vmem:[%s14584_s7 + $0x504] ss:$16 sps:$4 sm:$0xff]  }
 0x192   : > { %3808 = vmatprep.subr.bf16.mxu1 %v12836_v35  ;;  %v12890_v35 = vld [vmem:[%s14584_s7 + $0x704] ss:$16 sps:$4 sm:$0xff]  }
 0x194   : > { %3768 = vmatpush1.bf16.msra.mxu0 %v12831_v36  ;;  %v12885_v36 = vld [vmem:[%s14584_s7 + $0x500] ss:$16 sps:$4 sm:$0xff]  }
 0x195   : > { %3809 = vmatpush1.bf16.msra.mxu1 %v12834_v37  ;;  %3819 = vmatprep.subr.bf16.mxu0 %v12839_v38  ;;  %v12888_v37 = vld [vmem:[%s14584_s7 + $0x700] ss:$16 sps:$4 sm:$0xff]   ;;  %v12893_v38 = vld [vmem:[%s14584_s7 + $0x524] ss:$16 sps:$4 sm:$0xff]  }
 0x196   : > { %3860 = vmatprep.subr.bf16.mxu1 %v12842_v41  ;;  %v12896_v41 = vld [vmem:[%s14584_s7 + $0x724] ss:$16 sps:$4 sm:$0xff]  }
 0x197   : > { %3770 = vmatmul.mubr.bf16.vlgmr.msra.gmra.mrb[16].mxu0 %v14682_v4 }
 0x198   : > { %3811 = vmatmul.mubr.bf16.vlgmr.msra.gmra.mrb[16].mxu1 %v14684_v5  ;;  %3820 = vmatpush1.bf16.msra.mxu0 %v12837_v42  ;;  %v12891_v42 = vld [vmem:[%s14584_s7 + $0x520] ss:$16 sps:$4 sm:$0xff]  }
 0x199   : > { %3861 = vmatpush1.bf16.msra.mxu1 %v12840_v43  ;;  %3821 = vmatprep.subr.bf16.mxu0 %v12845_v47  ;;  %v12894_v43 = vld [vmem:[%s14584_s7 + $0x720] ss:$16 sps:$4 sm:$0xff]   ;;  %v12899_v47 = vld [vmem:[%s14584_s7 + $0x544] ss:$16 sps:$4 sm:$0xff]  }
 0x19a   : > { %3862 = vmatprep.subr.bf16.mxu1 %v12848_v49  ;;  %3851 = vmatprep.mubr.bf16.mxu0 %v14731_v39  ;;  %v12902_v49 = vld [vmem:[%s14584_s7 + $0x744] ss:$16 sps:$4 sm:$0xff]  }
 0x19b   : > { %3892 = vmatprep.mubr.bf16.mxu1 %v14735_v40 }
 0x19c   : > { %3822 = vmatpush1.bf16.msra.mxu0 %v12843_v51  ;;  %v12897_v51 = vld [vmem:[%s14584_s7 + $0x540] ss:$16 sps:$4 sm:$0xff]  }
 0x19d   : > { %3863 = vmatpush1.bf16.msra.mxu1 %v12846_v53  ;;  %3823 = vmatprep.subr.bf16.mxu0 %v12851_v56  ;;  %v12900_v53 = vld [vmem:[%s14584_s7 + $0x740] ss:$16 sps:$4 sm:$0xff]   ;;  %v12905_v56 = vld [vmem:[%s14584_s7 + $0x564] ss:$16 sps:$4 sm:$0xff]  }
 0x19e   : > { %3864 = vmatprep.subr.bf16.mxu1 %v12854_v57  ;;  %v12908_v57 = vld [vmem:[%s14584_s7 + $0x764] ss:$16 sps:$4 sm:$0xff]  }
 0x1a0   : > { %3824 = vmatpush1.bf16.msra.mxu0 %v12849_v58  ;;  %v12903_v58 = vld [vmem:[%s14584_s7 + $0x560] ss:$16 sps:$4 sm:$0xff]  }
 0x1a1   : > { %3865 = vmatpush1.bf16.msra.mxu1 %v12852_v59  ;;  %3825 = vmatprep.subr.bf16.mxu0 %v12857_v60  ;;  %v12906_v59 = vld [vmem:[%s14584_s7 + $0x760] ss:$16 sps:$4 sm:$0xff]   ;;  %v12911_v60 = vld [vmem:[%s14584_s7 + $0x584] ss:$16 sps:$4 sm:$0xff]  }
 0x1a2   : > { %3866 = vmatprep.subr.bf16.mxu1 %v12860_v61  ;;  %v12914_v61 = vld [vmem:[%s14584_s7 + $0x784] ss:$16 sps:$4 sm:$0xff]  }
 0x1a4   : > { %3826 = vmatpush1.bf16.msra.mxu0 %v12855_v62  ;;  %v12909_v62 = vld [vmem:[%s14584_s7 + $0x580] ss:$16 sps:$4 sm:$0xff]  }
 0x1a5   : > { %3867 = vmatpush1.bf16.msra.mxu1 %v12858_v63  ;;  %3827 = vmatprep.subr.bf16.mxu0 %v12863_v0  ;;  %v12912_v63 = vld [vmem:[%s14584_s7 + $0x780] ss:$16 sps:$4 sm:$0xff]   ;;  %v12917_v0 = vld [vmem:[%s14584_s7 + $0x5a4] ss:$16 sps:$4 sm:$0xff]  }
 0x1a6   : > { %3868 = vmatprep.subr.bf16.mxu1 %v12866_v1  ;;  %v12920_v1 = vld [vmem:[%s14584_s7 + $0x7a4] ss:$16 sps:$4 sm:$0xff]  }
 0x1a8   : > { %3828 = vmatpush1.bf16.msra.mxu0 %v12861_v2  ;;  %v12915_v2 = vld [vmem:[%s14584_s7 + $0x5a0] ss:$16 sps:$4 sm:$0xff]  }
 0x1a9   : > { %3869 = vmatpush1.bf16.msra.mxu1 %v12864_v3  ;;  %3829 = vmatprep.subr.bf16.mxu0 %v12869_v6  ;;  %v12918_v3 = vld [vmem:[%s14584_s7 + $0x7a0] ss:$16 sps:$4 sm:$0xff]   ;;  %v12923_v6 = vld [vmem:[%s14584_s7 + $0x5c4] ss:$16 sps:$4 sm:$0xff]  }
 0x1aa   : > { %3870 = vmatprep.subr.bf16.mxu1 %v12872_v7  ;;  %v2237_v14 = vpop.f32.mrb[4].mxu0  ;;  %v12926_v7 = vld [vmem:[%s14584_s7 + $0x7c4] ss:$16 sps:$4 sm:$0xff]  }
 0x1ab   : > { %v2278_v15 = vpop.f32.mrb[4].mxu1  ;;  %v2238_v18 = vadd.f32 %v2237_v14, %v14964_v46  ;;  %v2239_v19 = vpop.f32.mrb[5].mxu0  ;;  %v12881_v46 = vld [vmem:[%s14584_s7 + $0x4e4] ss:$16 sps:$4 sm:$0xff]   ;;  %v12927_v14 = vld [vmem:[%s14584_s7 + $0x5e0] ss:$16 sps:$4 sm:$0xff]  }
 0x1ac   : > { %v2280_v20 = vpop.f32.mrb[5].mxu1  ;;  %v2240_v21 = vadd.f32 %v2239_v19, %v14966_v50  ;;  %v2241_v24 = vpop.f32.mrb[6].mxu0  ;;  %3830 = vmatpush1.bf16.msra.mxu0 %v12867_v8  ;;  %v12879_v50 = vld [vmem:[%s14584_s7 + $0x4e0] ss:$16 sps:$4 sm:$0xff]   ;;  %v12936_v19 = vld [vmem:[%s14584_s7 + $0x208] ss:$16 sps:$4 sm:$0xff]  }
 0x1ad   : > { %v2282_v25 = vpop.f32.mrb[6].mxu1  ;;  %3871 = vmatpush1.bf16.msra.mxu1 %v12870_v9  ;;  %v15038_v26 = vadd.f32 %v2278_v15, %v2238_v18  ;;  %v2242_v27 = vpop.f32.mrb[7].mxu0  ;;  %3831 = vmatprep.subr.bf16.mxu0 %v12875_v12  ;;  %v12921_v8 = vld [vmem:[%s14584_s7 + $0x5c0] ss:$16 sps:$4 sm:$0xff]   ;;  %v12929_v12 = vld [vmem:[%s14584_s7 + $0x5e4] ss:$16 sps:$4 sm:$0xff]  }
 0x1ae   : > { %v2283_v30 = vpop.f32.mrb[7].mxu1  ;;  %3872 = vmatprep.subr.bf16.mxu1 %v12878_v13  ;;  %v15042_v32 = vadd.f32 %v2280_v20, %v2240_v21  ;;  %v12924_v9 = vld [vmem:[%s14584_s7 + $0x7c0] ss:$16 sps:$4 sm:$0xff]   ;;  %v12932_v13 = vld [vmem:[%s14584_s7 + $0x7e4] ss:$16 sps:$4 sm:$0xff]  }
 0x1af   : > { %v12930_v15 = vld [vmem:[%s14584_s7 + $0x7e0] ss:$16 sps:$4 sm:$0xff]   ;;  %v12933_v18 = vld [vmem:[%s14584_s7 + $0x8] ss:$16 sps:$4 sm:$0xff]   ;;  %v12941_v20 = vld [vmem:[%s14584_s7 + $0x2c] ss:$16 sps:$4 sm:$0xff]  }
 0x1b0   : > { %3832 = vmatpush1.bf16.msra.mxu0 %v12873_v16  ;;  %v12935_v16 = vld [vmem:[%s14584_s7 + $0xc] ss:$16 sps:$4 sm:$0xff]   ;;  %v12939_v24 = vld [vmem:[%s14584_s7 + $0x28] ss:$16 sps:$4 sm:$0xff]  }
 0x1b1   : > { %3873 = vmatpush1.bf16.msra.mxu1 %v12876_v17  ;;  %3833 = vmatprep.subr.bf16.mxu0 %v12881_v46  ;;  %v12938_v17 = vld [vmem:[%s14584_s7 + $0x20c] ss:$16 sps:$4 sm:$0xff]   ;;  %v12942_v25 = vld [vmem:[%s14584_s7 + $0x228] ss:$16 sps:$4 sm:$0xff]  }
 0x1b2   : > { %3874 = vmatprep.subr.bf16.mxu1 %v12884_v31  ;;  %v12944_v21 = vld [vmem:[%s14584_s7 + $0x22c] ss:$16 sps:$4 sm:$0xff]   ;;  %v12945_v46 = vld [vmem:[%s14584_s7 + $0x48] ss:$16 sps:$4 sm:$0xff]  }
 0x1b3   : > { %v12947_v27 = vld [vmem:[%s14584_s7 + $0x4c] ss:$16 sps:$4 sm:$0xff]   ;;  %v12948_v31 = vld [vmem:[%s14584_s7 + $0x248] ss:$16 sps:$4 sm:$0xff]  }
 0x1b4   : > { %3834 = vmatpush1.bf16.msra.mxu0 %v12879_v50  ;;  %v12950_v30 = vld [vmem:[%s14584_s7 + $0x24c] ss:$16 sps:$4 sm:$0xff]  }
 0x1b5   : > { %3875 = vmatpush1.bf16.msra.mxu1 %v12882_v33  ;;  %3835 = vmatprep.subr.bf16.mxu0 %v12887_v34  ;;  %v12953_v50 = vld [vmem:[%s14584_s7 + $0x6c] ss:$16 sps:$4 sm:$0xff]   ;;  %v12951_v34 = vld [vmem:[%s14584_s7 + $0x68] ss:$16 sps:$4 sm:$0xff]  }
 0x1b6   : > { %3876 = vmatprep.subr.bf16.mxu1 %v12890_v35  ;;  %v12956_v33 = vld [vmem:[%s14584_s7 + $0x26c] ss:$16 sps:$4 sm:$0xff]   ;;  %v12954_v35 = vld [vmem:[%s14584_s7 + $0x268] ss:$16 sps:$4 sm:$0xff]  }
 0x1b8   : > { %3836 = vmatpush1.bf16.msra.mxu0 %v12885_v36  ;;  %v12959_v36 = vld [vmem:[%s14584_s7 + $0x8c] ss:$16 sps:$4 sm:$0xff]  }
 0x1b9   : > { %3877 = vmatpush1.bf16.msra.mxu1 %v12888_v37  ;;  %3837 = vmatprep.subr.bf16.mxu0 %v12893_v38  ;;  %v12962_v37 = vld [vmem:[%s14584_s7 + $0x28c] ss:$16 sps:$4 sm:$0xff]   ;;  %v12957_v38 = vld [vmem:[%s14584_s7 + $0x88] ss:$16 sps:$4 sm:$0xff]  }
 0x1ba   : > { %3878 = vmatprep.subr.bf16.mxu1 %v12896_v41  ;;  %v12960_v41 = vld [vmem:[%s14584_s7 + $0x288] ss:$16 sps:$4 sm:$0xff]  }
 0x1bc   : > { %3838 = vmatpush1.bf16.msra.mxu0 %v12891_v42  ;;  %v12965_v42 = vld [vmem:[%s14584_s7 + $0xac] ss:$16 sps:$4 sm:$0xff]  }
 0x1bd   : > { %3879 = vmatpush1.bf16.msra.mxu1 %v12894_v43  ;;  %3839 = vmatprep.subr.bf16.mxu0 %v12899_v47  ;;  %v12968_v43 = vld [vmem:[%s14584_s7 + $0x2ac] ss:$16 sps:$4 sm:$0xff]   ;;  %v12963_v47 = vld [vmem:[%s14584_s7 + $0xa8] ss:$16 sps:$4 sm:$0xff]  }
 0x1be   : > { %3880 = vmatprep.subr.bf16.mxu1 %v12902_v49  ;;  %v12966_v49 = vld [vmem:[%s14584_s7 + $0x2a8] ss:$16 sps:$4 sm:$0xff]  }
 0x1c0   : > { %3840 = vmatpush1.bf16.msra.mxu0 %v12897_v51  ;;  %v12971_v51 = vld [vmem:[%s14584_s7 + $0xcc] ss:$16 sps:$4 sm:$0xff]  }
 0x1c1   : > { %3881 = vmatpush1.bf16.msra.mxu1 %v12900_v53  ;;  %3841 = vmatprep.subr.bf16.mxu0 %v12905_v56  ;;  %v12974_v53 = vld [vmem:[%s14584_s7 + $0x2cc] ss:$16 sps:$4 sm:$0xff]  }
 0x1c2   : > { %3882 = vmatprep.subr.bf16.mxu1 %v12908_v57 }
 0x1c4   : > { %3842 = vmatpush1.bf16.msra.mxu0 %v12903_v58  ;;  %v12969_v58 = vld [vmem:[%s14584_s7 + $0xc8] ss:$16 sps:$4 sm:$0xff]  }
 0x1c5   : > { %3883 = vmatpush1.bf16.msra.mxu1 %v12906_v59  ;;  %3843 = vmatprep.subr.bf16.mxu0 %v12911_v60  ;;  %v12972_v59 = vld [vmem:[%s14584_s7 + $0x2c8] ss:$16 sps:$4 sm:$0xff]  }
 0x1c6   : > { %3884 = vmatprep.subr.bf16.mxu1 %v12914_v61 }
 0x1c8   : > { %3844 = vmatpush1.bf16.msra.mxu0 %v12909_v62 }
 0x1c9   : > { %3885 = vmatpush1.bf16.msra.mxu1 %v12912_v63  ;;  %3845 = vmatprep.subr.bf16.mxu0 %v12917_v0 }
 0x1ca   : > { %3886 = vmatprep.subr.bf16.mxu1 %v12920_v1 }
 0x1cc   : > { %3846 = vmatpush1.bf16.msra.mxu0 %v12915_v2 }
 0x1cd   : > { %3887 = vmatpush1.bf16.msra.mxu1 %v12918_v3  ;;  %3847 = vmatprep.subr.bf16.mxu0 %v12923_v6  ;;  %v12977_v6 = vld [vmem:[%s14584_s7 + $0xec] ss:$16 sps:$4 sm:$0xff]  }
 0x1ce   : > { %3888 = vmatprep.subr.bf16.mxu1 %v12926_v7  ;;  %v12980_v7 = vld [vmem:[%s14584_s7 + $0x2ec] ss:$16 sps:$4 sm:$0xff]  }
 0x1d0   : > { %3848 = vmatpush1.bf16.msra.mxu0 %v12921_v8  ;;  %v12975_v8 = vld [vmem:[%s14584_s7 + $0xe8] ss:$16 sps:$4 sm:$0xff]  }
 0x1d1   : > { %3889 = vmatpush1.bf16.msra.mxu1 %v12924_v9  ;;  %3849 = vmatprep.subr.bf16.mxu0 %v12929_v12  ;;  %v12978_v9 = vld [vmem:[%s14584_s7 + $0x2e8] ss:$16 sps:$4 sm:$0xff]   ;;  %v12983_v12 = vld [vmem:[%s14584_s7 + $0x10c] ss:$16 sps:$4 sm:$0xff]  }
 0x1d2   : > { %3890 = vmatprep.subr.bf16.mxu1 %v12932_v13  ;;  %v12986_v13 = vld [vmem:[%s14584_s7 + $0x30c] ss:$16 sps:$4 sm:$0xff]  }
 0x1d4   : > { %3850 = vmatpush1.bf16.msra.mxu0 %v12927_v14  ;;  %v12981_v14 = vld [vmem:[%s14584_s7 + $0x108] ss:$16 sps:$4 sm:$0xff]  }
 0x1d5   : > { %3891 = vmatpush1.bf16.msra.mxu1 %v12930_v15  ;;  %3901 = vmatprep.subr.bf16.mxu0 %v12935_v16  ;;  %v12984_v15 = vld [vmem:[%s14584_s7 + $0x308] ss:$16 sps:$4 sm:$0xff]   ;;  %v12989_v16 = vld [vmem:[%s14584_s7 + $0x12c] ss:$16 sps:$4 sm:$0xff]  }
 0x1d6   : > { %3942 = vmatprep.subr.bf16.mxu1 %v12938_v17  ;;  %v12992_v17 = vld [vmem:[%s14584_s7 + $0x32c] ss:$16 sps:$4 sm:$0xff]  }
 0x1d7   : > { %3852 = vmatmul.mubr.bf16.vlgmr.msra.gmra.mrb[20].mxu0 %v14782_v22 }
 0x1d8   : > { %3893 = vmatmul.mubr.bf16.vlgmr.msra.gmra.mrb[20].mxu1 %v14786_v23  ;;  %3902 = vmatpush1.bf16.msra.mxu0 %v12933_v18  ;;  %v12987_v18 = vld [vmem:[%s14584_s7 + $0x128] ss:$16 sps:$4 sm:$0xff]  }
 0x1d9   : > { %3943 = vmatpush1.bf16.msra.mxu1 %v12936_v19  ;;  %3903 = vmatprep.subr.bf16.mxu0 %v12941_v20  ;;  %v12990_v19 = vld [vmem:[%s14584_s7 + $0x328] ss:$16 sps:$4 sm:$0xff]   ;;  %v12995_v20 = vld [vmem:[%s14584_s7 + $0x14c] ss:$16 sps:$4 sm:$0xff]  }
 0x1da   : > { %3944 = vmatprep.subr.bf16.mxu1 %v12944_v21  ;;  %3933 = vmatprep.mubr.bf16.mxu0 %v14654_v48  ;;  %v12998_v21 = vld [vmem:[%s14584_s7 + $0x34c] ss:$16 sps:$4 sm:$0xff]  }
 0x1db   : > { %3974 = vmatprep.mubr.bf16.mxu1 %v14659_v52 }
 0x1dc   : > { %3904 = vmatpush1.bf16.msra.mxu0 %v12939_v24  ;;  %v12993_v24 = vld [vmem:[%s14584_s7 + $0x148] ss:$16 sps:$4 sm:$0xff]  }
 0x1dd   : > { %3945 = vmatpush1.bf16.msra.mxu1 %v12942_v25  ;;  %3905 = vmatprep.subr.bf16.mxu0 %v12947_v27  ;;  %v12996_v25 = vld [vmem:[%s14584_s7 + $0x348] ss:$16 sps:$4 sm:$0xff]   ;;  %v13001_v27 = vld [vmem:[%s14584_s7 + $0x16c] ss:$16 sps:$4 sm:$0xff]  }
 0x1de   : > { %3946 = vmatprep.subr.bf16.mxu1 %v12950_v30  ;;  %v13004_v30 = vld [vmem:[%s14584_s7 + $0x36c] ss:$16 sps:$4 sm:$0xff]  }
 0x1e0   : > { %3906 = vmatpush1.bf16.msra.mxu0 %v12945_v46  ;;  %v12999_v46 = vld [vmem:[%s14584_s7 + $0x168] ss:$16 sps:$4 sm:$0xff]  }
 0x1e1   : > { %3947 = vmatpush1.bf16.msra.mxu1 %v12948_v31  ;;  %3907 = vmatprep.subr.bf16.mxu0 %v12953_v50  ;;  %v13002_v31 = vld [vmem:[%s14584_s7 + $0x368] ss:$16 sps:$4 sm:$0xff]   ;;  %v13007_v50 = vld [vmem:[%s14584_s7 + $0x18c] ss:$16 sps:$4 sm:$0xff]  }
 0x1e2   : > { %3948 = vmatprep.subr.bf16.mxu1 %v12956_v33  ;;  %v13010_v33 = vld [vmem:[%s14584_s7 + $0x38c] ss:$16 sps:$4 sm:$0xff]  }
 0x1e4   : > { %3908 = vmatpush1.bf16.msra.mxu0 %v12951_v34  ;;  %v13005_v34 = vld [vmem:[%s14584_s7 + $0x188] ss:$16 sps:$4 sm:$0xff]  }
 0x1e5   : > { %3949 = vmatpush1.bf16.msra.mxu1 %v12954_v35  ;;  %3909 = vmatprep.subr.bf16.mxu0 %v12959_v36  ;;  %v13008_v35 = vld [vmem:[%s14584_s7 + $0x388] ss:$16 sps:$4 sm:$0xff]   ;;  %v13013_v36 = vld [vmem:[%s14584_s7 + $0x1ac] ss:$16 sps:$4 sm:$0xff]  }
 0x1e6   : > { %3950 = vmatprep.subr.bf16.mxu1 %v12962_v37  ;;  %v13016_v37 = vld [vmem:[%s14584_s7 + $0x3ac] ss:$16 sps:$4 sm:$0xff]  }
 0x1e8   : > { %3910 = vmatpush1.bf16.msra.mxu0 %v12957_v38  ;;  %v13011_v38 = vld [vmem:[%s14584_s7 + $0x1a8] ss:$16 sps:$4 sm:$0xff]  }
 0x1e9   : > { %3951 = vmatpush1.bf16.msra.mxu1 %v12960_v41  ;;  %3911 = vmatprep.subr.bf16.mxu0 %v12965_v42  ;;  %v13014_v41 = vld [vmem:[%s14584_s7 + $0x3a8] ss:$16 sps:$4 sm:$0xff]   ;;  %v13019_v42 = vld [vmem:[%s14584_s7 + $0x1cc] ss:$16 sps:$4 sm:$0xff]  }
 0x1ea   : > { %3952 = vmatprep.subr.bf16.mxu1 %v12968_v43  ;;  %v2319_v56 = vpop.f32.mrb[8].mxu0  ;;  %v13022_v43 = vld [vmem:[%s14584_s7 + $0x3cc] ss:$16 sps:$4 sm:$0xff]  }
 0x1eb   : > { %v2360_v57 = vpop.f32.mrb[8].mxu1  ;;  %v2321_v61 = vpop.f32.mrb[9].mxu0 }
 0x1ec   : > { %v15110_v60 = vadd.f32 %v2360_v57, %v2319_v56  ;;  %v2362_v62 = vpop.f32.mrb[9].mxu1  ;;  %v2323_v0 = vpop.f32.mrb[10].mxu0  ;;  %3912 = vmatpush1.bf16.msra.mxu0 %v12963_v47  ;;  %v13017_v47 = vld [vmem:[%s14584_s7 + $0x1c8] ss:$16 sps:$4 sm:$0xff]  }
 0x1ed   : > { %v15112_v63 = vadd.f32 %v2362_v62, %v2321_v61  ;;  %v2364_v1 = vpop.f32.mrb[10].mxu1  ;;  %3953 = vmatpush1.bf16.msra.mxu1 %v12966_v49  ;;  %v2324_v2 = vpop.f32.mrb[11].mxu0  ;;  %3913 = vmatprep.subr.bf16.mxu0 %v12971_v51  ;;  %v13020_v49 = vld [vmem:[%s14584_s7 + $0x3c8] ss:$16 sps:$4 sm:$0xff]   ;;  %v13025_v51 = vld [vmem:[%s14584_s7 + $0x1ec] ss:$16 sps:$4 sm:$0xff]  }
 0x1ee   : > { %v2365_v3 = vpop.f32.mrb[11].mxu1  ;;  %3954 = vmatprep.subr.bf16.mxu1 %v12974_v53  ;;  %v13028_v53 = vld [vmem:[%s14584_s7 + $0x3ec] ss:$16 sps:$4 sm:$0xff]   ;;  %v13023_v56 = vld [vmem:[%s14584_s7 + $0x1e8] ss:$16 sps:$4 sm:$0xff]  }
 0x1ef   : > { %v13026_v57 = vld [vmem:[%s14584_s7 + $0x3e8] ss:$16 sps:$4 sm:$0xff]   ;;  %v13037_v0 = vld [vmem:[%s14584_s7 + $0x42c] ss:$16 sps:$4 sm:$0xff]  }
 0x1f0   : > { %3914 = vmatpush1.bf16.msra.mxu0 %v12969_v58  ;;  %v13031_v58 = vld [vmem:[%s14584_s7 + $0x40c] ss:$16 sps:$4 sm:$0xff]   ;;  %v13029_v61 = vld [vmem:[%s14584_s7 + $0x408] ss:$16 sps:$4 sm:$0xff]  }
 0x1f1   : > { %3955 = vmatpush1.bf16.msra.mxu1 %v12972_v59  ;;  %3915 = vmatprep.subr.bf16.mxu0 %v12977_v6  ;;  %v13034_v59 = vld [vmem:[%s14584_s7 + $0x60c] ss:$16 sps:$4 sm:$0xff]   ;;  %v13032_v62 = vld [vmem:[%s14584_s7 + $0x608] ss:$16 sps:$4 sm:$0xff]  }
 0x1f2   : > { %3956 = vmatprep.subr.bf16.mxu1 %v12980_v7  ;;  %v13040_v1 = vld [vmem:[%s14584_s7 + $0x62c] ss:$16 sps:$4 sm:$0xff]   ;;  %v13035_v2 = vld [vmem:[%s14584_s7 + $0x428] ss:$16 sps:$4 sm:$0xff]  }
 0x1f3   : > { %v13038_v3 = vld [vmem:[%s14584_s7 + $0x628] ss:$16 sps:$4 sm:$0xff]   ;;  %v13043_v6 = vld [vmem:[%s14584_s7 + $0x44c] ss:$16 sps:$4 sm:$0xff]  }
 0x1f4   : > { %3916 = vmatpush1.bf16.msra.mxu0 %v12975_v8  ;;  %v13046_v7 = vld [vmem:[%s14584_s7 + $0x64c] ss:$16 sps:$4 sm:$0xff]   ;;  %v13041_v8 = vld [vmem:[%s14584_s7 + $0x448] ss:$16 sps:$4 sm:$0xff]  }
 0x1f5   : > { %3957 = vmatpush1.bf16.msra.mxu1 %v12978_v9  ;;  %3917 = vmatprep.subr.bf16.mxu0 %v12983_v12  ;;  %v13044_v9 = vld [vmem:[%s14584_s7 + $0x648] ss:$16 sps:$4 sm:$0xff]   ;;  %v13049_v12 = vld [vmem:[%s14584_s7 + $0x46c] ss:$16 sps:$4 sm:$0xff]  }
 0x1f6   : > { %3958 = vmatprep.subr.bf16.mxu1 %v12986_v13  ;;  %v13052_v13 = vld [vmem:[%s14584_s7 + $0x66c] ss:$16 sps:$4 sm:$0xff]  }
 0x1f8   : > { %3918 = vmatpush1.bf16.msra.mxu0 %v12981_v14  ;;  %v13047_v14 = vld [vmem:[%s14584_s7 + $0x468] ss:$16 sps:$4 sm:$0xff]  }
 0x1f9   : > { %3959 = vmatpush1.bf16.msra.mxu1 %v12984_v15  ;;  %3919 = vmatprep.subr.bf16.mxu0 %v12989_v16  ;;  %v13050_v15 = vld [vmem:[%s14584_s7 + $0x668] ss:$16 sps:$4 sm:$0xff]   ;;  %v13055_v16 = vld [vmem:[%s14584_s7 + $0x48c] ss:$16 sps:$4 sm:$0xff]  }
 0x1fa   : > { %3960 = vmatprep.subr.bf16.mxu1 %v12992_v17  ;;  %v13058_v17 = vld [vmem:[%s14584_s7 + $0x68c] ss:$16 sps:$4 sm:$0xff]  }
 0x1fc   : > { %3920 = vmatpush1.bf16.msra.mxu0 %v12987_v18  ;;  %v13053_v18 = vld [vmem:[%s14584_s7 + $0x488] ss:$16 sps:$4 sm:$0xff]  }
 0x1fd   : > { %3961 = vmatpush1.bf16.msra.mxu1 %v12990_v19  ;;  %3921 = vmatprep.subr.bf16.mxu0 %v12995_v20  ;;  %v13056_v19 = vld [vmem:[%s14584_s7 + $0x688] ss:$16 sps:$4 sm:$0xff]   ;;  %v13061_v20 = vld [vmem:[%s14584_s7 + $0x4ac] ss:$16 sps:$4 sm:$0xff]  }
 0x1fe   : > { %3962 = vmatprep.subr.bf16.mxu1 %v12998_v21  ;;  %v13064_v21 = vld [vmem:[%s14584_s7 + $0x6ac] ss:$16 sps:$4 sm:$0xff]  }
 0x200   : > { %3922 = vmatpush1.bf16.msra.mxu0 %v12993_v24  ;;  %v13059_v24 = vld [vmem:[%s14584_s7 + $0x4a8] ss:$16 sps:$4 sm:$0xff]  }
 0x201   : > { %3963 = vmatpush1.bf16.msra.mxu1 %v12996_v25  ;;  %3923 = vmatprep.subr.bf16.mxu0 %v13001_v27  ;;  %v13062_v25 = vld [vmem:[%s14584_s7 + $0x6a8] ss:$16 sps:$4 sm:$0xff]   ;;  %v13067_v27 = vld [vmem:[%s14584_s7 + $0x4cc] ss:$16 sps:$4 sm:$0xff]  }
 0x202   : > { %3964 = vmatprep.subr.bf16.mxu1 %v13004_v30  ;;  %v13070_v30 = vld [vmem:[%s14584_s7 + $0x6cc] ss:$16 sps:$4 sm:$0xff]  }
 0x204   : > { %3924 = vmatpush1.bf16.msra.mxu0 %v12999_v46 }
 0x205   : > { %3965 = vmatpush1.bf16.msra.mxu1 %v13002_v31  ;;  %3925 = vmatprep.subr.bf16.mxu0 %v13007_v50  ;;  %v13065_v50 = vld [vmem:[%s14584_s7 + $0x4c8] ss:$16 sps:$4 sm:$0xff]  }
 0x206   : > { %3966 = vmatprep.subr.bf16.mxu1 %v13010_v33  ;;  %v13068_v33 = vld [vmem:[%s14584_s7 + $0x6c8] ss:$16 sps:$4 sm:$0xff]  }
 0x208   : > { %3926 = vmatpush1.bf16.msra.mxu0 %v13005_v34 }
 0x209   : > { %3967 = vmatpush1.bf16.msra.mxu1 %v13008_v35  ;;  %3927 = vmatprep.subr.bf16.mxu0 %v13013_v36 }
 0x20a   : > { %3968 = vmatprep.subr.bf16.mxu1 %v13016_v37 }
 0x20c   : > { %3928 = vmatpush1.bf16.msra.mxu0 %v13011_v38 }
 0x20d   : > { %3969 = vmatpush1.bf16.msra.mxu1 %v13014_v41  ;;  %3929 = vmatprep.subr.bf16.mxu0 %v13019_v42 }
 0x20e   : > { %3970 = vmatprep.subr.bf16.mxu1 %v13022_v43 }
 0x210   : > { %3930 = vmatpush1.bf16.msra.mxu0 %v13017_v47 }
 0x211   : > { %3971 = vmatpush1.bf16.msra.mxu1 %v13020_v49  ;;  %3931 = vmatprep.subr.bf16.mxu0 %v13025_v51  ;;  %v13076_v49 = vld [vmem:[%s14584_s7 + $0x6ec] ss:$16 sps:$4 sm:$0xff]  }
 0x212   : > { %3972 = vmatprep.subr.bf16.mxu1 %v13028_v53  ;;  %v13074_v53 = vld [vmem:[%s14584_s7 + $0x6e8] ss:$16 sps:$4 sm:$0xff]  }
 0x214   : > { %3932 = vmatpush1.bf16.msra.mxu0 %v13023_v56  ;;  %v13079_v56 = vld [vmem:[%s14584_s7 + $0x50c] ss:$16 sps:$4 sm:$0xff]  }
 0x215   : > { %3973 = vmatpush1.bf16.msra.mxu1 %v13026_v57  ;;  %3983 = vmatprep.subr.bf16.mxu0 %v13031_v58  ;;  %v13082_v57 = vld [vmem:[%s14584_s7 + $0x70c] ss:$16 sps:$4 sm:$0xff]   ;;  %v13077_v58 = vld [vmem:[%s14584_s7 + $0x508] ss:$16 sps:$4 sm:$0xff]  }
 0x216   : > { %4024 = vmatprep.subr.bf16.mxu1 %v13034_v59  ;;  %v13080_v59 = vld [vmem:[%s14584_s7 + $0x708] ss:$16 sps:$4 sm:$0xff]  }
 0x217   : > { %3934 = vmatmul.mubr.bf16.vlgmr.msra.gmra.mrb[24].mxu0 %v14682_v4 }
 0x218   : > { %3975 = vmatmul.mubr.bf16.vlgmr.msra.gmra.mrb[24].mxu1 %v14684_v5  ;;  %3984 = vmatpush1.bf16.msra.mxu0 %v13029_v61  ;;  %v13085_v61 = vld [vmem:[%s14584_s7 + $0x52c] ss:$16 sps:$4 sm:$0xff]  }
 0x219   : > { %4025 = vmatpush1.bf16.msra.mxu1 %v13032_v62  ;;  %3985 = vmatprep.subr.bf16.mxu0 %v13037_v0  ;;  %v13088_v62 = vld [vmem:[%s14584_s7 + $0x72c] ss:$16 sps:$4 sm:$0xff]   ;;  %v13083_v0 = vld [vmem:[%s14584_s7 + $0x528] ss:$16 sps:$4 sm:$0xff]  }
 0x21a   : > { %4026 = vmatprep.subr.bf16.mxu1 %v13040_v1  ;;  %4015 = vmatprep.mubr.bf16.mxu0 %v14731_v39  ;;  %v13086_v1 = vld [vmem:[%s14584_s7 + $0x728] ss:$16 sps:$4 sm:$0xff]  }
 0x21b   : > { %4056 = vmatprep.mubr.bf16.mxu1 %v14735_v40 }
 0x21c   : > { %3986 = vmatpush1.bf16.msra.mxu0 %v13035_v2  ;;  %v13091_v2 = vld [vmem:[%s14584_s7 + $0x54c] ss:$16 sps:$4 sm:$0xff]  }
 0x21d   : > { %4027 = vmatpush1.bf16.msra.mxu1 %v13038_v3  ;;  %3987 = vmatprep.subr.bf16.mxu0 %v13043_v6  ;;  %v13094_v3 = vld [vmem:[%s14584_s7 + $0x74c] ss:$16 sps:$4 sm:$0xff]   ;;  %v13089_v6 = vld [vmem:[%s14584_s7 + $0x548] ss:$16 sps:$4 sm:$0xff]  }
 0x21e   : > { %4028 = vmatprep.subr.bf16.mxu1 %v13046_v7  ;;  %v13092_v7 = vld [vmem:[%s14584_s7 + $0x748] ss:$16 sps:$4 sm:$0xff]  }
 0x220   : > { %3988 = vmatpush1.bf16.msra.mxu0 %v13041_v8  ;;  %v13097_v8 = vld [vmem:[%s14584_s7 + $0x56c] ss:$16 sps:$4 sm:$0xff]  }
 0x221   : > { %4029 = vmatpush1.bf16.msra.mxu1 %v13044_v9  ;;  %3989 = vmatprep.subr.bf16.mxu0 %v13049_v12  ;;  %v13100_v9 = vld [vmem:[%s14584_s7 + $0x76c] ss:$16 sps:$4 sm:$0xff]   ;;  %v13095_v12 = vld [vmem:[%s14584_s7 + $0x568] ss:$16 sps:$4 sm:$0xff]  }
 0x222   : > { %4030 = vmatprep.subr.bf16.mxu1 %v13052_v13  ;;  %v13098_v13 = vld [vmem:[%s14584_s7 + $0x768] ss:$16 sps:$4 sm:$0xff]  }
 0x224   : > { %3990 = vmatpush1.bf16.msra.mxu0 %v13047_v14  ;;  %v13103_v14 = vld [vmem:[%s14584_s7 + $0x58c] ss:$16 sps:$4 sm:$0xff]  }
 0x225   : > { %4031 = vmatpush1.bf16.msra.mxu1 %v13050_v15  ;;  %3991 = vmatprep.subr.bf16.mxu0 %v13055_v16  ;;  %v13106_v15 = vld [vmem:[%s14584_s7 + $0x78c] ss:$16 sps:$4 sm:$0xff]   ;;  %v13101_v16 = vld [vmem:[%s14584_s7 + $0x588] ss:$16 sps:$4 sm:$0xff]  }
 0x226   : > { %4032 = vmatprep.subr.bf16.mxu1 %v13058_v17  ;;  %v13104_v17 = vld [vmem:[%s14584_s7 + $0x788] ss:$16 sps:$4 sm:$0xff]  }
 0x228   : > { %3992 = vmatpush1.bf16.msra.mxu0 %v13053_v18  ;;  %v13109_v18 = vld [vmem:[%s14584_s7 + $0x5ac] ss:$16 sps:$4 sm:$0xff]  }
 0x229   : > { %4033 = vmatpush1.bf16.msra.mxu1 %v13056_v19  ;;  %3993 = vmatprep.subr.bf16.mxu0 %v13061_v20  ;;  %v13112_v19 = vld [vmem:[%s14584_s7 + $0x7ac] ss:$16 sps:$4 sm:$0xff]   ;;  %v13107_v20 = vld [vmem:[%s14584_s7 + $0x5a8] ss:$16 sps:$4 sm:$0xff]  }
 0x22a   : > { %4034 = vmatprep.subr.bf16.mxu1 %v13064_v21  ;;  %v2401_v46 = vpop.f32.mrb[12].mxu0  ;;  %v13110_v21 = vld [vmem:[%s14584_s7 + $0x7a8] ss:$16 sps:$4 sm:$0xff]  }
 0x22b   : > { %v2442_v31 = vpop.f32.mrb[12].mxu1  ;;  %v2402_v34 = vadd.f32 %v2401_v46, %v15110_v60  ;;  %v2403_v35 = vpop.f32.mrb[13].mxu0  ;;  %v13073_v60 = vld [vmem:[%s14584_s7 + $0x4ec] ss:$16 sps:$4 sm:$0xff]  }
 0x22c   : > { %v2444_v36 = vpop.f32.mrb[13].mxu1  ;;  %v2404_v37 = vadd.f32 %v2403_v35, %v15112_v63  ;;  %v2405_v38 = vpop.f32.mrb[14].mxu0  ;;  %3994 = vmatpush1.bf16.msra.mxu0 %v13059_v24  ;;  %v13071_v63 = vld [vmem:[%s14584_s7 + $0x4e8] ss:$16 sps:$4 sm:$0xff]   ;;  %v13115_v24 = vld [vmem:[%s14584_s7 + $0x5cc] ss:$16 sps:$4 sm:$0xff]  }
 0x22d   : > { %v2446_v41 = vpop.f32.mrb[14].mxu1  ;;  %4035 = vmatpush1.bf16.msra.mxu1 %v13062_v25  ;;  %v15184_v42 = vadd.f32 %v2442_v31, %v2402_v34  ;;  %v2406_v43 = vpop.f32.mrb[15].mxu0  ;;  %3995 = vmatprep.subr.bf16.mxu0 %v13067_v27  ;;  %v13118_v25 = vld [vmem:[%s14584_s7 + $0x7cc] ss:$16 sps:$4 sm:$0xff]   ;;  %v13113_v27 = vld [vmem:[%s14584_s7 + $0x5c8] ss:$16 sps:$4 sm:$0xff]  }
 0x22e   : > { %v2447_v47 = vpop.f32.mrb[15].mxu1  ;;  %4036 = vmatprep.subr.bf16.mxu1 %v13070_v30  ;;  %v15188_v51 = vadd.f32 %v2444_v36, %v2404_v37  ;;  %v13116_v30 = vld [vmem:[%s14584_s7 + $0x7c8] ss:$16 sps:$4 sm:$0xff]   ;;  %v13121_v46 = vld [vmem:[%s14584_s7 + $0x5ec] ss:$16 sps:$4 sm:$0xff]   ;;  %v4323_v43 = vrot.slane %v14654_v48, 1 }
 0x22f   : > { %v13124_v31 = vld [vmem:[%s14584_s7 + $0x7ec] ss:$16 sps:$4 sm:$0xff]   ;;  %v13127_v34 = vld [vmem:[%s14584_s7 + $0x1004] ss:$16 sps:$4 sm:$0xff]   ;;  %v13125_v36 = vld [vmem:[%s14584_s7 + $0x1000] ss:$16 sps:$4 sm:$0xff]  }
 0x230   : > { %3996 = vmatpush1.bf16.msra.mxu0 %v13065_v50  ;;  %v13119_v50 = vld [vmem:[%s14584_s7 + $0x5e8] ss:$16 sps:$4 sm:$0xff]   ;;  %v13130_v35 = vld [vmem:[%s14584_s7 + $0x1204] ss:$16 sps:$4 sm:$0xff]   ;;  %v13128_v37 = vld [vmem:[%s14584_s7 + $0x1200] ss:$16 sps:$4 sm:$0xff]  }
 0x231   : > { %4037 = vmatpush1.bf16.msra.mxu1 %v13068_v33  ;;  %3997 = vmatprep.subr.bf16.mxu0 %v13073_v60  ;;  %v13122_v33 = vld [vmem:[%s14584_s7 + $0x7e8] ss:$16 sps:$4 sm:$0xff]   ;;  %v13133_v38 = vld [vmem:[%s14584_s7 + $0x1024] ss:$16 sps:$4 sm:$0xff]   ;;  %v4325_v47 = vrot.slane %v14659_v52, 1 }
 0x232   : > { %4038 = vmatprep.subr.bf16.mxu1 %v13076_v49  ;;  %v13136_v41 = vld [vmem:[%s14584_s7 + $0x1224] ss:$16 sps:$4 sm:$0xff]   ;;  %v13131_v60 = vld [vmem:[%s14584_s7 + $0x1020] ss:$16 sps:$4 sm:$0xff]  }
 0x233   : > { %v13134_v49 = vld [vmem:[%s14584_s7 + $0x1220] ss:$16 sps:$4 sm:$0xff]  }
 0x234   : > { %3998 = vmatpush1.bf16.msra.mxu0 %v13071_v63  ;;  %v13139_v63 = vld [vmem:[%s14584_s7 + $0x1044] ss:$16 sps:$4 sm:$0xff]  }
 0x235   : > { %4039 = vmatpush1.bf16.msra.mxu1 %v13074_v53  ;;  %3999 = vmatprep.subr.bf16.mxu0 %v13079_v56  ;;  %v13142_v53 = vld [vmem:[%s14584_s7 + $0x1244] ss:$16 sps:$4 sm:$0xff]   ;;  %v13137_v56 = vld [vmem:[%s14584_s7 + $0x1040] ss:$16 sps:$4 sm:$0xff]  }
 0x236   : > { %4040 = vmatprep.subr.bf16.mxu1 %v13082_v57  ;;  %v13140_v57 = vld [vmem:[%s14584_s7 + $0x1240] ss:$16 sps:$4 sm:$0xff]  }
 0x238   : > { %4000 = vmatpush1.bf16.msra.mxu0 %v13077_v58  ;;  %v13145_v58 = vld [vmem:[%s14584_s7 + $0x1064] ss:$16 sps:$4 sm:$0xff]  }
 0x239   : > { %4041 = vmatpush1.bf16.msra.mxu1 %v13080_v59  ;;  %4001 = vmatprep.subr.bf16.mxu0 %v13085_v61  ;;  %v13148_v59 = vld [vmem:[%s14584_s7 + $0x1264] ss:$16 sps:$4 sm:$0xff]   ;;  %v13143_v61 = vld [vmem:[%s14584_s7 + $0x1060] ss:$16 sps:$4 sm:$0xff]  }
 0x23a   : > { %4042 = vmatprep.subr.bf16.mxu1 %v13088_v62  ;;  %v13146_v62 = vld [vmem:[%s14584_s7 + $0x1260] ss:$16 sps:$4 sm:$0xff]  }
 0x23c   : > { %4002 = vmatpush1.bf16.msra.mxu0 %v13083_v0  ;;  %v13151_v0 = vld [vmem:[%s14584_s7 + $0x1084] ss:$16 sps:$4 sm:$0xff]  }
 0x23d   : > { %4043 = vmatpush1.bf16.msra.mxu1 %v13086_v1  ;;  %4003 = vmatprep.subr.bf16.mxu0 %v13091_v2  ;;  %v13154_v1 = vld [vmem:[%s14584_s7 + $0x1284] ss:$16 sps:$4 sm:$0xff]   ;;  %v13149_v2 = vld [vmem:[%s14584_s7 + $0x1080] ss:$16 sps:$4 sm:$0xff]  }
 0x23e   : > { %4044 = vmatprep.subr.bf16.mxu1 %v13094_v3  ;;  %v13152_v3 = vld [vmem:[%s14584_s7 + $0x1280] ss:$16 sps:$4 sm:$0xff]  }
 0x240   : > { %4004 = vmatpush1.bf16.msra.mxu0 %v13089_v6  ;;  %v13157_v6 = vld [vmem:[%s14584_s7 + $0x10a4] ss:$16 sps:$4 sm:$0xff]  }
 0x241   : > { %4045 = vmatpush1.bf16.msra.mxu1 %v13092_v7  ;;  %4005 = vmatprep.subr.bf16.mxu0 %v13097_v8  ;;  %v13160_v7 = vld [vmem:[%s14584_s7 + $0x12a4] ss:$16 sps:$4 sm:$0xff]   ;;  %v13155_v8 = vld [vmem:[%s14584_s7 + $0x10a0] ss:$16 sps:$4 sm:$0xff]  }
 0x242   : > { %4046 = vmatprep.subr.bf16.mxu1 %v13100_v9  ;;  %v13158_v9 = vld [vmem:[%s14584_s7 + $0x12a0] ss:$16 sps:$4 sm:$0xff]  }
 0x244   : > { %4006 = vmatpush1.bf16.msra.mxu0 %v13095_v12  ;;  %v13163_v12 = vld [vmem:[%s14584_s7 + $0x10c4] ss:$16 sps:$4 sm:$0xff]  }
 0x245   : > { %4047 = vmatpush1.bf16.msra.mxu1 %v13098_v13  ;;  %4007 = vmatprep.subr.bf16.mxu0 %v13103_v14  ;;  %v13166_v13 = vld [vmem:[%s14584_s7 + $0x12c4] ss:$16 sps:$4 sm:$0xff]  }
 0x246   : > { %4048 = vmatprep.subr.bf16.mxu1 %v13106_v15 }
 0x248   : > { %4008 = vmatpush1.bf16.msra.mxu0 %v13101_v16  ;;  %v13161_v16 = vld [vmem:[%s14584_s7 + $0x10c0] ss:$16 sps:$4 sm:$0xff]  }
 0x249   : > { %4049 = vmatpush1.bf16.msra.mxu1 %v13104_v17  ;;  %4009 = vmatprep.subr.bf16.mxu0 %v13109_v18  ;;  %v13164_v17 = vld [vmem:[%s14584_s7 + $0x12c0] ss:$16 sps:$4 sm:$0xff]  }
 0x24a   : > { %4050 = vmatprep.subr.bf16.mxu1 %v13112_v19 }
 0x24c   : > { %4010 = vmatpush1.bf16.msra.mxu0 %v13107_v20 }
 0x24d   : > { %4051 = vmatpush1.bf16.msra.mxu1 %v13110_v21  ;;  %4011 = vmatprep.subr.bf16.mxu0 %v13115_v24 }
 0x24e   : > { %4052 = vmatprep.subr.bf16.mxu1 %v13118_v25 }
 0x250   : > { %4012 = vmatpush1.bf16.msra.mxu0 %v13113_v27 }
 0x251   : > { %4053 = vmatpush1.bf16.msra.mxu1 %v13116_v30  ;;  %4013 = vmatprep.subr.bf16.mxu0 %v13121_v46 }
 0x252   : > { %4054 = vmatprep.subr.bf16.mxu1 %v13124_v31  ;;  %v13172_v31 = vld [vmem:[%s14584_s7 + $0x12e4] ss:$16 sps:$4 sm:$0xff]  }
 0x254   : > { %4014 = vmatpush1.bf16.msra.mxu0 %v13119_v50 }
 0x255   : > { %4055 = vmatpush1.bf16.msra.mxu1 %v13122_v33  ;;  %5618 = vmatprep.subr.bf16.mxu0 %v13127_v34  ;;  %v13170_v33 = vld [vmem:[%s14584_s7 + $0x12e0] ss:$16 sps:$4 sm:$0xff]   ;;  %v13175_v34 = vld [vmem:[%s14584_s7 + $0x1104] ss:$16 sps:$4 sm:$0xff]  }
 0x256   : > { %5659 = vmatprep.subr.bf16.mxu1 %v13130_v35  ;;  %v13178_v35 = vld [vmem:[%s14584_s7 + $0x1304] ss:$16 sps:$4 sm:$0xff]  }
 0x257   : > { %4016 = vmatmul.mubr.bf16.vlgmr.msra.gmra.mrb[28].mxu0 %v14782_v22 }
 0x258   : > { %4057 = vmatmul.mubr.bf16.vlgmr.msra.gmra.mrb[28].mxu1 %v14786_v23  ;;  %5619 = vmatpush1.bf16.msra.mxu0 %v13125_v36  ;;  %v13173_v36 = vld [vmem:[%s14584_s7 + $0x1100] ss:$16 sps:$4 sm:$0xff]  }
 0x259   : > { %5660 = vmatpush1.bf16.msra.mxu1 %v13128_v37  ;;  %5620 = vmatprep.subr.bf16.mxu0 %v13133_v38  ;;  %v13176_v37 = vld [vmem:[%s14584_s7 + $0x1300] ss:$16 sps:$4 sm:$0xff]   ;;  %v13181_v38 = vld [vmem:[%s14584_s7 + $0x1124] ss:$16 sps:$4 sm:$0xff]  }
 0x25a   : > { %5661 = vmatprep.subr.bf16.mxu1 %v13136_v41  ;;  %5650 = vmatprep.mubr.bf16.mxu0 %v4323_v43  ;;  %v13184_v41 = vld [vmem:[%s14584_s7 + $0x1324] ss:$16 sps:$4 sm:$0xff]  }
 0x25b   : > { %5691 = vmatprep.mubr.bf16.mxu1 %v4325_v47 }
 0x25c   : > { %5621 = vmatpush1.bf16.msra.mxu0 %v13131_v60  ;;  %v13179_v60 = vld [vmem:[%s14584_s7 + $0x1120] ss:$16 sps:$4 sm:$0xff]  }
 0x25d   : > { %5662 = vmatpush1.bf16.msra.mxu1 %v13134_v49  ;;  %5622 = vmatprep.subr.bf16.mxu0 %v13139_v63  ;;  %v13182_v49 = vld [vmem:[%s14584_s7 + $0x1320] ss:$16 sps:$4 sm:$0xff]   ;;  %v13187_v63 = vld [vmem:[%s14584_s7 + $0x1144] ss:$16 sps:$4 sm:$0xff]  }
 0x25e   : > { %5663 = vmatprep.subr.bf16.mxu1 %v13142_v53  ;;  %v13190_v53 = vld [vmem:[%s14584_s7 + $0x1344] ss:$16 sps:$4 sm:$0xff]  }
 0x260   : > { %5623 = vmatpush1.bf16.msra.mxu0 %v13137_v56  ;;  %v13185_v56 = vld [vmem:[%s14584_s7 + $0x1140] ss:$16 sps:$4 sm:$0xff]  }
 0x261   : > { %5664 = vmatpush1.bf16.msra.mxu1 %v13140_v57  ;;  %5624 = vmatprep.subr.bf16.mxu0 %v13145_v58  ;;  %v13188_v57 = vld [vmem:[%s14584_s7 + $0x1340] ss:$16 sps:$4 sm:$0xff]   ;;  %v13193_v58 = vld [vmem:[%s14584_s7 + $0x1164] ss:$16 sps:$4 sm:$0xff]  }
 0x262   : > { %5665 = vmatprep.subr.bf16.mxu1 %v13148_v59  ;;  %v13196_v59 = vld [vmem:[%s14584_s7 + $0x1364] ss:$16 sps:$4 sm:$0xff]  }
 0x264   : > { %5625 = vmatpush1.bf16.msra.mxu0 %v13143_v61  ;;  %v13191_v61 = vld [vmem:[%s14584_s7 + $0x1160] ss:$16 sps:$4 sm:$0xff]  }
 0x265   : > { %5666 = vmatpush1.bf16.msra.mxu1 %v13146_v62  ;;  %5626 = vmatprep.subr.bf16.mxu0 %v13151_v0  ;;  %v13194_v62 = vld [vmem:[%s14584_s7 + $0x1360] ss:$16 sps:$4 sm:$0xff]   ;;  %v13199_v0 = vld [vmem:[%s14584_s7 + $0x1184] ss:$16 sps:$4 sm:$0xff]  }
 0x266   : > { %5667 = vmatprep.subr.bf16.mxu1 %v13154_v1  ;;  %v13202_v1 = vld [vmem:[%s14584_s7 + $0x1384] ss:$16 sps:$4 sm:$0xff]  }
 0x268   : > { %5627 = vmatpush1.bf16.msra.mxu0 %v13149_v2  ;;  %v13197_v2 = vld [vmem:[%s14584_s7 + $0x1180] ss:$16 sps:$4 sm:$0xff]  }
 0x269   : > { %5668 = vmatpush1.bf16.msra.mxu1 %v13152_v3  ;;  %5628 = vmatprep.subr.bf16.mxu0 %v13157_v6  ;;  %v13200_v3 = vld [vmem:[%s14584_s7 + $0x1380] ss:$16 sps:$4 sm:$0xff]   ;;  %v13205_v6 = vld [vmem:[%s14584_s7 + $0x11a4] ss:$16 sps:$4 sm:$0xff]  }
 0x26a   : > { %5669 = vmatprep.subr.bf16.mxu1 %v13160_v7  ;;  %v3771_v14 = vpop.f32.mrb[16].mxu0  ;;  %v13208_v7 = vld [vmem:[%s14584_s7 + $0x13a4] ss:$16 sps:$4 sm:$0xff]  }
 0x26b   : > { %v3812_v15 = vpop.f32.mrb[16].mxu1  ;;  %v3772_v18 = vadd.f32 %v3771_v14, %v15038_v26  ;;  %v3773_v19 = vpop.f32.mrb[17].mxu0  ;;  %v13169_v26 = vld [vmem:[%s14584_s7 + $0x10e4] ss:$16 sps:$4 sm:$0xff]   ;;  %v13209_v14 = vld [vmem:[%s14584_s7 + $0x11c0] ss:$16 sps:$4 sm:$0xff]  }
 0x26c   : > { %v3814_v20 = vpop.f32.mrb[17].mxu1  ;;  %v3774_v21 = vadd.f32 %v3773_v19, %v15042_v32  ;;  %v3775_v24 = vpop.f32.mrb[18].mxu0  ;;  %5629 = vmatpush1.bf16.msra.mxu0 %v13155_v8  ;;  %v13167_v32 = vld [vmem:[%s14584_s7 + $0x10e0] ss:$16 sps:$4 sm:$0xff]  }
 0x26d   : > { %v3816_v25 = vpop.f32.mrb[18].mxu1  ;;  %5670 = vmatpush1.bf16.msra.mxu1 %v13158_v9  ;;  %v15262_v27 = vadd.f32 %v3812_v15, %v3772_v18  ;;  %v3776_v30 = vpop.f32.mrb[19].mxu0  ;;  %5630 = vmatprep.subr.bf16.mxu0 %v13163_v12  ;;  %v13203_v8 = vld [vmem:[%s14584_s7 + $0x11a0] ss:$16 sps:$4 sm:$0xff]   ;;  %v13211_v12 = vld [vmem:[%s14584_s7 + $0x11c4] ss:$16 sps:$4 sm:$0xff]  }
 0x26e   : > { %v3817_v46 = vpop.f32.mrb[19].mxu1  ;;  %5671 = vmatprep.subr.bf16.mxu1 %v13166_v13  ;;  %v15266_v50 = vadd.f32 %v3814_v20, %v3774_v21  ;;  %v13206_v9 = vld [vmem:[%s14584_s7 + $0x13a0] ss:$16 sps:$4 sm:$0xff]   ;;  %v13214_v13 = vld [vmem:[%s14584_s7 + $0x13c4] ss:$16 sps:$4 sm:$0xff]   ;;  %v4322_v30 = vrot.slane %v14682_v4, 1 }
 0x26f   : > { %v13212_v15 = vld [vmem:[%s14584_s7 + $0x13c0] ss:$16 sps:$4 sm:$0xff]   ;;  %v13223_v20 = vld [vmem:[%s14584_s7 + $0x1404] ss:$16 sps:$4 sm:$0xff]   ;;  %v4324_v46 = vrot.slane %v14684_v5, 1 }
 0x270   : > { %5631 = vmatpush1.bf16.msra.mxu0 %v13161_v16  ;;  %v13217_v16 = vld [vmem:[%s14584_s7 + $0x11e4] ss:$16 sps:$4 sm:$0xff]   ;;  %v13215_v18 = vld [vmem:[%s14584_s7 + $0x11e0] ss:$16 sps:$4 sm:$0xff]  }
 0x271   : > { %5672 = vmatpush1.bf16.msra.mxu1 %v13164_v17  ;;  %5632 = vmatprep.subr.bf16.mxu0 %v13169_v26  ;;  %v13220_v17 = vld [vmem:[%s14584_s7 + $0x13e4] ss:$16 sps:$4 sm:$0xff]   ;;  %v13218_v19 = vld [vmem:[%s14584_s7 + $0x13e0] ss:$16 sps:$4 sm:$0xff]  }
 0x272   : > { %5673 = vmatprep.subr.bf16.mxu1 %v13172_v31  ;;  %v13226_v21 = vld [vmem:[%s14584_s7 + $0x1604] ss:$16 sps:$4 sm:$0xff]   ;;  %v13221_v24 = vld [vmem:[%s14584_s7 + $0x1400] ss:$16 sps:$4 sm:$0xff]  }
 0x273   : > { %v13224_v25 = vld [vmem:[%s14584_s7 + $0x1600] ss:$16 sps:$4 sm:$0xff]   ;;  %v13229_v26 = vld [vmem:[%s14584_s7 + $0x1424] ss:$16 sps:$4 sm:$0xff]  }
 0x274   : > { %5633 = vmatpush1.bf16.msra.mxu0 %v13167_v32  ;;  %v13232_v31 = vld [vmem:[%s14584_s7 + $0x1624] ss:$16 sps:$4 sm:$0xff]   ;;  %v4327_v32 = vrot.slane %v14731_v39, 1 }
 0x275   : > { %5674 = vmatpush1.bf16.msra.mxu1 %v13170_v33  ;;  %5634 = vmatprep.subr.bf16.mxu0 %v13175_v34  ;;  %v4329_v33 = vrot.slane %v14735_v40, 1  ;;  %v13227_v34 = vld [vmem:[%s14584_s7 + $0x1420] ss:$16 sps:$4 sm:$0xff]  }
 0x276   : > { %5675 = vmatprep.subr.bf16.mxu1 %v13178_v35  ;;  %v13230_v35 = vld [vmem:[%s14584_s7 + $0x1620] ss:$16 sps:$4 sm:$0xff]  }
 0x278   : > { %5635 = vmatpush1.bf16.msra.mxu0 %v13173_v36  ;;  %v13235_v36 = vld [vmem:[%s14584_s7 + $0x1444] ss:$16 sps:$4 sm:$0xff]  }
 0x279   : > { %5676 = vmatpush1.bf16.msra.mxu1 %v13176_v37  ;;  %5636 = vmatprep.subr.bf16.mxu0 %v13181_v38  ;;  %v13238_v37 = vld [vmem:[%s14584_s7 + $0x1644] ss:$16 sps:$4 sm:$0xff]   ;;  %v13233_v38 = vld [vmem:[%s14584_s7 + $0x1440] ss:$16 sps:$4 sm:$0xff]  }
 0x27a   : > { %5677 = vmatprep.subr.bf16.mxu1 %v13184_v41  ;;  %v13236_v41 = vld [vmem:[%s14584_s7 + $0x1640] ss:$16 sps:$4 sm:$0xff]  }
 0x27c   : > { %5637 = vmatpush1.bf16.msra.mxu0 %v13179_v60  ;;  %v13241_v60 = vld [vmem:[%s14584_s7 + $0x1464] ss:$16 sps:$4 sm:$0xff]  }
 0x27d   : > { %5678 = vmatpush1.bf16.msra.mxu1 %v13182_v49  ;;  %5638 = vmatprep.subr.bf16.mxu0 %v13187_v63  ;;  %v13244_v49 = vld [vmem:[%s14584_s7 + $0x1664] ss:$16 sps:$4 sm:$0xff]   ;;  %v13239_v63 = vld [vmem:[%s14584_s7 + $0x1460] ss:$16 sps:$4 sm:$0xff]  }
 0x27e   : > { %5679 = vmatprep.subr.bf16.mxu1 %v13190_v53  ;;  %v13242_v53 = vld [vmem:[%s14584_s7 + $0x1660] ss:$16 sps:$4 sm:$0xff]  }
 0x280   : > { %5639 = vmatpush1.bf16.msra.mxu0 %v13185_v56  ;;  %v13247_v56 = vld [vmem:[%s14584_s7 + $0x1484] ss:$16 sps:$4 sm:$0xff]  }
 0x281   : > { %5680 = vmatpush1.bf16.msra.mxu1 %v13188_v57  ;;  %5640 = vmatprep.subr.bf16.mxu0 %v13193_v58  ;;  %v13250_v57 = vld [vmem:[%s14584_s7 + $0x1684] ss:$16 sps:$4 sm:$0xff]   ;;  %v13245_v58 = vld [vmem:[%s14584_s7 + $0x1480] ss:$16 sps:$4 sm:$0xff]  }
 0x282   : > { %5681 = vmatprep.subr.bf16.mxu1 %v13196_v59  ;;  %v13248_v59 = vld [vmem:[%s14584_s7 + $0x1680] ss:$16 sps:$4 sm:$0xff]  }
 0x284   : > { %5641 = vmatpush1.bf16.msra.mxu0 %v13191_v61  ;;  %v13253_v61 = vld [vmem:[%s14584_s7 + $0x14a4] ss:$16 sps:$4 sm:$0xff]  }
 0x285   : > { %5682 = vmatpush1.bf16.msra.mxu1 %v13194_v62  ;;  %5642 = vmatprep.subr.bf16.mxu0 %v13199_v0  ;;  %v13256_v62 = vld [vmem:[%s14584_s7 + $0x16a4] ss:$16 sps:$4 sm:$0xff]   ;;  %v13251_v0 = vld [vmem:[%s14584_s7 + $0x14a0] ss:$16 sps:$4 sm:$0xff]  }
 0x286   : > { %5683 = vmatprep.subr.bf16.mxu1 %v13202_v1  ;;  %v13254_v1 = vld [vmem:[%s14584_s7 + $0x16a0] ss:$16 sps:$4 sm:$0xff]  }
 0x288   : > { %5643 = vmatpush1.bf16.msra.mxu0 %v13197_v2  ;;  %v13259_v2 = vld [vmem:[%s14584_s7 + $0x14c4] ss:$16 sps:$4 sm:$0xff]  }
 0x289   : > { %5684 = vmatpush1.bf16.msra.mxu1 %v13200_v3  ;;  %5644 = vmatprep.subr.bf16.mxu0 %v13205_v6  ;;  %v13262_v3 = vld [vmem:[%s14584_s7 + $0x16c4] ss:$16 sps:$4 sm:$0xff]  }
 0x28a   : > { %5685 = vmatprep.subr.bf16.mxu1 %v13208_v7 }
 0x28c   : > { %5645 = vmatpush1.bf16.msra.mxu0 %v13203_v8  ;;  %v13257_v8 = vld [vmem:[%s14584_s7 + $0x14c0] ss:$16 sps:$4 sm:$0xff]  }
 0x28d   : > { %5686 = vmatpush1.bf16.msra.mxu1 %v13206_v9  ;;  %5646 = vmatprep.subr.bf16.mxu0 %v13211_v12  ;;  %v13260_v9 = vld [vmem:[%s14584_s7 + $0x16c0] ss:$16 sps:$4 sm:$0xff]  }
 0x28e   : > { %5687 = vmatprep.subr.bf16.mxu1 %v13214_v13 }
 0x290   : > { %5647 = vmatpush1.bf16.msra.mxu0 %v13209_v14 }
 0x291   : > { %5688 = vmatpush1.bf16.msra.mxu1 %v13212_v15  ;;  %5648 = vmatprep.subr.bf16.mxu0 %v13217_v16 }
 0x292   : > { %5689 = vmatprep.subr.bf16.mxu1 %v13220_v17 }
 0x294   : > { %5649 = vmatpush1.bf16.msra.mxu0 %v13215_v18 }
 0x295   : > { %5690 = vmatpush1.bf16.msra.mxu1 %v13218_v19  ;;  %5700 = vmatprep.subr.bf16.mxu0 %v13223_v20 }
 0x296   : > { %5741 = vmatprep.subr.bf16.mxu1 %v13226_v21  ;;  %v13268_v21 = vld [vmem:[%s14584_s7 + $0x16e4] ss:$16 sps:$4 sm:$0xff]  }
 0x297   : > { %5651 = vmatmul.mubr.bf16.vlgmr.msra.gmra.mrb[32].mxu0 %v4322_v30 }
 0x298   : > { %5692 = vmatmul.mubr.bf16.vlgmr.msra.gmra.mrb[32].mxu1 %v4324_v46  ;;  %5701 = vmatpush1.bf16.msra.mxu0 %v13221_v24 }
 0x299   : > { %5742 = vmatpush1.bf16.msra.mxu1 %v13224_v25  ;;  %5702 = vmatprep.subr.bf16.mxu0 %v13229_v26  ;;  %v13266_v25 = vld [vmem:[%s14584_s7 + $0x16e0] ss:$16 sps:$4 sm:$0xff]   ;;  %v13271_v26 = vld [vmem:[%s14584_s7 + $0x1504] ss:$16 sps:$4 sm:$0xff]  }
 0x29a   : > { %5743 = vmatprep.subr.bf16.mxu1 %v13232_v31  ;;  %5732 = vmatprep.mubr.bf16.mxu0 %v4327_v32  ;;  %v13274_v31 = vld [vmem:[%s14584_s7 + $0x1704] ss:$16 sps:$4 sm:$0xff]  }
 0x29b   : > { %5773 = vmatprep.mubr.bf16.mxu1 %v4329_v33 }
 0x29c   : > { %5703 = vmatpush1.bf16.msra.mxu0 %v13227_v34  ;;  %v13269_v34 = vld [vmem:[%s14584_s7 + $0x1500] ss:$16 sps:$4 sm:$0xff]  }
 0x29d   : > { %5744 = vmatpush1.bf16.msra.mxu1 %v13230_v35  ;;  %5704 = vmatprep.subr.bf16.mxu0 %v13235_v36  ;;  %v13272_v35 = vld [vmem:[%s14584_s7 + $0x1700] ss:$16 sps:$4 sm:$0xff]   ;;  %v13277_v36 = vld [vmem:[%s14584_s7 + $0x1524] ss:$16 sps:$4 sm:$0xff]  }
 0x29e   : > { %5745 = vmatprep.subr.bf16.mxu1 %v13238_v37  ;;  %v13280_v37 = vld [vmem:[%s14584_s7 + $0x1724] ss:$16 sps:$4 sm:$0xff]  }
 0x2a0   : > { %5705 = vmatpush1.bf16.msra.mxu0 %v13233_v38  ;;  %v13275_v38 = vld [vmem:[%s14584_s7 + $0x1520] ss:$16 sps:$4 sm:$0xff]  }
 0x2a1   : > { %5746 = vmatpush1.bf16.msra.mxu1 %v13236_v41  ;;  %5706 = vmatprep.subr.bf16.mxu0 %v13241_v60  ;;  %v13278_v41 = vld [vmem:[%s14584_s7 + $0x1720] ss:$16 sps:$4 sm:$0xff]   ;;  %v13283_v60 = vld [vmem:[%s14584_s7 + $0x1544] ss:$16 sps:$4 sm:$0xff]  }
 0x2a2   : > { %5747 = vmatprep.subr.bf16.mxu1 %v13244_v49  ;;  %v13286_v49 = vld [vmem:[%s14584_s7 + $0x1744] ss:$16 sps:$4 sm:$0xff]  }
 0x2a4   : > { %5707 = vmatpush1.bf16.msra.mxu0 %v13239_v63  ;;  %v13281_v63 = vld [vmem:[%s14584_s7 + $0x1540] ss:$16 sps:$4 sm:$0xff]  }
 0x2a5   : > { %5748 = vmatpush1.bf16.msra.mxu1 %v13242_v53  ;;  %5708 = vmatprep.subr.bf16.mxu0 %v13247_v56  ;;  %v13284_v53 = vld [vmem:[%s14584_s7 + $0x1740] ss:$16 sps:$4 sm:$0xff]   ;;  %v13289_v56 = vld [vmem:[%s14584_s7 + $0x1564] ss:$16 sps:$4 sm:$0xff]  }
 0x2a6   : > { %5749 = vmatprep.subr.bf16.mxu1 %v13250_v57  ;;  %v13292_v57 = vld [vmem:[%s14584_s7 + $0x1764] ss:$16 sps:$4 sm:$0xff]  }
 0x2a8   : > { %5709 = vmatpush1.bf16.msra.mxu0 %v13245_v58  ;;  %v13287_v58 = vld [vmem:[%s14584_s7 + $0x1560] ss:$16 sps:$4 sm:$0xff]  }
 0x2a9   : > { %5750 = vmatpush1.bf16.msra.mxu1 %v13248_v59  ;;  %5710 = vmatprep.subr.bf16.mxu0 %v13253_v61  ;;  %v13290_v59 = vld [vmem:[%s14584_s7 + $0x1760] ss:$16 sps:$4 sm:$0xff]   ;;  %v13295_v61 = vld [vmem:[%s14584_s7 + $0x1584] ss:$16 sps:$4 sm:$0xff]  }
 0x2aa   : > { %5751 = vmatprep.subr.bf16.mxu1 %v13256_v62  ;;  %v3853_v6 = vpop.f32.mrb[20].mxu0  ;;  %v13298_v62 = vld [vmem:[%s14584_s7 + $0x1784] ss:$16 sps:$4 sm:$0xff]  }
 0x2ab   : > { %v3894_v7 = vpop.f32.mrb[20].mxu1  ;;  %v3854_v12 = vadd.f32 %v3853_v6, %v15262_v27  ;;  %v3855_v13 = vpop.f32.mrb[21].mxu0  ;;  %v13265_v27 = vld [vmem:[%s14584_s7 + $0x14e4] ss:$16 sps:$4 sm:$0xff]   ;;  %v13299_v6 = vld [vmem:[%s14584_s7 + $0x15a0] ss:$16 sps:$4 sm:$0xff]  }
 0x2ac   : > { %v3896_v14 = vpop.f32.mrb[21].mxu1  ;;  %v3856_v15 = vadd.f32 %v3855_v13, %v15266_v50  ;;  %v3857_v16 = vpop.f32.mrb[22].mxu0  ;;  %5711 = vmatpush1.bf16.msra.mxu0 %v13251_v0  ;;  %v13263_v50 = vld [vmem:[%s14584_s7 + $0x14e0] ss:$16 sps:$4 sm:$0xff]  }
 0x2ad   : > { %v3898_v17 = vpop.f32.mrb[22].mxu1  ;;  %5752 = vmatpush1.bf16.msra.mxu1 %v13254_v1  ;;  %v15344_v18 = vadd.f32 %v3894_v7, %v3854_v12  ;;  %v3858_v19 = vpop.f32.mrb[23].mxu0  ;;  %5712 = vmatprep.subr.bf16.mxu0 %v13259_v2  ;;  %v13293_v0 = vld [vmem:[%s14584_s7 + $0x1580] ss:$16 sps:$4 sm:$0xff]   ;;  %v13301_v2 = vld [vmem:[%s14584_s7 + $0x15a4] ss:$16 sps:$4 sm:$0xff]  }
 0x2ae   : > { %v3899_v20 = vpop.f32.mrb[23].mxu1  ;;  %5753 = vmatprep.subr.bf16.mxu1 %v13262_v3  ;;  %v15348_v24 = vadd.f32 %v3896_v14, %v3856_v15  ;;  %v13296_v1 = vld [vmem:[%s14584_s7 + $0x1780] ss:$16 sps:$4 sm:$0xff]   ;;  %v13304_v3 = vld [vmem:[%s14584_s7 + $0x17a4] ss:$16 sps:$4 sm:$0xff]  }
 0x2af   : > { %v13302_v7 = vld [vmem:[%s14584_s7 + $0x17a0] ss:$16 sps:$4 sm:$0xff]   ;;  %v13313_v14 = vld [vmem:[%s14584_s7 + $0x15e4] ss:$16 sps:$4 sm:$0xff]   ;;  %v13319_v19 = vld [vmem:[%s14584_s7 + $0x100c] ss:$16 sps:$4 sm:$0xff]  }
 0x2b0   : > { %5713 = vmatpush1.bf16.msra.mxu0 %v13257_v8  ;;  %v13307_v8 = vld [vmem:[%s14584_s7 + $0x15c4] ss:$16 sps:$4 sm:$0xff]   ;;  %v13305_v12 = vld [vmem:[%s14584_s7 + $0x15c0] ss:$16 sps:$4 sm:$0xff]   ;;  %v13322_v20 = vld [vmem:[%s14584_s7 + $0x120c] ss:$16 sps:$4 sm:$0xff]  }
 0x2b1   : > { %5754 = vmatpush1.bf16.msra.mxu1 %v13260_v9  ;;  %5714 = vmatprep.subr.bf16.mxu0 %v13265_v27  ;;  %v13310_v9 = vld [vmem:[%s14584_s7 + $0x17c4] ss:$16 sps:$4 sm:$0xff]   ;;  %v13308_v13 = vld [vmem:[%s14584_s7 + $0x17c0] ss:$16 sps:$4 sm:$0xff]   ;;  %v13317_v27 = vld [vmem:[%s14584_s7 + $0x1008] ss:$16 sps:$4 sm:$0xff]  }
 0x2b2   : > { %5755 = vmatprep.subr.bf16.mxu1 %v13268_v21  ;;  %v13316_v15 = vld [vmem:[%s14584_s7 + $0x17e4] ss:$16 sps:$4 sm:$0xff]   ;;  %v13311_v16 = vld [vmem:[%s14584_s7 + $0x15e0] ss:$16 sps:$4 sm:$0xff]   ;;  %v13320_v21 = vld [vmem:[%s14584_s7 + $0x1208] ss:$16 sps:$4 sm:$0xff]  }
 0x2b3   : > { %v13314_v17 = vld [vmem:[%s14584_s7 + $0x17e0] ss:$16 sps:$4 sm:$0xff]  }
 0x2b4   : > { %5715 = vmatpush1.bf16.msra.mxu0 %v13263_v50  ;;  %v4326_v50 = vrot.slane %v14782_v22, 1 }
 0x2b5   : > { %5756 = vmatpush1.bf16.msra.mxu1 %v13266_v25  ;;  %5716 = vmatprep.subr.bf16.mxu0 %v13271_v26  ;;  %v4328_v25 = vrot.slane %v14786_v23, 1  ;;  %v13325_v26 = vld [vmem:[%s14584_s7 + $0x102c] ss:$16 sps:$4 sm:$0xff]  }
 0x2b6   : > { %5757 = vmatprep.subr.bf16.mxu1 %v13274_v31  ;;  %v13328_v31 = vld [vmem:[%s14584_s7 + $0x122c] ss:$16 sps:$4 sm:$0xff]  }
 0x2b8   : > { %5717 = vmatpush1.bf16.msra.mxu0 %v13269_v34  ;;  %v13323_v34 = vld [vmem:[%s14584_s7 + $0x1028] ss:$16 sps:$4 sm:$0xff]  }
 0x2b9   : > { %5758 = vmatpush1.bf16.msra.mxu1 %v13272_v35  ;;  %5718 = vmatprep.subr.bf16.mxu0 %v13277_v36  ;;  %v13326_v35 = vld [vmem:[%s14584_s7 + $0x1228] ss:$16 sps:$4 sm:$0xff]   ;;  %v13331_v36 = vld [vmem:[%s14584_s7 + $0x104c] ss:$16 sps:$4 sm:$0xff]  }
 0x2ba   : > { %5759 = vmatprep.subr.bf16.mxu1 %v13280_v37  ;;  %v13334_v37 = vld [vmem:[%s14584_s7 + $0x124c] ss:$16 sps:$4 sm:$0xff]  }
 0x2bc   : > { %5719 = vmatpush1.bf16.msra.mxu0 %v13275_v38  ;;  %v13329_v38 = vld [vmem:[%s14584_s7 + $0x1048] ss:$16 sps:$4 sm:$0xff]  }
 0x2bd   : > { %5760 = vmatpush1.bf16.msra.mxu1 %v13278_v41  ;;  %5720 = vmatprep.subr.bf16.mxu0 %v13283_v60  ;;  %v13332_v41 = vld [vmem:[%s14584_s7 + $0x1248] ss:$16 sps:$4 sm:$0xff]   ;;  %v13337_v60 = vld [vmem:[%s14584_s7 + $0x106c] ss:$16 sps:$4 sm:$0xff]  }
 0x2be   : > { %5761 = vmatprep.subr.bf16.mxu1 %v13286_v49  ;;  %v13340_v49 = vld [vmem:[%s14584_s7 + $0x126c] ss:$16 sps:$4 sm:$0xff]  }
 0x2c0   : > { %5721 = vmatpush1.bf16.msra.mxu0 %v13281_v63  ;;  %v13338_v63 = vld [vmem:[%s14584_s7 + $0x1268] ss:$16 sps:$4 sm:$0xff]  }
 0x2c1   : > { %5762 = vmatpush1.bf16.msra.mxu1 %v13284_v53  ;;  %5722 = vmatprep.subr.bf16.mxu0 %v13289_v56  ;;  %v13346_v53 = vld [vmem:[%s14584_s7 + $0x128c] ss:$16 sps:$4 sm:$0xff]   ;;  %v13341_v56 = vld [vmem:[%s14584_s7 + $0x1088] ss:$16 sps:$4 sm:$0xff]  }
 0x2c2   : > { %5763 = vmatprep.subr.bf16.mxu1 %v13292_v57  ;;  %v13344_v57 = vld [vmem:[%s14584_s7 + $0x1288] ss:$16 sps:$4 sm:$0xff]  }
 0x2c4   : > { %5723 = vmatpush1.bf16.msra.mxu0 %v13287_v58  ;;  %v13349_v58 = vld [vmem:[%s14584_s7 + $0x10ac] ss:$16 sps:$4 sm:$0xff]  }
 0x2c5   : > { %5764 = vmatpush1.bf16.msra.mxu1 %v13290_v59  ;;  %5724 = vmatprep.subr.bf16.mxu0 %v13295_v61  ;;  %v13352_v59 = vld [vmem:[%s14584_s7 + $0x12ac] ss:$16 sps:$4 sm:$0xff]   ;;  %v13347_v61 = vld [vmem:[%s14584_s7 + $0x10a8] ss:$16 sps:$4 sm:$0xff]  }
 0x2c6   : > { %5765 = vmatprep.subr.bf16.mxu1 %v13298_v62  ;;  %v13350_v62 = vld [vmem:[%s14584_s7 + $0x12a8] ss:$16 sps:$4 sm:$0xff]  }
 0x2c8   : > { %5725 = vmatpush1.bf16.msra.mxu0 %v13293_v0  ;;  %v13355_v0 = vld [vmem:[%s14584_s7 + $0x10cc] ss:$16 sps:$4 sm:$0xff]  }
 0x2c9   : > { %5766 = vmatpush1.bf16.msra.mxu1 %v13296_v1  ;;  %5726 = vmatprep.subr.bf16.mxu0 %v13301_v2  ;;  %v13358_v1 = vld [vmem:[%s14584_s7 + $0x12cc] ss:$16 sps:$4 sm:$0xff]  }
 0x2ca   : > { %5767 = vmatprep.subr.bf16.mxu1 %v13304_v3 }
 0x2cc   : > { %5727 = vmatpush1.bf16.msra.mxu0 %v13299_v6  ;;  %v13353_v6 = vld [vmem:[%s14584_s7 + $0x10c8] ss:$16 sps:$4 sm:$0xff]  }
 0x2cd   : > { %5768 = vmatpush1.bf16.msra.mxu1 %v13302_v7  ;;  %5728 = vmatprep.subr.bf16.mxu0 %v13307_v8  ;;  %v13356_v7 = vld [vmem:[%s14584_s7 + $0x12c8] ss:$16 sps:$4 sm:$0xff]  }
 0x2ce   : > { %5769 = vmatprep.subr.bf16.mxu1 %v13310_v9 }
 0x2d0   : > { %5729 = vmatpush1.bf16.msra.mxu0 %v13305_v12 }
 0x2d1   : > { %5770 = vmatpush1.bf16.msra.mxu1 %v13308_v13  ;;  %5730 = vmatprep.subr.bf16.mxu0 %v13313_v14 }
 0x2d2   : > { %5771 = vmatprep.subr.bf16.mxu1 %v13316_v15 }
 0x2d4   : > { %5731 = vmatpush1.bf16.msra.mxu0 %v13311_v16 }
 0x2d5   : > { %5772 = vmatpush1.bf16.msra.mxu1 %v13314_v17  ;;  %5782 = vmatprep.subr.bf16.mxu0 %v13319_v19 }
 0x2d6   : > { %5823 = vmatprep.subr.bf16.mxu1 %v13322_v20  ;;  %v13364_v20 = vld [vmem:[%s14584_s7 + $0x12ec] ss:$16 sps:$4 sm:$0xff]  }
 0x2d7   : > { %5733 = vmatmul.mubr.bf16.vlgmr.msra.gmra.mrb[36].mxu0 %v4326_v50 }
 0x2d8   : > { %5774 = vmatmul.mubr.bf16.vlgmr.msra.gmra.mrb[36].mxu1 %v4328_v25  ;;  %5783 = vmatpush1.bf16.msra.mxu0 %v13317_v27 }
 0x2d9   : > { %5824 = vmatpush1.bf16.msra.mxu1 %v13320_v21  ;;  %5784 = vmatprep.subr.bf16.mxu0 %v13325_v26  ;;  %v13362_v21 = vld [vmem:[%s14584_s7 + $0x12e8] ss:$16 sps:$4 sm:$0xff]   ;;  %v13367_v26 = vld [vmem:[%s14584_s7 + $0x110c] ss:$16 sps:$4 sm:$0xff]  }
 0x2da   : > { %5825 = vmatprep.subr.bf16.mxu1 %v13328_v31  ;;  %5814 = vmatprep.mubr.bf16.mxu0 %v4323_v43  ;;  %v13335_v43 = vld [vmem:[%s14584_s7 + $0x1068] ss:$16 sps:$4 sm:$0xff]   ;;  %v13370_v31 = vld [vmem:[%s14584_s7 + $0x130c] ss:$16 sps:$4 sm:$0xff]  }
 0x2db   : > { %5855 = vmatprep.mubr.bf16.mxu1 %v4325_v47  ;;  %v13343_v47 = vld [vmem:[%s14584_s7 + $0x108c] ss:$16 sps:$4 sm:$0xff]  }
 0x2dc   : > { %5785 = vmatpush1.bf16.msra.mxu0 %v13323_v34  ;;  %v13365_v34 = vld [vmem:[%s14584_s7 + $0x1108] ss:$16 sps:$4 sm:$0xff]  }
 0x2dd   : > { %5826 = vmatpush1.bf16.msra.mxu1 %v13326_v35  ;;  %5786 = vmatprep.subr.bf16.mxu0 %v13331_v36  ;;  %v13368_v35 = vld [vmem:[%s14584_s7 + $0x1308] ss:$16 sps:$4 sm:$0xff]   ;;  %v13373_v36 = vld [vmem:[%s14584_s7 + $0x112c] ss:$16 sps:$4 sm:$0xff]  }
 0x2de   : > { %5827 = vmatprep.subr.bf16.mxu1 %v13334_v37  ;;  %v13376_v37 = vld [vmem:[%s14584_s7 + $0x132c] ss:$16 sps:$4 sm:$0xff]  }
 0x2e0   : > { %5787 = vmatpush1.bf16.msra.mxu0 %v13329_v38  ;;  %v13371_v38 = vld [vmem:[%s14584_s7 + $0x1128] ss:$16 sps:$4 sm:$0xff]  }
 0x2e1   : > { %5828 = vmatpush1.bf16.msra.mxu1 %v13332_v41  ;;  %5788 = vmatprep.subr.bf16.mxu0 %v13337_v60  ;;  %v13374_v41 = vld [vmem:[%s14584_s7 + $0x1328] ss:$16 sps:$4 sm:$0xff]   ;;  %v13379_v60 = vld [vmem:[%s14584_s7 + $0x114c] ss:$16 sps:$4 sm:$0xff]  }
 0x2e2   : > { %5829 = vmatprep.subr.bf16.mxu1 %v13340_v49  ;;  %v13382_v49 = vld [vmem:[%s14584_s7 + $0x134c] ss:$16 sps:$4 sm:$0xff]  }
 0x2e4   : > { %5789 = vmatpush1.bf16.msra.mxu0 %v13335_v43  ;;  %v13377_v43 = vld [vmem:[%s14584_s7 + $0x1148] ss:$16 sps:$4 sm:$0xff]  }
 0x2e5   : > { %5830 = vmatpush1.bf16.msra.mxu1 %v13338_v63  ;;  %5790 = vmatprep.subr.bf16.mxu0 %v13343_v47  ;;  %v13380_v63 = vld [vmem:[%s14584_s7 + $0x1348] ss:$16 sps:$4 sm:$0xff]   ;;  %v13385_v47 = vld [vmem:[%s14584_s7 + $0x116c] ss:$16 sps:$4 sm:$0xff]  }
 0x2e6   : > { %5831 = vmatprep.subr.bf16.mxu1 %v13346_v53  ;;  %v13388_v53 = vld [vmem:[%s14584_s7 + $0x136c] ss:$16 sps:$4 sm:$0xff]  }
 0x2e8   : > { %5791 = vmatpush1.bf16.msra.mxu0 %v13341_v56  ;;  %v13383_v56 = vld [vmem:[%s14584_s7 + $0x1168] ss:$16 sps:$4 sm:$0xff]  }
 0x2e9   : > { %5832 = vmatpush1.bf16.msra.mxu1 %v13344_v57  ;;  %5792 = vmatprep.subr.bf16.mxu0 %v13349_v58  ;;  %v13386_v57 = vld [vmem:[%s14584_s7 + $0x1368] ss:$16 sps:$4 sm:$0xff]   ;;  %v13391_v58 = vld [vmem:[%s14584_s7 + $0x118c] ss:$16 sps:$4 sm:$0xff]  }
 0x2ea   : > { %5833 = vmatprep.subr.bf16.mxu1 %v13352_v59  ;;  %v3935_v2 = vpop.f32.mrb[24].mxu0  ;;  %v13394_v59 = vld [vmem:[%s14584_s7 + $0x138c] ss:$16 sps:$4 sm:$0xff]  }
 0x2eb   : > { %v3976_v3 = vpop.f32.mrb[24].mxu1  ;;  %v3936_v8 = vadd.f32 %v3935_v2, %v15184_v42  ;;  %v3937_v9 = vpop.f32.mrb[25].mxu0  ;;  %v13361_v42 = vld [vmem:[%s14584_s7 + $0x10ec] ss:$16 sps:$4 sm:$0xff]   ;;  %v13395_v2 = vld [vmem:[%s14584_s7 + $0x11a8] ss:$16 sps:$4 sm:$0xff]  }
 0x2ec   : > { %v3978_v12 = vpop.f32.mrb[25].mxu1  ;;  %v3938_v13 = vadd.f32 %v3937_v9, %v15188_v51  ;;  %v3939_v14 = vpop.f32.mrb[26].mxu0  ;;  %5793 = vmatpush1.bf16.msra.mxu0 %v13347_v61  ;;  %v13359_v51 = vld [vmem:[%s14584_s7 + $0x10e8] ss:$16 sps:$4 sm:$0xff]  }
 0x2ed   : > { %v3980_v15 = vpop.f32.mrb[26].mxu1  ;;  %5834 = vmatpush1.bf16.msra.mxu1 %v13350_v62  ;;  %v15424_v16 = vadd.f32 %v3976_v3, %v3936_v8  ;;  %v3940_v17 = vpop.f32.mrb[27].mxu0  ;;  %5794 = vmatprep.subr.bf16.mxu0 %v13355_v0  ;;  %v13389_v61 = vld [vmem:[%s14584_s7 + $0x1188] ss:$16 sps:$4 sm:$0xff]   ;;  %v13397_v0 = vld [vmem:[%s14584_s7 + $0x11ac] ss:$16 sps:$4 sm:$0xff]  }
 0x2ee   : > { %v3981_v19 = vpop.f32.mrb[27].mxu1  ;;  %5835 = vmatprep.subr.bf16.mxu1 %v13358_v1  ;;  %v15428_v27 = vadd.f32 %v3978_v12, %v3938_v13  ;;  %v13392_v62 = vld [vmem:[%s14584_s7 + $0x1388] ss:$16 sps:$4 sm:$0xff]   ;;  %v13400_v1 = vld [vmem:[%s14584_s7 + $0x13ac] ss:$16 sps:$4 sm:$0xff]  }
 0x2ef   : > { %v13398_v3 = vld [vmem:[%s14584_s7 + $0x13a8] ss:$16 sps:$4 sm:$0xff]   ;;  %v13409_v12 = vld [vmem:[%s14584_s7 + $0x11ec] ss:$16 sps:$4 sm:$0xff]  }
 0x2f0   : > { %5795 = vmatpush1.bf16.msra.mxu0 %v13353_v6  ;;  %v13403_v6 = vld [vmem:[%s14584_s7 + $0x11cc] ss:$16 sps:$4 sm:$0xff]   ;;  %v13401_v8 = vld [vmem:[%s14584_s7 + $0x11c8] ss:$16 sps:$4 sm:$0xff]  }
 0x2f1   : > { %5836 = vmatpush1.bf16.msra.mxu1 %v13356_v7  ;;  %5796 = vmatprep.subr.bf16.mxu0 %v13361_v42  ;;  %v13406_v7 = vld [vmem:[%s14584_s7 + $0x13cc] ss:$16 sps:$4 sm:$0xff]   ;;  %v13404_v9 = vld [vmem:[%s14584_s7 + $0x13c8] ss:$16 sps:$4 sm:$0xff]  }
 0x2f2   : > { %5837 = vmatprep.subr.bf16.mxu1 %v13364_v20  ;;  %v13412_v13 = vld [vmem:[%s14584_s7 + $0x13ec] ss:$16 sps:$4 sm:$0xff]   ;;  %v13407_v14 = vld [vmem:[%s14584_s7 + $0x11e8] ss:$16 sps:$4 sm:$0xff]  }
 0x2f3   : > { %v13410_v15 = vld [vmem:[%s14584_s7 + $0x13e8] ss:$16 sps:$4 sm:$0xff]   ;;  %v13415_v17 = vld [vmem:[%s14584_s7 + $0x140c] ss:$16 sps:$4 sm:$0xff]  }
 0x2f4   : > { %5797 = vmatpush1.bf16.msra.mxu0 %v13359_v51  ;;  %v13418_v19 = vld [vmem:[%s14584_s7 + $0x160c] ss:$16 sps:$4 sm:$0xff]   ;;  %v13413_v42 = vld [vmem:[%s14584_s7 + $0x1408] ss:$16 sps:$4 sm:$0xff]  }
 0x2f5   : > { %5838 = vmatpush1.bf16.msra.mxu1 %v13362_v21  ;;  %5798 = vmatprep.subr.bf16.mxu0 %v13367_v26  ;;  %v13416_v20 = vld [vmem:[%s14584_s7 + $0x1608] ss:$16 sps:$4 sm:$0xff]   ;;  %v13421_v51 = vld [vmem:[%s14584_s7 + $0x142c] ss:$16 sps:$4 sm:$0xff]  }
 0x2f6   : > { %5839 = vmatprep.subr.bf16.mxu1 %v13370_v31  ;;  %v13424_v21 = vld [vmem:[%s14584_s7 + $0x162c] ss:$16 sps:$4 sm:$0xff]   ;;  %v13419_v26 = vld [vmem:[%s14584_s7 + $0x1428] ss:$16 sps:$4 sm:$0xff]  }
 0x2f7   : > { %v13422_v31 = vld [vmem:[%s14584_s7 + $0x1628] ss:$16 sps:$4 sm:$0xff]  }
 0x2f8   : > { %5799 = vmatpush1.bf16.msra.mxu0 %v13365_v34  ;;  %v13427_v34 = vld [vmem:[%s14584_s7 + $0x144c] ss:$16 sps:$4 sm:$0xff]  }
 0x2f9   : > { %5840 = vmatpush1.bf16.msra.mxu1 %v13368_v35  ;;  %5800 = vmatprep.subr.bf16.mxu0 %v13373_v36  ;;  %v13430_v35 = vld [vmem:[%s14584_s7 + $0x164c] ss:$16 sps:$4 sm:$0xff]  }
 0x2fa   : > { %5841 = vmatprep.subr.bf16.mxu1 %v13376_v37  ;;  %v13433_v36 = vld [vmem:[%s14584_s7 + $0x146c] ss:$16 sps:$4 sm:$0xff]  }
 0x2fb   : > { %v13436_v37 = vld [vmem:[%s14584_s7 + $0x166c] ss:$16 sps:$4 sm:$0xff]  }
 0x2fc   : > { %5801 = vmatpush1.bf16.msra.mxu0 %v13371_v38  ;;  %v13434_v38 = vld [vmem:[%s14584_s7 + $0x1668] ss:$16 sps:$4 sm:$0xff]  }
 0x2fd   : > { %5842 = vmatpush1.bf16.msra.mxu1 %v13374_v41  ;;  %5802 = vmatprep.subr.bf16.mxu0 %v13379_v60  ;;  %v13442_v41 = vld [vmem:[%s14584_s7 + $0x168c] ss:$16 sps:$4 sm:$0xff]   ;;  %v13437_v60 = vld [vmem:[%s14584_s7 + $0x1488] ss:$16 sps:$4 sm:$0xff]  }
 0x2fe   : > { %5843 = vmatprep.subr.bf16.mxu1 %v13382_v49  ;;  %v13440_v49 = vld [vmem:[%s14584_s7 + $0x1688] ss:$16 sps:$4 sm:$0xff]  }
 0x300   : > { %5803 = vmatpush1.bf16.msra.mxu0 %v13377_v43  ;;  %v13445_v43 = vld [vmem:[%s14584_s7 + $0x14ac] ss:$16 sps:$4 sm:$0xff]  }
 0x301   : > { %5844 = vmatpush1.bf16.msra.mxu1 %v13380_v63  ;;  %5804 = vmatprep.subr.bf16.mxu0 %v13385_v47  ;;  %v13448_v63 = vld [vmem:[%s14584_s7 + $0x16ac] ss:$16 sps:$4 sm:$0xff]   ;;  %v13443_v47 = vld [vmem:[%s14584_s7 + $0x14a8] ss:$16 sps:$4 sm:$0xff]  }
 0x302   : > { %5845 = vmatprep.subr.bf16.mxu1 %v13388_v53  ;;  %v13446_v53 = vld [vmem:[%s14584_s7 + $0x16a8] ss:$16 sps:$4 sm:$0xff]  }
 0x304   : > { %5805 = vmatpush1.bf16.msra.mxu0 %v13383_v56  ;;  %v13451_v56 = vld [vmem:[%s14584_s7 + $0x14cc] ss:$16 sps:$4 sm:$0xff]  }
 0x305   : > { %5846 = vmatpush1.bf16.msra.mxu1 %v13386_v57  ;;  %5806 = vmatprep.subr.bf16.mxu0 %v13391_v58  ;;  %v13454_v57 = vld [vmem:[%s14584_s7 + $0x16cc] ss:$16 sps:$4 sm:$0xff]  }
 0x306   : > { %5847 = vmatprep.subr.bf16.mxu1 %v13394_v59 }
 0x308   : > { %5807 = vmatpush1.bf16.msra.mxu0 %v13389_v61 }
 0x309   : > { %5848 = vmatpush1.bf16.msra.mxu1 %v13392_v62  ;;  %5808 = vmatprep.subr.bf16.mxu0 %v13397_v0 }
 0x30a   : > { %5849 = vmatprep.subr.bf16.mxu1 %v13400_v1 }
 0x30c   : > { %5809 = vmatpush1.bf16.msra.mxu0 %v13395_v2 }
 0x30d   : > { %5850 = vmatpush1.bf16.msra.mxu1 %v13398_v3  ;;  %5810 = vmatprep.subr.bf16.mxu0 %v13403_v6  ;;  %v13449_v6 = vld [vmem:[%s14584_s7 + $0x14c8] ss:$16 sps:$4 sm:$0xff]  }
 0x30e   : > { %5851 = vmatprep.subr.bf16.mxu1 %v13406_v7  ;;  %v13452_v7 = vld [vmem:[%s14584_s7 + $0x16c8] ss:$16 sps:$4 sm:$0xff]  }
 0x310   : > { %5811 = vmatpush1.bf16.msra.mxu0 %v13401_v8 }
 0x311   : > { %5852 = vmatpush1.bf16.msra.mxu1 %v13404_v9  ;;  %5812 = vmatprep.subr.bf16.mxu0 %v13409_v12 }
 0x312   : > { %5853 = vmatprep.subr.bf16.mxu1 %v13412_v13 }
 0x314   : > { %5813 = vmatpush1.bf16.msra.mxu0 %v13407_v14  ;;  %v13455_v14 = vld [vmem:[%s14584_s7 + $0x14e8] ss:$16 sps:$4 sm:$0xff]  }
 0x315   : > { %5854 = vmatpush1.bf16.msra.mxu1 %v13410_v15  ;;  %5864 = vmatprep.subr.bf16.mxu0 %v13415_v17  ;;  %v13458_v15 = vld [vmem:[%s14584_s7 + $0x16e8] ss:$16 sps:$4 sm:$0xff]   ;;  %v13463_v17 = vld [vmem:[%s14584_s7 + $0x150c] ss:$16 sps:$4 sm:$0xff]  }
 0x316   : > { %5905 = vmatprep.subr.bf16.mxu1 %v13418_v19  ;;  %v13466_v19 = vld [vmem:[%s14584_s7 + $0x170c] ss:$16 sps:$4 sm:$0xff]  }
 0x317   : > { %5815 = vmatmul.mubr.bf16.vlgmr.msra.gmra.mrb[40].mxu0 %v4322_v30  ;;  %v13425_v30 = vld [vmem:[%s14584_s7 + $0x1448] ss:$16 sps:$4 sm:$0xff]  }
 0x318   : > { %5856 = vmatmul.mubr.bf16.vlgmr.msra.gmra.mrb[40].mxu1 %v4324_v46  ;;  %5865 = vmatpush1.bf16.msra.mxu0 %v13413_v42  ;;  %v13428_v46 = vld [vmem:[%s14584_s7 + $0x1648] ss:$16 sps:$4 sm:$0xff]  }
 0x319   : > { %5906 = vmatpush1.bf16.msra.mxu1 %v13416_v20  ;;  %5866 = vmatprep.subr.bf16.mxu0 %v13421_v51  ;;  %v13461_v42 = vld [vmem:[%s14584_s7 + $0x1508] ss:$16 sps:$4 sm:$0xff]   ;;  %v13469_v51 = vld [vmem:[%s14584_s7 + $0x152c] ss:$16 sps:$4 sm:$0xff]  }
 0x31a   : > { %5907 = vmatprep.subr.bf16.mxu1 %v13424_v21  ;;  %5896 = vmatprep.mubr.bf16.mxu0 %v4327_v32  ;;  %v13431_v32 = vld [vmem:[%s14584_s7 + $0x1468] ss:$16 sps:$4 sm:$0xff]   ;;  %v13472_v21 = vld [vmem:[%s14584_s7 + $0x172c] ss:$16 sps:$4 sm:$0xff]  }
 0x31b   : > { %5937 = vmatprep.mubr.bf16.mxu1 %v4329_v33  ;;  %v13439_v33 = vld [vmem:[%s14584_s7 + $0x148c] ss:$16 sps:$4 sm:$0xff]   ;;  %v13464_v20 = vld [vmem:[%s14584_s7 + $0x1708] ss:$16 sps:$4 sm:$0xff]  }
 0x31c   : > { %5867 = vmatpush1.bf16.msra.mxu0 %v13419_v26  ;;  %v13467_v26 = vld [vmem:[%s14584_s7 + $0x1528] ss:$16 sps:$4 sm:$0xff]  }
 0x31d   : > { %5908 = vmatpush1.bf16.msra.mxu1 %v13422_v31  ;;  %5868 = vmatprep.subr.bf16.mxu0 %v13427_v34  ;;  %v13470_v31 = vld [vmem:[%s14584_s7 + $0x1728] ss:$16 sps:$4 sm:$0xff]   ;;  %v13475_v34 = vld [vmem:[%s14584_s7 + $0x154c] ss:$16 sps:$4 sm:$0xff]  }
 0x31e   : > { %5909 = vmatprep.subr.bf16.mxu1 %v13430_v35  ;;  %v13478_v35 = vld [vmem:[%s14584_s7 + $0x174c] ss:$16 sps:$4 sm:$0xff]  }
 0x320   : > { %5869 = vmatpush1.bf16.msra.mxu0 %v13425_v30  ;;  %v13473_v30 = vld [vmem:[%s14584_s7 + $0x1548] ss:$16 sps:$4 sm:$0xff]  }
 0x321   : > { %5910 = vmatpush1.bf16.msra.mxu1 %v13428_v46  ;;  %5870 = vmatprep.subr.bf16.mxu0 %v13433_v36  ;;  %v13476_v46 = vld [vmem:[%s14584_s7 + $0x1748] ss:$16 sps:$4 sm:$0xff]   ;;  %v13481_v36 = vld [vmem:[%s14584_s7 + $0x156c] ss:$16 sps:$4 sm:$0xff]  }
 0x322   : > { %5911 = vmatprep.subr.bf16.mxu1 %v13436_v37  ;;  %v13484_v37 = vld [vmem:[%s14584_s7 + $0x176c] ss:$16 sps:$4 sm:$0xff]  }
 0x324   : > { %5871 = vmatpush1.bf16.msra.mxu0 %v13431_v32  ;;  %v13479_v32 = vld [vmem:[%s14584_s7 + $0x1568] ss:$16 sps:$4 sm:$0xff]  }
 0x325   : > { %5912 = vmatpush1.bf16.msra.mxu1 %v13434_v38  ;;  %5872 = vmatprep.subr.bf16.mxu0 %v13439_v33  ;;  %v13482_v38 = vld [vmem:[%s14584_s7 + $0x1768] ss:$16 sps:$4 sm:$0xff]   ;;  %v13487_v33 = vld [vmem:[%s14584_s7 + $0x158c] ss:$16 sps:$4 sm:$0xff]  }
 0x326   : > { %5913 = vmatprep.subr.bf16.mxu1 %v13442_v41  ;;  %v13490_v41 = vld [vmem:[%s14584_s7 + $0x178c] ss:$16 sps:$4 sm:$0xff]  }
 0x328   : > { %5873 = vmatpush1.bf16.msra.mxu0 %v13437_v60  ;;  %v13485_v60 = vld [vmem:[%s14584_s7 + $0x1588] ss:$16 sps:$4 sm:$0xff]  }
 0x329   : > { %5914 = vmatpush1.bf16.msra.mxu1 %v13440_v49  ;;  %5874 = vmatprep.subr.bf16.mxu0 %v13445_v43  ;;  %v13488_v49 = vld [vmem:[%s14584_s7 + $0x1788] ss:$16 sps:$4 sm:$0xff]   ;;  %v13493_v43 = vld [vmem:[%s14584_s7 + $0x15ac] ss:$16 sps:$4 sm:$0xff]  }
 0x32a   : > { %5915 = vmatprep.subr.bf16.mxu1 %v13448_v63  ;;  %v4017_v58 = vpop.f32.mrb[28].mxu0  ;;  %v13496_v63 = vld [vmem:[%s14584_s7 + $0x17ac] ss:$16 sps:$4 sm:$0xff]  }
 0x32b   : > { %v4058_v59 = vpop.f32.mrb[28].mxu1  ;;  %v4018_v61 = vadd.f32 %v4017_v58, %v15424_v16  ;;  %v4019_v62 = vpop.f32.mrb[29].mxu0  ;;  %v13457_v16 = vld [vmem:[%s14584_s7 + $0x14ec] ss:$16 sps:$4 sm:$0xff]   ;;  %v13497_v58 = vld [vmem:[%s14584_s7 + $0x15c8] ss:$16 sps:$4 sm:$0xff]  }
 0x32c   : > { %v4060_v0 = vpop.f32.mrb[29].mxu1  ;;  %v4020_v1 = vadd.f32 %v4019_v62, %v15428_v27  ;;  %v4021_v2 = vpop.f32.mrb[30].mxu0  ;;  %5875 = vmatpush1.bf16.msra.mxu0 %v13443_v47  ;;  %v13460_v27 = vld [vmem:[%s14584_s7 + $0x16ec] ss:$16 sps:$4 sm:$0xff]   ;;  %v13491_v47 = vld [vmem:[%s14584_s7 + $0x15a8] ss:$16 sps:$4 sm:$0xff]  }
 0x32d   : > { %v4062_v3 = vpop.f32.mrb[30].mxu1  ;;  %5916 = vmatpush1.bf16.msra.mxu1 %v13446_v53  ;;  %v15502_v8 = vadd.f32 %v4058_v59, %v4018_v61  ;;  %v4022_v9 = vpop.f32.mrb[31].mxu0  ;;  %5876 = vmatprep.subr.bf16.mxu0 %v13451_v56  ;;  %v13494_v53 = vld [vmem:[%s14584_s7 + $0x17a8] ss:$16 sps:$4 sm:$0xff]   ;;  %v13499_v56 = vld [vmem:[%s14584_s7 + $0x15cc] ss:$16 sps:$4 sm:$0xff]  }
 0x32e   : > { %v4063_v12 = vpop.f32.mrb[31].mxu1  ;;  %5917 = vmatprep.subr.bf16.mxu1 %v13454_v57  ;;  %v15506_v13 = vadd.f32 %v4060_v0, %v4020_v1  ;;  %v13502_v57 = vld [vmem:[%s14584_s7 + $0x17cc] ss:$16 sps:$4 sm:$0xff]   ;;  %v13500_v59 = vld [vmem:[%s14584_s7 + $0x17c8] ss:$16 sps:$4 sm:$0xff]  }
 0x32f   : > { %v13505_v61 = vld [vmem:[%s14584_s7 + $0x15ec] ss:$16 sps:$4 sm:$0xff]   ;;  %v13503_v0 = vld [vmem:[%s14584_s7 + $0x15e8] ss:$16 sps:$4 sm:$0xff]   ;;  %v13511_v2 = vld [vmem:[%s14584_s7 + $0x1804] ss:$16 sps:$4 sm:$0xff]  }
 0x330   : > { %5877 = vmatpush1.bf16.msra.mxu0 %v13449_v6  ;;  %v13508_v62 = vld [vmem:[%s14584_s7 + $0x17ec] ss:$16 sps:$4 sm:$0xff]   ;;  %v13506_v1 = vld [vmem:[%s14584_s7 + $0x17e8] ss:$16 sps:$4 sm:$0xff]   ;;  %v13514_v3 = vld [vmem:[%s14584_s7 + $0x1a04] ss:$16 sps:$4 sm:$0xff]  }
 0x331   : > { %5918 = vmatpush1.bf16.msra.mxu1 %v13452_v7  ;;  %5878 = vmatprep.subr.bf16.mxu0 %v13457_v16  ;;  %v13509_v6 = vld [vmem:[%s14584_s7 + $0x1800] ss:$16 sps:$4 sm:$0xff]   ;;  %v13517_v9 = vld [vmem:[%s14584_s7 + $0x1824] ss:$16 sps:$4 sm:$0xff]   ;;  %v6208_v16 = vrot.slane %v14663_v54, 1 }
 0x332   : > { %5919 = vmatprep.subr.bf16.mxu1 %v13460_v27  ;;  %v13512_v7 = vld [vmem:[%s14584_s7 + $0x1a00] ss:$16 sps:$4 sm:$0xff]   ;;  %v13520_v12 = vld [vmem:[%s14584_s7 + $0x1a24] ss:$16 sps:$4 sm:$0xff]   ;;  %v6210_v27 = vrot.slane %v14666_v55, 1 }
 0x333   : > { %v13719_v54 = vld [vmem:[%s14584_s7 + $0x1868] ss:$16 sps:$4 sm:$0xff]  }
 0x334   : > { %5879 = vmatpush1.bf16.msra.mxu0 %v13455_v14  ;;  %v13515_v14 = vld [vmem:[%s14584_s7 + $0x1820] ss:$16 sps:$4 sm:$0xff]   ;;  %v13722_v55 = vld [vmem:[%s14584_s7 + $0x1a68] ss:$16 sps:$4 sm:$0xff]  }
 0x335   : > { %5920 = vmatpush1.bf16.msra.mxu1 %v13458_v15  ;;  %5880 = vmatprep.subr.bf16.mxu0 %v13463_v17  ;;  %v13518_v15 = vld [vmem:[%s14584_s7 + $0x1a20] ss:$16 sps:$4 sm:$0xff]   ;;  %v13523_v17 = vld [vmem:[%s14584_s7 + $0x1844] ss:$16 sps:$4 sm:$0xff]  }
 0x336   : > { %5921 = vmatprep.subr.bf16.mxu1 %v13466_v19  ;;  %v13526_v19 = vld [vmem:[%s14584_s7 + $0x1a44] ss:$16 sps:$4 sm:$0xff]  }
 0x338   : > { %5881 = vmatpush1.bf16.msra.mxu0 %v13461_v42  ;;  %v13529_v42 = vld [vmem:[%s14584_s7 + $0x1864] ss:$16 sps:$4 sm:$0xff]  }
 0x339   : > { %5922 = vmatpush1.bf16.msra.mxu1 %v13464_v20  ;;  %5882 = vmatprep.subr.bf16.mxu0 %v13469_v51  ;;  %v13532_v20 = vld [vmem:[%s14584_s7 + $0x1a64] ss:$16 sps:$4 sm:$0xff]   ;;  %v13527_v51 = vld [vmem:[%s14584_s7 + $0x1860] ss:$16 sps:$4 sm:$0xff]  }
 0x33a   : > { %5923 = vmatprep.subr.bf16.mxu1 %v13472_v21  ;;  %v13530_v21 = vld [vmem:[%s14584_s7 + $0x1a60] ss:$16 sps:$4 sm:$0xff]  }
 0x33c   : > { %5883 = vmatpush1.bf16.msra.mxu0 %v13467_v26  ;;  %v13535_v26 = vld [vmem:[%s14584_s7 + $0x1884] ss:$16 sps:$4 sm:$0xff]  }
 0x33d   : > { %5924 = vmatpush1.bf16.msra.mxu1 %v13470_v31  ;;  %5884 = vmatprep.subr.bf16.mxu0 %v13475_v34  ;;  %v13538_v31 = vld [vmem:[%s14584_s7 + $0x1a84] ss:$16 sps:$4 sm:$0xff]   ;;  %v13533_v34 = vld [vmem:[%s14584_s7 + $0x1880] ss:$16 sps:$4 sm:$0xff]  }
 0x33e   : > { %5925 = vmatprep.subr.bf16.mxu1 %v13478_v35  ;;  %v13536_v35 = vld [vmem:[%s14584_s7 + $0x1a80] ss:$16 sps:$4 sm:$0xff]  }
 0x340   : > { %5885 = vmatpush1.bf16.msra.mxu0 %v13473_v30  ;;  %v13541_v30 = vld [vmem:[%s14584_s7 + $0x18a4] ss:$16 sps:$4 sm:$0xff]  }
 0x341   : > { %5926 = vmatpush1.bf16.msra.mxu1 %v13476_v46  ;;  %5886 = vmatprep.subr.bf16.mxu0 %v13481_v36  ;;  %v13544_v46 = vld [vmem:[%s14584_s7 + $0x1aa4] ss:$16 sps:$4 sm:$0xff]   ;;  %v13539_v36 = vld [vmem:[%s14584_s7 + $0x18a0] ss:$16 sps:$4 sm:$0xff]  }
 0x342   : > { %5927 = vmatprep.subr.bf16.mxu1 %v13484_v37  ;;  %v13542_v37 = vld [vmem:[%s14584_s7 + $0x1aa0] ss:$16 sps:$4 sm:$0xff]  }
 0x344   : > { %5887 = vmatpush1.bf16.msra.mxu0 %v13479_v32  ;;  %v13547_v32 = vld [vmem:[%s14584_s7 + $0x18c4] ss:$16 sps:$4 sm:$0xff]  }
 0x345   : > { %5928 = vmatpush1.bf16.msra.mxu1 %v13482_v38  ;;  %5888 = vmatprep.subr.bf16.mxu0 %v13487_v33  ;;  %v13550_v38 = vld [vmem:[%s14584_s7 + $0x1ac4] ss:$16 sps:$4 sm:$0xff]  }
 0x346   : > { %5929 = vmatprep.subr.bf16.mxu1 %v13490_v41 }
 0x348   : > { %5889 = vmatpush1.bf16.msra.mxu0 %v13485_v60 }
 0x349   : > { %5930 = vmatpush1.bf16.msra.mxu1 %v13488_v49  ;;  %5890 = vmatprep.subr.bf16.mxu0 %v13493_v43 }
 0x34a   : > { %5931 = vmatprep.subr.bf16.mxu1 %v13496_v63 }
 0x34c   : > { %5891 = vmatpush1.bf16.msra.mxu0 %v13491_v47 }
 0x34d   : > { %5932 = vmatpush1.bf16.msra.mxu1 %v13494_v53  ;;  %5892 = vmatprep.subr.bf16.mxu0 %v13499_v56  ;;  %v13545_v56 = vld [vmem:[%s14584_s7 + $0x18c0] ss:$16 sps:$4 sm:$0xff]  }
 0x34e   : > { %5933 = vmatprep.subr.bf16.mxu1 %v13502_v57  ;;  %v13548_v57 = vld [vmem:[%s14584_s7 + $0x1ac0] ss:$16 sps:$4 sm:$0xff]  }
 0x350   : > { %5893 = vmatpush1.bf16.msra.mxu0 %v13497_v58 }
 0x351   : > { %5934 = vmatpush1.bf16.msra.mxu1 %v13500_v59  ;;  %5894 = vmatprep.subr.bf16.mxu0 %v13505_v61  ;;  %v13553_v61 = vld [vmem:[%s14584_s7 + $0x18e4] ss:$16 sps:$4 sm:$0xff]  }
 0x352   : > { %5935 = vmatprep.subr.bf16.mxu1 %v13508_v62  ;;  %v13556_v62 = vld [vmem:[%s14584_s7 + $0x1ae4] ss:$16 sps:$4 sm:$0xff]  }
 0x354   : > { %5895 = vmatpush1.bf16.msra.mxu0 %v13503_v0  ;;  %v13551_v0 = vld [vmem:[%s14584_s7 + $0x18e0] ss:$16 sps:$4 sm:$0xff]  }
 0x355   : > { %5936 = vmatpush1.bf16.msra.mxu1 %v13506_v1  ;;  %7503 = vmatprep.subr.bf16.mxu0 %v13511_v2  ;;  %v13554_v1 = vld [vmem:[%s14584_s7 + $0x1ae0] ss:$16 sps:$4 sm:$0xff]   ;;  %v13559_v2 = vld [vmem:[%s14584_s7 + $0x1904] ss:$16 sps:$4 sm:$0xff]  }
 0x356   : > { %7544 = vmatprep.subr.bf16.mxu1 %v13514_v3  ;;  %v13562_v3 = vld [vmem:[%s14584_s7 + $0x1b04] ss:$16 sps:$4 sm:$0xff]  }
 0x357   : > { %5897 = vmatmul.mubr.bf16.vlgmr.msra.gmra.mrb[44].mxu0 %v4326_v50  ;;  %v13521_v50 = vld [vmem:[%s14584_s7 + $0x1840] ss:$16 sps:$4 sm:$0xff]  }
 0x358   : > { %5938 = vmatmul.mubr.bf16.vlgmr.msra.gmra.mrb[44].mxu1 %v4328_v25  ;;  %7504 = vmatpush1.bf16.msra.mxu0 %v13509_v6  ;;  %v13524_v25 = vld [vmem:[%s14584_s7 + $0x1a40] ss:$16 sps:$4 sm:$0xff]  }
 0x359   : > { %7545 = vmatpush1.bf16.msra.mxu1 %v13512_v7  ;;  %7505 = vmatprep.subr.bf16.mxu0 %v13517_v9  ;;  %v13557_v6 = vld [vmem:[%s14584_s7 + $0x1900] ss:$16 sps:$4 sm:$0xff]   ;;  %v13565_v9 = vld [vmem:[%s14584_s7 + $0x1924] ss:$16 sps:$4 sm:$0xff]  }
 0x35a   : > { %7546 = vmatprep.subr.bf16.mxu1 %v13520_v12  ;;  %7535 = vmatprep.mubr.bf16.mxu0 %v6208_v16  ;;  %v13560_v7 = vld [vmem:[%s14584_s7 + $0x1b00] ss:$16 sps:$4 sm:$0xff]   ;;  %v13568_v12 = vld [vmem:[%s14584_s7 + $0x1b24] ss:$16 sps:$4 sm:$0xff]  }
 0x35b   : > { %7576 = vmatprep.mubr.bf16.mxu1 %v6210_v27 }
 0x35c   : > { %7506 = vmatpush1.bf16.msra.mxu0 %v13515_v14  ;;  %v13563_v14 = vld [vmem:[%s14584_s7 + $0x1920] ss:$16 sps:$4 sm:$0xff]  }
 0x35d   : > { %7547 = vmatpush1.bf16.msra.mxu1 %v13518_v15  ;;  %7507 = vmatprep.subr.bf16.mxu0 %v13523_v17  ;;  %v13566_v15 = vld [vmem:[%s14584_s7 + $0x1b20] ss:$16 sps:$4 sm:$0xff]   ;;  %v13571_v17 = vld [vmem:[%s14584_s7 + $0x1944] ss:$16 sps:$4 sm:$0xff]  }
 0x35e   : > { %7548 = vmatprep.subr.bf16.mxu1 %v13526_v19  ;;  %v13574_v19 = vld [vmem:[%s14584_s7 + $0x1b44] ss:$16 sps:$4 sm:$0xff]  }
 0x360   : > { %7508 = vmatpush1.bf16.msra.mxu0 %v13521_v50  ;;  %v13569_v50 = vld [vmem:[%s14584_s7 + $0x1940] ss:$16 sps:$4 sm:$0xff]  }
 0x361   : > { %7549 = vmatpush1.bf16.msra.mxu1 %v13524_v25  ;;  %7509 = vmatprep.subr.bf16.mxu0 %v13529_v42  ;;  %v13572_v25 = vld [vmem:[%s14584_s7 + $0x1b40] ss:$16 sps:$4 sm:$0xff]   ;;  %v13577_v42 = vld [vmem:[%s14584_s7 + $0x1964] ss:$16 sps:$4 sm:$0xff]  }
 0x362   : > { %7550 = vmatprep.subr.bf16.mxu1 %v13532_v20  ;;  %v13580_v20 = vld [vmem:[%s14584_s7 + $0x1b64] ss:$16 sps:$4 sm:$0xff]  }
 0x364   : > { %7510 = vmatpush1.bf16.msra.mxu0 %v13527_v51  ;;  %v13575_v51 = vld [vmem:[%s14584_s7 + $0x1960] ss:$16 sps:$4 sm:$0xff]  }
 0x365   : > { %7551 = vmatpush1.bf16.msra.mxu1 %v13530_v21  ;;  %7511 = vmatprep.subr.bf16.mxu0 %v13535_v26  ;;  %v13578_v21 = vld [vmem:[%s14584_s7 + $0x1b60] ss:$16 sps:$4 sm:$0xff]   ;;  %v13583_v26 = vld [vmem:[%s14584_s7 + $0x1984] ss:$16 sps:$4 sm:$0xff]  }
 0x366   : > { %7552 = vmatprep.subr.bf16.mxu1 %v13538_v31  ;;  %v13586_v31 = vld [vmem:[%s14584_s7 + $0x1b84] ss:$16 sps:$4 sm:$0xff]  }
 0x368   : > { %7512 = vmatpush1.bf16.msra.mxu0 %v13533_v34  ;;  %v13581_v34 = vld [vmem:[%s14584_s7 + $0x1980] ss:$16 sps:$4 sm:$0xff]  }
 0x369   : > { %7553 = vmatpush1.bf16.msra.mxu1 %v13536_v35  ;;  %7513 = vmatprep.subr.bf16.mxu0 %v13541_v30  ;;  %v13584_v35 = vld [vmem:[%s14584_s7 + $0x1b80] ss:$16 sps:$4 sm:$0xff]   ;;  %v13589_v30 = vld [vmem:[%s14584_s7 + $0x19a4] ss:$16 sps:$4 sm:$0xff]  }
 0x36a   : > { %7554 = vmatprep.subr.bf16.mxu1 %v13544_v46  ;;  %v5652_v33 = vpop.f32.mrb[32].mxu0  ;;  %v13592_v46 = vld [vmem:[%s14584_s7 + $0x1ba4] ss:$16 sps:$4 sm:$0xff]  }
 0x36b   : > { %v5693_v41 = vpop.f32.mrb[32].mxu1  ;;  %v5654_v49 = vpop.f32.mrb[33].mxu0 }
 0x36c   : > { %v15578_v60 = vadd.f32 %v5693_v41, %v5652_v33  ;;  %v5695_v43 = vpop.f32.mrb[33].mxu1  ;;  %v5656_v47 = vpop.f32.mrb[34].mxu0  ;;  %7514 = vmatpush1.bf16.msra.mxu0 %v13539_v36  ;;  %v13587_v36 = vld [vmem:[%s14584_s7 + $0x19a0] ss:$16 sps:$4 sm:$0xff]  }
 0x36d   : > { %v15580_v63 = vadd.f32 %v5695_v43, %v5654_v49  ;;  %v5697_v53 = vpop.f32.mrb[34].mxu1  ;;  %7555 = vmatpush1.bf16.msra.mxu1 %v13542_v37  ;;  %v5657_v58 = vpop.f32.mrb[35].mxu0  ;;  %7515 = vmatprep.subr.bf16.mxu0 %v13547_v32  ;;  %v13590_v37 = vld [vmem:[%s14584_s7 + $0x1ba0] ss:$16 sps:$4 sm:$0xff]   ;;  %v13595_v32 = vld [vmem:[%s14584_s7 + $0x19c4] ss:$16 sps:$4 sm:$0xff]  }
 0x36e   : > { %v5698_v59 = vpop.f32.mrb[35].mxu1  ;;  %7556 = vmatprep.subr.bf16.mxu1 %v13550_v38  ;;  %v13598_v38 = vld [vmem:[%s14584_s7 + $0x1bc4] ss:$16 sps:$4 sm:$0xff]   ;;  %v13593_v33 = vld [vmem:[%s14584_s7 + $0x19c0] ss:$16 sps:$4 sm:$0xff]   ;;  %v6207_v58 = vrot.slane %v14691_v10, 1 }
 0x36f   : > { %v13596_v41 = vld [vmem:[%s14584_s7 + $0x1bc0] ss:$16 sps:$4 sm:$0xff]   ;;  %v13601_v49 = vld [vmem:[%s14584_s7 + $0x19e4] ss:$16 sps:$4 sm:$0xff]   ;;  %v6209_v59 = vrot.slane %v14694_v11, 1 }
 0x370   : > { %7516 = vmatpush1.bf16.msra.mxu0 %v13545_v56  ;;  %v13604_v43 = vld [vmem:[%s14584_s7 + $0x1be4] ss:$16 sps:$4 sm:$0xff]   ;;  %v13599_v47 = vld [vmem:[%s14584_s7 + $0x19e0] ss:$16 sps:$4 sm:$0xff]   ;;  %v13809_v10 = vld [vmem:[%s14584_s7 + $0x1c48] ss:$16 sps:$4 sm:$0xff]  }
 0x371   : > { %7557 = vmatpush1.bf16.msra.mxu1 %v13548_v57  ;;  %7517 = vmatprep.subr.bf16.mxu0 %v13553_v61  ;;  %v13602_v53 = vld [vmem:[%s14584_s7 + $0x1be0] ss:$16 sps:$4 sm:$0xff]   ;;  %v13607_v56 = vld [vmem:[%s14584_s7 + $0x1c04] ss:$16 sps:$4 sm:$0xff]   ;;  %v13812_v11 = vld [vmem:[%s14584_s7 + $0x1e48] ss:$16 sps:$4 sm:$0xff]  }
 0x372   : > { %7558 = vmatprep.subr.bf16.mxu1 %v13556_v62  ;;  %v13610_v57 = vld [vmem:[%s14584_s7 + $0x1e04] ss:$16 sps:$4 sm:$0xff]   ;;  %v13605_v61 = vld [vmem:[%s14584_s7 + $0x1c00] ss:$16 sps:$4 sm:$0xff]  }
 0x373   : > { %v13608_v62 = vld [vmem:[%s14584_s7 + $0x1e00] ss:$16 sps:$4 sm:$0xff]  }
 0x374   : > { %7518 = vmatpush1.bf16.msra.mxu0 %v13551_v0  ;;  %v13613_v0 = vld [vmem:[%s14584_s7 + $0x1c24] ss:$16 sps:$4 sm:$0xff]  }
 0x375   : > { %7559 = vmatpush1.bf16.msra.mxu1 %v13554_v1  ;;  %7519 = vmatprep.subr.bf16.mxu0 %v13559_v2  ;;  %v13616_v1 = vld [vmem:[%s14584_s7 + $0x1e24] ss:$16 sps:$4 sm:$0xff]   ;;  %v6212_v2 = vrot.slane %v14741_v44, 1  ;;  %v13815_v44 = vld [vmem:[%s14584_s7 + $0x1c68] ss:$16 sps:$4 sm:$0xff]  }
 0x376   : > { %7560 = vmatprep.subr.bf16.mxu1 %v13562_v3  ;;  %v6214_v3 = vrot.slane %v14744_v45, 1  ;;  %v13818_v45 = vld [vmem:[%s14584_s7 + $0x1e68] ss:$16 sps:$4 sm:$0xff]  }
 0x378   : > { %7520 = vmatpush1.bf16.msra.mxu0 %v13557_v6  ;;  %v13611_v6 = vld [vmem:[%s14584_s7 + $0x1c20] ss:$16 sps:$4 sm:$0xff]  }
 0x379   : > { %7561 = vmatpush1.bf16.msra.mxu1 %v13560_v7  ;;  %7521 = vmatprep.subr.bf16.mxu0 %v13565_v9  ;;  %v13614_v7 = vld [vmem:[%s14584_s7 + $0x1e20] ss:$16 sps:$4 sm:$0xff]   ;;  %v13619_v9 = vld [vmem:[%s14584_s7 + $0x1c44] ss:$16 sps:$4 sm:$0xff]  }
 0x37a   : > { %7562 = vmatprep.subr.bf16.mxu1 %v13568_v12  ;;  %v13622_v12 = vld [vmem:[%s14584_s7 + $0x1e44] ss:$16 sps:$4 sm:$0xff]  }
 0x37c   : > { %7522 = vmatpush1.bf16.msra.mxu0 %v13563_v14  ;;  %v13617_v14 = vld [vmem:[%s14584_s7 + $0x1c40] ss:$16 sps:$4 sm:$0xff]  }
 0x37d   : > { %7563 = vmatpush1.bf16.msra.mxu1 %v13566_v15  ;;  %7523 = vmatprep.subr.bf16.mxu0 %v13571_v17  ;;  %v13620_v15 = vld [vmem:[%s14584_s7 + $0x1e40] ss:$16 sps:$4 sm:$0xff]   ;;  %v13625_v17 = vld [vmem:[%s14584_s7 + $0x1c64] ss:$16 sps:$4 sm:$0xff]  }
 0x37e   : > { %7564 = vmatprep.subr.bf16.mxu1 %v13574_v19  ;;  %v13628_v19 = vld [vmem:[%s14584_s7 + $0x1e64] ss:$16 sps:$4 sm:$0xff]  }
 0x380   : > { %7524 = vmatpush1.bf16.msra.mxu0 %v13569_v50  ;;  %v13623_v50 = vld [vmem:[%s14584_s7 + $0x1c60] ss:$16 sps:$4 sm:$0xff]  }
 0x381   : > { %7565 = vmatpush1.bf16.msra.mxu1 %v13572_v25  ;;  %7525 = vmatprep.subr.bf16.mxu0 %v13577_v42  ;;  %v13626_v25 = vld [vmem:[%s14584_s7 + $0x1e60] ss:$16 sps:$4 sm:$0xff]   ;;  %v13631_v42 = vld [vmem:[%s14584_s7 + $0x1c84] ss:$16 sps:$4 sm:$0xff]  }
 0x382   : > { %7566 = vmatprep.subr.bf16.mxu1 %v13580_v20  ;;  %v13634_v20 = vld [vmem:[%s14584_s7 + $0x1e84] ss:$16 sps:$4 sm:$0xff]  }
 0x384   : > { %7526 = vmatpush1.bf16.msra.mxu0 %v13575_v51  ;;  %v13629_v51 = vld [vmem:[%s14584_s7 + $0x1c80] ss:$16 sps:$4 sm:$0xff]  }
 0x385   : > { %7567 = vmatpush1.bf16.msra.mxu1 %v13578_v21  ;;  %7527 = vmatprep.subr.bf16.mxu0 %v13583_v26  ;;  %v13632_v21 = vld [vmem:[%s14584_s7 + $0x1e80] ss:$16 sps:$4 sm:$0xff]   ;;  %v13637_v26 = vld [vmem:[%s14584_s7 + $0x1ca4] ss:$16 sps:$4 sm:$0xff]  }
 0x386   : > { %7568 = vmatprep.subr.bf16.mxu1 %v13586_v31  ;;  %v13640_v31 = vld [vmem:[%s14584_s7 + $0x1ea4] ss:$16 sps:$4 sm:$0xff]  }
 0x388   : > { %7528 = vmatpush1.bf16.msra.mxu0 %v13581_v34  ;;  %v13635_v34 = vld [vmem:[%s14584_s7 + $0x1ca0] ss:$16 sps:$4 sm:$0xff]  }
 0x389   : > { %7569 = vmatpush1.bf16.msra.mxu1 %v13584_v35  ;;  %7529 = vmatprep.subr.bf16.mxu0 %v13589_v30  ;;  %v13638_v35 = vld [vmem:[%s14584_s7 + $0x1ea0] ss:$16 sps:$4 sm:$0xff]   ;;  %v13643_v30 = vld [vmem:[%s14584_s7 + $0x1cc4] ss:$16 sps:$4 sm:$0xff]  }
 0x38a   : > { %7570 = vmatprep.subr.bf16.mxu1 %v13592_v46  ;;  %v13646_v46 = vld [vmem:[%s14584_s7 + $0x1ec4] ss:$16 sps:$4 sm:$0xff]  }
 0x38c   : > { %7530 = vmatpush1.bf16.msra.mxu0 %v13587_v36 }
 0x38d   : > { %7571 = vmatpush1.bf16.msra.mxu1 %v13590_v37  ;;  %7531 = vmatprep.subr.bf16.mxu0 %v13595_v32 }
 0x38e   : > { %7572 = vmatprep.subr.bf16.mxu1 %v13598_v38 }
 0x390   : > { %7532 = vmatpush1.bf16.msra.mxu0 %v13593_v33 }
 0x391   : > { %7573 = vmatpush1.bf16.msra.mxu1 %v13596_v41  ;;  %7533 = vmatprep.subr.bf16.mxu0 %v13601_v49 }
 0x392   : > { %7574 = vmatprep.subr.bf16.mxu1 %v13604_v43 }
 0x394   : > { %7534 = vmatpush1.bf16.msra.mxu0 %v13599_v47  ;;  %v13641_v47 = vld [vmem:[%s14584_s7 + $0x1cc0] ss:$16 sps:$4 sm:$0xff]  }
 0x395   : > { %7575 = vmatpush1.bf16.msra.mxu1 %v13602_v53  ;;  %7585 = vmatprep.subr.bf16.mxu0 %v13607_v56  ;;  %v13644_v53 = vld [vmem:[%s14584_s7 + $0x1ec0] ss:$16 sps:$4 sm:$0xff]  }
 0x396   : > { %7626 = vmatprep.subr.bf16.mxu1 %v13610_v57 }
 0x397   : > { %7536 = vmatmul.mubr.bf16.vlgmr.msra.gmra.mrb[48].mxu0 %v6207_v58 }
 0x398   : > { %7577 = vmatmul.mubr.bf16.vlgmr.msra.gmra.mrb[48].mxu1 %v6209_v59  ;;  %7586 = vmatpush1.bf16.msra.mxu0 %v13605_v61 }
 0x399   : > { %7627 = vmatpush1.bf16.msra.mxu1 %v13608_v62  ;;  %7587 = vmatprep.subr.bf16.mxu0 %v13613_v0  ;;  %v13652_v62 = vld [vmem:[%s14584_s7 + $0x1ee4] ss:$16 sps:$4 sm:$0xff]  }
 0x39a   : > { %7628 = vmatprep.subr.bf16.mxu1 %v13616_v1  ;;  %7617 = vmatprep.mubr.bf16.mxu0 %v6212_v2 }
 0x39b   : > { %7658 = vmatprep.mubr.bf16.mxu1 %v6214_v3 }
 0x39c   : > { %7588 = vmatpush1.bf16.msra.mxu0 %v13611_v6  ;;  %v13647_v6 = vld [vmem:[%s14584_s7 + $0x1ce0] ss:$16 sps:$4 sm:$0xff]  }
 0x39d   : > { %7629 = vmatpush1.bf16.msra.mxu1 %v13614_v7  ;;  %7589 = vmatprep.subr.bf16.mxu0 %v13619_v9  ;;  %v13650_v7 = vld [vmem:[%s14584_s7 + $0x1ee0] ss:$16 sps:$4 sm:$0xff]   ;;  %v13655_v9 = vld [vmem:[%s14584_s7 + $0x1d04] ss:$16 sps:$4 sm:$0xff]  }
 0x39e   : > { %7630 = vmatprep.subr.bf16.mxu1 %v13622_v12  ;;  %v13658_v12 = vld [vmem:[%s14584_s7 + $0x1f04] ss:$16 sps:$4 sm:$0xff]  }
 0x3a0   : > { %7590 = vmatpush1.bf16.msra.mxu0 %v13617_v14  ;;  %v13656_v14 = vld [vmem:[%s14584_s7 + $0x1f00] ss:$16 sps:$4 sm:$0xff]  }
 0x3a1   : > { %7631 = vmatpush1.bf16.msra.mxu1 %v13620_v15  ;;  %7591 = vmatprep.subr.bf16.mxu0 %v13625_v17  ;;  %v13664_v15 = vld [vmem:[%s14584_s7 + $0x1f24] ss:$16 sps:$4 sm:$0xff]   ;;  %v13659_v17 = vld [vmem:[%s14584_s7 + $0x1d20] ss:$16 sps:$4 sm:$0xff]  }
 0x3a2   : > { %7632 = vmatprep.subr.bf16.mxu1 %v13628_v19  ;;  %v13662_v19 = vld [vmem:[%s14584_s7 + $0x1f20] ss:$16 sps:$4 sm:$0xff]  }
 0x3a4   : > { %7592 = vmatpush1.bf16.msra.mxu0 %v13623_v50  ;;  %v13667_v50 = vld [vmem:[%s14584_s7 + $0x1d44] ss:$16 sps:$4 sm:$0xff]  }
 0x3a5   : > { %7633 = vmatpush1.bf16.msra.mxu1 %v13626_v25  ;;  %7593 = vmatprep.subr.bf16.mxu0 %v13631_v42  ;;  %v13670_v25 = vld [vmem:[%s14584_s7 + $0x1f44] ss:$16 sps:$4 sm:$0xff]   ;;  %v13665_v42 = vld [vmem:[%s14584_s7 + $0x1d40] ss:$16 sps:$4 sm:$0xff]  }
 0x3a6   : > { %7634 = vmatprep.subr.bf16.mxu1 %v13634_v20  ;;  %v13668_v20 = vld [vmem:[%s14584_s7 + $0x1f40] ss:$16 sps:$4 sm:$0xff]  }
 0x3a8   : > { %7594 = vmatpush1.bf16.msra.mxu0 %v13629_v51  ;;  %v13673_v51 = vld [vmem:[%s14584_s7 + $0x1d64] ss:$16 sps:$4 sm:$0xff]  }
 0x3a9   : > { %7635 = vmatpush1.bf16.msra.mxu1 %v13632_v21  ;;  %7595 = vmatprep.subr.bf16.mxu0 %v13637_v26  ;;  %v13676_v21 = vld [vmem:[%s14584_s7 + $0x1f64] ss:$16 sps:$4 sm:$0xff]   ;;  %v13671_v26 = vld [vmem:[%s14584_s7 + $0x1d60] ss:$16 sps:$4 sm:$0xff]  }
 0x3aa   : > { %7636 = vmatprep.subr.bf16.mxu1 %v13640_v31  ;;  %v5734_v36 = vpop.f32.mrb[36].mxu0  ;;  %v13674_v31 = vld [vmem:[%s14584_s7 + $0x1f60] ss:$16 sps:$4 sm:$0xff]  }
 0x3ab   : > { %v5775_v37 = vpop.f32.mrb[36].mxu1  ;;  %v5735_v32 = vadd.f32 %v5734_v36, %v15578_v60  ;;  %v5736_v38 = vpop.f32.mrb[37].mxu0  ;;  %v13649_v60 = vld [vmem:[%s14584_s7 + $0x1ce4] ss:$16 sps:$4 sm:$0xff]  }
 0x3ac   : > { %v5777_v33 = vpop.f32.mrb[37].mxu1  ;;  %v5737_v41 = vadd.f32 %v5736_v38, %v15580_v63  ;;  %v5738_v49 = vpop.f32.mrb[38].mxu0  ;;  %7596 = vmatpush1.bf16.msra.mxu0 %v13635_v34  ;;  %v13679_v34 = vld [vmem:[%s14584_s7 + $0x1d84] ss:$16 sps:$4 sm:$0xff]   ;;  %v13686_v38 = vld [vmem:[%s14584_s7 + $0x1fa0] ss:$16 sps:$4 sm:$0xff]  }
 0x3ad   : > { %v5779_v43 = vpop.f32.mrb[38].mxu1  ;;  %7637 = vmatpush1.bf16.msra.mxu1 %v13638_v35  ;;  %v5776_v56 = vadd.f32 %v5775_v37, %v5735_v32  ;;  %v5739_v57 = vpop.f32.mrb[39].mxu0  ;;  %7597 = vmatprep.subr.bf16.mxu0 %v13643_v30  ;;  %v13682_v35 = vld [vmem:[%s14584_s7 + $0x1f84] ss:$16 sps:$4 sm:$0xff]   ;;  %v13677_v30 = vld [vmem:[%s14584_s7 + $0x1d80] ss:$16 sps:$4 sm:$0xff]  }
 0x3ae   : > { %v5780_v61 = vpop.f32.mrb[39].mxu1  ;;  %7638 = vmatprep.subr.bf16.mxu1 %v13646_v46  ;;  %v5778_v63 = vadd.f32 %v5777_v33, %v5737_v41  ;;  %v13680_v46 = vld [vmem:[%s14584_s7 + $0x1f80] ss:$16 sps:$4 sm:$0xff]   ;;  %v13685_v36 = vld [vmem:[%s14584_s7 + $0x1da4] ss:$16 sps:$4 sm:$0xff]  }
 0x3af   : > { %v15665_v0 = vadd.f32 %v5776_v56, %v15344_v18  ;;  %v13653_v18 = vld [vmem:[%s14584_s7 + $0x1d00] ss:$16 sps:$4 sm:$0xff]   ;;  %v13688_v37 = vld [vmem:[%s14584_s7 + $0x1fa4] ss:$16 sps:$4 sm:$0xff]   ;;  %v13703_v61 = vld [vmem:[%s14584_s7 + $0x180c] ss:$16 sps:$4 sm:$0xff]  }
 0x3b0   : > { %v15668_v1 = vadd.f32 %v5778_v63, %v15348_v24  ;;  %7598 = vmatpush1.bf16.msra.mxu0 %v13641_v47  ;;  %v13661_v24 = vld [vmem:[%s14584_s7 + $0x1d24] ss:$16 sps:$4 sm:$0xff]   ;;  %v13683_v32 = vld [vmem:[%s14584_s7 + $0x1da0] ss:$16 sps:$4 sm:$0xff]   ;;  %v6213_v63 = vrot.slane %v14796_v29, 1 }
 0x3b1   : > { %7639 = vmatpush1.bf16.msra.mxu1 %v13644_v53  ;;  %7599 = vmatprep.subr.bf16.mxu0 %v13649_v60  ;;  %v13691_v33 = vld [vmem:[%s14584_s7 + $0x1dc4] ss:$16 sps:$4 sm:$0xff]   ;;  %v13689_v49 = vld [vmem:[%s14584_s7 + $0x1dc0] ss:$16 sps:$4 sm:$0xff]   ;;  %v13706_v60 = vld [vmem:[%s14584_s7 + $0x1a0c] ss:$16 sps:$4 sm:$0xff]  }
 0x3b2   : > { %7640 = vmatprep.subr.bf16.mxu1 %v13652_v62  ;;  %v13694_v41 = vld [vmem:[%s14584_s7 + $0x1fc4] ss:$16 sps:$4 sm:$0xff]   ;;  %v13692_v43 = vld [vmem:[%s14584_s7 + $0x1fc0] ss:$16 sps:$4 sm:$0xff]   ;;  %v6211_v62 = vrot.slane %v14793_v28, 1 }
 0x3b3   : > { %v13697_v47 = vld [vmem:[%s14584_s7 + $0x1de4] ss:$16 sps:$4 sm:$0xff]   ;;  %v13695_v56 = vld [vmem:[%s14584_s7 + $0x1de0] ss:$16 sps:$4 sm:$0xff]  }
 0x3b4   : > { %7600 = vmatpush1.bf16.msra.mxu0 %v13647_v6  ;;  %v13700_v53 = vld [vmem:[%s14584_s7 + $0x1fe4] ss:$16 sps:$4 sm:$0xff]   ;;  %v13698_v57 = vld [vmem:[%s14584_s7 + $0x1fe0] ss:$16 sps:$4 sm:$0xff]   ;;  %v13701_v6 = vld [vmem:[%s14584_s7 + $0x1808] ss:$16 sps:$4 sm:$0xff]  }
 0x3b5   : > { %7641 = vmatpush1.bf16.msra.mxu1 %v13650_v7  ;;  %7601 = vmatprep.subr.bf16.mxu0 %v13655_v9  ;;  %v13704_v7 = vld [vmem:[%s14584_s7 + $0x1a08] ss:$16 sps:$4 sm:$0xff]   ;;  %v13709_v9 = vld [vmem:[%s14584_s7 + $0x182c] ss:$16 sps:$4 sm:$0xff]   ;;  %v13905_v28 = vld [vmem:[%s14584_s7 + $0x2040] ss:$16 sps:$4 sm:$0xff]  }
 0x3b6   : > { %7642 = vmatprep.subr.bf16.mxu1 %v13658_v12  ;;  %v13712_v12 = vld [vmem:[%s14584_s7 + $0x1a2c] ss:$16 sps:$4 sm:$0xff]   ;;  %v13908_v29 = vld [vmem:[%s14584_s7 + $0x2240] ss:$16 sps:$4 sm:$0xff]  }
 0x3b8   : > { %7602 = vmatpush1.bf16.msra.mxu0 %v13653_v18  ;;  %v13707_v18 = vld [vmem:[%s14584_s7 + $0x1828] ss:$16 sps:$4 sm:$0xff]  }
 0x3b9   : > { %7643 = vmatpush1.bf16.msra.mxu1 %v13656_v14  ;;  %7603 = vmatprep.subr.bf16.mxu0 %v13661_v24  ;;  %v13710_v14 = vld [vmem:[%s14584_s7 + $0x1a28] ss:$16 sps:$4 sm:$0xff]   ;;  %v13715_v24 = vld [vmem:[%s14584_s7 + $0x184c] ss:$16 sps:$4 sm:$0xff]  }
 0x3ba   : > { %7644 = vmatprep.subr.bf16.mxu1 %v13664_v15  ;;  %v13718_v15 = vld [vmem:[%s14584_s7 + $0x1a4c] ss:$16 sps:$4 sm:$0xff]  }
 0x3bc   : > { %7604 = vmatpush1.bf16.msra.mxu0 %v13659_v17  ;;  %v13713_v17 = vld [vmem:[%s14584_s7 + $0x1848] ss:$16 sps:$4 sm:$0xff]  }
 0x3bd   : > { %7645 = vmatpush1.bf16.msra.mxu1 %v13662_v19  ;;  %7605 = vmatprep.subr.bf16.mxu0 %v13667_v50  ;;  %v13716_v19 = vld [vmem:[%s14584_s7 + $0x1a48] ss:$16 sps:$4 sm:$0xff]   ;;  %v13721_v50 = vld [vmem:[%s14584_s7 + $0x186c] ss:$16 sps:$4 sm:$0xff]  }
 0x3be   : > { %7646 = vmatprep.subr.bf16.mxu1 %v13670_v25  ;;  %v13724_v25 = vld [vmem:[%s14584_s7 + $0x1a6c] ss:$16 sps:$4 sm:$0xff]  }
 0x3c0   : > { %7606 = vmatpush1.bf16.msra.mxu0 %v13665_v42  ;;  %v13725_v42 = vld [vmem:[%s14584_s7 + $0x1888] ss:$16 sps:$4 sm:$0xff]  }
 0x3c1   : > { %7647 = vmatpush1.bf16.msra.mxu1 %v13668_v20  ;;  %7607 = vmatprep.subr.bf16.mxu0 %v13673_v51  ;;  %v13728_v20 = vld [vmem:[%s14584_s7 + $0x1a88] ss:$16 sps:$4 sm:$0xff]   ;;  %v13733_v51 = vld [vmem:[%s14584_s7 + $0x18ac] ss:$16 sps:$4 sm:$0xff]  }
 0x3c2   : > { %7648 = vmatprep.subr.bf16.mxu1 %v13676_v21  ;;  %v13736_v21 = vld [vmem:[%s14584_s7 + $0x1aac] ss:$16 sps:$4 sm:$0xff]  }
 0x3c4   : > { %7608 = vmatpush1.bf16.msra.mxu0 %v13671_v26  ;;  %v13731_v26 = vld [vmem:[%s14584_s7 + $0x18a8] ss:$16 sps:$4 sm:$0xff]  }
 0x3c5   : > { %7649 = vmatpush1.bf16.msra.mxu1 %v13674_v31  ;;  %7609 = vmatprep.subr.bf16.mxu0 %v13679_v34  ;;  %v13734_v31 = vld [vmem:[%s14584_s7 + $0x1aa8] ss:$16 sps:$4 sm:$0xff]   ;;  %v13739_v34 = vld [vmem:[%s14584_s7 + $0x18cc] ss:$16 sps:$4 sm:$0xff]  }
 0x3c6   : > { %7650 = vmatprep.subr.bf16.mxu1 %v13682_v35  ;;  %v13742_v35 = vld [vmem:[%s14584_s7 + $0x1acc] ss:$16 sps:$4 sm:$0xff]  }
 0x3c8   : > { %7610 = vmatpush1.bf16.msra.mxu0 %v13677_v30 }
 0x3c9   : > { %7651 = vmatpush1.bf16.msra.mxu1 %v13680_v46  ;;  %7611 = vmatprep.subr.bf16.mxu0 %v13685_v36 }
 0x3ca   : > { %7652 = vmatprep.subr.bf16.mxu1 %v13688_v37 }
 0x3cc   : > { %7612 = vmatpush1.bf16.msra.mxu0 %v13683_v32 }
 0x3cd   : > { %7653 = vmatpush1.bf16.msra.mxu1 %v13686_v38  ;;  %7613 = vmatprep.subr.bf16.mxu0 %v13691_v33 }
 0x3ce   : > { %7654 = vmatprep.subr.bf16.mxu1 %v13694_v41 }
 0x3d0   : > { %7614 = vmatpush1.bf16.msra.mxu0 %v13689_v49  ;;  %v13737_v49 = vld [vmem:[%s14584_s7 + $0x18c8] ss:$16 sps:$4 sm:$0xff]  }
 0x3d1   : > { %7655 = vmatpush1.bf16.msra.mxu1 %v13692_v43  ;;  %7615 = vmatprep.subr.bf16.mxu0 %v13697_v47  ;;  %v13740_v43 = vld [vmem:[%s14584_s7 + $0x1ac8] ss:$16 sps:$4 sm:$0xff]  }
 0x3d2   : > { %7656 = vmatprep.subr.bf16.mxu1 %v13700_v53 }
 0x3d4   : > { %7616 = vmatpush1.bf16.msra.mxu0 %v13695_v56  ;;  %v13745_v56 = vld [vmem:[%s14584_s7 + $0x18ec] ss:$16 sps:$4 sm:$0xff]  }
 0x3d5   : > { %7657 = vmatpush1.bf16.msra.mxu1 %v13698_v57  ;;  %7667 = vmatprep.subr.bf16.mxu0 %v13703_v61  ;;  %v13748_v57 = vld [vmem:[%s14584_s7 + $0x1aec] ss:$16 sps:$4 sm:$0xff]   ;;  %v13743_v61 = vld [vmem:[%s14584_s7 + $0x18e8] ss:$16 sps:$4 sm:$0xff]  }
 0x3d6   : > { %7708 = vmatprep.subr.bf16.mxu1 %v13706_v60  ;;  %v13746_v60 = vld [vmem:[%s14584_s7 + $0x1ae8] ss:$16 sps:$4 sm:$0xff]  }
 0x3d7   : > { %7618 = vmatmul.mubr.bf16.vlgmr.msra.gmra.mrb[52].mxu0 %v6211_v62 }
 0x3d8   : > { %7659 = vmatmul.mubr.bf16.vlgmr.msra.gmra.mrb[52].mxu1 %v6213_v63  ;;  %7668 = vmatpush1.bf16.msra.mxu0 %v13701_v6  ;;  %v13751_v6 = vld [vmem:[%s14584_s7 + $0x190c] ss:$16 sps:$4 sm:$0xff]  }
 0x3d9   : > { %7709 = vmatpush1.bf16.msra.mxu1 %v13704_v7  ;;  %7669 = vmatprep.subr.bf16.mxu0 %v13709_v9  ;;  %v13754_v7 = vld [vmem:[%s14584_s7 + $0x1b0c] ss:$16 sps:$4 sm:$0xff]   ;;  %v13749_v9 = vld [vmem:[%s14584_s7 + $0x1908] ss:$16 sps:$4 sm:$0xff]  }
 0x3da   : > { %7710 = vmatprep.subr.bf16.mxu1 %v13712_v12  ;;  %7699 = vmatprep.mubr.bf16.mxu0 %v6208_v16  ;;  %v13727_v16 = vld [vmem:[%s14584_s7 + $0x188c] ss:$16 sps:$4 sm:$0xff]   ;;  %v13752_v12 = vld [vmem:[%s14584_s7 + $0x1b08] ss:$16 sps:$4 sm:$0xff]  }
 0x3db   : > { %7740 = vmatprep.mubr.bf16.mxu1 %v6210_v27  ;;  %v13730_v27 = vld [vmem:[%s14584_s7 + $0x1a8c] ss:$16 sps:$4 sm:$0xff]  }
 0x3dc   : > { %7670 = vmatpush1.bf16.msra.mxu0 %v13707_v18  ;;  %v13757_v18 = vld [vmem:[%s14584_s7 + $0x192c] ss:$16 sps:$4 sm:$0xff]  }
 0x3dd   : > { %7711 = vmatpush1.bf16.msra.mxu1 %v13710_v14  ;;  %7671 = vmatprep.subr.bf16.mxu0 %v13715_v24  ;;  %v13760_v14 = vld [vmem:[%s14584_s7 + $0x1b2c] ss:$16 sps:$4 sm:$0xff]   ;;  %v13755_v24 = vld [vmem:[%s14584_s7 + $0x1928] ss:$16 sps:$4 sm:$0xff]  }
 0x3de   : > { %7712 = vmatprep.subr.bf16.mxu1 %v13718_v15  ;;  %v13758_v15 = vld [vmem:[%s14584_s7 + $0x1b28] ss:$16 sps:$4 sm:$0xff]  }
 0x3e0   : > { %7672 = vmatpush1.bf16.msra.mxu0 %v13713_v17  ;;  %v13763_v17 = vld [vmem:[%s14584_s7 + $0x194c] ss:$16 sps:$4 sm:$0xff]  }
 0x3e1   : > { %7713 = vmatpush1.bf16.msra.mxu1 %v13716_v19  ;;  %7673 = vmatprep.subr.bf16.mxu0 %v13721_v50  ;;  %v13766_v19 = vld [vmem:[%s14584_s7 + $0x1b4c] ss:$16 sps:$4 sm:$0xff]   ;;  %v13761_v50 = vld [vmem:[%s14584_s7 + $0x1948] ss:$16 sps:$4 sm:$0xff]  }
 0x3e2   : > { %7714 = vmatprep.subr.bf16.mxu1 %v13724_v25  ;;  %v13764_v25 = vld [vmem:[%s14584_s7 + $0x1b48] ss:$16 sps:$4 sm:$0xff]  }
 0x3e4   : > { %7674 = vmatpush1.bf16.msra.mxu0 %v13719_v54  ;;  %v13769_v54 = vld [vmem:[%s14584_s7 + $0x196c] ss:$16 sps:$4 sm:$0xff]  }
 0x3e5   : > { %7715 = vmatpush1.bf16.msra.mxu1 %v13722_v55  ;;  %7675 = vmatprep.subr.bf16.mxu0 %v13727_v16  ;;  %v13772_v55 = vld [vmem:[%s14584_s7 + $0x1b6c] ss:$16 sps:$4 sm:$0xff]   ;;  %v13767_v16 = vld [vmem:[%s14584_s7 + $0x1968] ss:$16 sps:$4 sm:$0xff]  }
 0x3e6   : > { %7716 = vmatprep.subr.bf16.mxu1 %v13730_v27  ;;  %v13770_v27 = vld [vmem:[%s14584_s7 + $0x1b68] ss:$16 sps:$4 sm:$0xff]  }
 0x3e8   : > { %7676 = vmatpush1.bf16.msra.mxu0 %v13725_v42  ;;  %v13775_v42 = vld [vmem:[%s14584_s7 + $0x198c] ss:$16 sps:$4 sm:$0xff]  }
 0x3e9   : > { %7717 = vmatpush1.bf16.msra.mxu1 %v13728_v20  ;;  %7677 = vmatprep.subr.bf16.mxu0 %v13733_v51  ;;  %v13778_v20 = vld [vmem:[%s14584_s7 + $0x1b8c] ss:$16 sps:$4 sm:$0xff]   ;;  %v13773_v51 = vld [vmem:[%s14584_s7 + $0x1988] ss:$16 sps:$4 sm:$0xff]  }
 0x3ea   : > { %7718 = vmatprep.subr.bf16.mxu1 %v13736_v21  ;;  %v5816_v30 = vpop.f32.mrb[40].mxu0  ;;  %v13776_v21 = vld [vmem:[%s14584_s7 + $0x1b88] ss:$16 sps:$4 sm:$0xff]  }
 0x3eb   : > { %v5857_v46 = vpop.f32.mrb[40].mxu1  ;;  %v5818_v37 = vpop.f32.mrb[41].mxu0 }
 0x3ec   : > { %v15740_v36 = vadd.f32 %v5857_v46, %v5816_v30  ;;  %v5859_v32 = vpop.f32.mrb[41].mxu1  ;;  %v5820_v33 = vpop.f32.mrb[42].mxu0  ;;  %7678 = vmatpush1.bf16.msra.mxu0 %v13731_v26  ;;  %v13781_v26 = vld [vmem:[%s14584_s7 + $0x19ac] ss:$16 sps:$4 sm:$0xff]  }
 0x3ed   : > { %v15742_v38 = vadd.f32 %v5859_v32, %v5818_v37  ;;  %v5861_v41 = vpop.f32.mrb[42].mxu1  ;;  %7719 = vmatpush1.bf16.msra.mxu1 %v13734_v31  ;;  %v5821_v47 = vpop.f32.mrb[43].mxu0  ;;  %7679 = vmatprep.subr.bf16.mxu0 %v13739_v34  ;;  %v13784_v31 = vld [vmem:[%s14584_s7 + $0x1bac] ss:$16 sps:$4 sm:$0xff]   ;;  %v13779_v34 = vld [vmem:[%s14584_s7 + $0x19a8] ss:$16 sps:$4 sm:$0xff]  }
 0x3ee   : > { %v5862_v53 = vpop.f32.mrb[43].mxu1  ;;  %7720 = vmatprep.subr.bf16.mxu1 %v13742_v35  ;;  %v13782_v35 = vld [vmem:[%s14584_s7 + $0x1ba8] ss:$16 sps:$4 sm:$0xff]   ;;  %v13787_v30 = vld [vmem:[%s14584_s7 + $0x19cc] ss:$16 sps:$4 sm:$0xff]  }
 0x3ef   : > { %v13790_v46 = vld [vmem:[%s14584_s7 + $0x1bcc] ss:$16 sps:$4 sm:$0xff]   ;;  %v13785_v37 = vld [vmem:[%s14584_s7 + $0x19c8] ss:$16 sps:$4 sm:$0xff]  }
 0x3f0   : > { %7680 = vmatpush1.bf16.msra.mxu0 %v13737_v49  ;;  %v13788_v32 = vld [vmem:[%s14584_s7 + $0x1bc8] ss:$16 sps:$4 sm:$0xff]   ;;  %v13793_v33 = vld [vmem:[%s14584_s7 + $0x19ec] ss:$16 sps:$4 sm:$0xff]  }
 0x3f1   : > { %7721 = vmatpush1.bf16.msra.mxu1 %v13740_v43  ;;  %7681 = vmatprep.subr.bf16.mxu0 %v13745_v56  ;;  %v13796_v41 = vld [vmem:[%s14584_s7 + $0x1bec] ss:$16 sps:$4 sm:$0xff]   ;;  %v13791_v49 = vld [vmem:[%s14584_s7 + $0x19e8] ss:$16 sps:$4 sm:$0xff]  }
 0x3f2   : > { %7722 = vmatprep.subr.bf16.mxu1 %v13748_v57  ;;  %v13794_v43 = vld [vmem:[%s14584_s7 + $0x1be8] ss:$16 sps:$4 sm:$0xff]   ;;  %v13799_v47 = vld [vmem:[%s14584_s7 + $0x1c0c] ss:$16 sps:$4 sm:$0xff]  }
 0x3f3   : > { %v13802_v53 = vld [vmem:[%s14584_s7 + $0x1e0c] ss:$16 sps:$4 sm:$0xff]   ;;  %v13797_v56 = vld [vmem:[%s14584_s7 + $0x1c08] ss:$16 sps:$4 sm:$0xff]  }
 0x3f4   : > { %7682 = vmatpush1.bf16.msra.mxu0 %v13743_v61  ;;  %v13800_v57 = vld [vmem:[%s14584_s7 + $0x1e08] ss:$16 sps:$4 sm:$0xff]   ;;  %v13805_v61 = vld [vmem:[%s14584_s7 + $0x1c2c] ss:$16 sps:$4 sm:$0xff]  }
 0x3f5   : > { %7723 = vmatpush1.bf16.msra.mxu1 %v13746_v60  ;;  %7683 = vmatprep.subr.bf16.mxu0 %v13751_v6  ;;  %v13808_v60 = vld [vmem:[%s14584_s7 + $0x1e2c] ss:$16 sps:$4 sm:$0xff]   ;;  %v13803_v6 = vld [vmem:[%s14584_s7 + $0x1c28] ss:$16 sps:$4 sm:$0xff]  }
 0x3f6   : > { %7724 = vmatprep.subr.bf16.mxu1 %v13754_v7  ;;  %v13806_v7 = vld [vmem:[%s14584_s7 + $0x1e28] ss:$16 sps:$4 sm:$0xff]  }
 0x3f8   : > { %7684 = vmatpush1.bf16.msra.mxu0 %v13749_v9  ;;  %v13811_v9 = vld [vmem:[%s14584_s7 + $0x1c4c] ss:$16 sps:$4 sm:$0xff]  }
 0x3f9   : > { %7725 = vmatpush1.bf16.msra.mxu1 %v13752_v12  ;;  %7685 = vmatprep.subr.bf16.mxu0 %v13757_v18  ;;  %v13814_v12 = vld [vmem:[%s14584_s7 + $0x1e4c] ss:$16 sps:$4 sm:$0xff]   ;;  %v13821_v18 = vld [vmem:[%s14584_s7 + $0x1c88] ss:$16 sps:$4 sm:$0xff]  }
 0x3fa   : > { %7726 = vmatprep.subr.bf16.mxu1 %v13760_v14  ;;  %v13824_v14 = vld [vmem:[%s14584_s7 + $0x1e88] ss:$16 sps:$4 sm:$0xff]  }
 0x3fc   : > { %7686 = vmatpush1.bf16.msra.mxu0 %v13755_v24  ;;  %v13829_v24 = vld [vmem:[%s14584_s7 + $0x1cac] ss:$16 sps:$4 sm:$0xff]  }
 0x3fd   : > { %7727 = vmatpush1.bf16.msra.mxu1 %v13758_v15  ;;  %7687 = vmatprep.subr.bf16.mxu0 %v13763_v17  ;;  %v13832_v15 = vld [vmem:[%s14584_s7 + $0x1eac] ss:$16 sps:$4 sm:$0xff]   ;;  %v13827_v17 = vld [vmem:[%s14584_s7 + $0x1ca8] ss:$16 sps:$4 sm:$0xff]  }
 0x3fe   : > { %7728 = vmatprep.subr.bf16.mxu1 %v13766_v19  ;;  %v13830_v19 = vld [vmem:[%s14584_s7 + $0x1ea8] ss:$16 sps:$4 sm:$0xff]  }
 0x400   : > { %7688 = vmatpush1.bf16.msra.mxu0 %v13761_v50  ;;  %v13835_v50 = vld [vmem:[%s14584_s7 + $0x1ccc] ss:$16 sps:$4 sm:$0xff]  }
 0x401   : > { %7729 = vmatpush1.bf16.msra.mxu1 %v13764_v25  ;;  %7689 = vmatprep.subr.bf16.mxu0 %v13769_v54  ;;  %v13838_v25 = vld [vmem:[%s14584_s7 + $0x1ecc] ss:$16 sps:$4 sm:$0xff]  }
 0x402   : > { %7730 = vmatprep.subr.bf16.mxu1 %v13772_v55 }
 0x404   : > { %7690 = vmatpush1.bf16.msra.mxu0 %v13767_v16 }
 0x405   : > { %7731 = vmatpush1.bf16.msra.mxu1 %v13770_v27  ;;  %7691 = vmatprep.subr.bf16.mxu0 %v13775_v42 }
 0x406   : > { %7732 = vmatprep.subr.bf16.mxu1 %v13778_v20 }
 0x408   : > { %7692 = vmatpush1.bf16.msra.mxu0 %v13773_v51 }
 0x409   : > { %7733 = vmatpush1.bf16.msra.mxu1 %v13776_v21  ;;  %7693 = vmatprep.subr.bf16.mxu0 %v13781_v26  ;;  %v13833_v26 = vld [vmem:[%s14584_s7 + $0x1cc8] ss:$16 sps:$4 sm:$0xff]  }
 0x40a   : > { %7734 = vmatprep.subr.bf16.mxu1 %v13784_v31  ;;  %v13836_v31 = vld [vmem:[%s14584_s7 + $0x1ec8] ss:$16 sps:$4 sm:$0xff]  }
 0x40c   : > { %7694 = vmatpush1.bf16.msra.mxu0 %v13779_v34 }
 0x40d   : > { %7735 = vmatpush1.bf16.msra.mxu1 %v13782_v35  ;;  %7695 = vmatprep.subr.bf16.mxu0 %v13787_v30 }
 0x40e   : > { %7736 = vmatprep.subr.bf16.mxu1 %v13790_v46  ;;  %v13844_v46 = vld [vmem:[%s14584_s7 + $0x1eec] ss:$16 sps:$4 sm:$0xff]  }
 0x410   : > { %7696 = vmatpush1.bf16.msra.mxu0 %v13785_v37 }
 0x411   : > { %7737 = vmatpush1.bf16.msra.mxu1 %v13788_v32  ;;  %7697 = vmatprep.subr.bf16.mxu0 %v13793_v33  ;;  %v13839_v33 = vld [vmem:[%s14584_s7 + $0x1ce8] ss:$16 sps:$4 sm:$0xff]  }
 0x412   : > { %7738 = vmatprep.subr.bf16.mxu1 %v13796_v41  ;;  %v13842_v41 = vld [vmem:[%s14584_s7 + $0x1ee8] ss:$16 sps:$4 sm:$0xff]  }
 0x414   : > { %7698 = vmatpush1.bf16.msra.mxu0 %v13791_v49  ;;  %v13847_v49 = vld [vmem:[%s14584_s7 + $0x1d0c] ss:$16 sps:$4 sm:$0xff]  }
 0x415   : > { %7739 = vmatpush1.bf16.msra.mxu1 %v13794_v43  ;;  %7749 = vmatprep.subr.bf16.mxu0 %v13799_v47  ;;  %v13850_v43 = vld [vmem:[%s14584_s7 + $0x1f0c] ss:$16 sps:$4 sm:$0xff]   ;;  %v13848_v47 = vld [vmem:[%s14584_s7 + $0x1f08] ss:$16 sps:$4 sm:$0xff]  }
 0x416   : > { %7790 = vmatprep.subr.bf16.mxu1 %v13802_v53  ;;  %v13856_v53 = vld [vmem:[%s14584_s7 + $0x1f2c] ss:$16 sps:$4 sm:$0xff]  }
 0x417   : > { %7700 = vmatmul.mubr.bf16.vlgmr.msra.gmra.mrb[56].mxu0 %v6207_v58  ;;  %v13817_v58 = vld [vmem:[%s14584_s7 + $0x1c6c] ss:$16 sps:$4 sm:$0xff]  }
 0x418   : > { %7741 = vmatmul.mubr.bf16.vlgmr.msra.gmra.mrb[56].mxu1 %v6209_v59  ;;  %7750 = vmatpush1.bf16.msra.mxu0 %v13797_v56  ;;  %v13820_v59 = vld [vmem:[%s14584_s7 + $0x1e6c] ss:$16 sps:$4 sm:$0xff]   ;;  %v13851_v56 = vld [vmem:[%s14584_s7 + $0x1d28] ss:$16 sps:$4 sm:$0xff]  }
 0x419   : > { %7791 = vmatpush1.bf16.msra.mxu1 %v13800_v57  ;;  %7751 = vmatprep.subr.bf16.mxu0 %v13805_v61  ;;  %v13854_v57 = vld [vmem:[%s14584_s7 + $0x1f28] ss:$16 sps:$4 sm:$0xff]   ;;  %v13859_v61 = vld [vmem:[%s14584_s7 + $0x1d4c] ss:$16 sps:$4 sm:$0xff]  }
 0x41a   : > { %7792 = vmatprep.subr.bf16.mxu1 %v13808_v60  ;;  %7781 = vmatprep.mubr.bf16.mxu0 %v6212_v2  ;;  %v13823_v2 = vld [vmem:[%s14584_s7 + $0x1c8c] ss:$16 sps:$4 sm:$0xff]  }
 0x41b   : > { %7822 = vmatprep.mubr.bf16.mxu1 %v6214_v3  ;;  %v13826_v3 = vld [vmem:[%s14584_s7 + $0x1e8c] ss:$16 sps:$4 sm:$0xff]  }
 0x41c   : > { %7752 = vmatpush1.bf16.msra.mxu0 %v13803_v6  ;;  %v13862_v60 = vld [vmem:[%s14584_s7 + $0x1f4c] ss:$16 sps:$4 sm:$0xff]   ;;  %v13857_v6 = vld [vmem:[%s14584_s7 + $0x1d48] ss:$16 sps:$4 sm:$0xff]  }
 0x41d   : > { %7793 = vmatpush1.bf16.msra.mxu1 %v13806_v7  ;;  %7753 = vmatprep.subr.bf16.mxu0 %v13811_v9  ;;  %v13860_v7 = vld [vmem:[%s14584_s7 + $0x1f48] ss:$16 sps:$4 sm:$0xff]   ;;  %v13865_v9 = vld [vmem:[%s14584_s7 + $0x1d6c] ss:$16 sps:$4 sm:$0xff]  }
 0x41e   : > { %7794 = vmatprep.subr.bf16.mxu1 %v13814_v12  ;;  %v13868_v12 = vld [vmem:[%s14584_s7 + $0x1f6c] ss:$16 sps:$4 sm:$0xff]  }
 0x420   : > { %7754 = vmatpush1.bf16.msra.mxu0 %v13809_v10  ;;  %v13863_v10 = vld [vmem:[%s14584_s7 + $0x1d68] ss:$16 sps:$4 sm:$0xff]  }
 0x421   : > { %7795 = vmatpush1.bf16.msra.mxu1 %v13812_v11  ;;  %7755 = vmatprep.subr.bf16.mxu0 %v13817_v58  ;;  %v13866_v11 = vld [vmem:[%s14584_s7 + $0x1f68] ss:$16 sps:$4 sm:$0xff]   ;;  %v13871_v58 = vld [vmem:[%s14584_s7 + $0x1d8c] ss:$16 sps:$4 sm:$0xff]  }
 0x422   : > { %7796 = vmatprep.subr.bf16.mxu1 %v13820_v59  ;;  %v13874_v59 = vld [vmem:[%s14584_s7 + $0x1f8c] ss:$16 sps:$4 sm:$0xff]  }
 0x424   : > { %7756 = vmatpush1.bf16.msra.mxu0 %v13815_v44  ;;  %v13869_v44 = vld [vmem:[%s14584_s7 + $0x1d88] ss:$16 sps:$4 sm:$0xff]  }
 0x425   : > { %7797 = vmatpush1.bf16.msra.mxu1 %v13818_v45  ;;  %7757 = vmatprep.subr.bf16.mxu0 %v13823_v2  ;;  %v13872_v45 = vld [vmem:[%s14584_s7 + $0x1f88] ss:$16 sps:$4 sm:$0xff]   ;;  %v13877_v2 = vld [vmem:[%s14584_s7 + $0x1dac] ss:$16 sps:$4 sm:$0xff]  }
 0x426   : > { %7798 = vmatprep.subr.bf16.mxu1 %v13826_v3  ;;  %v13880_v3 = vld [vmem:[%s14584_s7 + $0x1fac] ss:$16 sps:$4 sm:$0xff]  }
 0x428   : > { %7758 = vmatpush1.bf16.msra.mxu0 %v13821_v18  ;;  %v13875_v18 = vld [vmem:[%s14584_s7 + $0x1da8] ss:$16 sps:$4 sm:$0xff]  }
 0x429   : > { %7799 = vmatpush1.bf16.msra.mxu1 %v13824_v14  ;;  %7759 = vmatprep.subr.bf16.mxu0 %v13829_v24  ;;  %v13878_v14 = vld [vmem:[%s14584_s7 + $0x1fa8] ss:$16 sps:$4 sm:$0xff]   ;;  %v13883_v24 = vld [vmem:[%s14584_s7 + $0x1dcc] ss:$16 sps:$4 sm:$0xff]  }
 0x42a   : > { %7800 = vmatprep.subr.bf16.mxu1 %v13832_v15  ;;  %v5898_v54 = vpop.f32.mrb[44].mxu0  ;;  %v13886_v15 = vld [vmem:[%s14584_s7 + $0x1fcc] ss:$16 sps:$4 sm:$0xff]  }
 0x42b   : > { %v5939_v55 = vpop.f32.mrb[44].mxu1  ;;  %v5899_v16 = vadd.f32 %v5898_v54, %v15740_v36  ;;  %v5900_v27 = vpop.f32.mrb[45].mxu0  ;;  %v13841_v36 = vld [vmem:[%s14584_s7 + $0x1cec] ss:$16 sps:$4 sm:$0xff]   ;;  %v13887_v54 = vld [vmem:[%s14584_s7 + $0x1de8] ss:$16 sps:$4 sm:$0xff]  }
 0x42c   : > { %v5941_v42 = vpop.f32.mrb[45].mxu1  ;;  %v5901_v20 = vadd.f32 %v5900_v27, %v15742_v38  ;;  %v5902_v51 = vpop.f32.mrb[46].mxu0  ;;  %7760 = vmatpush1.bf16.msra.mxu0 %v13827_v17  ;;  %v13881_v17 = vld [vmem:[%s14584_s7 + $0x1dc8] ss:$16 sps:$4 sm:$0xff]   ;;  %v13898_v27 = vld [vmem:[%s14584_s7 + $0x2204] ss:$16 sps:$4 sm:$0xff]  }
 0x42d   : > { %v5943_v21 = vpop.f32.mrb[46].mxu1  ;;  %7801 = vmatpush1.bf16.msra.mxu1 %v13830_v19  ;;  %v5940_v34 = vadd.f32 %v5939_v55, %v5899_v16  ;;  %v5903_v35 = vpop.f32.mrb[47].mxu0  ;;  %7761 = vmatprep.subr.bf16.mxu0 %v13835_v50  ;;  %v13884_v19 = vld [vmem:[%s14584_s7 + $0x1fc8] ss:$16 sps:$4 sm:$0xff]   ;;  %v13889_v50 = vld [vmem:[%s14584_s7 + $0x1dec] ss:$16 sps:$4 sm:$0xff]  }
 0x42e   : > { %v5944_v30 = vpop.f32.mrb[47].mxu1  ;;  %7802 = vmatprep.subr.bf16.mxu1 %v13838_v25  ;;  %v5942_v38 = vadd.f32 %v5941_v42, %v5901_v20  ;;  %v13892_v25 = vld [vmem:[%s14584_s7 + $0x1fec] ss:$16 sps:$4 sm:$0xff]   ;;  %v13890_v55 = vld [vmem:[%s14584_s7 + $0x1fe8] ss:$16 sps:$4 sm:$0xff]  }
 0x42f   : > { %v15823_v37 = vadd.f32 %v5940_v34, %v15502_v8  ;;  %v13845_v8 = vld [vmem:[%s14584_s7 + $0x1d08] ss:$16 sps:$4 sm:$0xff]   ;;  %v13895_v16 = vld [vmem:[%s14584_s7 + $0x2004] ss:$16 sps:$4 sm:$0xff]   ;;  %v13893_v42 = vld [vmem:[%s14584_s7 + $0x2000] ss:$16 sps:$4 sm:$0xff]  }
 0x430   : > { %v15826_v32 = vadd.f32 %v5942_v38, %v15506_v13  ;;  %7762 = vmatpush1.bf16.msra.mxu0 %v13833_v26  ;;  %v13853_v13 = vld [vmem:[%s14584_s7 + $0x1d2c] ss:$16 sps:$4 sm:$0xff]   ;;  %v13896_v20 = vld [vmem:[%s14584_s7 + $0x2200] ss:$16 sps:$4 sm:$0xff]   ;;  %v13901_v51 = vld [vmem:[%s14584_s7 + $0x2024] ss:$16 sps:$4 sm:$0xff]  }
 0x431   : > { %7803 = vmatpush1.bf16.msra.mxu1 %v13836_v31  ;;  %7763 = vmatprep.subr.bf16.mxu0 %v13841_v36  ;;  %v13904_v21 = vld [vmem:[%s14584_s7 + $0x2224] ss:$16 sps:$4 sm:$0xff]   ;;  %v8093_v26 = vrot.slane %v14654_v48, 2  ;;  %v8095_v31 = vrot.slane %v14659_v52, 2  ;;  %v13899_v34 = vld [vmem:[%s14584_s7 + $0x2020] ss:$16 sps:$4 sm:$0xff]  }
 0x432   : > { %7804 = vmatprep.subr.bf16.mxu1 %v13844_v46  ;;  %v13902_v35 = vld [vmem:[%s14584_s7 + $0x2220] ss:$16 sps:$4 sm:$0xff]   ;;  %v13907_v30 = vld [vmem:[%s14584_s7 + $0x2044] ss:$16 sps:$4 sm:$0xff]   ;;  %v14103_v48 = vld [vmem:[%s14584_s7 + $0x2068] ss:$16 sps:$4 sm:$0xff]  }
 0x433   : > { %v13910_v36 = vld [vmem:[%s14584_s7 + $0x2244] ss:$16 sps:$4 sm:$0xff]   ;;  %v13911_v46 = vld [vmem:[%s14584_s7 + $0x2060] ss:$16 sps:$4 sm:$0xff]   ;;  %v14106_v52 = vld [vmem:[%s14584_s7 + $0x2268] ss:$16 sps:$4 sm:$0xff]  }
 0x434   : > { %7764 = vmatpush1.bf16.msra.mxu0 %v13839_v33  ;;  %v13914_v38 = vld [vmem:[%s14584_s7 + $0x2260] ss:$16 sps:$4 sm:$0xff]   ;;  %v13919_v33 = vld [vmem:[%s14584_s7 + $0x2084] ss:$16 sps:$4 sm:$0xff]  }
 0x435   : > { %7805 = vmatpush1.bf16.msra.mxu1 %v13842_v41  ;;  %7765 = vmatprep.subr.bf16.mxu0 %v13847_v49  ;;  %v13922_v41 = vld [vmem:[%s14584_s7 + $0x2284] ss:$16 sps:$4 sm:$0xff]   ;;  %v13917_v49 = vld [vmem:[%s14584_s7 + $0x2080] ss:$16 sps:$4 sm:$0xff]  }
 0x436   : > { %7806 = vmatprep.subr.bf16.mxu1 %v13850_v43  ;;  %v13920_v43 = vld [vmem:[%s14584_s7 + $0x2280] ss:$16 sps:$4 sm:$0xff]  }
 0x438   : > { %7766 = vmatpush1.bf16.msra.mxu0 %v13845_v8  ;;  %v13925_v8 = vld [vmem:[%s14584_s7 + $0x20a4] ss:$16 sps:$4 sm:$0xff]  }
 0x439   : > { %7807 = vmatpush1.bf16.msra.mxu1 %v13848_v47  ;;  %7767 = vmatprep.subr.bf16.mxu0 %v13853_v13  ;;  %v13928_v47 = vld [vmem:[%s14584_s7 + $0x22a4] ss:$16 sps:$4 sm:$0xff]   ;;  %v13923_v13 = vld [vmem:[%s14584_s7 + $0x20a0] ss:$16 sps:$4 sm:$0xff]  }
 0x43a   : > { %7808 = vmatprep.subr.bf16.mxu1 %v13856_v53  ;;  %v13926_v53 = vld [vmem:[%s14584_s7 + $0x22a0] ss:$16 sps:$4 sm:$0xff]  }
 0x43c   : > { %7768 = vmatpush1.bf16.msra.mxu0 %v13851_v56  ;;  %v13931_v56 = vld [vmem:[%s14584_s7 + $0x20c4] ss:$16 sps:$4 sm:$0xff]  }
 0x43d   : > { %7809 = vmatpush1.bf16.msra.mxu1 %v13854_v57  ;;  %7769 = vmatprep.subr.bf16.mxu0 %v13859_v61  ;;  %v13934_v57 = vld [vmem:[%s14584_s7 + $0x22c4] ss:$16 sps:$4 sm:$0xff]  }
 0x43e   : > { %7810 = vmatprep.subr.bf16.mxu1 %v13862_v60 }
 0x440   : > { %7770 = vmatpush1.bf16.msra.mxu0 %v13857_v6 }
 0x441   : > { %7811 = vmatpush1.bf16.msra.mxu1 %v13860_v7  ;;  %7771 = vmatprep.subr.bf16.mxu0 %v13865_v9 }
 0x442   : > { %7812 = vmatprep.subr.bf16.mxu1 %v13868_v12 }
 0x444   : > { %7772 = vmatpush1.bf16.msra.mxu0 %v13863_v10 }
 0x445   : > { %7813 = vmatpush1.bf16.msra.mxu1 %v13866_v11  ;;  %7773 = vmatprep.subr.bf16.mxu0 %v13871_v58  ;;  %v13929_v58 = vld [vmem:[%s14584_s7 + $0x20c0] ss:$16 sps:$4 sm:$0xff]  }
 0x446   : > { %7814 = vmatprep.subr.bf16.mxu1 %v13874_v59  ;;  %v13932_v59 = vld [vmem:[%s14584_s7 + $0x22c0] ss:$16 sps:$4 sm:$0xff]  }
 0x448   : > { %7774 = vmatpush1.bf16.msra.mxu0 %v13869_v44 }
 0x449   : > { %7815 = vmatpush1.bf16.msra.mxu1 %v13872_v45  ;;  %7775 = vmatprep.subr.bf16.mxu0 %v13877_v2  ;;  %v13937_v2 = vld [vmem:[%s14584_s7 + $0x20e4] ss:$16 sps:$4 sm:$0xff]  }
 0x44a   : > { %7816 = vmatprep.subr.bf16.mxu1 %v13880_v3  ;;  %v13940_v3 = vld [vmem:[%s14584_s7 + $0x22e4] ss:$16 sps:$4 sm:$0xff]  }
 0x44c   : > { %7776 = vmatpush1.bf16.msra.mxu0 %v13875_v18  ;;  %v13935_v18 = vld [vmem:[%s14584_s7 + $0x20e0] ss:$16 sps:$4 sm:$0xff]  }
 0x44d   : > { %7817 = vmatpush1.bf16.msra.mxu1 %v13878_v14  ;;  %7777 = vmatprep.subr.bf16.mxu0 %v13883_v24  ;;  %v13938_v14 = vld [vmem:[%s14584_s7 + $0x22e0] ss:$16 sps:$4 sm:$0xff]   ;;  %v13943_v24 = vld [vmem:[%s14584_s7 + $0x2104] ss:$16 sps:$4 sm:$0xff]  }
 0x44e   : > { %7818 = vmatprep.subr.bf16.mxu1 %v13886_v15  ;;  %v13946_v15 = vld [vmem:[%s14584_s7 + $0x2304] ss:$16 sps:$4 sm:$0xff]  }
 0x450   : > { %7778 = vmatpush1.bf16.msra.mxu0 %v13881_v17  ;;  %v13941_v17 = vld [vmem:[%s14584_s7 + $0x2100] ss:$16 sps:$4 sm:$0xff]  }
 0x451   : > { %7819 = vmatpush1.bf16.msra.mxu1 %v13884_v19  ;;  %7779 = vmatprep.subr.bf16.mxu0 %v13889_v50  ;;  %v13944_v19 = vld [vmem:[%s14584_s7 + $0x2300] ss:$16 sps:$4 sm:$0xff]   ;;  %v13949_v50 = vld [vmem:[%s14584_s7 + $0x2124] ss:$16 sps:$4 sm:$0xff]  }
 0x452   : > { %7820 = vmatprep.subr.bf16.mxu1 %v13892_v25  ;;  %v13952_v25 = vld [vmem:[%s14584_s7 + $0x2324] ss:$16 sps:$4 sm:$0xff]  }
 0x454   : > { %7780 = vmatpush1.bf16.msra.mxu0 %v13887_v54  ;;  %v13947_v54 = vld [vmem:[%s14584_s7 + $0x2120] ss:$16 sps:$4 sm:$0xff]  }
 0x455   : > { %7821 = vmatpush1.bf16.msra.mxu1 %v13890_v55  ;;  %9388 = vmatprep.subr.bf16.mxu0 %v13895_v16  ;;  %v13950_v55 = vld [vmem:[%s14584_s7 + $0x2320] ss:$16 sps:$4 sm:$0xff]   ;;  %v13955_v16 = vld [vmem:[%s14584_s7 + $0x2144] ss:$16 sps:$4 sm:$0xff]  }
 0x456   : > { %9429 = vmatprep.subr.bf16.mxu1 %v13898_v27  ;;  %v13958_v27 = vld [vmem:[%s14584_s7 + $0x2344] ss:$16 sps:$4 sm:$0xff]  }
 0x457   : > { %7782 = vmatmul.mubr.bf16.vlgmr.msra.gmra.mrb[60].mxu0 %v6211_v62  ;;  %v13913_v62 = vld [vmem:[%s14584_s7 + $0x2064] ss:$16 sps:$4 sm:$0xff]  }
 0x458   : > { %7823 = vmatmul.mubr.bf16.vlgmr.msra.gmra.mrb[60].mxu1 %v6213_v63  ;;  %9389 = vmatpush1.bf16.msra.mxu0 %v13893_v42  ;;  %v13916_v63 = vld [vmem:[%s14584_s7 + $0x2264] ss:$16 sps:$4 sm:$0xff]   ;;  %v13953_v42 = vld [vmem:[%s14584_s7 + $0x2140] ss:$16 sps:$4 sm:$0xff]  }
 0x459   : > { %9430 = vmatpush1.bf16.msra.mxu1 %v13896_v20  ;;  %9390 = vmatprep.subr.bf16.mxu0 %v13901_v51  ;;  %v13956_v20 = vld [vmem:[%s14584_s7 + $0x2340] ss:$16 sps:$4 sm:$0xff]   ;;  %v13961_v51 = vld [vmem:[%s14584_s7 + $0x2164] ss:$16 sps:$4 sm:$0xff]  }
 0x45a   : > { %9431 = vmatprep.subr.bf16.mxu1 %v13904_v21  ;;  %9420 = vmatprep.mubr.bf16.mxu0 %v8093_v26  ;;  %v13964_v21 = vld [vmem:[%s14584_s7 + $0x2364] ss:$16 sps:$4 sm:$0xff]  }
 0x45b   : > { %9461 = vmatprep.mubr.bf16.mxu1 %v8095_v31 }
 0x45c   : > { %9391 = vmatpush1.bf16.msra.mxu0 %v13899_v34  ;;  %v13959_v34 = vld [vmem:[%s14584_s7 + $0x2160] ss:$16 sps:$4 sm:$0xff]  }
 0x45d   : > { %9432 = vmatpush1.bf16.msra.mxu1 %v13902_v35  ;;  %9392 = vmatprep.subr.bf16.mxu0 %v13907_v30  ;;  %v13962_v35 = vld [vmem:[%s14584_s7 + $0x2360] ss:$16 sps:$4 sm:$0xff]   ;;  %v13967_v30 = vld [vmem:[%s14584_s7 + $0x2184] ss:$16 sps:$4 sm:$0xff]  }
 0x45e   : > { %9433 = vmatprep.subr.bf16.mxu1 %v13910_v36  ;;  %v13970_v36 = vld [vmem:[%s14584_s7 + $0x2384] ss:$16 sps:$4 sm:$0xff]  }
 0x460   : > { %9393 = vmatpush1.bf16.msra.mxu0 %v13905_v28  ;;  %v13965_v28 = vld [vmem:[%s14584_s7 + $0x2180] ss:$16 sps:$4 sm:$0xff]  }
 0x461   : > { %9434 = vmatpush1.bf16.msra.mxu1 %v13908_v29  ;;  %9394 = vmatprep.subr.bf16.mxu0 %v13913_v62  ;;  %v13968_v29 = vld [vmem:[%s14584_s7 + $0x2380] ss:$16 sps:$4 sm:$0xff]   ;;  %v13973_v62 = vld [vmem:[%s14584_s7 + $0x21a4] ss:$16 sps:$4 sm:$0xff]  }
 0x462   : > { %9435 = vmatprep.subr.bf16.mxu1 %v13916_v63  ;;  %v13976_v63 = vld [vmem:[%s14584_s7 + $0x23a4] ss:$16 sps:$4 sm:$0xff]  }
 0x464   : > { %9395 = vmatpush1.bf16.msra.mxu0 %v13911_v46  ;;  %v13971_v46 = vld [vmem:[%s14584_s7 + $0x21a0] ss:$16 sps:$4 sm:$0xff]  }
 0x465   : > { %9436 = vmatpush1.bf16.msra.mxu1 %v13914_v38  ;;  %9396 = vmatprep.subr.bf16.mxu0 %v13919_v33  ;;  %v13974_v38 = vld [vmem:[%s14584_s7 + $0x23a0] ss:$16 sps:$4 sm:$0xff]   ;;  %v13979_v33 = vld [vmem:[%s14584_s7 + $0x21c4] ss:$16 sps:$4 sm:$0xff]  }
 0x466   : > { %9437 = vmatprep.subr.bf16.mxu1 %v13922_v41  ;;  %v13982_v41 = vld [vmem:[%s14584_s7 + $0x23c4] ss:$16 sps:$4 sm:$0xff]  }
 0x468   : > { %9397 = vmatpush1.bf16.msra.mxu0 %v13917_v49  ;;  %v13977_v49 = vld [vmem:[%s14584_s7 + $0x21c0] ss:$16 sps:$4 sm:$0xff]  }
 0x469   : > { %9438 = vmatpush1.bf16.msra.mxu1 %v13920_v43  ;;  %9398 = vmatprep.subr.bf16.mxu0 %v13925_v8  ;;  %v13980_v43 = vld [vmem:[%s14584_s7 + $0x23c0] ss:$16 sps:$4 sm:$0xff]   ;;  %v13985_v8 = vld [vmem:[%s14584_s7 + $0x21e4] ss:$16 sps:$4 sm:$0xff]  }
 0x46a   : > { %9439 = vmatprep.subr.bf16.mxu1 %v13928_v47  ;;  %v7537_v61 = vpop.f32.mrb[48].mxu0  ;;  %v13988_v47 = vld [vmem:[%s14584_s7 + $0x23e4] ss:$16 sps:$4 sm:$0xff]  }
 0x46b   : > { %v7578_v60 = vpop.f32.mrb[48].mxu1  ;;  %v7539_v7 = vpop.f32.mrb[49].mxu0 }
 0x46c   : > { %v15898_v6 = vadd.f32 %v7578_v60, %v7537_v61  ;;  %v7580_v9 = vpop.f32.mrb[49].mxu1  ;;  %v7541_v10 = vpop.f32.mrb[50].mxu0  ;;  %9399 = vmatpush1.bf16.msra.mxu0 %v13923_v13  ;;  %v13983_v13 = vld [vmem:[%s14584_s7 + $0x21e0] ss:$16 sps:$4 sm:$0xff]   ;;  %v8092_v61 = vrot.slane %v14682_v4, 2  ;;  %v8094_v60 = vrot.slane %v14684_v5, 2 }
 0x46d   : > { %v15900_v12 = vadd.f32 %v7580_v9, %v7539_v7  ;;  %v7582_v11 = vpop.f32.mrb[50].mxu1  ;;  %9440 = vmatpush1.bf16.msra.mxu1 %v13926_v53  ;;  %v7542_v44 = vpop.f32.mrb[51].mxu0  ;;  %9400 = vmatprep.subr.bf16.mxu0 %v13931_v56  ;;  %v13986_v53 = vld [vmem:[%s14584_s7 + $0x23e0] ss:$16 sps:$4 sm:$0xff]   ;;  %v13991_v56 = vld [vmem:[%s14584_s7 + $0x2404] ss:$16 sps:$4 sm:$0xff]  }
 0x46e   : > { %v7583_v45 = vpop.f32.mrb[51].mxu1  ;;  %9441 = vmatprep.subr.bf16.mxu1 %v13934_v57  ;;  %v13994_v57 = vld [vmem:[%s14584_s7 + $0x2604] ss:$16 sps:$4 sm:$0xff]   ;;  %v13989_v7 = vld [vmem:[%s14584_s7 + $0x2400] ss:$16 sps:$4 sm:$0xff]  }
 0x46f   : > { %v13992_v9 = vld [vmem:[%s14584_s7 + $0x2600] ss:$16 sps:$4 sm:$0xff]   ;;  %v13997_v10 = vld [vmem:[%s14584_s7 + $0x2424] ss:$16 sps:$4 sm:$0xff]   ;;  %v14193_v4 = vld [vmem:[%s14584_s7 + $0x2448] ss:$16 sps:$4 sm:$0xff]  }
 0x470   : > { %9401 = vmatpush1.bf16.msra.mxu0 %v13929_v58  ;;  %v14000_v11 = vld [vmem:[%s14584_s7 + $0x2624] ss:$16 sps:$4 sm:$0xff]   ;;  %v8097_v58 = vrot.slane %v14731_v39, 2  ;;  %v13995_v44 = vld [vmem:[%s14584_s7 + $0x2420] ss:$16 sps:$4 sm:$0xff]  }
 0x471   : > { %9442 = vmatpush1.bf16.msra.mxu1 %v13932_v59  ;;  %9402 = vmatprep.subr.bf16.mxu0 %v13937_v2  ;;  %v8099_v59 = vrot.slane %v14735_v40, 2  ;;  %v13998_v45 = vld [vmem:[%s14584_s7 + $0x2620] ss:$16 sps:$4 sm:$0xff]   ;;  %v14003_v2 = vld [vmem:[%s14584_s7 + $0x2444] ss:$16 sps:$4 sm:$0xff]  }
 0x472   : > { %9443 = vmatprep.subr.bf16.mxu1 %v13940_v3  ;;  %v14006_v3 = vld [vmem:[%s14584_s7 + $0x2644] ss:$16 sps:$4 sm:$0xff]   ;;  %v14196_v5 = vld [vmem:[%s14584_s7 + $0x2648] ss:$16 sps:$4 sm:$0xff]  }
 0x473   : > { %v14199_v39 = vld [vmem:[%s14584_s7 + $0x2468] ss:$16 sps:$4 sm:$0xff]  }
 0x474   : > { %9403 = vmatpush1.bf16.msra.mxu0 %v13935_v18  ;;  %v14001_v18 = vld [vmem:[%s14584_s7 + $0x2440] ss:$16 sps:$4 sm:$0xff]   ;;  %v14202_v40 = vld [vmem:[%s14584_s7 + $0x2668] ss:$16 sps:$4 sm:$0xff]  }
 0x475   : > { %9444 = vmatpush1.bf16.msra.mxu1 %v13938_v14  ;;  %9404 = vmatprep.subr.bf16.mxu0 %v13943_v24  ;;  %v14004_v14 = vld [vmem:[%s14584_s7 + $0x2640] ss:$16 sps:$4 sm:$0xff]   ;;  %v14009_v24 = vld [vmem:[%s14584_s7 + $0x2464] ss:$16 sps:$4 sm:$0xff]  }
 0x476   : > { %9445 = vmatprep.subr.bf16.mxu1 %v13946_v15  ;;  %v14012_v15 = vld [vmem:[%s14584_s7 + $0x2664] ss:$16 sps:$4 sm:$0xff]  }
 0x478   : > { %9405 = vmatpush1.bf16.msra.mxu0 %v13941_v17  ;;  %v14007_v17 = vld [vmem:[%s14584_s7 + $0x2460] ss:$16 sps:$4 sm:$0xff]  }
 0x479   : > { %9446 = vmatpush1.bf16.msra.mxu1 %v13944_v19  ;;  %9406 = vmatprep.subr.bf16.mxu0 %v13949_v50  ;;  %v14010_v19 = vld [vmem:[%s14584_s7 + $0x2660] ss:$16 sps:$4 sm:$0xff]   ;;  %v14015_v50 = vld [vmem:[%s14584_s7 + $0x2484] ss:$16 sps:$4 sm:$0xff]  }
 0x47a   : > { %9447 = vmatprep.subr.bf16.mxu1 %v13952_v25  ;;  %v14018_v25 = vld [vmem:[%s14584_s7 + $0x2684] ss:$16 sps:$4 sm:$0xff]  }
 0x47c   : > { %9407 = vmatpush1.bf16.msra.mxu0 %v13947_v54  ;;  %v14013_v54 = vld [vmem:[%s14584_s7 + $0x2480] ss:$16 sps:$4 sm:$0xff]  }
 0x47d   : > { %9448 = vmatpush1.bf16.msra.mxu1 %v13950_v55  ;;  %9408 = vmatprep.subr.bf16.mxu0 %v13955_v16  ;;  %v14016_v55 = vld [vmem:[%s14584_s7 + $0x2680] ss:$16 sps:$4 sm:$0xff]   ;;  %v14021_v16 = vld [vmem:[%s14584_s7 + $0x24a4] ss:$16 sps:$4 sm:$0xff]  }
 0x47e   : > { %9449 = vmatprep.subr.bf16.mxu1 %v13958_v27  ;;  %v14024_v27 = vld [vmem:[%s14584_s7 + $0x26a4] ss:$16 sps:$4 sm:$0xff]  }
 0x480   : > { %9409 = vmatpush1.bf16.msra.mxu0 %v13953_v42  ;;  %v14019_v42 = vld [vmem:[%s14584_s7 + $0x24a0] ss:$16 sps:$4 sm:$0xff]  }
 0x481   : > { %9450 = vmatpush1.bf16.msra.mxu1 %v13956_v20  ;;  %9410 = vmatprep.subr.bf16.mxu0 %v13961_v51  ;;  %v14022_v20 = vld [vmem:[%s14584_s7 + $0x26a0] ss:$16 sps:$4 sm:$0xff]   ;;  %v14027_v51 = vld [vmem:[%s14584_s7 + $0x24c4] ss:$16 sps:$4 sm:$0xff]  }
 0x482   : > { %9451 = vmatprep.subr.bf16.mxu1 %v13964_v21  ;;  %v14030_v21 = vld [vmem:[%s14584_s7 + $0x26c4] ss:$16 sps:$4 sm:$0xff]  }
 0x484   : > { %9411 = vmatpush1.bf16.msra.mxu0 %v13959_v34 }
 0x485   : > { %9452 = vmatpush1.bf16.msra.mxu1 %v13962_v35  ;;  %9412 = vmatprep.subr.bf16.mxu0 %v13967_v30 }
 0x486   : > { %9453 = vmatprep.subr.bf16.mxu1 %v13970_v36 }
 0x488   : > { %9413 = vmatpush1.bf16.msra.mxu0 %v13965_v28 }
 0x489   : > { %9454 = vmatpush1.bf16.msra.mxu1 %v13968_v29  ;;  %9414 = vmatprep.subr.bf16.mxu0 %v13973_v62 }
 0x48a   : > { %9455 = vmatprep.subr.bf16.mxu1 %v13976_v63 }
 0x48c   : > { %9415 = vmatpush1.bf16.msra.mxu0 %v13971_v46  ;;  %v14025_v46 = vld [vmem:[%s14584_s7 + $0x24c0] ss:$16 sps:$4 sm:$0xff]  }
 0x48d   : > { %9456 = vmatpush1.bf16.msra.mxu1 %v13974_v38  ;;  %9416 = vmatprep.subr.bf16.mxu0 %v13979_v33  ;;  %v14028_v38 = vld [vmem:[%s14584_s7 + $0x26c0] ss:$16 sps:$4 sm:$0xff]  }
 0x48e   : > { %9457 = vmatprep.subr.bf16.mxu1 %v13982_v41 }
 0x490   : > { %9417 = vmatpush1.bf16.msra.mxu0 %v13977_v49 }
 0x491   : > { %9458 = vmatpush1.bf16.msra.mxu1 %v13980_v43  ;;  %9418 = vmatprep.subr.bf16.mxu0 %v13985_v8  ;;  %v14036_v43 = vld [vmem:[%s14584_s7 + $0x26e4] ss:$16 sps:$4 sm:$0xff]  }
 0x492   : > { %9459 = vmatprep.subr.bf16.mxu1 %v13988_v47 }
 0x494   : > { %9419 = vmatpush1.bf16.msra.mxu0 %v13983_v13  ;;  %v14031_v13 = vld [vmem:[%s14584_s7 + $0x24e0] ss:$16 sps:$4 sm:$0xff]  }
 0x495   : > { %9460 = vmatpush1.bf16.msra.mxu1 %v13986_v53  ;;  %9470 = vmatprep.subr.bf16.mxu0 %v13991_v56  ;;  %v14034_v53 = vld [vmem:[%s14584_s7 + $0x26e0] ss:$16 sps:$4 sm:$0xff]   ;;  %v14039_v56 = vld [vmem:[%s14584_s7 + $0x2504] ss:$16 sps:$4 sm:$0xff]  }
 0x496   : > { %9511 = vmatprep.subr.bf16.mxu1 %v13994_v57  ;;  %v14042_v57 = vld [vmem:[%s14584_s7 + $0x2704] ss:$16 sps:$4 sm:$0xff]  }
 0x497   : > { %9421 = vmatmul.mubr.bf16.vlgmr.msra.gmra.mrb[64].mxu0 %v8092_v61 }
 0x498   : > { %9462 = vmatmul.mubr.bf16.vlgmr.msra.gmra.mrb[64].mxu1 %v8094_v60  ;;  %9471 = vmatpush1.bf16.msra.mxu0 %v13989_v7  ;;  %v14040_v7 = vld [vmem:[%s14584_s7 + $0x2700] ss:$16 sps:$4 sm:$0xff]  }
 0x499   : > { %9512 = vmatpush1.bf16.msra.mxu1 %v13992_v9  ;;  %9472 = vmatprep.subr.bf16.mxu0 %v13997_v10  ;;  %v14048_v9 = vld [vmem:[%s14584_s7 + $0x2724] ss:$16 sps:$4 sm:$0xff]   ;;  %v14043_v10 = vld [vmem:[%s14584_s7 + $0x2520] ss:$16 sps:$4 sm:$0xff]  }
 0x49a   : > { %9513 = vmatprep.subr.bf16.mxu1 %v14000_v11  ;;  %9502 = vmatprep.mubr.bf16.mxu0 %v8097_v58  ;;  %v14046_v11 = vld [vmem:[%s14584_s7 + $0x2720] ss:$16 sps:$4 sm:$0xff]  }
 0x49b   : > { %9543 = vmatprep.mubr.bf16.mxu1 %v8099_v59 }
 0x49c   : > { %9473 = vmatpush1.bf16.msra.mxu0 %v13995_v44  ;;  %v14051_v44 = vld [vmem:[%s14584_s7 + $0x2544] ss:$16 sps:$4 sm:$0xff]  }
 0x49d   : > { %9514 = vmatpush1.bf16.msra.mxu1 %v13998_v45  ;;  %9474 = vmatprep.subr.bf16.mxu0 %v14003_v2  ;;  %v14054_v45 = vld [vmem:[%s14584_s7 + $0x2744] ss:$16 sps:$4 sm:$0xff]   ;;  %v14049_v2 = vld [vmem:[%s14584_s7 + $0x2540] ss:$16 sps:$4 sm:$0xff]  }
 0x49e   : > { %9515 = vmatprep.subr.bf16.mxu1 %v14006_v3  ;;  %v14052_v3 = vld [vmem:[%s14584_s7 + $0x2740] ss:$16 sps:$4 sm:$0xff]  }
 0x4a0   : > { %9475 = vmatpush1.bf16.msra.mxu0 %v14001_v18  ;;  %v14057_v18 = vld [vmem:[%s14584_s7 + $0x2564] ss:$16 sps:$4 sm:$0xff]  }
 0x4a1   : > { %9516 = vmatpush1.bf16.msra.mxu1 %v14004_v14  ;;  %9476 = vmatprep.subr.bf16.mxu0 %v14009_v24  ;;  %v14060_v14 = vld [vmem:[%s14584_s7 + $0x2764] ss:$16 sps:$4 sm:$0xff]   ;;  %v14055_v24 = vld [vmem:[%s14584_s7 + $0x2560] ss:$16 sps:$4 sm:$0xff]  }
 0x4a2   : > { %9517 = vmatprep.subr.bf16.mxu1 %v14012_v15  ;;  %v14058_v15 = vld [vmem:[%s14584_s7 + $0x2760] ss:$16 sps:$4 sm:$0xff]  }
 0x4a4   : > { %9477 = vmatpush1.bf16.msra.mxu0 %v14007_v17  ;;  %v14063_v17 = vld [vmem:[%s14584_s7 + $0x2584] ss:$16 sps:$4 sm:$0xff]  }
 0x4a5   : > { %9518 = vmatpush1.bf16.msra.mxu1 %v14010_v19  ;;  %9478 = vmatprep.subr.bf16.mxu0 %v14015_v50  ;;  %v14066_v19 = vld [vmem:[%s14584_s7 + $0x2784] ss:$16 sps:$4 sm:$0xff]   ;;  %v14061_v50 = vld [vmem:[%s14584_s7 + $0x2580] ss:$16 sps:$4 sm:$0xff]  }
 0x4a6   : > { %9519 = vmatprep.subr.bf16.mxu1 %v14018_v25  ;;  %v14064_v25 = vld [vmem:[%s14584_s7 + $0x2780] ss:$16 sps:$4 sm:$0xff]  }
 0x4a8   : > { %9479 = vmatpush1.bf16.msra.mxu0 %v14013_v54  ;;  %v14069_v54 = vld [vmem:[%s14584_s7 + $0x25a4] ss:$16 sps:$4 sm:$0xff]  }
 0x4a9   : > { %9520 = vmatpush1.bf16.msra.mxu1 %v14016_v55  ;;  %9480 = vmatprep.subr.bf16.mxu0 %v14021_v16  ;;  %v14072_v55 = vld [vmem:[%s14584_s7 + $0x27a4] ss:$16 sps:$4 sm:$0xff]   ;;  %v14067_v16 = vld [vmem:[%s14584_s7 + $0x25a0] ss:$16 sps:$4 sm:$0xff]  }
 0x4aa   : > { %9521 = vmatprep.subr.bf16.mxu1 %v14024_v27  ;;  %v7619_v34 = vpop.f32.mrb[52].mxu0  ;;  %v14070_v27 = vld [vmem:[%s14584_s7 + $0x27a0] ss:$16 sps:$4 sm:$0xff]  }
 0x4ab   : > { %v7660_v35 = vpop.f32.mrb[52].mxu1  ;;  %v7620_v30 = vadd.f32 %v7619_v34, %v15898_v6  ;;  %v7621_v36 = vpop.f32.mrb[53].mxu0  ;;  %v14033_v6 = vld [vmem:[%s14584_s7 + $0x24e4] ss:$16 sps:$4 sm:$0xff]  }
 0x4ac   : > { %v7662_v28 = vpop.f32.mrb[53].mxu1  ;;  %v7622_v29 = vadd.f32 %v7621_v36, %v15900_v12  ;;  %v7623_v62 = vpop.f32.mrb[54].mxu0  ;;  %9481 = vmatpush1.bf16.msra.mxu0 %v14019_v42  ;;  %v14075_v42 = vld [vmem:[%s14584_s7 + $0x25c4] ss:$16 sps:$4 sm:$0xff]   ;;  %v14082_v36 = vld [vmem:[%s14584_s7 + $0x27e0] ss:$16 sps:$4 sm:$0xff]  }
 0x4ad   : > { %v7664_v63 = vpop.f32.mrb[54].mxu1  ;;  %9522 = vmatpush1.bf16.msra.mxu1 %v14022_v20  ;;  %v7661_v33 = vadd.f32 %v7660_v35, %v7620_v30  ;;  %v7624_v41 = vpop.f32.mrb[55].mxu0  ;;  %9482 = vmatprep.subr.bf16.mxu0 %v14027_v51  ;;  %v14078_v20 = vld [vmem:[%s14584_s7 + $0x27c4] ss:$16 sps:$4 sm:$0xff]   ;;  %v14073_v51 = vld [vmem:[%s14584_s7 + $0x25c0] ss:$16 sps:$4 sm:$0xff]  }
 0x4ae   : > { %v7665_v49 = vpop.f32.mrb[55].mxu1  ;;  %9523 = vmatprep.subr.bf16.mxu1 %v14030_v21  ;;  %v7663_v12 = vadd.f32 %v7662_v28, %v7622_v29  ;;  %v14076_v21 = vld [vmem:[%s14584_s7 + $0x27c0] ss:$16 sps:$4 sm:$0xff]   ;;  %v14081_v34 = vld [vmem:[%s14584_s7 + $0x25e4] ss:$16 sps:$4 sm:$0xff]   ;;  %v8096_v62 = vrot.slane %v14782_v22, 2 }
 0x4af   : > { %v15985_v8 = vadd.f32 %v7661_v33, %v15665_v0  ;;  %v14037_v0 = vld [vmem:[%s14584_s7 + $0x2500] ss:$16 sps:$4 sm:$0xff]   ;;  %v14084_v35 = vld [vmem:[%s14584_s7 + $0x27e4] ss:$16 sps:$4 sm:$0xff]   ;;  %v14087_v28 = vld [vmem:[%s14584_s7 + $0x200c] ss:$16 sps:$4 sm:$0xff]  }
 0x4b0   : > { %v15988_v47 = vadd.f32 %v7663_v12, %v15668_v1  ;;  %9483 = vmatpush1.bf16.msra.mxu0 %v14025_v46  ;;  %v14045_v1 = vld [vmem:[%s14584_s7 + $0x2524] ss:$16 sps:$4 sm:$0xff]   ;;  %v14079_v30 = vld [vmem:[%s14584_s7 + $0x25e0] ss:$16 sps:$4 sm:$0xff]   ;;  %v14090_v29 = vld [vmem:[%s14584_s7 + $0x220c] ss:$16 sps:$4 sm:$0xff]  }
 0x4b1   : > { %9524 = vmatpush1.bf16.msra.mxu1 %v14028_v38  ;;  %9484 = vmatprep.subr.bf16.mxu0 %v14033_v6  ;;  %v8098_v63 = vrot.slane %v14786_v23, 2  ;;  %v14085_v46 = vld [vmem:[%s14584_s7 + $0x2008] ss:$16 sps:$4 sm:$0xff]   ;;  %v14093_v33 = vld [vmem:[%s14584_s7 + $0x202c] ss:$16 sps:$4 sm:$0xff]  }
 0x4b2   : > { %9525 = vmatprep.subr.bf16.mxu1 %v14036_v43  ;;  %v14088_v38 = vld [vmem:[%s14584_s7 + $0x2208] ss:$16 sps:$4 sm:$0xff]   ;;  %v14096_v41 = vld [vmem:[%s14584_s7 + $0x222c] ss:$16 sps:$4 sm:$0xff]   ;;  %v9720_v23 = vld [vmem:[%s14590_s12] sm:$0xf] }
 0x4b3   : > { %v14091_v49 = vld [vmem:[%s14584_s7 + $0x2028] ss:$16 sps:$4 sm:$0xff]   ;;  %v14099_v43 = vld [vmem:[%s14584_s7 + $0x204c] ss:$16 sps:$4 sm:$0xff]  }
 0x4b4   : > { %9485 = vmatpush1.bf16.msra.mxu0 %v14031_v13  ;;  %v14094_v6 = vld [vmem:[%s14584_s7 + $0x2228] ss:$16 sps:$4 sm:$0xff]   ;;  %v14102_v12 = vld [vmem:[%s14584_s7 + $0x224c] ss:$16 sps:$4 sm:$0xff]  }
 0x4b5   : > { %9526 = vmatpush1.bf16.msra.mxu1 %v14034_v53  ;;  %9486 = vmatprep.subr.bf16.mxu0 %v14039_v56  ;;  %v14097_v13 = vld [vmem:[%s14584_s7 + $0x2048] ss:$16 sps:$4 sm:$0xff]   ;;  %v14105_v56 = vld [vmem:[%s14584_s7 + $0x206c] ss:$16 sps:$4 sm:$0xff]  }
 0x4b6   : > { %9527 = vmatprep.subr.bf16.mxu1 %v14042_v57  ;;  %v14100_v53 = vld [vmem:[%s14584_s7 + $0x2248] ss:$16 sps:$4 sm:$0xff]   ;;  %v14108_v57 = vld [vmem:[%s14584_s7 + $0x226c] ss:$16 sps:$4 sm:$0xff]  }
 0x4b8   : > { %9487 = vmatpush1.bf16.msra.mxu0 %v14037_v0  ;;  %v14109_v0 = vld [vmem:[%s14584_s7 + $0x2088] ss:$16 sps:$4 sm:$0xff]  }
 0x4b9   : > { %9528 = vmatpush1.bf16.msra.mxu1 %v14040_v7  ;;  %9488 = vmatprep.subr.bf16.mxu0 %v14045_v1  ;;  %v14112_v7 = vld [vmem:[%s14584_s7 + $0x2288] ss:$16 sps:$4 sm:$0xff]   ;;  %v14117_v1 = vld [vmem:[%s14584_s7 + $0x20ac] ss:$16 sps:$4 sm:$0xff]  }
 0x4ba   : > { %9529 = vmatprep.subr.bf16.mxu1 %v14048_v9  ;;  %v14120_v9 = vld [vmem:[%s14584_s7 + $0x22ac] ss:$16 sps:$4 sm:$0xff]  }
 0x4bc   : > { %9489 = vmatpush1.bf16.msra.mxu0 %v14043_v10  ;;  %v14115_v10 = vld [vmem:[%s14584_s7 + $0x20a8] ss:$16 sps:$4 sm:$0xff]  }
 0x4bd   : > { %9530 = vmatpush1.bf16.msra.mxu1 %v14046_v11  ;;  %9490 = vmatprep.subr.bf16.mxu0 %v14051_v44  ;;  %v14118_v11 = vld [vmem:[%s14584_s7 + $0x22a8] ss:$16 sps:$4 sm:$0xff]   ;;  %v14123_v44 = vld [vmem:[%s14584_s7 + $0x20cc] ss:$16 sps:$4 sm:$0xff]  }
 0x4be   : > { %9531 = vmatprep.subr.bf16.mxu1 %v14054_v45  ;;  %v14126_v45 = vld [vmem:[%s14584_s7 + $0x22cc] ss:$16 sps:$4 sm:$0xff]  }
 0x4c0   : > { %9491 = vmatpush1.bf16.msra.mxu0 %v14049_v2 }
 0x4c1   : > { %9532 = vmatpush1.bf16.msra.mxu1 %v14052_v3  ;;  %9492 = vmatprep.subr.bf16.mxu0 %v14057_v18 }
 0x4c2   : > { %9533 = vmatprep.subr.bf16.mxu1 %v14060_v14 }
 0x4c4   : > { %9493 = vmatpush1.bf16.msra.mxu0 %v14055_v24 }
 0x4c5   : > { %9534 = vmatpush1.bf16.msra.mxu1 %v14058_v15  ;;  %9494 = vmatprep.subr.bf16.mxu0 %v14063_v17 }
 0x4c6   : > { %9535 = vmatprep.subr.bf16.mxu1 %v14066_v19 }
 0x4c8   : > { %9495 = vmatpush1.bf16.msra.mxu0 %v14061_v50  ;;  %v14121_v50 = vld [vmem:[%s14584_s7 + $0x20c8] ss:$16 sps:$4 sm:$0xff]  }
 0x4c9   : > { %9536 = vmatpush1.bf16.msra.mxu1 %v14064_v25  ;;  %9496 = vmatprep.subr.bf16.mxu0 %v14069_v54  ;;  %v14124_v25 = vld [vmem:[%s14584_s7 + $0x22c8] ss:$16 sps:$4 sm:$0xff]  }
 0x4ca   : > { %9537 = vmatprep.subr.bf16.mxu1 %v14072_v55 }
 0x4cc   : > { %9497 = vmatpush1.bf16.msra.mxu0 %v14067_v16  ;;  %v14129_v16 = vld [vmem:[%s14584_s7 + $0x20ec] ss:$16 sps:$4 sm:$0xff]  }
 0x4cd   : > { %9538 = vmatpush1.bf16.msra.mxu1 %v14070_v27  ;;  %9498 = vmatprep.subr.bf16.mxu0 %v14075_v42  ;;  %v14132_v27 = vld [vmem:[%s14584_s7 + $0x22ec] ss:$16 sps:$4 sm:$0xff]   ;;  %v14127_v42 = vld [vmem:[%s14584_s7 + $0x20e8] ss:$16 sps:$4 sm:$0xff]  }
 0x4ce   : > { %9539 = vmatprep.subr.bf16.mxu1 %v14078_v20  ;;  %v14130_v20 = vld [vmem:[%s14584_s7 + $0x22e8] ss:$16 sps:$4 sm:$0xff]  }
 0x4d0   : > { %9499 = vmatpush1.bf16.msra.mxu0 %v14073_v51  ;;  %v14135_v51 = vld [vmem:[%s14584_s7 + $0x210c] ss:$16 sps:$4 sm:$0xff]  }
 0x4d1   : > { %9540 = vmatpush1.bf16.msra.mxu1 %v14076_v21  ;;  %9500 = vmatprep.subr.bf16.mxu0 %v14081_v34  ;;  %v14138_v21 = vld [vmem:[%s14584_s7 + $0x230c] ss:$16 sps:$4 sm:$0xff]   ;;  %v14133_v34 = vld [vmem:[%s14584_s7 + $0x2108] ss:$16 sps:$4 sm:$0xff]  }
 0x4d2   : > { %9541 = vmatprep.subr.bf16.mxu1 %v14084_v35  ;;  %v14136_v35 = vld [vmem:[%s14584_s7 + $0x2308] ss:$16 sps:$4 sm:$0xff]  }
 0x4d4   : > { %9501 = vmatpush1.bf16.msra.mxu0 %v14079_v30  ;;  %v14141_v30 = vld [vmem:[%s14584_s7 + $0x212c] ss:$16 sps:$4 sm:$0xff]  }
 0x4d5   : > { %9542 = vmatpush1.bf16.msra.mxu1 %v14082_v36  ;;  %9552 = vmatprep.subr.bf16.mxu0 %v14087_v28  ;;  %v14144_v36 = vld [vmem:[%s14584_s7 + $0x232c] ss:$16 sps:$4 sm:$0xff]   ;;  %v14139_v28 = vld [vmem:[%s14584_s7 + $0x2128] ss:$16 sps:$4 sm:$0xff]  }
 0x4d6   : > { %9593 = vmatprep.subr.bf16.mxu1 %v14090_v29  ;;  %v14142_v29 = vld [vmem:[%s14584_s7 + $0x2328] ss:$16 sps:$4 sm:$0xff]  }
 0x4d7   : > { %9503 = vmatmul.mubr.bf16.vlgmr.msra.gmra.mrb[68].mxu0 %v8096_v62 }
 0x4d8   : > { %9544 = vmatmul.mubr.bf16.vlgmr.msra.gmra.mrb[68].mxu1 %v8098_v63  ;;  %9553 = vmatpush1.bf16.msra.mxu0 %v14085_v46  ;;  %v14147_v46 = vld [vmem:[%s14584_s7 + $0x214c] ss:$16 sps:$4 sm:$0xff]  }
 0x4d9   : > { %9594 = vmatpush1.bf16.msra.mxu1 %v14088_v38  ;;  %9554 = vmatprep.subr.bf16.mxu0 %v14093_v33  ;;  %v14150_v38 = vld [vmem:[%s14584_s7 + $0x234c] ss:$16 sps:$4 sm:$0xff]   ;;  %v14145_v33 = vld [vmem:[%s14584_s7 + $0x2148] ss:$16 sps:$4 sm:$0xff]  }
 0x4da   : > { %9595 = vmatprep.subr.bf16.mxu1 %v14096_v41  ;;  %9584 = vmatprep.mubr.bf16.mxu0 %v8093_v26  ;;  %v14111_v26 = vld [vmem:[%s14584_s7 + $0x208c] ss:$16 sps:$4 sm:$0xff]   ;;  %v14148_v41 = vld [vmem:[%s14584_s7 + $0x2348] ss:$16 sps:$4 sm:$0xff]  }
 0x4db   : > { %9625 = vmatprep.mubr.bf16.mxu1 %v8095_v31  ;;  %v14114_v31 = vld [vmem:[%s14584_s7 + $0x228c] ss:$16 sps:$4 sm:$0xff]  }
 0x4dc   : > { %9555 = vmatpush1.bf16.msra.mxu0 %v14091_v49  ;;  %v14153_v49 = vld [vmem:[%s14584_s7 + $0x216c] ss:$16 sps:$4 sm:$0xff]  }
 0x4dd   : > { %9596 = vmatpush1.bf16.msra.mxu1 %v14094_v6  ;;  %9556 = vmatprep.subr.bf16.mxu0 %v14099_v43  ;;  %v14156_v6 = vld [vmem:[%s14584_s7 + $0x236c] ss:$16 sps:$4 sm:$0xff]   ;;  %v14151_v43 = vld [vmem:[%s14584_s7 + $0x2168] ss:$16 sps:$4 sm:$0xff]  }
 0x4de   : > { %9597 = vmatprep.subr.bf16.mxu1 %v14102_v12  ;;  %v14154_v12 = vld [vmem:[%s14584_s7 + $0x2368] ss:$16 sps:$4 sm:$0xff]  }
 0x4e0   : > { %9557 = vmatpush1.bf16.msra.mxu0 %v14097_v13  ;;  %v14159_v13 = vld [vmem:[%s14584_s7 + $0x218c] ss:$16 sps:$4 sm:$0xff]  }
 0x4e1   : > { %9598 = vmatpush1.bf16.msra.mxu1 %v14100_v53  ;;  %9558 = vmatprep.subr.bf16.mxu0 %v14105_v56  ;;  %v14162_v53 = vld [vmem:[%s14584_s7 + $0x238c] ss:$16 sps:$4 sm:$0xff]   ;;  %v14157_v56 = vld [vmem:[%s14584_s7 + $0x2188] ss:$16 sps:$4 sm:$0xff]  }
 0x4e2   : > { %9599 = vmatprep.subr.bf16.mxu1 %v14108_v57  ;;  %v14160_v57 = vld [vmem:[%s14584_s7 + $0x2388] ss:$16 sps:$4 sm:$0xff]  }
 0x4e4   : > { %9559 = vmatpush1.bf16.msra.mxu0 %v14103_v48  ;;  %v14165_v48 = vld [vmem:[%s14584_s7 + $0x21ac] ss:$16 sps:$4 sm:$0xff]  }
 0x4e5   : > { %9600 = vmatpush1.bf16.msra.mxu1 %v14106_v52  ;;  %9560 = vmatprep.subr.bf16.mxu0 %v14111_v26  ;;  %v14168_v52 = vld [vmem:[%s14584_s7 + $0x23ac] ss:$16 sps:$4 sm:$0xff]   ;;  %v14163_v26 = vld [vmem:[%s14584_s7 + $0x21a8] ss:$16 sps:$4 sm:$0xff]  }
 0x4e6   : > { %9601 = vmatprep.subr.bf16.mxu1 %v14114_v31  ;;  %v14166_v31 = vld [vmem:[%s14584_s7 + $0x23a8] ss:$16 sps:$4 sm:$0xff]  }
 0x4e8   : > { %9561 = vmatpush1.bf16.msra.mxu0 %v14109_v0  ;;  %v14171_v0 = vld [vmem:[%s14584_s7 + $0x21cc] ss:$16 sps:$4 sm:$0xff]  }
 0x4e9   : > { %9602 = vmatpush1.bf16.msra.mxu1 %v14112_v7  ;;  %9562 = vmatprep.subr.bf16.mxu0 %v14117_v1  ;;  %v14174_v7 = vld [vmem:[%s14584_s7 + $0x23cc] ss:$16 sps:$4 sm:$0xff]   ;;  %v14169_v1 = vld [vmem:[%s14584_s7 + $0x21c8] ss:$16 sps:$4 sm:$0xff]  }
 0x4ea   : > { %9603 = vmatprep.subr.bf16.mxu1 %v14120_v9  ;;  %v7701_v2 = vpop.f32.mrb[56].mxu0  ;;  %v14172_v9 = vld [vmem:[%s14584_s7 + $0x23c8] ss:$16 sps:$4 sm:$0xff]  }
 0x4eb   : > { %v7742_v3 = vpop.f32.mrb[56].mxu1  ;;  %v7703_v14 = vpop.f32.mrb[57].mxu0 }
 0x4ec   : > { %v16060_v18 = vadd.f32 %v7742_v3, %v7701_v2  ;;  %v7744_v24 = vpop.f32.mrb[57].mxu1  ;;  %v7705_v17 = vpop.f32.mrb[58].mxu0  ;;  %9563 = vmatpush1.bf16.msra.mxu0 %v14115_v10  ;;  %v14177_v10 = vld [vmem:[%s14584_s7 + $0x21ec] ss:$16 sps:$4 sm:$0xff]  }
 0x4ed   : > { %v16062_v15 = vadd.f32 %v7744_v24, %v7703_v14  ;;  %v7746_v19 = vpop.f32.mrb[58].mxu1  ;;  %9604 = vmatpush1.bf16.msra.mxu1 %v14118_v11  ;;  %v7706_v54 = vpop.f32.mrb[59].mxu0  ;;  %9564 = vmatprep.subr.bf16.mxu0 %v14123_v44  ;;  %v14180_v11 = vld [vmem:[%s14584_s7 + $0x23ec] ss:$16 sps:$4 sm:$0xff]   ;;  %v14175_v44 = vld [vmem:[%s14584_s7 + $0x21e8] ss:$16 sps:$4 sm:$0xff]  }
 0x4ee   : > { %v7747_v55 = vpop.f32.mrb[59].mxu1  ;;  %9605 = vmatprep.subr.bf16.mxu1 %v14126_v45  ;;  %v14178_v45 = vld [vmem:[%s14584_s7 + $0x23e8] ss:$16 sps:$4 sm:$0xff]   ;;  %v14183_v2 = vld [vmem:[%s14584_s7 + $0x240c] ss:$16 sps:$4 sm:$0xff]  }
 0x4ef   : > { %v14186_v3 = vld [vmem:[%s14584_s7 + $0x260c] ss:$16 sps:$4 sm:$0xff]   ;;  %v14181_v14 = vld [vmem:[%s14584_s7 + $0x2408] ss:$16 sps:$4 sm:$0xff]  }
 0x4f0   : > { %9565 = vmatpush1.bf16.msra.mxu0 %v14121_v50  ;;  %v14184_v24 = vld [vmem:[%s14584_s7 + $0x2608] ss:$16 sps:$4 sm:$0xff]   ;;  %v14189_v17 = vld [vmem:[%s14584_s7 + $0x242c] ss:$16 sps:$4 sm:$0xff]  }
 0x4f1   : > { %9606 = vmatpush1.bf16.msra.mxu1 %v14124_v25  ;;  %9566 = vmatprep.subr.bf16.mxu0 %v14129_v16  ;;  %v14192_v19 = vld [vmem:[%s14584_s7 + $0x262c] ss:$16 sps:$4 sm:$0xff]   ;;  %v14187_v50 = vld [vmem:[%s14584_s7 + $0x2428] ss:$16 sps:$4 sm:$0xff]  }
 0x4f2   : > { %9607 = vmatprep.subr.bf16.mxu1 %v14132_v27  ;;  %v14190_v25 = vld [vmem:[%s14584_s7 + $0x2628] ss:$16 sps:$4 sm:$0xff]   ;;  %v14195_v54 = vld [vmem:[%s14584_s7 + $0x244c] ss:$16 sps:$4 sm:$0xff]  }
 0x4f3   : > { %v14198_v55 = vld [vmem:[%s14584_s7 + $0x264c] ss:$16 sps:$4 sm:$0xff]   ;;  %v14205_v16 = vld [vmem:[%s14584_s7 + $0x2488] ss:$16 sps:$4 sm:$0xff]  }
 0x4f4   : > { %9567 = vmatpush1.bf16.msra.mxu0 %v14127_v42  ;;  %v14208_v27 = vld [vmem:[%s14584_s7 + $0x2688] ss:$16 sps:$4 sm:$0xff]   ;;  %v14213_v42 = vld [vmem:[%s14584_s7 + $0x24ac] ss:$16 sps:$4 sm:$0xff]  }
 0x4f5   : > { %9608 = vmatpush1.bf16.msra.mxu1 %v14130_v20  ;;  %9568 = vmatprep.subr.bf16.mxu0 %v14135_v51  ;;  %v14216_v20 = vld [vmem:[%s14584_s7 + $0x26ac] ss:$16 sps:$4 sm:$0xff]   ;;  %v14211_v51 = vld [vmem:[%s14584_s7 + $0x24a8] ss:$16 sps:$4 sm:$0xff]  }
 0x4f6   : > { %9609 = vmatprep.subr.bf16.mxu1 %v14138_v21  ;;  %v14214_v21 = vld [vmem:[%s14584_s7 + $0x26a8] ss:$16 sps:$4 sm:$0xff]  }
 0x4f8   : > { %9569 = vmatpush1.bf16.msra.mxu0 %v14133_v34  ;;  %v14219_v34 = vld [vmem:[%s14584_s7 + $0x24cc] ss:$16 sps:$4 sm:$0xff]  }
 0x4f9   : > { %9610 = vmatpush1.bf16.msra.mxu1 %v14136_v35  ;;  %9570 = vmatprep.subr.bf16.mxu0 %v14141_v30  ;;  %v14222_v35 = vld [vmem:[%s14584_s7 + $0x26cc] ss:$16 sps:$4 sm:$0xff]  }
 0x4fa   : > { %9611 = vmatprep.subr.bf16.mxu1 %v14144_v36 }
 0x4fc   : > { %9571 = vmatpush1.bf16.msra.mxu0 %v14139_v28 }
 0x4fd   : > { %9612 = vmatpush1.bf16.msra.mxu1 %v14142_v29  ;;  %9572 = vmatprep.subr.bf16.mxu0 %v14147_v46 }
 0x4fe   : > { %9613 = vmatprep.subr.bf16.mxu1 %v14150_v38 }
 0x500   : > { %9573 = vmatpush1.bf16.msra.mxu0 %v14145_v33 }
 0x501   : > { %9614 = vmatpush1.bf16.msra.mxu1 %v14148_v41  ;;  %9574 = vmatprep.subr.bf16.mxu0 %v14153_v49  ;;  %v14217_v49 = vld [vmem:[%s14584_s7 + $0x24c8] ss:$16 sps:$4 sm:$0xff]  }
 0x502   : > { %9615 = vmatprep.subr.bf16.mxu1 %v14156_v6  ;;  %v14220_v6 = vld [vmem:[%s14584_s7 + $0x26c8] ss:$16 sps:$4 sm:$0xff]  }
 0x504   : > { %9575 = vmatpush1.bf16.msra.mxu0 %v14151_v43 }
 0x505   : > { %9616 = vmatpush1.bf16.msra.mxu1 %v14154_v12  ;;  %9576 = vmatprep.subr.bf16.mxu0 %v14159_v13 }
 0x506   : > { %9617 = vmatprep.subr.bf16.mxu1 %v14162_v53  ;;  %v14228_v53 = vld [vmem:[%s14584_s7 + $0x26ec] ss:$16 sps:$4 sm:$0xff]  }
 0x508   : > { %9577 = vmatpush1.bf16.msra.mxu0 %v14157_v56 }
 0x509   : > { %9618 = vmatpush1.bf16.msra.mxu1 %v14160_v57  ;;  %9578 = vmatprep.subr.bf16.mxu0 %v14165_v48  ;;  %v14223_v48 = vld [vmem:[%s14584_s7 + $0x24e8] ss:$16 sps:$4 sm:$0xff]  }
 0x50a   : > { %9619 = vmatprep.subr.bf16.mxu1 %v14168_v52  ;;  %v14226_v52 = vld [vmem:[%s14584_s7 + $0x26e8] ss:$16 sps:$4 sm:$0xff]  }
 0x50c   : > { %9579 = vmatpush1.bf16.msra.mxu0 %v14163_v26  ;;  %v14231_v26 = vld [vmem:[%s14584_s7 + $0x250c] ss:$16 sps:$4 sm:$0xff]  }
 0x50d   : > { %9620 = vmatpush1.bf16.msra.mxu1 %v14166_v31  ;;  %9580 = vmatprep.subr.bf16.mxu0 %v14171_v0  ;;  %v14234_v31 = vld [vmem:[%s14584_s7 + $0x270c] ss:$16 sps:$4 sm:$0xff]   ;;  %v14232_v0 = vld [vmem:[%s14584_s7 + $0x2708] ss:$16 sps:$4 sm:$0xff]  }
 0x50e   : > { %9621 = vmatprep.subr.bf16.mxu1 %v14174_v7  ;;  %v14240_v7 = vld [vmem:[%s14584_s7 + $0x272c] ss:$16 sps:$4 sm:$0xff]  }
 0x510   : > { %9581 = vmatpush1.bf16.msra.mxu0 %v14169_v1  ;;  %v14235_v1 = vld [vmem:[%s14584_s7 + $0x2528] ss:$16 sps:$4 sm:$0xff]  }
 0x511   : > { %9622 = vmatpush1.bf16.msra.mxu1 %v14172_v9  ;;  %9582 = vmatprep.subr.bf16.mxu0 %v14177_v10  ;;  %v14238_v9 = vld [vmem:[%s14584_s7 + $0x2728] ss:$16 sps:$4 sm:$0xff]   ;;  %v14243_v10 = vld [vmem:[%s14584_s7 + $0x254c] ss:$16 sps:$4 sm:$0xff]  }
 0x512   : > { %9623 = vmatprep.subr.bf16.mxu1 %v14180_v11  ;;  %v14246_v11 = vld [vmem:[%s14584_s7 + $0x274c] ss:$16 sps:$4 sm:$0xff]  }
 0x514   : > { %9583 = vmatpush1.bf16.msra.mxu0 %v14175_v44  ;;  %v14241_v44 = vld [vmem:[%s14584_s7 + $0x2548] ss:$16 sps:$4 sm:$0xff]  }
 0x515   : > { %9624 = vmatpush1.bf16.msra.mxu1 %v14178_v45  ;;  %9634 = vmatprep.subr.bf16.mxu0 %v14183_v2  ;;  %v14244_v45 = vld [vmem:[%s14584_s7 + $0x2748] ss:$16 sps:$4 sm:$0xff]   ;;  %v14249_v2 = vld [vmem:[%s14584_s7 + $0x256c] ss:$16 sps:$4 sm:$0xff]  }
 0x516   : > { %9675 = vmatprep.subr.bf16.mxu1 %v14186_v3  ;;  %v14252_v3 = vld [vmem:[%s14584_s7 + $0x276c] ss:$16 sps:$4 sm:$0xff]  }
 0x517   : > { %9585 = vmatmul.mubr.bf16.vlgmr.msra.gmra.mrb[72].mxu0 %v8092_v61  ;;  %v14201_v61 = vld [vmem:[%s14584_s7 + $0x246c] ss:$16 sps:$4 sm:$0xff]  }
 0x518   : > { %9626 = vmatmul.mubr.bf16.vlgmr.msra.gmra.mrb[72].mxu1 %v8094_v60  ;;  %9635 = vmatpush1.bf16.msra.mxu0 %v14181_v14  ;;  %v14204_v60 = vld [vmem:[%s14584_s7 + $0x266c] ss:$16 sps:$4 sm:$0xff]   ;;  %v14247_v14 = vld [vmem:[%s14584_s7 + $0x2568] ss:$16 sps:$4 sm:$0xff]  }
 0x519   : > { %9676 = vmatpush1.bf16.msra.mxu1 %v14184_v24  ;;  %9636 = vmatprep.subr.bf16.mxu0 %v14189_v17  ;;  %v14250_v24 = vld [vmem:[%s14584_s7 + $0x2768] ss:$16 sps:$4 sm:$0xff]   ;;  %v14255_v17 = vld [vmem:[%s14584_s7 + $0x258c] ss:$16 sps:$4 sm:$0xff]  }
 0x51a   : > { %9677 = vmatprep.subr.bf16.mxu1 %v14192_v19  ;;  %9666 = vmatprep.mubr.bf16.mxu0 %v8097_v58  ;;  %v14207_v58 = vld [vmem:[%s14584_s7 + $0x248c] ss:$16 sps:$4 sm:$0xff]  }
 0x51b   : > { %9707 = vmatprep.mubr.bf16.mxu1 %v8099_v59  ;;  %v14210_v59 = vld [vmem:[%s14584_s7 + $0x268c] ss:$16 sps:$4 sm:$0xff]  }
 0x51c   : > { %9637 = vmatpush1.bf16.msra.mxu0 %v14187_v50  ;;  %v14258_v19 = vld [vmem:[%s14584_s7 + $0x278c] ss:$16 sps:$4 sm:$0xff]   ;;  %v14253_v50 = vld [vmem:[%s14584_s7 + $0x2588] ss:$16 sps:$4 sm:$0xff]  }
 0x51d   : > { %9678 = vmatpush1.bf16.msra.mxu1 %v14190_v25  ;;  %9638 = vmatprep.subr.bf16.mxu0 %v14195_v54  ;;  %v14256_v25 = vld [vmem:[%s14584_s7 + $0x2788] ss:$16 sps:$4 sm:$0xff]   ;;  %v14261_v54 = vld [vmem:[%s14584_s7 + $0x25ac] ss:$16 sps:$4 sm:$0xff]  }
 0x51e   : > { %9679 = vmatprep.subr.bf16.mxu1 %v14198_v55  ;;  %v14264_v55 = vld [vmem:[%s14584_s7 + $0x27ac] ss:$16 sps:$4 sm:$0xff]  }
 0x520   : > { %9639 = vmatpush1.bf16.msra.mxu0 %v14193_v4  ;;  %v14259_v4 = vld [vmem:[%s14584_s7 + $0x25a8] ss:$16 sps:$4 sm:$0xff]  }
 0x521   : > { %9680 = vmatpush1.bf16.msra.mxu1 %v14196_v5  ;;  %9640 = vmatprep.subr.bf16.mxu0 %v14201_v61  ;;  %v14262_v5 = vld [vmem:[%s14584_s7 + $0x27a8] ss:$16 sps:$4 sm:$0xff]   ;;  %v14267_v61 = vld [vmem:[%s14584_s7 + $0x25cc] ss:$16 sps:$4 sm:$0xff]  }
 0x522   : > { %9681 = vmatprep.subr.bf16.mxu1 %v14204_v60  ;;  %v14270_v60 = vld [vmem:[%s14584_s7 + $0x27cc] ss:$16 sps:$4 sm:$0xff]  }
 0x524   : > { %9641 = vmatpush1.bf16.msra.mxu0 %v14199_v39  ;;  %v14265_v39 = vld [vmem:[%s14584_s7 + $0x25c8] ss:$16 sps:$4 sm:$0xff]  }
 0x525   : > { %9682 = vmatpush1.bf16.msra.mxu1 %v14202_v40  ;;  %9642 = vmatprep.subr.bf16.mxu0 %v14207_v58  ;;  %v14268_v40 = vld [vmem:[%s14584_s7 + $0x27c8] ss:$16 sps:$4 sm:$0xff]   ;;  %v14273_v58 = vld [vmem:[%s14584_s7 + $0x25ec] ss:$16 sps:$4 sm:$0xff]  }
 0x526   : > { %9683 = vmatprep.subr.bf16.mxu1 %v14210_v59  ;;  %v14276_v59 = vld [vmem:[%s14584_s7 + $0x27ec] ss:$16 sps:$4 sm:$0xff]  }
 0x528   : > { %9643 = vmatpush1.bf16.msra.mxu0 %v14205_v16  ;;  %v14271_v16 = vld [vmem:[%s14584_s7 + $0x25e8] ss:$16 sps:$4 sm:$0xff]  }
 0x529   : > { %9684 = vmatpush1.bf16.msra.mxu1 %v14208_v27  ;;  %9644 = vmatprep.subr.bf16.mxu0 %v14213_v42  ;;  %v14274_v27 = vld [vmem:[%s14584_s7 + $0x27e8] ss:$16 sps:$4 sm:$0xff]  }
 0x52a   : > { %9685 = vmatprep.subr.bf16.mxu1 %v14216_v20  ;;  %v7783_v30 = vpop.f32.mrb[60].mxu0 }
 0x52b   : > { %v7824_v36 = vpop.f32.mrb[60].mxu1  ;;  %v7784_v28 = vadd.f32 %v7783_v30, %v16060_v18  ;;  %v7785_v29 = vpop.f32.mrb[61].mxu0  ;;  %v14225_v18 = vld [vmem:[%s14584_s7 + $0x24ec] ss:$16 sps:$4 sm:$0xff]  }
 0x52c   : > { %v7826_v46 = vpop.f32.mrb[61].mxu1  ;;  %v7786_v38 = vadd.f32 %v7785_v29, %v16062_v15  ;;  %v7787_v33 = vpop.f32.mrb[62].mxu0  ;;  %9645 = vmatpush1.bf16.msra.mxu0 %v14211_v51 }
 0x52d   : > { %v7828_v41 = vpop.f32.mrb[62].mxu1  ;;  %9686 = vmatpush1.bf16.msra.mxu1 %v14214_v21  ;;  %v7825_v43 = vadd.f32 %v7824_v36, %v7784_v28  ;;  %v7788_v12 = vpop.f32.mrb[63].mxu0  ;;  %9646 = vmatprep.subr.bf16.mxu0 %v14219_v34 }
 0x52e   : > { %v7829_v13 = vpop.f32.mrb[63].mxu1  ;;  %9687 = vmatprep.subr.bf16.mxu1 %v14222_v35  ;;  %v7827_v15 = vadd.f32 %v7826_v46, %v7786_v38  ;;  %v9722_v46 = vlaneseq }
 0x52f   : > { %v16143_v56 = vadd.f32 %v7825_v43, %v15823_v37  ;;  %v14229_v37 = vld [vmem:[%s14584_s7 + $0x2508] ss:$16 sps:$4 sm:$0xff]  }
 0x530   : > { %v16146_v57 = vadd.f32 %v7827_v15, %v15826_v32  ;;  %9647 = vmatpush1.bf16.msra.mxu0 %v14217_v49  ;;  %v14237_v32 = vld [vmem:[%s14584_s7 + $0x252c] ss:$16 sps:$4 sm:$0xff]   ;;  %v16186_v38 = vshrl.u32 %v9722_v46, 7 }
 0x531   : > { %9688 = vmatpush1.bf16.msra.mxu1 %v14220_v6  ;;  %9648 = vmatprep.subr.bf16.mxu0 %v14225_v18 }
 0x532   : > { %9689 = vmatprep.subr.bf16.mxu1 %v14228_v53  ;;  %v9724_v22 = vsub.s32 0, %v16186_v38 }
 0x534   : > { %9649 = vmatpush1.bf16.msra.mxu0 %v14223_v48  ;;  %v9725_v53 = vrot.slane %v9720_v23, %v9724_v22 }
 0x535   : > { %9690 = vmatpush1.bf16.msra.mxu1 %v14226_v52  ;;  %9650 = vmatprep.subr.bf16.mxu0 %v14231_v26 }
 0x536   : > { %9691 = vmatprep.subr.bf16.mxu1 %v14234_v31 }
 0x538   : > { %9651 = vmatpush1.bf16.msra.mxu0 %v14229_v37 }
 0x539   : > { %9692 = vmatpush1.bf16.msra.mxu1 %v14232_v0  ;;  %9652 = vmatprep.subr.bf16.mxu0 %v14237_v32 }
 0x53a   : > { %9693 = vmatprep.subr.bf16.mxu1 %v14240_v7 }
 0x53c   : > { %9653 = vmatpush1.bf16.msra.mxu0 %v14235_v1 }
 0x53d   : > { %9694 = vmatpush1.bf16.msra.mxu1 %v14238_v9  ;;  %9654 = vmatprep.subr.bf16.mxu0 %v14243_v10 }
 0x53e   : > { %9695 = vmatprep.subr.bf16.mxu1 %v14246_v11 }
 0x540   : > { %9655 = vmatpush1.bf16.msra.mxu0 %v14241_v44 }
 0x541   : > { %9696 = vmatpush1.bf16.msra.mxu1 %v14244_v45  ;;  %9656 = vmatprep.subr.bf16.mxu0 %v14249_v2 }
 0x542   : > { %9697 = vmatprep.subr.bf16.mxu1 %v14252_v3 }
 0x544   : > { %9657 = vmatpush1.bf16.msra.mxu0 %v14247_v14 }
 0x545   : > { %9698 = vmatpush1.bf16.msra.mxu1 %v14250_v24  ;;  %9658 = vmatprep.subr.bf16.mxu0 %v14255_v17 }
 0x546   : > { %9699 = vmatprep.subr.bf16.mxu1 %v14258_v19 }
 0x548   : > { %9659 = vmatpush1.bf16.msra.mxu0 %v14253_v50  ;;  %v9732_v50 = vsub.s32 2, %v16186_v38 }
 0x549   : > { %9700 = vmatpush1.bf16.msra.mxu1 %v14256_v25  ;;  %9660 = vmatprep.subr.bf16.mxu0 %v14261_v54 }
 0x54a   : > { %9701 = vmatprep.subr.bf16.mxu1 %v14264_v55  ;;  %v9736_v55 = vsub.s32 3, %v16186_v38 }
 0x54c   : > { %9661 = vmatpush1.bf16.msra.mxu0 %v14259_v4 }
 0x54d   : > { %9702 = vmatpush1.bf16.msra.mxu1 %v14262_v5  ;;  %9662 = vmatprep.subr.bf16.mxu0 %v14267_v61 }
 0x54e   : > { %9703 = vmatprep.subr.bf16.mxu1 %v14270_v60  ;;  %v14414_v60 = vmov 1966171168  }
 0x550   : > { %9663 = vmatpush1.bf16.msra.mxu0 %v14265_v39  ;;  %v9769_v39 = vunpack.c.l.s4 %v14414_v60 }
 0x551   : > { %9704 = vmatpush1.bf16.msra.mxu1 %v14268_v40  ;;  %9664 = vmatprep.subr.bf16.mxu0 %v14273_v58 }
 0x552   : > { %9705 = vmatprep.subr.bf16.mxu1 %v14276_v59 }
 0x554   : > { %9665 = vmatpush1.bf16.msra.mxu0 %v14271_v16 }
 0x555   : > { %9706 = vmatpush1.bf16.msra.mxu1 %v14274_v27  ;;  %v9733_v27 = vrot.slane %v9720_v23, %v9732_v50 }
 0x557   : > { %9667 = vmatmul.mubr.bf16.vlgmr.msra.gmra.mrb[76].mxu0 %v8096_v62 }
 0x558   : > { %9708 = vmatmul.mubr.bf16.vlgmr.msra.gmra.mrb[76].mxu1 %v8098_v63  ;;  %v9728_v63 = vsub.s32 1, %v16186_v38 }
 0x55a   : > { %v9729_v26 = vrot.slane %v9720_v23, %v9728_v63 }
 0x56a   : > { %v9422_v42 = vpop.f32.mrb[64].mxu0 }
 0x56b   : > { %v9463_v20 = vpop.f32.mrb[64].mxu1  ;;  %v9424_v21 = vpop.f32.mrb[65].mxu0 }
 0x56c   : > { %v9464_v51 = vadd.f32 %v9463_v20, %v9422_v42  ;;  %v9465_v34 = vpop.f32.mrb[65].mxu1  ;;  %v9426_v30 = vpop.f32.mrb[66].mxu0 }
 0x56d   : > { %v9466_v35 = vadd.f32 %v9465_v34, %v9424_v21  ;;  %v9467_v36 = vpop.f32.mrb[66].mxu1  ;;  %v9427_v28 = vpop.f32.mrb[67].mxu0  ;;  %v9737_v21 = vrot.slane %v9720_v23, %v9736_v55 }
 0x56e   : > { %v9468_v29 = vpop.f32.mrb[67].mxu1  ;;  %v9770_v36 = vunpack.c.0.s8 %v9769_v39 }
 0x5aa   : > { %v9504_v62 = vpop.f32.mrb[68].mxu0 }
 0x5ab   : > { %v9545_v33 = vpop.f32.mrb[68].mxu1  ;;  %v9505_v41 = vadd.f32 %v9504_v62, %v9464_v51  ;;  %v9506_v49 = vpop.f32.mrb[69].mxu0 }
 0x5ac   : > { %v9547_v6 = vpop.f32.mrb[69].mxu1  ;;  %v9507_v43 = vadd.f32 %v9506_v49, %v9466_v35  ;;  %v9508_v12 = vpop.f32.mrb[70].mxu0 }
 0x5ad   : > { %v9549_v13 = vpop.f32.mrb[70].mxu1  ;;  %v9546_v18 = vadd.f32 %v9545_v33, %v9505_v41  ;;  %v9509_v15 = vpop.f32.mrb[71].mxu0 }
 0x5ae   : > { %v9550_v48 = vpop.f32.mrb[71].mxu1  ;;  %v9548_v52 = vadd.f32 %v9547_v6, %v9507_v43  ;;  %v9806_v6 = vld [vmem:[%s270_s20] sm:$0xf] }
 0x5af   : > { %v9716_v31 = vadd.f32 %v9546_v18, %v15985_v8 }
 0x5b0   : > { %v9717_v37 = vadd.f32 %v9548_v52, %v15988_v47 }
 0x5b1   : > { %v9742_v0 = vadd.f32 %v9725_v53, %v9716_v31 }
 0x5b2   : > { %v9743_v32 = vadd.f32 %v9729_v26, %v9717_v37 }
 0x5b3   : > { %vm9746_vm0 = vcmp.ge.f32.partialorder %v9742_v0, 0.0  ;;  %v9750_v7 = vmul.f32 0.1, %v9742_v0 }
 0x5b4   : > { %vm9747_vm1 = vcmp.ge.f32.partialorder %v9743_v32, 0.0  ;;  %v9751_v1 = vmul.f32 0.1, %v9743_v32 }
 0x5b5   : > { %v16193_v9 = vsel %vm9746_vm0, %v9742_v0, %v9750_v7  ;;  %vm9801_vm0 = vmor %vm9800_vm13, %vm9797_vm12 }
 0x5b6   : > { %v9755_v10 = vsel %vm9747_vm1, %v9743_v32, %v9751_v1  ;;  %vm9804_vm1 = vmand %vm9802_vm14, %vm9803_vm15 }
 0x5b7   : > { %v12260_v11 = vpack.c.bf16 %v9755_v10, %v16193_v9  ;;  %vm9805_vm2 = vmor %vm9804_vm1, %vm9801_vm0 }
 0x5ea   : > { %v9586_v44 = vpop.f32.mrb[72].mxu0 }
 0x5eb   : > { %v9627_v45 = vpop.f32.mrb[72].mxu1  ;;  %v9588_v3 = vpop.f32.mrb[73].mxu0 }
 0x5ec   : > { %v9628_v2 = vadd.f32 %v9627_v45, %v9586_v44  ;;  %v9629_v14 = vpop.f32.mrb[73].mxu1  ;;  %v9590_v24 = vpop.f32.mrb[74].mxu0 }
 0x5ed   : > { %v9630_v8 = vadd.f32 %v9629_v14, %v9588_v3  ;;  %v9631_v47 = vpop.f32.mrb[74].mxu1  ;;  %v9591_v17 = vpop.f32.mrb[75].mxu0 }
 0x5ee   : > { %v9632_v19 = vpop.f32.mrb[75].mxu1 }
 0x62a   : > { %v9668_v25 = vpop.f32.mrb[76].mxu0 }
 0x62b   : > { %v9709_v54 = vpop.f32.mrb[76].mxu1  ;;  %v9669_v4 = vadd.f32 %v9668_v25, %v9628_v2  ;;  %v9670_v5 = vpop.f32.mrb[77].mxu0 }
 0x62c   : > { %v9711_v61 = vpop.f32.mrb[77].mxu1  ;;  %v9671_v40 = vadd.f32 %v9670_v5, %v9630_v8  ;;  %v9672_v58 = vpop.f32.mrb[78].mxu0 }
 0x62d   : > { %v9713_v59 = vpop.f32.mrb[78].mxu1  ;;  %v9710_v16 = vadd.f32 %v9709_v54, %v9669_v4  ;;  %v9673_v42 = vpop.f32.mrb[79].mxu0 }
 0x62e   : > { %v9714_v20 = vpop.f32.mrb[79].mxu1  ;;  %v9712_v51 = vadd.f32 %v9711_v61, %v9671_v40 }
 0x62f   : > { %v9718_v34 = vadd.f32 %v9710_v16, %v16143_v56 }
 0x630   : > { %v9719_v35 = vadd.f32 %v9712_v51, %v16146_v57  ;;  %v9773_v57 = vsub.s32 %v9770_v36, %v16186_v38 }
 0x631   : > { %v9744_v28 = vadd.f32 %v9733_v27, %v9718_v34 }
 0x632   : > { %v9745_v46 = vadd.f32 %v9737_v21, %v9719_v35  ;;  %v9774_v63 = vrot.slane %v12260_v11, %v9773_v57 }
 0x633   : > { %vm9748_vm10 = vcmp.ge.f32.partialorder %v9744_v28, 0.0  ;;  %v9752_v22 = vmul.f32 0.1, %v9744_v28 }
 0x634   : > { %vm9749_vm11 = vcmp.ge.f32.partialorder %v9745_v46, 0.0  ;;  %v9753_v56 = vmul.f32 0.1, %v9745_v46 }
 0x635   : > { %v9756_v62 = vsel %vm9748_vm10, %v9744_v28, %v9752_v22 }
 0x636   : > { %v9757_v33 = vsel %vm9749_vm11, %v9745_v46, %v9753_v56 }
 0x637   : > { %v12261_v23 = vpack.c.bf16 %v9757_v33, %v9756_v62 }
 0x639   : > { %v9781_v41 = vrot.slane %v12261_v23, %v9773_v57 }
 0x63b   : > { %v9782_v49 = vcombine.low %v9774_v63, %v9781_v41 }
 0x63d   : > { %v9789_v43 = vrot.slane %v9782_v49, %v9773_v57 }
 0x63f   : > { %v9807_v38 = vsel %vm9805_vm2, %v9789_v43, %v9806_v6 }
 0x640   : > { %9808 = vst [vmem:[%s270_s20] sm:$0xf] %v9807_v38 }
 0x641 PF: > { %s19_s19 = sadd.s32 1, %s14407_s19   ;;  %s16258_s12 = smov %s14383_s13 }
 0x642   : > { %p16_p5 = scmp.ge.s32.totalorder %s19_s19, 14   ;;  %s16259_s13 = smov %s14387_s14 }
 0x643   : > { %s16260_s14 = smov %s14503_s30  ;;  %s16261_s15 = smov %s14399_s17 }
 0x644   : > { %s16262_s16 = smov %s14403_s18  ;;  %s16263_s17 = smov %s16266_s21 }
 0x645   : > { %s16264_s18 = smov %s16270_s22  ;;  %18 = sbr.rel (!%p16_p5) target bundleno = 7 (0x7), region = 92 }
 0x64c   :  { %9837 = vsyncpa [#allocation3], 1 }
 0x64d   :  { %9839 = vsyncpa [#allocation3 + $0x1], 1 }
 0x64e   :  { %9840 = vsyncpa [#allocation5], 1 }
 0x64f   :  { %9842 = vsyncpa [#allocation5 + $0x1], 1 }

</bundles_post_ra>
